<compile_context>
chip_gen: v7x
topology: tpu7x:2x2x1
jax: 0.10.0
libtpu: 0.0.40
codegen_flags: <defaults>
</compile_context>

<pallas_src>
import functools

import jax
import jax.numpy as jnp
from jax.experimental import pallas as pl
from jax.experimental.pallas import tpu as pltpu


# --------------------------------------------------------------------------
# Fused Pallas kernel (one batch element per grid step)
# --------------------------------------------------------------------------
def _rdb_kernel(x_ref, mask_ref, wxs_ref, wh2_ref, wh3_ref, wh4_ref,
                w5x_ref, w5h_ref, bh_ref, b5_ref, se1_ref, se2_ref,
                o_ref, px_scr, ph_scr, fx_scr, *, H, W, Cin, G, slope):
    """All feature tensors are (channels, Sp_pad): flattened zero-padded
    spatial plane on the lane axis, halo & lane-pad columns masked to zero."""
    f32 = jnp.float32
    Wp = W + 2
    Sp_pad = x_ref.shape[-1]
    offs = [(dy - 1) * Wp + (dx - 1) for dy in range(3) for dx in range(3)]

    mask = mask_ref[...]                       # (1, Sp_pad): 1.0 on interior
    xv = x_ref[0].astype(f32)                  # (Cin, Sp_pad), zero halo/pad

    def put_patches(dst, row0, v, c):
        # dst[row0 + t*c + ci, p] = v[ci, p + offs[t]].  pltpu.roll wraps, but
        # wrapped columns only influence halo/pad outputs, which are masked
        # (conv1-4) or sliced away in the wrapper (conv5).
        for t, off in enumerate(offs):
            tap = v if off == 0 else pltpu.roll(v, shift=(-off) % Sp_pad, axis=1)
            dst[row0 + t * c:row0 + (t + 1) * c, :] = tap

    def row_sums(v):
        # Interior spatial sum per channel, as a (1, C) row (MXU NT dot).
        return jax.lax.dot_general(mask, v, (((1,), (1,)), ((), ())),
                                   preferred_element_type=f32)

    # ---- patches of x + all four "from x" partials in one wide stacked dot --
    put_patches(px_scr, 0, xv, Cin)
    fx_scr[...] = jnp.dot(wxs_ref[...], px_scr[...], preferred_element_type=f32)

    wh_refs = (None, wh2_ref, wh3_ref, wh4_ref)
    sums = []
    for k in range(1, 5):                                      # conv1..conv4
        acc = fx_scr[(k - 1) * G:k * G, :]
        if k > 1:                                              # one deep-K dot
            acc = acc + jnp.dot(wh_refs[k - 1][...],
                                ph_scr[0:(k - 1) * 9 * G, :],
                                preferred_element_type=f32)
        acc = acc + bh_ref[k - 1]
        act = jnp.where(acc >= 0, acc, slope * acc) * mask     # LeakyReLU, halo->0
        sums.append(row_sums(act))
        put_patches(ph_scr, (k - 1) * 9 * G, act, G)

    # ---- SE gate (channel order [x1..x4, x]; SE weights pre-permuted) -------
    sums.append(row_sums(xv))
    m_row = jnp.concatenate(sums, axis=1) * (1.0 / (H * W))         # (1, c_cat)
    h_row = jnp.maximum(jnp.dot(m_row, se1_ref[...],
                                preferred_element_type=f32), 0.0)
    gate = jax.nn.sigmoid(jnp.dot(h_row, se2_ref[...],
                                  preferred_element_type=f32))      # (1, c_cat)

    # ---- conv5: SE gate folded into the weight columns ----------------------
    s_x = jnp.concatenate([gate[:, 4 * G:4 * G + Cin]] * 9, axis=1)  # (1, 9*Cin)
    s_h = jnp.concatenate(
        [jnp.concatenate([gate[:, j * G:(j + 1) * G]] * 9, axis=1)
         for j in range(4)], axis=1)                                 # (1, 36*G)
    acc5 = jnp.dot(w5x_ref[...] * s_x, px_scr[...], preferred_element_type=f32)
    acc5 = acc5 + jnp.dot(w5h_ref[...] * s_h, ph_scr[...],
                          preferred_element_type=f32)
    acc5 = acc5 + b5_ref[...]
    o_ref[0] = acc5.astype(o_ref.dtype)


# --------------------------------------------------------------------------
# Wrapper: weight repacking + pallas_call
# --------------------------------------------------------------------------
def residual_dense_block_forward(x_nchw, p, *, growth=32, reduction=16, slope=0.01):
    B, Cin, H, W = x_nchw.shape
    G = growth
    c_cat = Cin + 4 * G
    c_red = c_cat // reduction
    Cout = p["w5"].shape[-1]
    Hp, Wp = H + 2, W + 2
    Sp = Hp * Wp
    Sp_pad = ((Sp + 127) // 128) * 128           # lane-dense spatial axis

    # Flattened, zero-padded (halo + lane pad) input: (B, Cin, Sp_pad).
    x_flat = jnp.pad(x_nchw, ((0, 0), (0, 0), (1, 1), (1, 1))).reshape(B, Cin, Sp)
    x_flat = jnp.pad(x_flat, ((0, 0), (0, 0), (0, Sp_pad - Sp)))

    # Interior-pixel mask over the flattened padded plane, (1, Sp_pad).
    pp = jnp.arange(Sp_pad, dtype=jnp.int32)
    ii, jj = pp // Wp, pp % Wp
    interior = ((pp < Sp) & (ii >= 1) & (ii <= H) & (jj >= 1) & (jj <= W))
    interior = interior.astype(x_nchw.dtype).reshape(1, Sp_pad)

    def split_sources(w_hwio, src_channels):
        # HWIO (3,3,sum(C),Cout_k) -> per-source (Cout_k, 9*C) matrices with
        # column order (dy*3+dx)*C + ci (matches the im2col row order).
        pieces, off = [], 0
        for c in src_channels:
            ws = w_hwio[:, :, off:off + c, :]
            pieces.append(ws.reshape(9 * c, -1).T)
            off += c
        return pieces

    wx_rows, wh_merged = [], []
    for k, wk in enumerate([p["w1"], p["w2"], p["w3"], p["w4"]], start=1):
        pcs = split_sources(wk, [Cin] + [G] * (k - 1))
        wx_rows.append(pcs[0])
        if k > 1:
            wh_merged.append(jnp.concatenate(pcs[1:], axis=1))
    wxs = jnp.concatenate(wx_rows, axis=0)            # (4*G, 9*Cin) conv1-4 from x
    wh2, wh3, wh4 = wh_merged                         # (G, 288/576/864)
    p5 = split_sources(p["w5"], [Cin] + [G] * 4)
    w5x = p5[0]                                       # (Cout, 9*Cin)
    w5h = jnp.concatenate(p5[1:], axis=1)             # (Cout, 36*G)

    bh = jnp.stack([p["b1"], p["b2"], p["b3"], p["b4"]], 0).reshape(4, G, 1)
    b5 = p["b5"].reshape(Cout, 1)

    # SE weights permuted to channel order [x1, x2, x3, x4, x] so the in-kernel
    # gate slices are 32-aligned.
    perm = jnp.concatenate([jnp.arange(Cin, c_cat), jnp.arange(Cin)])
    se1p = p["se_w1"][perm, :]                        # (c_cat, c_red)
    se2p = p["se_w2"][:, perm]                        # (c_red, c_cat)

    kernel = functools.partial(_rdb_kernel, H=H, W=W, Cin=Cin, G=G, slope=slope)

    scratch_rows = 9 * Cin + 36 * G + 4 * G
    est_vmem = 4 * Sp_pad * (scratch_rows + 2 * (Cin + Cout)) + (4 << 20)
    vmem_limit = int(min(96 << 20, max(32 << 20, 2 * est_vmem)))

    out_flat = pl.pallas_call(
        kernel,
        out_shape=jax.ShapeDtypeStruct((B, Cout, Sp_pad), x_nchw.dtype),
        grid=(B,),
        in_specs=[
            pl.BlockSpec((1, Cin, Sp_pad), lambda b: (b, 0, 0)),    # x
            pl.BlockSpec((1, Sp_pad), lambda b: (0, 0)),            # interior mask
            pl.BlockSpec((4 * G, 9 * Cin), lambda b: (0, 0)),       # conv1-4 from x
            pl.BlockSpec((G, 9 * G), lambda b: (0, 0)),             # conv2 from x1
            pl.BlockSpec((G, 18 * G), lambda b: (0, 0)),            # conv3 from x1..x2
            pl.BlockSpec((G, 27 * G), lambda b: (0, 0)),            # conv4 from x1..x3
            pl.BlockSpec((Cout, 9 * Cin), lambda b: (0, 0)),        # conv5 from x
            pl.BlockSpec((Cout, 36 * G), lambda b: (0, 0)),         # conv5 from x1..x4
            pl.BlockSpec((4, G, 1), lambda b: (0, 0, 0)),           # biases conv1-4
            pl.BlockSpec((Cout, 1), lambda b: (0, 0)),              # bias conv5
            pl.BlockSpec((c_cat, c_red), lambda b: (0, 0)),         # SE fc1 (permuted)
            pl.BlockSpec((c_red, c_cat), lambda b: (0, 0)),         # SE fc2 (permuted)
        ],
        out_specs=pl.BlockSpec((1, Cout, Sp_pad), lambda b: (b, 0, 0)),
        scratch_shapes=[
            pltpu.VMEM((9 * Cin, Sp_pad), jnp.float32),     # im2col patches of x
            pltpu.VMEM((36 * G, Sp_pad), jnp.float32),      # im2col patches of x1..x4
            pltpu.VMEM((4 * G, Sp_pad), jnp.float32),       # stacked "from x" partials
        ],
        compiler_params=pltpu.CompilerParams(
            dimension_semantics=("parallel",),
            vmem_limit_bytes=vmem_limit),
    )(x_flat, interior, wxs, wh2, wh3, wh4, w5x, w5h, bh, b5, se1p, se2p)

    out_flat = out_flat[:, :, :Sp].reshape(B, Cout, Hp, Wp)
    return out_flat[:, :, 1:H + 1, 1:W + 1]


# --------------------------------------------------------------------------
# Pure-JAX reference (for correctness check)
# --------------------------------------------------------------------------
def _conv_ref(x, w, b):
    y = jax.lax.conv_general_dilated(x, w, (1, 1), "SAME",
                                     dimension_numbers=("NHWC", "HWIO", "NHWC"))
    return y + b


def _lrelu(x, slope=0.01):
    return jnp.where(x >= 0, x, slope * x)


def reference_forward(x_nchw, p):
    x = jnp.transpose(x_nchw, (0, 2, 3, 1))
    x1 = _lrelu(_conv_ref(x, p["w1"], p["b1"]))
    x2 = _lrelu(_conv_ref(jnp.concatenate([x, x1], -1), p["w2"], p["b2"]))
    x3 = _lrelu(_conv_ref(jnp.concatenate([x, x1, x2], -1), p["w3"], p["b3"]))
    x4 = _lrelu(_conv_ref(jnp.concatenate([x, x1, x2, x3], -1), p["w4"], p["b4"]))
    cat = jnp.concatenate([x, x1, x2, x3, x4], -1)
    y = jnp.mean(cat, axis=(1, 2))                       # AdaptiveAvgPool2d(1)
    y = jnp.maximum(y @ p["se_w1"], 0.0)
    y = jax.nn.sigmoid(y @ p["se_w2"])
    se = cat * y[:, None, None, :]
    x5 = _conv_ref(se, p["w5"], p["b5"])
    return jnp.transpose(x5, (0, 3, 1, 2))


# --------------------------------------------------------------------------
# Deterministic parameter construction
# --------------------------------------------------------------------------
def make_params(key, cin, cout, growth=32, reduction=16, scale=0.1):
    keys = jax.random.split(key, 12)
    c_cat = cin + 4 * growth
    c_red = c_cat // reduction

    def nrm(k, shape):
        return scale * jax.random.normal(k, shape, jnp.float32)

    # NOTE: the torch module zero-scales conv5 via initialize_weights(..., 0.0);
    # we use small random weights instead so the kernel output is non-trivial.
    return {
        "w1": nrm(keys[0], (3, 3, cin, growth)),              "b1": nrm(keys[1], (growth,)),
        "w2": nrm(keys[2], (3, 3, cin + growth, growth)),     "b2": nrm(keys[3], (growth,)),
        "w3": nrm(keys[4], (3, 3, cin + 2 * growth, growth)), "b3": nrm(keys[5], (growth,)),
        "w4": nrm(keys[6], (3, 3, cin + 3 * growth, growth)), "b4": nrm(keys[7], (growth,)),
        "w5": nrm(keys[8], (3, 3, c_cat, cout)),              "b5": nrm(keys[9], (cout,)),
        "se_w1": nrm(keys[10], (c_cat, c_red)),
        "se_w2": nrm(keys[11], (c_red, c_cat)),
    }


# --------------------------------------------------------------------------
if __name__ == "__main__":
    key = jax.random.PRNGKey(0)
    k_x, k_p = jax.random.split(key)

    B, Cin, H, W = 2, 4, 16, 16
    Cout = 4

    x = jax.random.normal(k_x, (B, Cin, H, W), jnp.float32)   # NCHW, like PyTorch
    params = make_params(k_p, Cin, Cout)

    out = jax.block_until_ready(residual_dense_block_forward(x, params))
    ref = jax.block_until_ready(reference_forward(x, params))

    assert out.shape == (B, Cout, H, W), out.shape
    max_err = float(jnp.max(jnp.abs(out - ref)))
    assert jnp.allclose(out, ref, rtol=2e-4, atol=2e-4), max_err

    print("KERNEL_OK")
</pallas_src>

<mosaic_0001>
module attributes {stable_mosaic.version = 11 : i64} {
  func.func @_rdb_kernel(%arg0: i32, %arg1: memref<1x4x384xf32, #tpu.memory_space<vmem>>, %arg2: memref<1x384xf32, #tpu.memory_space<vmem>>, %arg3: memref<128x36xf32, #tpu.memory_space<vmem>>, %arg4: memref<32x288xf32, #tpu.memory_space<vmem>>, %arg5: memref<32x576xf32, #tpu.memory_space<vmem>>, %arg6: memref<32x864xf32, #tpu.memory_space<vmem>>, %arg7: memref<4x36xf32, #tpu.memory_space<vmem>>, %arg8: memref<4x1152xf32, #tpu.memory_space<vmem>>, %arg9: memref<4x32x1xf32, #tpu.memory_space<vmem>>, %arg10: memref<4x1xf32, #tpu.memory_space<vmem>>, %arg11: memref<132x8xf32, #tpu.memory_space<vmem>>, %arg12: memref<8x132xf32, #tpu.memory_space<vmem>>, %arg13: memref<1x4x384xf32, #tpu.memory_space<vmem>>, %arg14: memref<36x384xf32, #tpu.memory_space<vmem>>, %arg15: memref<1152x384xf32, #tpu.memory_space<vmem>>, %arg16: memref<128x384xf32, #tpu.memory_space<vmem>>) attributes {dimension_semantics = [#tpu.dimension_semantics<parallel>], iteration_bounds = array<i64: 2>, scalar_prefetch = 0 : i64, scratch_operands = 3 : i64, tpu.core_type = #tpu.core_type<tc>, window_params = [{transform_indices = @transform_0, window_bounds = array<i64: 1, 4, 384>}, {pipeline_mode = #tpu.pipeline_mode<synchronous>, transform_indices = @transform_1, window_bounds = array<i64: 1, 384>}, {pipeline_mode = #tpu.pipeline_mode<synchronous>, transform_indices = @transform_2, window_bounds = array<i64: 128, 36>}, {pipeline_mode = #tpu.pipeline_mode<synchronous>, transform_indices = @transform_3, window_bounds = array<i64: 32, 288>}, {pipeline_mode = #tpu.pipeline_mode<synchronous>, transform_indices = @transform_4, window_bounds = array<i64: 32, 576>}, {pipeline_mode = #tpu.pipeline_mode<synchronous>, transform_indices = @transform_5, window_bounds = array<i64: 32, 864>}, {pipeline_mode = #tpu.pipeline_mode<synchronous>, transform_indices = @transform_6, window_bounds = array<i64: 4, 36>}, {pipeline_mode = #tpu.pipeline_mode<synchronous>, transform_indices = @transform_7, window_bounds = array<i64: 4, 1152>}, {pipeline_mode = #tpu.pipeline_mode<synchronous>, transform_indices = @transform_8, window_bounds = array<i64: 4, 32, 1>}, {pipeline_mode = #tpu.pipeline_mode<synchronous>, transform_indices = @transform_9, window_bounds = array<i64: 4, 1>}, {pipeline_mode = #tpu.pipeline_mode<synchronous>, transform_indices = @transform_10, window_bounds = array<i64: 132, 8>}, {pipeline_mode = #tpu.pipeline_mode<synchronous>, transform_indices = @transform_11, window_bounds = array<i64: 8, 132>}, {transform_indices = @transform_12, window_bounds = array<i64: 1, 4, 384>}]} {
    %c0 = arith.constant 0 : index
    %c0_0 = arith.constant 0 : index
    %0 = vector.load %arg2[%c0, %c0_0] : memref<1x384xf32, #tpu.memory_space<vmem>>, vector<1x384xf32>
    %c0_1 = arith.constant 0 : index
    %c0_2 = arith.constant 0 : index
    %c0_3 = arith.constant 0 : index
    %1 = vector.load %arg1[%c0_1, %c0_2, %c0_3] : memref<1x4x384xf32, #tpu.memory_space<vmem>>, vector<1x4x384xf32>
    %2 = vector.shape_cast %1 : vector<1x4x384xf32> to vector<4x384xf32>
    %c19_i32 = arith.constant 19 : i32
    %3 = tpu.dynamic_rotate %2 by %c19_i32 dim 1 : vector<4x384xf32>, i32 -> vector<4x384xf32>
    %c0_4 = arith.constant 0 : index
    %c0_5 = arith.constant 0 : index
    %4 = vector.load %arg14[%c0_4, %c0_5] : memref<36x384xf32, #tpu.memory_space<vmem>>, vector<4x384xf32>
    tpu.vector_store %arg14[%c0_4, %c0_5], %3 {strides = array<i32>} : memref<36x384xf32, #tpu.memory_space<vmem>>, vector<4x384xf32>,
    %c18_i32 = arith.constant 18 : i32
    %5 = tpu.dynamic_rotate %2 by %c18_i32 dim 1 : vector<4x384xf32>, i32 -> vector<4x384xf32>
    %c4 = arith.constant 4 : index
    %c0_6 = arith.constant 0 : index
    %6 = vector.load %arg14[%c4, %c0_6] : memref<36x384xf32, #tpu.memory_space<vmem>>, vector<4x384xf32>
    tpu.vector_store %arg14[%c4, %c0_6], %5 {strides = array<i32>} : memref<36x384xf32, #tpu.memory_space<vmem>>, vector<4x384xf32>,
    %c17_i32 = arith.constant 17 : i32
    %7 = tpu.dynamic_rotate %2 by %c17_i32 dim 1 : vector<4x384xf32>, i32 -> vector<4x384xf32>
    %c8 = arith.constant 8 : index
    %c0_7 = arith.constant 0 : index
    %8 = vector.load %arg14[%c8, %c0_7] : memref<36x384xf32, #tpu.memory_space<vmem>>, vector<4x384xf32>
    tpu.vector_store %arg14[%c8, %c0_7], %7 {strides = array<i32>} : memref<36x384xf32, #tpu.memory_space<vmem>>, vector<4x384xf32>,
    %c1_i32 = arith.constant 1 : i32
    %9 = tpu.dynamic_rotate %2 by %c1_i32 dim 1 : vector<4x384xf32>, i32 -> vector<4x384xf32>
    %c12 = arith.constant 12 : index
    %c0_8 = arith.constant 0 : index
    %10 = vector.load %arg14[%c12, %c0_8] : memref<36x384xf32, #tpu.memory_space<vmem>>, vector<4x384xf32>
    tpu.vector_store %arg14[%c12, %c0_8], %9 {strides = array<i32>} : memref<36x384xf32, #tpu.memory_space<vmem>>, vector<4x384xf32>,
    %c16 = arith.constant 16 : index
    %c0_9 = arith.constant 0 : index
    %11 = vector.load %arg14[%c16, %c0_9] : memref<36x384xf32, #tpu.memory_space<vmem>>, vector<4x384xf32>
    tpu.vector_store %arg14[%c16, %c0_9], %2 {strides = array<i32>} : memref<36x384xf32, #tpu.memory_space<vmem>>, vector<4x384xf32>,
    %c383_i32 = arith.constant 383 : i32
    %12 = tpu.dynamic_rotate %2 by %c383_i32 dim 1 : vector<4x384xf32>, i32 -> vector<4x384xf32>
    %c20 = arith.constant 20 : index
    %c0_10 = arith.constant 0 : index
    %13 = vector.load %arg14[%c20, %c0_10] : memref<36x384xf32, #tpu.memory_space<vmem>>, vector<4x384xf32>
    tpu.vector_store %arg14[%c20, %c0_10], %12 {strides = array<i32>} : memref<36x384xf32, #tpu.memory_space<vmem>>, vector<4x384xf32>,
    %c367_i32 = arith.constant 367 : i32
    %14 = tpu.dynamic_rotate %2 by %c367_i32 dim 1 : vector<4x384xf32>, i32 -> vector<4x384xf32>
    %c24 = arith.constant 24 : index
    %c0_11 = arith.constant 0 : index
    %15 = vector.load %arg14[%c24, %c0_11] : memref<36x384xf32, #tpu.memory_space<vmem>>, vector<4x384xf32>
    tpu.vector_store %arg14[%c24, %c0_11], %14 {strides = array<i32>} : memref<36x384xf32, #tpu.memory_space<vmem>>, vector<4x384xf32>,
    %c366_i32 = arith.constant 366 : i32
    %16 = tpu.dynamic_rotate %2 by %c366_i32 dim 1 : vector<4x384xf32>, i32 -> vector<4x384xf32>
    %c28 = arith.constant 28 : index
    %c0_12 = arith.constant 0 : index
    %17 = vector.load %arg14[%c28, %c0_12] : memref<36x384xf32, #tpu.memory_space<vmem>>, vector<4x384xf32>
    tpu.vector_store %arg14[%c28, %c0_12], %16 {strides = array<i32>} : memref<36x384xf32, #tpu.memory_space<vmem>>, vector<4x384xf32>,
    %c365_i32 = arith.constant 365 : i32
    %18 = tpu.dynamic_rotate %2 by %c365_i32 dim 1 : vector<4x384xf32>, i32 -> vector<4x384xf32>
    %c32 = arith.constant 32 : index
    %c0_13 = arith.constant 0 : index
    %19 = vector.load %arg14[%c32, %c0_13] : memref<36x384xf32, #tpu.memory_space<vmem>>, vector<4x384xf32>
    tpu.vector_store %arg14[%c32, %c0_13], %18 {strides = array<i32>} : memref<36x384xf32, #tpu.memory_space<vmem>>, vector<4x384xf32>,
    %c0_14 = arith.constant 0 : index
    %c0_15 = arith.constant 0 : index
    %20 = vector.load %arg3[%c0_14, %c0_15] : memref<128x36xf32, #tpu.memory_space<vmem>>, vector<128x36xf32>
    %c0_16 = arith.constant 0 : index
    %c0_17 = arith.constant 0 : index
    %21 = vector.load %arg14[%c0_16, %c0_17] : memref<36x384xf32, #tpu.memory_space<vmem>>, vector<36x384xf32>
    %cst = arith.constant dense<0.000000e+00> : vector<128x384xf32>
    %22 = tpu.matmul %20, %21, %cst {dimension_numbers = #tpu.dot_dimension_numbers<[1], [0], [0], [1], [0, 0, 1, 1], [], []>} : vector<128x36xf32>, vector<36x384xf32>, vector<128x384xf32> -> vector<128x384xf32>
    %c0_18 = arith.constant 0 : index
    %c0_19 = arith.constant 0 : index
    %23 = vector.load %arg16[%c0_18, %c0_19] : memref<128x384xf32, #tpu.memory_space<vmem>>, vector<128x384xf32>
    tpu.vector_store %arg16[%c0_18, %c0_19], %22 {strides = array<i32>} : memref<128x384xf32, #tpu.memory_space<vmem>>, vector<128x384xf32>,
    %c0_20 = arith.constant 0 : index
    %c0_21 = arith.constant 0 : index
    %24 = vector.load %arg16[%c0_20, %c0_21] : memref<128x384xf32, #tpu.memory_space<vmem>>, vector<32x384xf32>
    %c0_22 = arith.constant 0 : index
    %c0_23 = arith.constant 0 : index
    %c0_24 = arith.constant 0 : index
    %25 = vector.load %arg9[%c0_22, %c0_23, %c0_24] : memref<4x32x1xf32, #tpu.memory_space<vmem>>, vector<1x32x1xf32>
    %26 = vector.shape_cast %25 : vector<1x32x1xf32> to vector<32x1xf32>
    %27 = vector.broadcast %26 : vector<32x1xf32> to vector<32x384xf32>
    %28 = arith.addf %24, %27 : vector<32x384xf32>
    %cst_25 = arith.constant 0.000000e+00 : f32
    %29 = vector.broadcast %cst_25 : f32 to vector<32x384xf32>
    %30 = arith.cmpf oge, %28, %29 : vector<32x384xf32>
    %cst_26 = arith.constant 0.00999999977 : f32
    %31 = vector.broadcast %cst_26 : f32 to vector<32x384xf32>
    %32 = arith.mulf %31, %28 : vector<32x384xf32>
    %33 = arith.select %30, %28, %32 : vector<32x384xi1>, vector<32x384xf32>
    %34 = vector.broadcast %0 : vector<1x384xf32> to vector<32x384xf32>
    %35 = arith.mulf %33, %34 : vector<32x384xf32>
    %cst_27 = arith.constant dense<0.000000e+00> : vector<1x32xf32>
    %36 = tpu.matmul %0, %35, %cst_27 {dimension_numbers = #tpu.dot_dimension_numbers<[1], [1], [0], [0], [0, 0, 1, 0], [], []>} : vector<1x384xf32>, vector<32x384xf32>, vector<1x32xf32> -> vector<1x32xf32>
    %c19_i32_28 = arith.constant 19 : i32
    %37 = tpu.dynamic_rotate %35 by %c19_i32_28 dim 1 : vector<32x384xf32>, i32 -> vector<32x384xf32>
    %c0_29 = arith.constant 0 : index
    %c0_30 = arith.constant 0 : index
    %38 = vector.load %arg15[%c0_29, %c0_30] : memref<1152x384xf32, #tpu.memory_space<vmem>>, vector<32x384xf32>
    tpu.vector_store %arg15[%c0_29, %c0_30], %37 {strides = array<i32>} : memref<1152x384xf32, #tpu.memory_space<vmem>>, vector<32x384xf32>,
    %c18_i32_31 = arith.constant 18 : i32
    %39 = tpu.dynamic_rotate %35 by %c18_i32_31 dim 1 : vector<32x384xf32>, i32 -> vector<32x384xf32>
    %c32_32 = arith.constant 32 : index
    %c0_33 = arith.constant 0 : index
    %40 = vector.load %arg15[%c32_32, %c0_33] : memref<1152x384xf32, #tpu.memory_space<vmem>>, vector<32x384xf32>
    tpu.vector_store %arg15[%c32_32, %c0_33], %39 {strides = array<i32>} : memref<1152x384xf32, #tpu.memory_space<vmem>>, vector<32x384xf32>,
    %c17_i32_34 = arith.constant 17 : i32
    %41 = tpu.dynamic_rotate %35 by %c17_i32_34 dim 1 : vector<32x384xf32>, i32 -> vector<32x384xf32>
    %c64 = arith.constant 64 : index
    %c0_35 = arith.constant 0 : index
    %42 = vector.load %arg15[%c64, %c0_35] : memref<1152x384xf32, #tpu.memory_space<vmem>>, vector<32x384xf32>
    tpu.vector_store %arg15[%c64, %c0_35], %41 {strides = array<i32>} : memref<1152x384xf32, #tpu.memory_space<vmem>>, vector<32x384xf32>,
    %c1_i32_36 = arith.constant 1 : i32
    %43 = tpu.dynamic_rotate %35 by %c1_i32_36 dim 1 : vector<32x384xf32>, i32 -> vector<32x384xf32>
    %c96 = arith.constant 96 : index
    %c0_37 = arith.constant 0 : index
    %44 = vector.load %arg15[%c96, %c0_37] : memref<1152x384xf32, #tpu.memory_space<vmem>>, vector<32x384xf32>
    tpu.vector_store %arg15[%c96, %c0_37], %43 {strides = array<i32>} : memref<1152x384xf32, #tpu.memory_space<vmem>>, vector<32x384xf32>,
    %c128 = arith.constant 128 : index
    %c0_38 = arith.constant 0 : index
    %45 = vector.load %arg15[%c128, %c0_38] : memref<1152x384xf32, #tpu.memory_space<vmem>>, vector<32x384xf32>
    tpu.vector_store %arg15[%c128, %c0_38], %35 {strides = array<i32>} : memref<1152x384xf32, #tpu.memory_space<vmem>>, vector<32x384xf32>,
    %c383_i32_39 = arith.constant 383 : i32
    %46 = tpu.dynamic_rotate %35 by %c383_i32_39 dim 1 : vector<32x384xf32>, i32 -> vector<32x384xf32>
    %c160 = arith.constant 160 : index
    %c0_40 = arith.constant 0 : index
    %47 = vector.load %arg15[%c160, %c0_40] : memref<1152x384xf32, #tpu.memory_space<vmem>>, vector<32x384xf32>
    tpu.vector_store %arg15[%c160, %c0_40], %46 {strides = array<i32>} : memref<1152x384xf32, #tpu.memory_space<vmem>>, vector<32x384xf32>,
    %c367_i32_41 = arith.constant 367 : i32
    %48 = tpu.dynamic_rotate %35 by %c367_i32_41 dim 1 : vector<32x384xf32>, i32 -> vector<32x384xf32>
    %c192 = arith.constant 192 : index
    %c0_42 = arith.constant 0 : index
    %49 = vector.load %arg15[%c192, %c0_42] : memref<1152x384xf32, #tpu.memory_space<vmem>>, vector<32x384xf32>
    tpu.vector_store %arg15[%c192, %c0_42], %48 {strides = array<i32>} : memref<1152x384xf32, #tpu.memory_space<vmem>>, vector<32x384xf32>,
    %c366_i32_43 = arith.constant 366 : i32
    %50 = tpu.dynamic_rotate %35 by %c366_i32_43 dim 1 : vector<32x384xf32>, i32 -> vector<32x384xf32>
    %c224 = arith.constant 224 : index
    %c0_44 = arith.constant 0 : index
    %51 = vector.load %arg15[%c224, %c0_44] : memref<1152x384xf32, #tpu.memory_space<vmem>>, vector<32x384xf32>
    tpu.vector_store %arg15[%c224, %c0_44], %50 {strides = array<i32>} : memref<1152x384xf32, #tpu.memory_space<vmem>>, vector<32x384xf32>,
    %c365_i32_45 = arith.constant 365 : i32
    %52 = tpu.dynamic_rotate %35 by %c365_i32_45 dim 1 : vector<32x384xf32>, i32 -> vector<32x384xf32>
    %c256 = arith.constant 256 : index
    %c0_46 = arith.constant 0 : index
    %53 = vector.load %arg15[%c256, %c0_46] : memref<1152x384xf32, #tpu.memory_space<vmem>>, vector<32x384xf32>
    tpu.vector_store %arg15[%c256, %c0_46], %52 {strides = array<i32>} : memref<1152x384xf32, #tpu.memory_space<vmem>>, vector<32x384xf32>,
    %c32_47 = arith.constant 32 : index
    %c0_48 = arith.constant 0 : index
    %54 = vector.load %arg16[%c32_47, %c0_48] : memref<128x384xf32, #tpu.memory_space<vmem>>, vector<32x384xf32>
    %c0_49 = arith.constant 0 : index
    %c0_50 = arith.constant 0 : index
    %55 = vector.load %arg4[%c0_49, %c0_50] : memref<32x288xf32, #tpu.memory_space<vmem>>, vector<32x288xf32>
    %c0_51 = arith.constant 0 : index
    %c0_52 = arith.constant 0 : index
    %56 = vector.load %arg15[%c0_51, %c0_52] : memref<1152x384xf32, #tpu.memory_space<vmem>>, vector<288x384xf32>
    %cst_53 = arith.constant dense<0.000000e+00> : vector<32x384xf32>
    %57 = tpu.matmul %55, %56, %cst_53 {dimension_numbers = #tpu.dot_dimension_numbers<[1], [0], [0], [1], [0, 0, 1, 1], [], []>} : vector<32x288xf32>, vector<288x384xf32>, vector<32x384xf32> -> vector<32x384xf32>
    %58 = arith.addf %54, %57 : vector<32x384xf32>
    %c1 = arith.constant 1 : index
    %c0_54 = arith.constant 0 : index
    %c0_55 = arith.constant 0 : index
    %59 = vector.load %arg9[%c1, %c0_54, %c0_55] : memref<4x32x1xf32, #tpu.memory_space<vmem>>, vector<1x32x1xf32>
    %60 = vector.shape_cast %59 : vector<1x32x1xf32> to vector<32x1xf32>
    %61 = vector.broadcast %60 : vector<32x1xf32> to vector<32x384xf32>
    %62 = arith.addf %58, %61 : vector<32x384xf32>
    %cst_56 = arith.constant 0.000000e+00 : f32
    %63 = vector.broadcast %cst_56 : f32 to vector<32x384xf32>
    %64 = arith.cmpf oge, %62, %63 : vector<32x384xf32>
    %cst_57 = arith.constant 0.00999999977 : f32
    %65 = vector.broadcast %cst_57 : f32 to vector<32x384xf32>
    %66 = arith.mulf %65, %62 : vector<32x384xf32>
    %67 = arith.select %64, %62, %66 : vector<32x384xi1>, vector<32x384xf32>
    %68 = vector.broadcast %0 : vector<1x384xf32> to vector<32x384xf32>
    %69 = arith.mulf %67, %68 : vector<32x384xf32>
    %cst_58 = arith.constant dense<0.000000e+00> : vector<1x32xf32>
    %70 = tpu.matmul %0, %69, %cst_58 {dimension_numbers = #tpu.dot_dimension_numbers<[1], [1], [0], [0], [0, 0, 1, 0], [], []>} : vector<1x384xf32>, vector<32x384xf32>, vector<1x32xf32> -> vector<1x32xf32>
    %c19_i32_59 = arith.constant 19 : i32
    %71 = tpu.dynamic_rotate %69 by %c19_i32_59 dim 1 : vector<32x384xf32>, i32 -> vector<32x384xf32>
    %c288 = arith.constant 288 : index
    %c0_60 = arith.constant 0 : index
    %72 = vector.load %arg15[%c288, %c0_60] : memref<1152x384xf32, #tpu.memory_space<vmem>>, vector<32x384xf32>
    tpu.vector_store %arg15[%c288, %c0_60], %71 {strides = array<i32>} : memref<1152x384xf32, #tpu.memory_space<vmem>>, vector<32x384xf32>,
    %c18_i32_61 = arith.constant 18 : i32
    %73 = tpu.dynamic_rotate %69 by %c18_i32_61 dim 1 : vector<32x384xf32>, i32 -> vector<32x384xf32>
    %c320 = arith.constant 320 : index
    %c0_62 = arith.constant 0 : index
    %74 = vector.load %arg15[%c320, %c0_62] : memref<1152x384xf32, #tpu.memory_space<vmem>>, vector<32x384xf32>
    tpu.vector_store %arg15[%c320, %c0_62], %73 {strides = array<i32>} : memref<1152x384xf32, #tpu.memory_space<vmem>>, vector<32x384xf32>,
    %c17_i32_63 = arith.constant 17 : i32
    %75 = tpu.dynamic_rotate %69 by %c17_i32_63 dim 1 : vector<32x384xf32>, i32 -> vector<32x384xf32>
    %c352 = arith.constant 352 : index
    %c0_64 = arith.constant 0 : index
    %76 = vector.load %arg15[%c352, %c0_64] : memref<1152x384xf32, #tpu.memory_space<vmem>>, vector<32x384xf32>
    tpu.vector_store %arg15[%c352, %c0_64], %75 {strides = array<i32>} : memref<1152x384xf32, #tpu.memory_space<vmem>>, vector<32x384xf32>,
    %c1_i32_65 = arith.constant 1 : i32
    %77 = tpu.dynamic_rotate %69 by %c1_i32_65 dim 1 : vector<32x384xf32>, i32 -> vector<32x384xf32>
    %c384 = arith.constant 384 : index
    %c0_66 = arith.constant 0 : index
    %78 = vector.load %arg15[%c384, %c0_66] : memref<1152x384xf32, #tpu.memory_space<vmem>>, vector<32x384xf32>
    tpu.vector_store %arg15[%c384, %c0_66], %77 {strides = array<i32>} : memref<1152x384xf32, #tpu.memory_space<vmem>>, vector<32x384xf32>,
    %c416 = arith.constant 416 : index
    %c0_67 = arith.constant 0 : index
    %79 = vector.load %arg15[%c416, %c0_67] : memref<1152x384xf32, #tpu.memory_space<vmem>>, vector<32x384xf32>
    tpu.vector_store %arg15[%c416, %c0_67], %69 {strides = array<i32>} : memref<1152x384xf32, #tpu.memory_space<vmem>>, vector<32x384xf32>,
    %c383_i32_68 = arith.constant 383 : i32
    %80 = tpu.dynamic_rotate %69 by %c383_i32_68 dim 1 : vector<32x384xf32>, i32 -> vector<32x384xf32>
    %c448 = arith.constant 448 : index
    %c0_69 = arith.constant 0 : index
    %81 = vector.load %arg15[%c448, %c0_69] : memref<1152x384xf32, #tpu.memory_space<vmem>>, vector<32x384xf32>
    tpu.vector_store %arg15[%c448, %c0_69], %80 {strides = array<i32>} : memref<1152x384xf32, #tpu.memory_space<vmem>>, vector<32x384xf32>,
    %c367_i32_70 = arith.constant 367 : i32
    %82 = tpu.dynamic_rotate %69 by %c367_i32_70 dim 1 : vector<32x384xf32>, i32 -> vector<32x384xf32>
    %c480 = arith.constant 480 : index
    %c0_71 = arith.constant 0 : index
    %83 = vector.load %arg15[%c480, %c0_71] : memref<1152x384xf32, #tpu.memory_space<vmem>>, vector<32x384xf32>
    tpu.vector_store %arg15[%c480, %c0_71], %82 {strides = array<i32>} : memref<1152x384xf32, #tpu.memory_space<vmem>>, vector<32x384xf32>,
    %c366_i32_72 = arith.constant 366 : i32
    %84 = tpu.dynamic_rotate %69 by %c366_i32_72 dim 1 : vector<32x384xf32>, i32 -> vector<32x384xf32>
    %c512 = arith.constant 512 : index
    %c0_73 = arith.constant 0 : index
    %85 = vector.load %arg15[%c512, %c0_73] : memref<1152x384xf32, #tpu.memory_space<vmem>>, vector<32x384xf32>
    tpu.vector_store %arg15[%c512, %c0_73], %84 {strides = array<i32>} : memref<1152x384xf32, #tpu.memory_space<vmem>>, vector<32x384xf32>,
    %c365_i32_74 = arith.constant 365 : i32
    %86 = tpu.dynamic_rotate %69 by %c365_i32_74 dim 1 : vector<32x384xf32>, i32 -> vector<32x384xf32>
    %c544 = arith.constant 544 : index
    %c0_75 = arith.constant 0 : index
    %87 = vector.load %arg15[%c544, %c0_75] : memref<1152x384xf32, #tpu.memory_space<vmem>>, vector<32x384xf32>
    tpu.vector_store %arg15[%c544, %c0_75], %86 {strides = array<i32>} : memref<1152x384xf32, #tpu.memory_space<vmem>>, vector<32x384xf32>,
    %c64_76 = arith.constant 64 : index
    %c0_77 = arith.constant 0 : index
    %88 = vector.load %arg16[%c64_76, %c0_77] : memref<128x384xf32, #tpu.memory_space<vmem>>, vector<32x384xf32>
    %c0_78 = arith.constant 0 : index
    %c0_79 = arith.constant 0 : index
    %89 = vector.load %arg5[%c0_78, %c0_79] : memref<32x576xf32, #tpu.memory_space<vmem>>, vector<32x576xf32>
    %c0_80 = arith.constant 0 : index
    %c0_81 = arith.constant 0 : index
    %90 = vector.load %arg15[%c0_80, %c0_81] : memref<1152x384xf32, #tpu.memory_space<vmem>>, vector<576x384xf32>
    %cst_82 = arith.constant dense<0.000000e+00> : vector<32x384xf32>
    %91 = tpu.matmul %89, %90, %cst_82 {dimension_numbers = #tpu.dot_dimension_numbers<[1], [0], [0], [1], [0, 0, 1, 1], [], []>} : vector<32x576xf32>, vector<576x384xf32>, vector<32x384xf32> -> vector<32x384xf32>
    %92 = arith.addf %88, %91 : vector<32x384xf32>
    %c2 = arith.constant 2 : index
    %c0_83 = arith.constant 0 : index
    %c0_84 = arith.constant 0 : index
    %93 = vector.load %arg9[%c2, %c0_83, %c0_84] : memref<4x32x1xf32, #tpu.memory_space<vmem>>, vector<1x32x1xf32>
    %94 = vector.shape_cast %93 : vector<1x32x1xf32> to vector<32x1xf32>
    %95 = vector.broadcast %94 : vector<32x1xf32> to vector<32x384xf32>
    %96 = arith.addf %92, %95 : vector<32x384xf32>
    %cst_85 = arith.constant 0.000000e+00 : f32
    %97 = vector.broadcast %cst_85 : f32 to vector<32x384xf32>
    %98 = arith.cmpf oge, %96, %97 : vector<32x384xf32>
    %cst_86 = arith.constant 0.00999999977 : f32
    %99 = vector.broadcast %cst_86 : f32 to vector<32x384xf32>
    %100 = arith.mulf %99, %96 : vector<32x384xf32>
    %101 = arith.select %98, %96, %100 : vector<32x384xi1>, vector<32x384xf32>
    %102 = vector.broadcast %0 : vector<1x384xf32> to vector<32x384xf32>
    %103 = arith.mulf %101, %102 : vector<32x384xf32>
    %cst_87 = arith.constant dense<0.000000e+00> : vector<1x32xf32>
    %104 = tpu.matmul %0, %103, %cst_87 {dimension_numbers = #tpu.dot_dimension_numbers<[1], [1], [0], [0], [0, 0, 1, 0], [], []>} : vector<1x384xf32>, vector<32x384xf32>, vector<1x32xf32> -> vector<1x32xf32>
    %c19_i32_88 = arith.constant 19 : i32
    %105 = tpu.dynamic_rotate %103 by %c19_i32_88 dim 1 : vector<32x384xf32>, i32 -> vector<32x384xf32>
    %c576 = arith.constant 576 : index
    %c0_89 = arith.constant 0 : index
    %106 = vector.load %arg15[%c576, %c0_89] : memref<1152x384xf32, #tpu.memory_space<vmem>>, vector<32x384xf32>
    tpu.vector_store %arg15[%c576, %c0_89], %105 {strides = array<i32>} : memref<1152x384xf32, #tpu.memory_space<vmem>>, vector<32x384xf32>,
    %c18_i32_90 = arith.constant 18 : i32
    %107 = tpu.dynamic_rotate %103 by %c18_i32_90 dim 1 : vector<32x384xf32>, i32 -> vector<32x384xf32>
    %c608 = arith.constant 608 : index
    %c0_91 = arith.constant 0 : index
    %108 = vector.load %arg15[%c608, %c0_91] : memref<1152x384xf32, #tpu.memory_space<vmem>>, vector<32x384xf32>
    tpu.vector_store %arg15[%c608, %c0_91], %107 {strides = array<i32>} : memref<1152x384xf32, #tpu.memory_space<vmem>>, vector<32x384xf32>,
    %c17_i32_92 = arith.constant 17 : i32
    %109 = tpu.dynamic_rotate %103 by %c17_i32_92 dim 1 : vector<32x384xf32>, i32 -> vector<32x384xf32>
    %c640 = arith.constant 640 : index
    %c0_93 = arith.constant 0 : index
    %110 = vector.load %arg15[%c640, %c0_93] : memref<1152x384xf32, #tpu.memory_space<vmem>>, vector<32x384xf32>
    tpu.vector_store %arg15[%c640, %c0_93], %109 {strides = array<i32>} : memref<1152x384xf32, #tpu.memory_space<vmem>>, vector<32x384xf32>,
    %c1_i32_94 = arith.constant 1 : i32
    %111 = tpu.dynamic_rotate %103 by %c1_i32_94 dim 1 : vector<32x384xf32>, i32 -> vector<32x384xf32>
    %c672 = arith.constant 672 : index
    %c0_95 = arith.constant 0 : index
    %112 = vector.load %arg15[%c672, %c0_95] : memref<1152x384xf32, #tpu.memory_space<vmem>>, vector<32x384xf32>
    tpu.vector_store %arg15[%c672, %c0_95], %111 {strides = array<i32>} : memref<1152x384xf32, #tpu.memory_space<vmem>>, vector<32x384xf32>,
    %c704 = arith.constant 704 : index
    %c0_96 = arith.constant 0 : index
    %113 = vector.load %arg15[%c704, %c0_96] : memref<1152x384xf32, #tpu.memory_space<vmem>>, vector<32x384xf32>
    tpu.vector_store %arg15[%c704, %c0_96], %103 {strides = array<i32>} : memref<1152x384xf32, #tpu.memory_space<vmem>>, vector<32x384xf32>,
    %c383_i32_97 = arith.constant 383 : i32
    %114 = tpu.dynamic_rotate %103 by %c383_i32_97 dim 1 : vector<32x384xf32>, i32 -> vector<32x384xf32>
    %c736 = arith.constant 736 : index
    %c0_98 = arith.constant 0 : index
    %115 = vector.load %arg15[%c736, %c0_98] : memref<1152x384xf32, #tpu.memory_space<vmem>>, vector<32x384xf32>
    tpu.vector_store %arg15[%c736, %c0_98], %114 {strides = array<i32>} : memref<1152x384xf32, #tpu.memory_space<vmem>>, vector<32x384xf32>,
    %c367_i32_99 = arith.constant 367 : i32
    %116 = tpu.dynamic_rotate %103 by %c367_i32_99 dim 1 : vector<32x384xf32>, i32 -> vector<32x384xf32>
    %c768 = arith.constant 768 : index
    %c0_100 = arith.constant 0 : index
    %117 = vector.load %arg15[%c768, %c0_100] : memref<1152x384xf32, #tpu.memory_space<vmem>>, vector<32x384xf32>
    tpu.vector_store %arg15[%c768, %c0_100], %116 {strides = array<i32>} : memref<1152x384xf32, #tpu.memory_space<vmem>>, vector<32x384xf32>,
    %c366_i32_101 = arith.constant 366 : i32
    %118 = tpu.dynamic_rotate %103 by %c366_i32_101 dim 1 : vector<32x384xf32>, i32 -> vector<32x384xf32>
    %c800 = arith.constant 800 : index
    %c0_102 = arith.constant 0 : index
    %119 = vector.load %arg15[%c800, %c0_102] : memref<1152x384xf32, #tpu.memory_space<vmem>>, vector<32x384xf32>
    tpu.vector_store %arg15[%c800, %c0_102], %118 {strides = array<i32>} : memref<1152x384xf32, #tpu.memory_space<vmem>>, vector<32x384xf32>,
    %c365_i32_103 = arith.constant 365 : i32
    %120 = tpu.dynamic_rotate %103 by %c365_i32_103 dim 1 : vector<32x384xf32>, i32 -> vector<32x384xf32>
    %c832 = arith.constant 832 : index
    %c0_104 = arith.constant 0 : index
    %121 = vector.load %arg15[%c832, %c0_104] : memref<1152x384xf32, #tpu.memory_space<vmem>>, vector<32x384xf32>
    tpu.vector_store %arg15[%c832, %c0_104], %120 {strides = array<i32>} : memref<1152x384xf32, #tpu.memory_space<vmem>>, vector<32x384xf32>,
    %c96_105 = arith.constant 96 : index
    %c0_106 = arith.constant 0 : index
    %122 = vector.load %arg16[%c96_105, %c0_106] : memref<128x384xf32, #tpu.memory_space<vmem>>, vector<32x384xf32>
    %c0_107 = arith.constant 0 : index
    %c0_108 = arith.constant 0 : index
    %123 = vector.load %arg6[%c0_107, %c0_108] : memref<32x864xf32, #tpu.memory_space<vmem>>, vector<32x864xf32>
    %c0_109 = arith.constant 0 : index
    %c0_110 = arith.constant 0 : index
    %124 = vector.load %arg15[%c0_109, %c0_110] : memref<1152x384xf32, #tpu.memory_space<vmem>>, vector<864x384xf32>
    %cst_111 = arith.constant dense<0.000000e+00> : vector<32x384xf32>
    %125 = tpu.matmul %123, %124, %cst_111 {dimension_numbers = #tpu.dot_dimension_numbers<[1], [0], [0], [1], [0, 0, 1, 1], [], []>} : vector<32x864xf32>, vector<864x384xf32>, vector<32x384xf32> -> vector<32x384xf32>
    %126 = arith.addf %122, %125 : vector<32x384xf32>
    %c3 = arith.constant 3 : index
    %c0_112 = arith.constant 0 : index
    %c0_113 = arith.constant 0 : index
    %127 = vector.load %arg9[%c3, %c0_112, %c0_113] : memref<4x32x1xf32, #tpu.memory_space<vmem>>, vector<1x32x1xf32>
    %128 = vector.shape_cast %127 : vector<1x32x1xf32> to vector<32x1xf32>
    %129 = vector.broadcast %128 : vector<32x1xf32> to vector<32x384xf32>
    %130 = arith.addf %126, %129 : vector<32x384xf32>
    %cst_114 = arith.constant 0.000000e+00 : f32
    %131 = vector.broadcast %cst_114 : f32 to vector<32x384xf32>
    %132 = arith.cmpf oge, %130, %131 : vector<32x384xf32>
    %cst_115 = arith.constant 0.00999999977 : f32
    %133 = vector.broadcast %cst_115 : f32 to vector<32x384xf32>
    %134 = arith.mulf %133, %130 : vector<32x384xf32>
    %135 = arith.select %132, %130, %134 : vector<32x384xi1>, vector<32x384xf32>
    %136 = vector.broadcast %0 : vector<1x384xf32> to vector<32x384xf32>
    %137 = arith.mulf %135, %136 : vector<32x384xf32>
    %cst_116 = arith.constant dense<0.000000e+00> : vector<1x32xf32>
    %138 = tpu.matmul %0, %137, %cst_116 {dimension_numbers = #tpu.dot_dimension_numbers<[1], [1], [0], [0], [0, 0, 1, 0], [], []>} : vector<1x384xf32>, vector<32x384xf32>, vector<1x32xf32> -> vector<1x32xf32>
    %c19_i32_117 = arith.constant 19 : i32
    %139 = tpu.dynamic_rotate %137 by %c19_i32_117 dim 1 : vector<32x384xf32>, i32 -> vector<32x384xf32>
    %c864 = arith.constant 864 : index
    %c0_118 = arith.constant 0 : index
    %140 = vector.load %arg15[%c864, %c0_118] : memref<1152x384xf32, #tpu.memory_space<vmem>>, vector<32x384xf32>
    tpu.vector_store %arg15[%c864, %c0_118], %139 {strides = array<i32>} : memref<1152x384xf32, #tpu.memory_space<vmem>>, vector<32x384xf32>,
    %c18_i32_119 = arith.constant 18 : i32
    %141 = tpu.dynamic_rotate %137 by %c18_i32_119 dim 1 : vector<32x384xf32>, i32 -> vector<32x384xf32>
    %c896 = arith.constant 896 : index
    %c0_120 = arith.constant 0 : index
    %142 = vector.load %arg15[%c896, %c0_120] : memref<1152x384xf32, #tpu.memory_space<vmem>>, vector<32x384xf32>
    tpu.vector_store %arg15[%c896, %c0_120], %141 {strides = array<i32>} : memref<1152x384xf32, #tpu.memory_space<vmem>>, vector<32x384xf32>,
    %c17_i32_121 = arith.constant 17 : i32
    %143 = tpu.dynamic_rotate %137 by %c17_i32_121 dim 1 : vector<32x384xf32>, i32 -> vector<32x384xf32>
    %c928 = arith.constant 928 : index
    %c0_122 = arith.constant 0 : index
    %144 = vector.load %arg15[%c928, %c0_122] : memref<1152x384xf32, #tpu.memory_space<vmem>>, vector<32x384xf32>
    tpu.vector_store %arg15[%c928, %c0_122], %143 {strides = array<i32>} : memref<1152x384xf32, #tpu.memory_space<vmem>>, vector<32x384xf32>,
    %c1_i32_123 = arith.constant 1 : i32
    %145 = tpu.dynamic_rotate %137 by %c1_i32_123 dim 1 : vector<32x384xf32>, i32 -> vector<32x384xf32>
    %c960 = arith.constant 960 : index
    %c0_124 = arith.constant 0 : index
    %146 = vector.load %arg15[%c960, %c0_124] : memref<1152x384xf32, #tpu.memory_space<vmem>>, vector<32x384xf32>
    tpu.vector_store %arg15[%c960, %c0_124], %145 {strides = array<i32>} : memref<1152x384xf32, #tpu.memory_space<vmem>>, vector<32x384xf32>,
    %c992 = arith.constant 992 : index
    %c0_125 = arith.constant 0 : index
    %147 = vector.load %arg15[%c992, %c0_125] : memref<1152x384xf32, #tpu.memory_space<vmem>>, vector<32x384xf32>
    tpu.vector_store %arg15[%c992, %c0_125], %137 {strides = array<i32>} : memref<1152x384xf32, #tpu.memory_space<vmem>>, vector<32x384xf32>,
    %c383_i32_126 = arith.constant 383 : i32
    %148 = tpu.dynamic_rotate %137 by %c383_i32_126 dim 1 : vector<32x384xf32>, i32 -> vector<32x384xf32>
    %c1024 = arith.constant 1024 : index
    %c0_127 = arith.constant 0 : index
    %149 = vector.load %arg15[%c1024, %c0_127] : memref<1152x384xf32, #tpu.memory_space<vmem>>, vector<32x384xf32>
    tpu.vector_store %arg15[%c1024, %c0_127], %148 {strides = array<i32>} : memref<1152x384xf32, #tpu.memory_space<vmem>>, vector<32x384xf32>,
    %c367_i32_128 = arith.constant 367 : i32
    %150 = tpu.dynamic_rotate %137 by %c367_i32_128 dim 1 : vector<32x384xf32>, i32 -> vector<32x384xf32>
    %c1056 = arith.constant 1056 : index
    %c0_129 = arith.constant 0 : index
    %151 = vector.load %arg15[%c1056, %c0_129] : memref<1152x384xf32, #tpu.memory_space<vmem>>, vector<32x384xf32>
    tpu.vector_store %arg15[%c1056, %c0_129], %150 {strides = array<i32>} : memref<1152x384xf32, #tpu.memory_space<vmem>>, vector<32x384xf32>,
    %c366_i32_130 = arith.constant 366 : i32
    %152 = tpu.dynamic_rotate %137 by %c366_i32_130 dim 1 : vector<32x384xf32>, i32 -> vector<32x384xf32>
    %c1088 = arith.constant 1088 : index
    %c0_131 = arith.constant 0 : index
    %153 = vector.load %arg15[%c1088, %c0_131] : memref<1152x384xf32, #tpu.memory_space<vmem>>, vector<32x384xf32>
    tpu.vector_store %arg15[%c1088, %c0_131], %152 {strides = array<i32>} : memref<1152x384xf32, #tpu.memory_space<vmem>>, vector<32x384xf32>,
    %c365_i32_132 = arith.constant 365 : i32
    %154 = tpu.dynamic_rotate %137 by %c365_i32_132 dim 1 : vector<32x384xf32>, i32 -> vector<32x384xf32>
    %c1120 = arith.constant 1120 : index
    %c0_133 = arith.constant 0 : index
    %155 = vector.load %arg15[%c1120, %c0_133] : memref<1152x384xf32, #tpu.memory_space<vmem>>, vector<32x384xf32>
    tpu.vector_store %arg15[%c1120, %c0_133], %154 {strides = array<i32>} : memref<1152x384xf32, #tpu.memory_space<vmem>>, vector<32x384xf32>,
    %cst_134 = arith.constant dense<0.000000e+00> : vector<1x4xf32>
    %156 = tpu.matmul %0, %2, %cst_134 {dimension_numbers = #tpu.dot_dimension_numbers<[1], [1], [0], [0], [0, 0, 1, 0], [], []>} : vector<1x384xf32>, vector<4x384xf32>, vector<1x4xf32> -> vector<1x4xf32>
    %157 = tpu.concatenate %36, %70, %104, %138, %156 in 1 : vector<1x32xf32>, vector<1x32xf32>, vector<1x32xf32>, vector<1x32xf32>, vector<1x4xf32> -> vector<1x132xf32>
    %cst_135 = arith.constant 3.906250e-03 : f32
    %158 = vector.broadcast %cst_135 : f32 to vector<1x132xf32>
    %159 = arith.mulf %157, %158 : vector<1x132xf32>
    %c0_136 = arith.constant 0 : index
    %c0_137 = arith.constant 0 : index
    %160 = vector.load %arg11[%c0_136, %c0_137] : memref<132x8xf32, #tpu.memory_space<vmem>>, vector<132x8xf32>
    %cst_138 = arith.constant dense<0.000000e+00> : vector<1x8xf32>
    %161 = tpu.matmul %159, %160, %cst_138 {dimension_numbers = #tpu.dot_dimension_numbers<[1], [0], [0], [1], [0, 0, 1, 1], [], []>} : vector<1x132xf32>, vector<132x8xf32>, vector<1x8xf32> -> vector<1x8xf32>
    %cst_139 = arith.constant 0.000000e+00 : f32
    %162 = vector.broadcast %cst_139 : f32 to vector<1x8xf32>
    %163 = arith.maximumf %161, %162 : vector<1x8xf32>
    %c0_140 = arith.constant 0 : index
    %c0_141 = arith.constant 0 : index
    %164 = vector.load %arg12[%c0_140, %c0_141] : memref<8x132xf32, #tpu.memory_space<vmem>>, vector<8x132xf32>
    %cst_142 = arith.constant dense<0.000000e+00> : vector<1x132xf32>
    %165 = tpu.matmul %163, %164, %cst_142 {dimension_numbers = #tpu.dot_dimension_numbers<[1], [0], [0], [1], [0, 0, 1, 1], [], []>} : vector<1x8xf32>, vector<8x132xf32>, vector<1x132xf32> -> vector<1x132xf32>
    %166 = arith.negf %165 : vector<1x132xf32>
    %167 = math.exp %166 : vector<1x132xf32>
    %cst_143 = arith.constant 1.000000e+00 : f32
    %168 = vector.broadcast %cst_143 : f32 to vector<1x132xf32>
    %169 = arith.addf %168, %167 : vector<1x132xf32>
    %170 = arith.divf %168, %169 : vector<1x132xf32>
    %171 = vector.extract_strided_slice %170 {offsets = [0, 128], sizes = [1, 4], strides = [1, 1]} : vector<1x132xf32> to vector<1x4xf32>
    %172 = tpu.concatenate %171, %171, %171, %171, %171, %171, %171, %171, %171 in 1 : vector<1x4xf32>, vector<1x4xf32>, vector<1x4xf32>, vector<1x4xf32>, vector<1x4xf32>, vector<1x4xf32>, vector<1x4xf32>, vector<1x4xf32>, vector<1x4xf32> -> vector<1x36xf32>
    %173 = vector.extract_strided_slice %170 {offsets = [0, 0], sizes = [1, 32], strides = [1, 1]} : vector<1x132xf32> to vector<1x32xf32>
    %174 = tpu.concatenate %173, %173, %173, %173, %173, %173, %173, %173, %173 in 1 : vector<1x32xf32>, vector<1x32xf32>, vector<1x32xf32>, vector<1x32xf32>, vector<1x32xf32>, vector<1x32xf32>, vector<1x32xf32>, vector<1x32xf32>, vector<1x32xf32> -> vector<1x288xf32>
    %175 = vector.extract_strided_slice %170 {offsets = [0, 32], sizes = [1, 32], strides = [1, 1]} : vector<1x132xf32> to vector<1x32xf32>
    %176 = tpu.concatenate %175, %175, %175, %175, %175, %175, %175, %175, %175 in 1 : vector<1x32xf32>, vector<1x32xf32>, vector<1x32xf32>, vector<1x32xf32>, vector<1x32xf32>, vector<1x32xf32>, vector<1x32xf32>, vector<1x32xf32>, vector<1x32xf32> -> vector<1x288xf32>
    %177 = vector.extract_strided_slice %170 {offsets = [0, 64], sizes = [1, 32], strides = [1, 1]} : vector<1x132xf32> to vector<1x32xf32>
    %178 = tpu.concatenate %177, %177, %177, %177, %177, %177, %177, %177, %177 in 1 : vector<1x32xf32>, vector<1x32xf32>, vector<1x32xf32>, vector<1x32xf32>, vector<1x32xf32>, vector<1x32xf32>, vector<1x32xf32>, vector<1x32xf32>, vector<1x32xf32> -> vector<1x288xf32>
    %179 = vector.extract_strided_slice %170 {offsets = [0, 96], sizes = [1, 32], strides = [1, 1]} : vector<1x132xf32> to vector<1x32xf32>
    %180 = tpu.concatenate %179, %179, %179, %179, %179, %179, %179, %179, %179 in 1 : vector<1x32xf32>, vector<1x32xf32>, vector<1x32xf32>, vector<1x32xf32>, vector<1x32xf32>, vector<1x32xf32>, vector<1x32xf32>, vector<1x32xf32>, vector<1x32xf32> -> vector<1x288xf32>
    %181 = tpu.concatenate %174, %176, %178, %180 in 1 : vector<1x288xf32>, vector<1x288xf32>, vector<1x288xf32>, vector<1x288xf32> -> vector<1x1152xf32>
    %c0_144 = arith.constant 0 : index
    %c0_145 = arith.constant 0 : index
    %182 = vector.load %arg7[%c0_144, %c0_145] : memref<4x36xf32, #tpu.memory_space<vmem>>, vector<4x36xf32>
    %183 = vector.broadcast %172 : vector<1x36xf32> to vector<4x36xf32>
    %184 = arith.mulf %182, %183 : vector<4x36xf32>
    %c0_146 = arith.constant 0 : index
    %c0_147 = arith.constant 0 : index
    %185 = vector.load %arg14[%c0_146, %c0_147] : memref<36x384xf32, #tpu.memory_space<vmem>>, vector<36x384xf32>
    %cst_148 = arith.constant dense<0.000000e+00> : vector<4x384xf32>
    %186 = tpu.matmul %184, %185, %cst_148 {dimension_numbers = #tpu.dot_dimension_numbers<[1], [0], [0], [1], [0, 0, 1, 1], [], []>} : vector<4x36xf32>, vector<36x384xf32>, vector<4x384xf32> -> vector<4x384xf32>
    %c0_149 = arith.constant 0 : index
    %c0_150 = arith.constant 0 : index
    %187 = vector.load %arg8[%c0_149, %c0_150] : memref<4x1152xf32, #tpu.memory_space<vmem>>, vector<4x1152xf32>
    %188 = vector.broadcast %181 : vector<1x1152xf32> to vector<4x1152xf32>
    %189 = arith.mulf %187, %188 : vector<4x1152xf32>
    %c0_151 = arith.constant 0 : index
    %c0_152 = arith.constant 0 : index
    %190 = vector.load %arg15[%c0_151, %c0_152] : memref<1152x384xf32, #tpu.memory_space<vmem>>, vector<1152x384xf32>
    %cst_153 = arith.constant dense<0.000000e+00> : vector<4x384xf32>
    %191 = tpu.matmul %189, %190, %cst_153 {dimension_numbers = #tpu.dot_dimension_numbers<[1], [0], [0], [1], [0, 0, 1, 1], [], []>} : vector<4x1152xf32>, vector<1152x384xf32>, vector<4x384xf32> -> vector<4x384xf32>
    %192 = arith.addf %186, %191 : vector<4x384xf32>
    %c0_154 = arith.constant 0 : index
    %c0_155 = arith.constant 0 : index
    %193 = vector.load %arg10[%c0_154, %c0_155] : memref<4x1xf32, #tpu.memory_space<vmem>>, vector<4x1xf32>
    %194 = vector.broadcast %193 : vector<4x1xf32> to vector<4x384xf32>
    %195 = arith.addf %192, %194 : vector<4x384xf32>
    %c0_156 = arith.constant 0 : index
    %c0_157 = arith.constant 0 : index
    %c0_158 = arith.constant 0 : index
    %196 = vector.load %arg13[%c0_156, %c0_157, %c0_158] : memref<1x4x384xf32, #tpu.memory_space<vmem>>, vector<1x4x384xf32>
    %197 = vector.shape_cast %196 : vector<1x4x384xf32> to vector<4x384xf32>
    %198 = vector.shape_cast %195 : vector<4x384xf32> to vector<1x4x384xf32>
    tpu.vector_store %arg13[%c0_156, %c0_157, %c0_158], %198 {strides = array<i32>} : memref<1x4x384xf32, #tpu.memory_space<vmem>>, vector<1x4x384xf32>,
    return
  }
  func.func @transform_0(%arg0: i32) -> (i32, i32, i32) {
    %c0_i32 = arith.constant 0 : i32
    %c0_i32_0 = arith.constant 0 : i32
    %c0_i32_1 = arith.constant 0 : i32
    return %arg0, %c0_i32, %c0_i32_0 : i32, i32, i32
  }
  func.func @transform_1(%arg0: i32) -> (i32, i32) {
    %c0_i32 = arith.constant 0 : i32
    %c0_i32_0 = arith.constant 0 : i32
    %c0_i32_1 = arith.constant 0 : i32
    return %c0_i32, %c0_i32_0 : i32, i32
  }
  func.func @transform_2(%arg0: i32) -> (i32, i32) {
    %c0_i32 = arith.constant 0 : i32
    %c0_i32_0 = arith.constant 0 : i32
    %c0_i32_1 = arith.constant 0 : i32
    return %c0_i32, %c0_i32_0 : i32, i32
  }
  func.func @transform_3(%arg0: i32) -> (i32, i32) {
    %c0_i32 = arith.constant 0 : i32
    %c0_i32_0 = arith.constant 0 : i32
    %c0_i32_1 = arith.constant 0 : i32
    return %c0_i32, %c0_i32_0 : i32, i32
  }
  func.func @transform_4(%arg0: i32) -> (i32, i32) {
    %c0_i32 = arith.constant 0 : i32
    %c0_i32_0 = arith.constant 0 : i32
    %c0_i32_1 = arith.constant 0 : i32
    return %c0_i32, %c0_i32_0 : i32, i32
  }
  func.func @transform_5(%arg0: i32) -> (i32, i32) {
    %c0_i32 = arith.constant 0 : i32
    %c0_i32_0 = arith.constant 0 : i32
    %c0_i32_1 = arith.constant 0 : i32
    return %c0_i32, %c0_i32_0 : i32, i32
  }
  func.func @transform_6(%arg0: i32) -> (i32, i32) {
    %c0_i32 = arith.constant 0 : i32
    %c0_i32_0 = arith.constant 0 : i32
    %c0_i32_1 = arith.constant 0 : i32
    return %c0_i32, %c0_i32_0 : i32, i32
  }
  func.func @transform_7(%arg0: i32) -> (i32, i32) {
    %c0_i32 = arith.constant 0 : i32
    %c0_i32_0 = arith.constant 0 : i32
    %c0_i32_1 = arith.constant 0 : i32
    return %c0_i32, %c0_i32_0 : i32, i32
  }
  func.func @transform_8(%arg0: i32) -> (i32, i32, i32) {
    %c0_i32 = arith.constant 0 : i32
    %c0_i32_0 = arith.constant 0 : i32
    %c0_i32_1 = arith.constant 0 : i32
    %c0_i32_2 = arith.constant 0 : i32
    return %c0_i32, %c0_i32_0, %c0_i32_1 : i32, i32, i32
  }
  func.func @transform_9(%arg0: i32) -> (i32, i32) {
    %c0_i32 = arith.constant 0 : i32
    %c0_i32_0 = arith.constant 0 : i32
    %c0_i32_1 = arith.constant 0 : i32
    return %c0_i32, %c0_i32_0 : i32, i32
  }
  func.func @transform_10(%arg0: i32) -> (i32, i32) {
    %c0_i32 = arith.constant 0 : i32
    %c0_i32_0 = arith.constant 0 : i32
    %c0_i32_1 = arith.constant 0 : i32
    return %c0_i32, %c0_i32_0 : i32, i32
  }
  func.func @transform_11(%arg0: i32) -> (i32, i32) {
    %c0_i32 = arith.constant 0 : i32
    %c0_i32_0 = arith.constant 0 : i32
    %c0_i32_1 = arith.constant 0 : i32
    return %c0_i32, %c0_i32_0 : i32, i32
  }
  func.func @transform_12(%arg0: i32) -> (i32, i32, i32) {
    %c0_i32 = arith.constant 0 : i32
    %c0_i32_0 = arith.constant 0 : i32
    %c0_i32_1 = arith.constant 0 : i32
    return %arg0, %c0_i32, %c0_i32_0 : i32, i32, i32
  }
}

</mosaic_0001>

<bundles_post_ra>
// kernel: tpu_custom_call.1
= control target key start
LH: loop header
LB: loop body
LE: loop exit
PB: predicated region body
PF: predicated region fallthrough
CT: control target
= control target key end

     0   :  { %17 = vsyncpa [#allocation6], 0  ;;  %s15360_s0 = inlined_call_operand.vmem [shape: f32[2,4,384], index: 0, kind: input, shape index: {}]   ;;  %s15361_s1 = inlined_call_operand.vmem [shape: f32[1,384], index: 1, kind: input, shape index: {}]   ;;  %s15362_s2 = inlined_call_operand.vmem [shape: f32[128,36], index: 2, kind: input, shape index: {}]   ;;  %s15363_s3 = inlined_call_operand.hbm [shape: f32[32,288], index: 3, kind: input, shape index: {}]   ;;  %s15364_s4 = inlined_call_operand.vmem [shape: f32[32,576], index: 4, kind: input, shape index: {}]   ;;  %s15365_s5 = inlined_call_operand.vmem [shape: f32[32,864], index: 5, kind: input, shape index: {}]   ;;  %s15366_s6 = inlined_call_operand.hbm [shape: f32[4,36], index: 6, kind: input, shape index: {}]   ;;  %s15367_s7 = inlined_call_operand.vmem [shape: f32[4,1152], index: 7, kind: input, shape index: {}]   ;;  %s15368_s8 = inlined_call_operand.vmem [shape: f32[4,32,1], index: 8, kind: input, shape index: {}]   ;;  %s15369_s9 = inlined_call_operand.vmem [shape: f32[4,1], index: 9, kind: input, shape index: {}]   ;;  %s15370_s10 = inlined_call_operand.vmem [shape: f32[132,8], index: 10, kind: input, shape index: {}]   ;;  %s15371_s11 = inlined_call_operand.vmem [shape: f32[8,132], index: 11, kind: input, shape index: {}]   ;;  %s15372_s12 = inlined_call_operand.hbm [shape: f32[2,4,384], index: 12, kind: output, shape index: {}]  }
   0x1   :  { %18 = vsyncpa [#allocation9], 0 }
   0x2   :  { %19 = vsyncpa [#allocation7], 0 }
   0x3   :  { %21 = vsyncpa [#allocation7 + $0x1], 0  ;;  %s11262_s21 = smov 0   ;;  %s11264_s22 = smov 0  }
   0x4   :  { %s11266_s23 = smov 0   ;;  %s11268_s24 = smov 0  }
   0x5 LB: > { %15695 = sst [smem:[#allocation14_spill]] %s11156_s21  ;;  %s11283_s25 = sadd.s32 4294967295, %s11168_s24   ;;  %s11168_s24 = sphi %s11268_s24, %s16261_s24   ;;  %s11164_s23 = sphi %s11266_s23, %s16266_s23   ;;  %s11160_s22 = sphi %s11264_s22, %s16265_s22   ;;  %s11156_s21 = sphi %s11262_s21, %s16264_s21  }
   0x6   : > { %15696 = sst [smem:[#allocation15_spill]] %s11164_s23  ;;  %s7850_s26 = sadd.s32 4294967294, %s11168_s24  }
   0x7   : > { %15697 = sst [smem:[#allocation16_spill]] %s11168_s24  ;;  %s11287_s27 = sadd.s32 1, %s11168_s24  }
   0x8   : > { %15698 = sst [smem:[#allocation17_spill]] %s11287_s27  ;;  %s291_s28 = sadd.s32 1, %s11164_s23 }
   0x9   : > { %s288_s29 = ssub.s32 %s11168_s24, %s11287_s27  ;;  %p301_p0 = scmp.ne.s32.totalorder %s11164_s23, %s11160_s22 }
   0xa   : > { %p289_p1 = scmp.eq.s32.totalorder %s288_s29, 0  ;;  %p302_p2 = scmp.eq.s32.totalorder %s11283_s25, 1 }
   0xb   : > { %p307_p3 = scmp.ne.s32.totalorder %s11160_s22, %s11156_s21  ;;  %p308_p4 = scmp.eq.s32.totalorder %s7850_s26, 1 }
   0xc   : > { %s11298_s30 = scalar_select %p289_p1, %s11164_s23, %s291_s28  }
   0xd   : > { %p11300_p5 = por %p302_p2, %p301_p0  ;;  %p11304_p6 = por %p308_p4, %p307_p3 }
   0xe   : > { %15699 = sst [smem:[#allocation18_spill]] %s11298_s30  ;;  %p7851_p7 = scmp.ge.s32.totalorder %s11168_s24, 1 }
   0xf   : > { %s15700_s13 = scalar_select %p11300_p5, 1, 0 }
  0x10   : > { %s15701_s14 = scalar_select %p11304_p6, 1, 0 }
  0x11   : > { %p315_p8 = scmp.lt.s32.totalorder %s11168_s24, 3  ;;  %p15376_p9 = scmp.eq.s32.totalorder %s11283_s25, 0 }
  0x12   : > { %15702 = sst [smem:[#allocation19_spill]] %s15701_s14  ;;  %s11170_s16 = smov [#allocation5]  }
  0x13   : > { %p11311_p10 = pnand %p7851_p7, %p315_p8  ;;  %s333_s17 = sshll.u32 %s11170_s16, 4  ;;  %s334_s17 = int_to_ptr.vmem [resolvable:$true] %s333_s17 }
  0x14   : > { %s11171_s19 = smov [#allocation8]   ;;  %s11042_s29 = scalar_lea.hbm %s15363_s3, 1536 }
  0x15   : > { %s15703_s15 = scalar_select %p11311_p10, 1, 0 }
  0x16   : > { %p9997_p11 = pneg %p11311_p10  ;;  %s353_s20 = sshll.u32 %s11171_s19, 4  ;;  %s11323_s20 = int_to_ptr.vmem [resolvable:$true] %s353_s20 }
  0x17   : > { %p11043_p13 = scmp.ne.s32.totalorder %s15363_s3, %s11042_s29  ;;  %p11049_p3 = scmp.lt.u32.totalorder %s11042_s29, %s15363_s3 }
  0x18   : > { %p11319_p12 = pnand %p15376_p9, %p9997_p11 }
  0x1a   : > { %p11044_p0 = pneg %p11319_p12 }
  0x1c   : > { %p11045_p1 = pnand %p11044_p0, %p11043_p13 }
  0x1e   : > { %p11046_p2 = pneg %p11045_p1 }
  0x20   : > { %p11051_p4 = pnand %p11049_p3, %p11046_p2 }
  0x22   : > { %11054 = shalt.err (!%p11051_p4)
}
  0x23   : > { %s11055_s19 = scalar_lea.vmem %s334_s17, 1536  ;;  %p11063_p9 = scmp.lt.s32.totalorder %s334_s17, %s334_s17 }
  0x24   : > { %p11056_p7 = scmp.ne.s32.totalorder %s334_s17, %s11055_s19  ;;  %p11064_p6 = scmp.lt.s32.totalorder %s11055_s19, %s11055_s19 }
  0x26   : > { %p11058_p8 = pnand %p11056_p7, %p11044_p0  ;;  %p11065_p5 = por %p11064_p6, %p11063_p9 }
  0x28   : > { %p11059_p11 = pneg %p11058_p8 }
  0x2a   : > { %p11066_p10 = pnand %p11065_p5, %p11059_p11 }
  0x2c   : > { %11069 = shalt.err (!%p11066_p10)
}
  0x2d   : > { %s11172_s30 = smov 384   ;;  %s11173_s26 = smov 24  }
  0x2e   : > { %10000 = dma.hbm_to_vmem [thread:$0]  (!%p11319_p12), %s15363_s3, 1536, %s334_s17, [#allocation6], %s11172_s30, %s11172_s30, %s11173_s26  }
  0x2f   : > { %s11070_s16 = scalar_lea.hbm %s15366_s6, 64 }
  0x30   : > { %p11071_p13 = scmp.ne.s32.totalorder %s15366_s6, %s11070_s16  ;;  %p11077_p9 = scmp.lt.u32.totalorder %s11070_s16, %s15366_s6 }
  0x32   : > { %p11073_p5 = pnand %p11071_p13, %p11044_p0 }
  0x34   : > { %p11074_p6 = pneg %p11073_p5 }
  0x36   : > { %p11079_p10 = pnand %p11077_p9, %p11074_p6 }
  0x38   : > { %11082 = shalt.err (!%p11079_p10)
}
  0x39   : > { %s11083_s17 = scalar_lea.vmem %s11323_s20, 64  ;;  %p11091_p4 = scmp.lt.s32.totalorder %s11323_s20, %s11323_s20 }
  0x3a   : > { %p11084_p1 = scmp.ne.s32.totalorder %s11323_s20, %s11083_s17  ;;  %p11092_p7 = scmp.lt.s32.totalorder %s11083_s17, %s11083_s17 }
  0x3c   : > { %p11086_p2 = pnand %p11084_p1, %p11044_p0  ;;  %p11093_p8 = por %p11092_p7, %p11091_p4 }
  0x3e   : > { %p11087_p3 = pneg %p11086_p2 }
  0x40   : > { %p11094_p11 = pnand %p11093_p8, %p11087_p3 }
  0x42   : > { %11097 = shalt.err (!%p11094_p11)
}
  0x43   : > { %10003 = dma.hbm_to_vmem [thread:$0]  (!%p11319_p12), %s15366_s6, 64, %s11323_s20, [#allocation9]  }
  0x44   : > { %p15705_p13 = scmp.ne.s32.totalorder %s15703_s15, 0 }
  0x46   : > { %389 = sbr.rel (%p15705_p13) target bundleno = 3311 (0xcef), region = 68 }
  0x4d   : > { %p15706_p5 = scmp.eq.s32.totalorder %s11283_s25, 0 }
  0x4f   : > { %11143 = dma.done.wait (%p15706_p5), [#allocation6], 1536   ;;  %p15707_p0 = pmov %p15706_p5 }
  0x51   : > { %11145 = vsyncadd (%p15707_p0), [#allocation6], 4294965760  ;;  %p15708_p6 = pmov %p15707_p0 }
  0x52   : > { %p15709_p9 = pmov %p15707_p0 }
  0x53   : > { %11147 = dma.done.wait (%p15708_p6), [#allocation9], 64  }
  0x54   : > { %11149 = vsyncadd (%p15709_p9), [#allocation9], 4294967232  ;;  %p435_p10 = scmp.lt.s32.totalorder %s11283_s25, 1  ;;  %s15644_s26 = smov 1   ;;  %v11445_v3 = vld [vmem:[%s15362_s2] sm:$0xff]  ;;  %vm15581_vm0 = vcmask 293888   ;;  %v452_v10 = vlaneseq }
  0x55   : > { %s11175_s23 = smov 18   ;;  %s11176_s27 = smov 19   ;;  %v15392_v4 = vmov 0.0   ;;  %8459 = vmatprep.mubr.msk.f32.mxu1 %vm15581_vm0, %v11445_v3  ;;  %v1048_v5 = vld [vmem:[%s15368_s8 + $0x8] sm:$0xff]  ;;  %v1047_v6 = vld [vmem:[%s15368_s8] sm:$0xff]  ;;  %v11183_v7 = vmov 0  }
  0x56   : > { %s436_s14 = scalar_select %p435_p10, %s11283_s25, 1  ;;  %745 = vmatprep.mubr.f32.mxu0 %v15392_v4  ;;  %10072 = vset.pattern.permute.xlu1 %v11183_v7  ;;  %v1049_v8 = vld [vmem:[%s15368_s8 + $0x10] sm:$0xff]  ;;  %v1050_v9 = vld [vmem:[%s15368_s8 + $0x18] sm:$0xff]  ;;  %v11467_v11 = vand.u32 127, %v452_v10  ;;  %vm671_vm9 = vcmask 1043456  }
  0x57   : > { %s15646_s28 = smov 17   ;;  %s15642_s29 = smov 127   ;;  %10071 = vset.pattern.permute.xlu0 %v11183_v7 }
  0x58   : > { %s9985_s18 = smul.u32 12, %s436_s14  ;;  %s15382_s16 = smov 110   ;;  %vm502_vm1 = vcmp.lt.s32.totalorder %v11467_v11, 1  ;;  %vm467_vm2 = vcmp.lt.s32.totalorder %v11467_v11, 18  ;;  %vm454_vm3 = vcmp.lt.s32.totalorder %v11467_v11, 19  ;;  %vm489_vm4 = vcmp.lt.s32.totalorder %v11467_v11, 17 }
  0x59   : > { %s15384_s19 = smov 111   ;;  %s15640_s17 = smov 109   ;;  %vm527_vm5 = vcmp.lt.s32.totalorder %v11467_v11, 127  ;;  %vm562_vm6 = vcmp.lt.s32.totalorder %v11467_v11, 110  ;;  %vm549_vm7 = vcmp.lt.s32.totalorder %v11467_v11, 111  ;;  %vm15639_vm8 = vcmp.lt.s32.totalorder %v11467_v11, 109 }
  0x5a   : > { %s439_s30 = scalar_lea.vmem %s15360_s0, %s9985_s18  ;;  %s15808_s15 = smov 111  }
  0x5b   : > { %v11387_v0 = vld [vmem:[%s439_s30] sm:$0xff]  ;;  %v11389_v1 = vld [vmem:[%s439_s30 + $0x8] sm:$0xf]  ;;  %s11186_s24 = smov 32   ;;  %s11187_s30 = smov 64  }
  0x5c   : > { %15710 = vst [vmem:[#allocation20_spill] sm:$0xff] %v11387_v0  ;;  %15711 = vst [vmem:[#allocation21_spill] sm:$0xff] %v11389_v1  ;;  %496 = vrot.lane.b32.xlu1 %v11387_v0, %s15644_s26  ;;  %461 = vrot.lane.b32.xlu0 %v11387_v0, %s11175_s23  ;;  %v11399_v2 = vcombine.high %v11387_v0, %v11387_v0  ;;  %s11188_s21 = smov 96   ;;  %s11193_s20 = smov 24  }
  0x5d   : > { %518 = vst [vmem:[#allocation2 + $0x30] sm:$0xf] %v11387_v0  ;;  %520 = vst [vmem:[#allocation2 + $0x40] sm:$0xf] %v11389_v1  ;;  %s11194_s14 = smov 20   ;;  %p16256_p1 = scmp.ne.s32.totalorder %s15700_s13, 0 }
  0x5e   : > { %15712 = vst [vmem:[#allocation22_spill] sm:$0xff] %v11399_v2  ;;  %519 = vst [vmem:[#allocation2 + $0x38] sm:$0xf] %v11399_v2 }
  0x60   : > { %500 = vrot.lane.b32.xlu1 %v11389_v1, %s15644_s26  ;;  %465 = vrot.lane.b32.xlu0 %v11389_v1, %s11175_s23 }
  0x64   : > { %498 = vrot.lane.b32.xlu1 %v11399_v2, %s15644_s26  ;;  %463 = vrot.lane.b32.xlu0 %v11399_v2, %s11175_s23 }
  0x68   : > { %448 = vrot.lane.b32.xlu1 %v11399_v2, %s11176_s27  ;;  %446 = vrot.lane.b32.xlu0 %v11387_v0, %s11176_s27 }
  0x6c   : > { %485 = vrot.lane.b32.xlu1 %v11399_v2, %s15646_s28  ;;  %483 = vrot.lane.b32.xlu0 %v11387_v0, %s15646_s28 }
  0x70   : > { %487 = vrot.lane.b32.xlu1 %v11389_v1, %s15646_s28  ;;  %450 = vrot.lane.b32.xlu0 %v11389_v1, %s11176_s27 }
  0x74   : > { %525 = vrot.lane.b32.xlu1 %v11389_v1, %s15642_s29  ;;  %523 = vrot.lane.b32.xlu0 %v11399_v2, %s15642_s29 }
  0x78   : > { %560 = vrot.lane.b32.xlu1 %v11389_v1, %s15382_s16  ;;  %558 = vrot.lane.b32.xlu0 %v11399_v2, %s15382_s16 }
  0x7c   : > { %556 = vrot.lane.b32.xlu1 %v11387_v0, %s15382_s16  ;;  %521 = vrot.lane.b32.xlu0 %v11387_v0, %s15642_s29  ;;  %s15722_s16 = smov 110  }
  0x80   : > { %547 = vrot.lane.b32.xlu1 %v11389_v1, %s15384_s19  ;;  %545 = vrot.lane.b32.xlu0 %v11399_v2, %s15384_s19 }
  0x84   : > { %580 = vrot.lane.b32.xlu1 %v11399_v2, %s15640_s17  ;;  %543 = vrot.lane.b32.xlu0 %v11387_v0, %s15384_s19 }
  0x88   : > { %578 = vrot.lane.b32.xlu1 %v11387_v0, %s15640_s17  ;;  %582 = vrot.lane.b32.xlu0 %v11389_v1, %s15640_s17 }
  0x8c   : > { %1058 = vperm.xlu1 %10072, %v1048_v5   ;;  %1053 = vperm.xlu0 %10071, %v1047_v6  }
  0x90   : > { %1063 = vperm.xlu1 %10072, %v1049_v8   ;;  %1068 = vperm.xlu0 %10071, %v1050_v9  }
  0xce   : > { %v497_v12 = vpop.permute.xlu1 %496  ;;  %v462_v13 = vpop.permute.xlu0 %461 }
  0xd2   : > { %v501_v14 = vpop.permute.xlu1 %500  ;;  %v466_v15 = vpop.permute.xlu0 %465 }
  0xd3   : > { %v505_v16 = vsel %vm502_vm1, %v501_v14, %v497_v12  ;;  %v470_v17 = vsel %vm467_vm2, %v466_v15, %v462_v13 }
  0xd4   : > { %v509_v18 = vrot.slane %v505_v16, 4  ;;  %v474_v19 = vrot.slane %v470_v17, 4 }
  0xd6   : > { %515 = vst [vmem:[#allocation2 + $0x18] sm:$0xf0] %v509_v18  ;;  %480 = vst [vmem:[#allocation2] sm:$0xf0] %v474_v19  ;;  %v499_v20 = vpop.permute.xlu1 %498  ;;  %v464_v21 = vpop.permute.xlu0 %463 }
  0xd7   : > { %v503_v22 = vsel %vm502_vm1, %v499_v20, %v501_v14  ;;  %v504_v23 = vsel %vm502_vm1, %v497_v12, %v499_v20  ;;  %v468_v24 = vsel %vm467_vm2, %v464_v21, %v466_v15  ;;  %v469_v25 = vsel %vm467_vm2, %v462_v13, %v464_v21 }
  0xd8   : > { %v510_v26 = vrot.slane %v504_v23, 4  ;;  %v511_v27 = vrot.slane %v503_v22, 4  ;;  %v475_v28 = vrot.slane %v469_v25, 4  ;;  %v476_v29 = vrot.slane %v468_v24, 4 }
  0xda   : > { %516 = vst [vmem:[#allocation2 + $0x20] sm:$0xf0] %v510_v26  ;;  %517 = vst [vmem:[#allocation2 + $0x28] sm:$0xf0] %v511_v27  ;;  %v449_v30 = vpop.permute.xlu1 %448  ;;  %v447_v31 = vpop.permute.xlu0 %446 }
  0xdb   : > { %481 = vst [vmem:[#allocation2 + $0x8] sm:$0xf0] %v475_v28  ;;  %482 = vst [vmem:[#allocation2 + $0x10] sm:$0xf0] %v476_v29  ;;  %v456_v32 = vsel %vm454_vm3, %v447_v31, %v449_v30 }
  0xdc   : > { %459 = vst [vmem:[#allocation2 + $0x8] sm:$0xf] %v456_v32 }
  0xde   : > { %v486_v33 = vpop.permute.xlu1 %485  ;;  %v484_v34 = vpop.permute.xlu0 %483 }
  0xdf   : > { %v491_v35 = vsel %vm489_vm4, %v484_v34, %v486_v33 }
  0xe0   : > { %494 = vst [vmem:[#allocation2 + $0x20] sm:$0xf] %v491_v35 }
  0xe2   : > { %v488_v36 = vpop.permute.xlu1 %487  ;;  %v451_v37 = vpop.permute.xlu0 %450 }
  0xe3   : > { %v490_v38 = vsel %vm489_vm4, %v486_v33, %v488_v36  ;;  %v492_v39 = vsel %vm489_vm4, %v488_v36, %v484_v34  ;;  %v455_v40 = vsel %vm454_vm3, %v449_v30, %v451_v37  ;;  %v457_v41 = vsel %vm454_vm3, %v451_v37, %v447_v31  ;;  %v608_v45 = vld [vmem:[#allocation2 + $0x8] sm:$0xff]  ;;  %v593_v37 = vld [vmem:[%s15362_s2 + $0x10] sm:$0xff] }
  0xe4   : > { %493 = vst [vmem:[#allocation2 + $0x18] sm:$0xf] %v492_v39  ;;  %495 = vst [vmem:[#allocation2 + $0x28] sm:$0xf] %v490_v38  ;;  %v592_v36 = vld [vmem:[%s15362_s2 + $0x8] sm:$0xff]  ;;  %v594_v38 = vld [vmem:[%s15362_s2 + $0x18] sm:$0xff] }
  0xe5   : > { %458 = vst [vmem:[#allocation2] sm:$0xf] %v457_v41  ;;  %460 = vst [vmem:[#allocation2 + $0x10] sm:$0xf] %v455_v40  ;;  %v440_v39 = vld [vmem:[%s15361_s1] sm:$0x7] }
  0xe6   : > { %v526_v42 = vpop.permute.xlu1 %525  ;;  %v524_v43 = vpop.permute.xlu0 %523 }
  0xe7   : > { %v528_v44 = vsel %vm527_vm5, %v524_v43, %v526_v42  ;;  %v611_v46 = vld [vmem:[#allocation2 + $0x20] sm:$0xff] }
  0xe8   : > { %v535_v47 = vrot.slane %v528_v44, 4  ;;  %v8646_v48 = vpack.c.bf16 %v611_v46, %v608_v45  ;;  %v598_v44 = vld [vmem:[%s15362_s2 + $0x38] sm:$0xff]  ;;  %v599_v45 = vld [vmem:[%s15362_s2 + $0x40] sm:$0xff]  ;;  %v600_v46 = vld [vmem:[%s15362_s2 + $0x48] sm:$0xff] }
  0xea   : > { %541 = vst [vmem:[#allocation2 + $0x38] sm:$0xf0] %v535_v47  ;;  %v561_v49 = vpop.permute.xlu1 %560  ;;  %8647 = vmatprep.subr.bf16.mxu0 %v8646_v48  ;;  %v559_v50 = vpop.permute.xlu0 %558  ;;  %v601_v47 = vld [vmem:[%s15362_s2 + $0x50] sm:$0xff]  ;;  %v602_v48 = vld [vmem:[%s15362_s2 + $0x58] sm:$0xff] }
  0xeb   : > { %v563_v51 = vsel %vm562_vm6, %v559_v50, %v561_v49  ;;  %v610_v53 = vld [vmem:[#allocation2 + $0x18] sm:$0xff]  ;;  %v612_v57 = vld [vmem:[#allocation2 + $0x28] sm:$0xff] }
  0xec   : > { %v607_v52 = vld [vmem:[#allocation2] sm:$0xff]  ;;  %v609_v54 = vld [vmem:[#allocation2 + $0x10] sm:$0xff]  ;;  %v570_v55 = vrot.slane %v563_v51, 4 }
  0xed   : > { %v8648_v56 = vpack.c.bf16 %v610_v53, %v607_v52  ;;  %v8654_v58 = vpack.c.bf16 %v612_v57, %v609_v54  ;;  %v605_v52 = vld [vmem:[%s15362_s2 + $0x70] sm:$0xff]  ;;  %v606_v53 = vld [vmem:[%s15362_s2 + $0x78] sm:$0xff] }
  0xee   : > { %576 = vst [vmem:[#allocation2 + $0x50] sm:$0xf0] %v570_v55  ;;  %v557_v59 = vpop.permute.xlu1 %556  ;;  %v522_v60 = vpop.permute.xlu0 %521 }
  0xef   : > { %8649 = vmatpush1.bf16.msra.mxu0 %v8648_v56  ;;  %v564_v61 = vsel %vm562_vm6, %v557_v59, %v559_v50  ;;  %v565_v62 = vsel %vm562_vm6, %v561_v49, %v557_v59  ;;  %8655 = vmatprep.subr.bf16.mxu1 %v8654_v58  ;;  %v529_v63 = vsel %vm527_vm5, %v522_v60, %v524_v43  ;;  %v596_v43 = vld [vmem:[%s15362_s2 + $0x28] sm:$0xff]  ;;  %v603_v49 = vld [vmem:[%s15362_s2 + $0x60] sm:$0xff] }
  0xf0   : > { %v530_v5 = vsel %vm527_vm5, %v526_v42, %v522_v60  ;;  %v569_v6 = vrot.slane %v564_v61, 4  ;;  %v571_v7 = vrot.slane %v565_v62, 4  ;;  %v534_v8 = vrot.slane %v529_v63, 4  ;;  %8657 = vmatpush3.bf16.msra.mxu1 %v8654_v58  ;;  %v595_v42 = vld [vmem:[%s15362_s2 + $0x20] sm:$0xff]  ;;  %v604_v50 = vld [vmem:[%s15362_s2 + $0x68] sm:$0xff] }
  0xf1   : > { %v536_v9 = vrot.slane %v530_v5, 4  ;;  %v614_v24 = vld [vmem:[#allocation2 + $0x38] sm:$0xff] }
  0xf2   : > { %575 = vst [vmem:[#allocation2 + $0x48] sm:$0xf0] %v569_v6  ;;  %577 = vst [vmem:[#allocation2 + $0x58] sm:$0xf0] %v571_v7  ;;  %v548_v12 = vpop.permute.xlu1 %547  ;;  %v546_v13 = vpop.permute.xlu0 %545 }
  0xf3   : > { %540 = vst [vmem:[#allocation2 + $0x30] sm:$0xf0] %v534_v8  ;;  %542 = vst [vmem:[#allocation2 + $0x40] sm:$0xf0] %v536_v9  ;;  %v550_v14 = vsel %vm549_vm7, %v546_v13, %v548_v12 }
  0xf4   : > { %554 = vst [vmem:[#allocation2 + $0x50] sm:$0xf] %v550_v14 }
  0xf6   : > { %v581_v15 = vpop.permute.xlu1 %580  ;;  %v544_v16 = vpop.permute.xlu0 %543 }
  0xf7   : > { %v551_v17 = vsel %vm549_vm7, %v544_v16, %v546_v13  ;;  %v552_v18 = vsel %vm549_vm7, %v548_v12, %v544_v16 }
  0xf8   : > { %553 = vst [vmem:[#allocation2 + $0x48] sm:$0xf] %v551_v17  ;;  %555 = vst [vmem:[#allocation2 + $0x58] sm:$0xf] %v552_v18 }
  0xfa   : > { %v579_v19 = vpop.permute.xlu1 %578  ;;  %v583_v20 = vpop.permute.xlu0 %582  ;;  %v613_v27 = vld [vmem:[#allocation2 + $0x30] sm:$0xff]  ;;  %v615_v29 = vld [vmem:[#allocation2 + $0x40] sm:$0xff] }
  0xfb   : > { %v586_v21 = vsel %vm15639_vm8, %v579_v19, %v581_v15  ;;  %v585_v22 = vsel %vm15639_vm8, %v581_v15, %v583_v20  ;;  %v587_v23 = vsel %vm15639_vm8, %v583_v20, %v579_v19  ;;  %v617_v25 = vld [vmem:[#allocation2 + $0x50] sm:$0xff] }
  0xfc   : > { %588 = vst [vmem:[#allocation2 + $0x60] sm:$0xf] %v586_v21  ;;  %589 = vst [vmem:[#allocation2 + $0x68] sm:$0xf] %v585_v22  ;;  %v8650_v26 = vpack.c.bf16 %v617_v25, %v614_v24 }
  0xfd   : > { %590 = vst [vmem:[#allocation2 + $0x70] sm:$0xf] %v587_v23 }
  0xfe   : > { %8651 = vmatprep.subr.bf16.mxu0 %v8650_v26 }
  0xff   : > { %v616_v28 = vld [vmem:[#allocation2 + $0x48] sm:$0xff]  ;;  %v618_v30 = vld [vmem:[#allocation2 + $0x58] sm:$0xff] }
 0x100   : > { %v8652_v31 = vpack.c.bf16 %v616_v28, %v613_v27  ;;  %v8658_v32 = vpack.c.bf16 %v618_v30, %v615_v29 }
 0x102   : > { %8653 = vmatpush1.bf16.msra.mxu0 %v8652_v31  ;;  %8659 = vmatprep.subr.bf16.mxu1 %v8658_v32 }
 0x103   : > { %8661 = vmatpush3.bf16.msra.mxu1 %v8658_v32  ;;  %v620_v33 = vld [vmem:[#allocation2 + $0x68] sm:$0xf]  ;;  %v619_v35 = vld [vmem:[#allocation2 + $0x60] sm:$0xf] }
 0x104   : > { %v621_v34 = vld [vmem:[#allocation2 + $0x70] sm:$0xf]  ;;  %7859 = vmatprep.subr.msk.mxu0 %vm671_vm9, %v620_v33 }
 0x105   : > { %8457 = vmatprep.subr.msk.mxu1 %vm671_vm9, %v621_v34 }
 0x106   : > { %7860 = vmatpush1.msk.msra.mxu0 %vm671_vm9, %v619_v35 }
 0x107   : > { %7861 = vmatmul.mubr.msk.f32.vlgmr.msra.gmra.mrb[0].mxu0 %vm15581_vm0, %v11445_v3  ;;  %8458 = vmatpush3.msk.msra.mxu1 %vm671_vm9, %v621_v34  ;;  %v1121_v3 = vshrl.u32 %v452_v10, 7  ;;  %v597_v10 = vld [vmem:[%s15362_s2 + $0x30] sm:$0xff] }
 0x108   : > { %8460 = vmatmul.mubr.msk.f32.vlgmr.msra.gmra.mrb[0].mxu1 %vm15581_vm0, %v592_v36  ;;  %751 = vmatprep.mubr.f32.mxu0 %v15392_v4 }
 0x109   : > { %8462 = vmatprep.mubr.msk.f32.mxu1 %vm15581_vm0, %v593_v37  ;;  %v1130_v40 = vsub.s32 2, %v1121_v3  ;;  %v1126_v51 = vsub.s32 1, %v1121_v3  ;;  %v11630_v56 = vsub.s32 0, %v1121_v3 }
 0x10b   : > { %7862 = vmatmul.mubr.msk.f32.gmra.mrb[2].mxu0 %vm15581_vm0, %v592_v36  ;;  %v11554_v41 = vrot.slane %v440_v39, %v1130_v40  ;;  %v11615_v54 = vrot.slane %v440_v39, %v1126_v51  ;;  %v1054_v55 = vpop.permute.xlu0 %1053  ;;  %15714 = vst [vmem:[#allocation24_spill] sm:$0xff] %v11630_v56  ;;  %v1059_v57 = vpop.permute.xlu1 %1058  ;;  %v11633_v62 = vrot.slane %v440_v39, %v11630_v56 }
 0x10c   : > { %8463 = vmatmul.mubr.msk.f32.gmra.mrb[2].mxu1 %vm15581_vm0, %v594_v38  ;;  %757 = vmatprep.mubr.f32.mxu0 %v15392_v4 }
 0x10d   : > { %15713 = vst [vmem:[#allocation23_spill] sm:$0xff] %v11554_v41  ;;  %8465 = vmatprep.mubr.msk.f32.mxu1 %vm15581_vm0, %v595_v42  ;;  %15715 = vst [vmem:[#allocation25_spill] sm:$0xff] %v11633_v62 }
 0x10f   : > { %7863 = vmatmul.mubr.msk.f32.gmra.mrb[4].mxu0 %vm15581_vm0, %v593_v37  ;;  %v1069_v13 = vpop.permute.xlu0 %1068  ;;  %v1064_v28 = vpop.permute.xlu1 %1063 }
 0x110   : > { %763 = vmatprep.mubr.f32.mxu0 %v15392_v4  ;;  %8466 = vmatmul.mubr.msk.f32.gmra.mrb[4].mxu1 %vm15581_vm0, %v596_v43 }
 0x111   : > { %8468 = vmatprep.mubr.msk.f32.mxu1 %vm15581_vm0, %v597_v10 }
 0x113   : > { %7864 = vmatmul.mubr.msk.f32.gmra.mrb[6].mxu0 %vm15581_vm0, %v594_v38 }
 0x114   : > { %769 = vmatprep.mubr.f32.mxu0 %v15392_v4  ;;  %8469 = vmatmul.mubr.msk.f32.gmra.mrb[6].mxu1 %vm15581_vm0, %v598_v44 }
 0x115   : > { %8471 = vmatprep.mubr.msk.f32.mxu1 %vm15581_vm0, %v599_v45 }
 0x117   : > { %7865 = vmatmul.mubr.msk.f32.gmra.mrb[8].mxu0 %vm15581_vm0, %v595_v42 }
 0x118   : > { %775 = vmatprep.mubr.f32.mxu0 %v15392_v4  ;;  %8472 = vmatmul.mubr.msk.f32.gmra.mrb[8].mxu1 %vm15581_vm0, %v600_v46 }
 0x119   : > { %8474 = vmatprep.mubr.msk.f32.mxu1 %vm15581_vm0, %v601_v47 }
 0x11b   : > { %7866 = vmatmul.mubr.msk.f32.gmra.mrb[10].mxu0 %vm15581_vm0, %v596_v43 }
 0x11c   : > { %781 = vmatprep.mubr.f32.mxu0 %v15392_v4  ;;  %8475 = vmatmul.mubr.msk.f32.gmra.mrb[10].mxu1 %vm15581_vm0, %v602_v48 }
 0x11d   : > { %8477 = vmatprep.mubr.msk.f32.mxu1 %vm15581_vm0, %v603_v49 }
 0x11f   : > { %7867 = vmatmul.mubr.msk.f32.gmra.mrb[12].mxu0 %vm15581_vm0, %v597_v10 }
 0x120   : > { %787 = vmatprep.mubr.f32.mxu0 %v15392_v4  ;;  %8478 = vmatmul.mubr.msk.f32.gmra.mrb[12].mxu1 %vm15581_vm0, %v604_v50 }
 0x121   : > { %8480 = vmatprep.mubr.msk.f32.mxu1 %vm15581_vm0, %v605_v52 }
 0x123   : > { %7868 = vmatmul.mubr.msk.f32.gmra.mrb[14].mxu0 %vm15581_vm0, %v598_v44 }
 0x124   : > { %793 = vmatprep.mubr.f32.mxu0 %v15392_v4  ;;  %8481 = vmatmul.mubr.msk.f32.gmra.mrb[14].mxu1 %vm15581_vm0, %v606_v53 }
 0x125   : > { %1211 = vmatprep.mubr.f32.mxu1 %v11615_v54 }
 0x127   : > { %7869 = vmatmul.mubr.msk.f32.gmra.mrb[16].mxu0 %vm15581_vm0, %v599_v45 }
 0x128   : > { %799 = vmatprep.mubr.f32.mxu0 %v15392_v4 }
 0x12b   : > { %7870 = vmatmul.mubr.msk.f32.gmra.mrb[18].mxu0 %vm15581_vm0, %v600_v46 }
 0x12c   : > { %805 = vmatprep.mubr.f32.mxu0 %v15392_v4 }
 0x12f   : > { %7871 = vmatmul.mubr.msk.f32.gmra.mrb[20].mxu0 %vm15581_vm0, %v601_v47 }
 0x130   : > { %811 = vmatprep.mubr.f32.mxu0 %v15392_v4 }
 0x133   : > { %7872 = vmatmul.mubr.msk.f32.gmra.mrb[22].mxu0 %vm15581_vm0, %v602_v48 }
 0x134   : > { %817 = vmatprep.mubr.f32.mxu0 %v15392_v4 }
 0x137   : > { %7873 = vmatmul.mubr.msk.f32.gmra.mrb[24].mxu0 %vm15581_vm0, %v603_v49 }
 0x138   : > { %823 = vmatprep.mubr.f32.mxu0 %v15392_v4 }
 0x13b   : > { %7874 = vmatmul.mubr.msk.f32.gmra.mrb[26].mxu0 %vm15581_vm0, %v604_v50 }
 0x13c   : > { %829 = vmatprep.mubr.f32.mxu0 %v15392_v4 }
 0x13f   : > { %7875 = vmatmul.mubr.msk.f32.gmra.mrb[28].mxu0 %vm15581_vm0, %v605_v52 }
 0x140   : > { %835 = vmatprep.mubr.f32.mxu0 %v15392_v4 }
 0x143   : > { %7876 = vmatmul.mubr.msk.f32.gmra.mrb[30].mxu0 %vm15581_vm0, %v606_v53 }
 0x1da   : > { %v747_v58 = vpop.f32.mrb[0].mxu0 }
 0x1db   : > { %v1071_v59 = vadd.f32 %v1054_v55, %v747_v58  ;;  %v749_v60 = vpop.f32.mrb[1].mxu0  ;;  %v8461_v61 = vpop.f32.mrb[0].mxu1 }
 0x1dc   : > { %v1072_v63 = vadd.f32 %v1054_v55, %v749_v60  ;;  %v1076_v5 = vadd.f32 %v8461_v61, %v1059_v57  ;;  %v908_v6 = vpop.f32.mrb[1].mxu1 }
 0x1dd   : > { %vm1083_vm10 = vcmp.ge.f32.partialorder %v1071_v59, 0.0  ;;  %v1095_v7 = vmul.f32 0.01, %v1071_v59  ;;  %v1073_v8 = vadd.f32 %v1054_v55, %v908_v6 }
 0x1de   : > { %vm1084_vm11 = vcmp.ge.f32.partialorder %v1072_v63, 0.0  ;;  %v1096_v9 = vmul.f32 0.01, %v1072_v63  ;;  %vm1088_vm12 = vcmp.ge.f32.partialorder %v1076_v5, 0.0  ;;  %v1100_v12 = vmul.f32 0.01, %v1076_v5 }
 0x1df   : > { %v1107_v14 = vsel %vm1083_vm10, %v1071_v59, %v1095_v7  ;;  %vm1085_vm13 = vcmp.ge.f32.partialorder %v1073_v8, 0.0  ;;  %v1097_v15 = vmul.f32 0.01, %v1073_v8  ;;  %v753_v16 = vpop.f32.mrb[2].mxu0  ;;  %v8464_v17 = vpop.f32.mrb[2].mxu1 }
 0x1e0   : > { %v1135_v18 = vmul.f32 %v11633_v62, %v1107_v14  ;;  %v1108_v19 = vsel %vm1084_vm11, %v1072_v63, %v1096_v9  ;;  %v1112_v20 = vsel %vm1088_vm12, %v1076_v5, %v1100_v12  ;;  %v1074_v21 = vadd.f32 %v1059_v57, %v753_v16  ;;  %v755_v22 = vpop.f32.mrb[3].mxu0  ;;  %v918_v23 = vpop.f32.mrb[3].mxu1 }
 0x1e1   : > { %v1136_v24 = vmul.f32 %v11615_v54, %v1108_v19  ;;  %v1140_v25 = vmul.f32 %v11554_v41, %v1112_v20  ;;  %v1109_v26 = vsel %vm1085_vm13, %v1073_v8, %v1097_v15  ;;  %v1075_v27 = vadd.f32 %v1059_v57, %v755_v22  ;;  %v11734_v22 = vld [vmem:[#allocation5 + $0x8] sm:$0xff] }
 0x1e2   : > { %v1137_v29 = vmul.f32 %v11554_v41, %v1109_v26  ;;  %vm1086_vm14 = vcmp.ge.f32.partialorder %v1074_v21, 0.0  ;;  %v1098_v30 = vmul.f32 0.01, %v1074_v21  ;;  %v1082_v31 = vadd.f32 %v8464_v17, %v1069_v13  ;;  %v759_v32 = vpop.f32.mrb[4].mxu0  ;;  %1892 = vmatprep.mubr.f32.mxu0 %v11734_v22  ;;  %v7904_v26 = vld [vmem:[%s15368_s8 + $0x30] sm:$0xff] }
 0x1e3   : > { %vm1087_vm15 = vcmp.ge.f32.partialorder %v1075_v27, 0.0  ;;  %v1099_v33 = vmul.f32 0.01, %v1075_v27  ;;  %v1079_v34 = vadd.f32 %v1064_v28, %v918_v23  ;;  %v1077_v35 = vadd.f32 %v1064_v28, %v759_v32  ;;  %v761_v36 = vpop.f32.mrb[5].mxu0  ;;  %v11749_v23 = vld [vmem:[#allocation5 + $0x10] sm:$0xff] }
 0x1e4   : > { %v1110_v37 = vsel %vm1086_vm14, %v1074_v21, %v1098_v30  ;;  %vm1094_vm10 = vcmp.ge.f32.partialorder %v1082_v31, 0.0  ;;  %v1106_v38 = vmul.f32 0.01, %v1082_v31  ;;  %v1078_v3 = vadd.f32 %v1064_v28, %v761_v36 }
 0x1e5   : > { %v1138_v39 = vmul.f32 %v11633_v62, %v1110_v37  ;;  %v1111_v40 = vsel %vm1087_vm15, %v1075_v27, %v1099_v33  ;;  %vm1091_vm11 = vcmp.ge.f32.partialorder %v1079_v34, 0.0  ;;  %v1103_v42 = vmul.f32 0.01, %v1079_v34  ;;  %v7905_v27 = vld [vmem:[%s15368_s8 + $0x38] sm:$0xff] }
 0x1e6   : > { %v1139_v43 = vmul.f32 %v11615_v54, %v1111_v40  ;;  %v1118_v10 = vsel %vm1094_vm10, %v1082_v31, %v1106_v38  ;;  %vm1089_vm12 = vcmp.ge.f32.partialorder %v1077_v35, 0.0  ;;  %v1101_v44 = vmul.f32 0.01, %v1077_v35  ;;  %v765_v45 = vpop.f32.mrb[6].mxu0 }
 0x1e7   : > { %v1146_v46 = vmul.f32 %v11554_v41, %v1118_v10  ;;  %v1115_v47 = vsel %vm1091_vm11, %v1079_v34, %v1103_v42  ;;  %vm1090_vm13 = vcmp.ge.f32.partialorder %v1078_v3, 0.0  ;;  %v1102_v48 = vmul.f32 0.01, %v1078_v3  ;;  %v767_v49 = vpop.f32.mrb[7].mxu0 }
 0x1e8   : > { %v1143_v50 = vmul.f32 %v11554_v41, %v1115_v47  ;;  %v1113_v51 = vsel %vm1089_vm12, %v1077_v35, %v1101_v44  ;;  %v1080_v52 = vadd.f32 %v1069_v13, %v765_v45  ;;  %v11643_v53 = vpack.i.bf16 %v1140_v25, %v1137_v29 }
 0x1e9   : > { %v1141_v55 = vmul.f32 %v11633_v62, %v1113_v51  ;;  %v1114_v57 = vsel %vm1090_vm13, %v1078_v3, %v1102_v48  ;;  %v1081_v58 = vadd.f32 %v1069_v13, %v767_v49  ;;  %v11646_v59 = vpack.i.bf16 %v1139_v43, %v1136_v24 }
 0x1ea   : > { %v1142_v60 = vmul.f32 %v11615_v54, %v1114_v57  ;;  %vm1092_vm14 = vcmp.ge.f32.partialorder %v1080_v52, 0.0  ;;  %v1104_v61 = vmul.f32 0.01, %v1080_v52  ;;  %10074 = vrot.lane.b32.xlu1 %v11643_v53, %s11176_s27  ;;  %v11651_v63 = vpack.c.bf16 %v1139_v43, %v1136_v24  ;;  %v7902_v24 = vld [vmem:[%s15368_s8 + $0x20] sm:$0xff] }
 0x1eb   : > { %vm1093_vm15 = vcmp.ge.f32.partialorder %v1081_v58, 0.0  ;;  %v1105_v5 = vmul.f32 0.01, %v1081_v58  ;;  %10104 = vrot.lane.b32.xlu0 %v11646_v59, %s11176_s27  ;;  %v11655_v6 = vpack.c.bf16 %v1138_v39, %v1135_v18  ;;  %v11658_v8 = vpack.i.bf16 %v1146_v46, %v1143_v50 }
 0x1ec   : > { %15716 = vst [vmem:[#allocation26_spill] sm:$0xff] %v11651_v63  ;;  %v1116_v7 = vsel %vm1092_vm14, %v1080_v52, %v1104_v61  ;;  %8663 = vmatprep.subr.bf16.mxu1 %v11651_v63  ;;  %v10088_v13 = vpack.i.bf16 %v1138_v39, %v1135_v18  ;;  %v11669_v16 = vpack.c.bf16 %v1140_v25, %v1137_v29  ;;  %v15386_v18 = vmov 0.0|0.0   ;;  %v7903_v25 = vld [vmem:[%s15368_s8 + $0x28] sm:$0xff] }
 0x1ed   : > { %15717 = vst [vmem:[#allocation27_spill] sm:$0xff] %v11655_v6  ;;  %v1144_v9 = vmul.f32 %v11633_v62, %v1116_v7  ;;  %v1117_v12 = vsel %vm1093_vm15, %v1081_v58, %v1105_v5  ;;  %8665 = vmatpush1.bf16.xpose.msra.mxu1 %v11655_v6  ;;  %v11673_v21 = vpack.c.bf16 %v1146_v46, %v1143_v50  ;;  %vm11185_vm10 = vmmov 0  }
 0x1ee   : > { %v1145_v14 = vmul.f32 %v11615_v54, %v1117_v12  ;;  %10079 = vrot.lane.b32.xlu1 %v11643_v53, %s11175_s23  ;;  %15719 = vst [vmem:[#allocation29_spill] sm:$0xff] %v11669_v16  ;;  %vm1815_vm11 = vcmask 261120  }
 0x1ef   : > { %10109 = vrot.lane.b32.xlu0 %v11658_v8, %s11176_s27  ;;  %v11667_v15 = vpack.c.bf16 %v1144_v9, %v1141_v55  ;;  %v10128_v17 = vpack.i.bf16 %v1144_v9, %v1141_v55  ;;  %15721 = vst [vmem:[#allocation31_spill] sm:$0xff] %v11673_v21 }
 0x1f0   : > { %v11671_v19 = vpack.c.bf16 %v1145_v14, %v1142_v60  ;;  %v10148_v20 = vpack.i.bf16 %v1145_v14, %v1142_v60 }
 0x1f1   : > { %15718 = vst [vmem:[#allocation28_spill] sm:$0xff] %v11667_v15 }
 0x1f2   : > { %15720 = vst [vmem:[#allocation30_spill] sm:$0xff] %v11671_v19  ;;  %10084 = vrot.lane.b32.xlu1 %v11643_v53, %s15646_s28  ;;  %8667 = vmatprep.subr.bf16.mxu1 %v11671_v19 }
 0x1f3   : > { %10114 = vrot.lane.b32.xlu0 %v11646_v59, %s11175_s23 }
 0x1f5   : > { %8669 = vmatpush1.bf16.xpose.msra.mxu1 %v11667_v15 }
 0x1f6   : > { %10089 = vrot.lane.b32.xlu1 %v10088_v13, %s11176_s27  ;;  %8670 = vmatprep.subr.bf16.mxu1 %v15386_v18 }
 0x1f7   : > { %10119 = vrot.lane.b32.xlu0 %v11658_v8, %s11175_s23 }
 0x1fa   : > { %10094 = vrot.lane.b32.xlu1 %v10088_v13, %s11175_s23 }
 0x1fb   : > { %10124 = vrot.lane.b32.xlu0 %v11646_v59, %s15646_s28 }
 0x1fc   : > { %1212 = vmatmul.mubr.f32.vlgmr.msra.gmra.mrb[16].mxu1 %v11633_v62 }
 0x1fd   : > { %8672 = vmatpush3.bf16.xpose.msra.mxu1 %v11669_v16  ;;  %8491 = vmatprep.mubr.msk.f32.mxu1 %vm11185_vm10, %v15392_v4 }
 0x1fe   : > { %10099 = vrot.lane.b32.xlu1 %v10088_v13, %s15646_s28  ;;  %8673 = vmatprep.subr.bf16.mxu1 %v15386_v18 }
 0x1ff   : > { %10129 = vrot.lane.b32.xlu0 %v10128_v17, %s11176_s27 }
 0x202   : > { %10149 = vrot.lane.b32.xlu1 %v10148_v20, %s11176_s27 }
 0x203   : > { %10134 = vrot.lane.b32.xlu0 %v11658_v8, %s15646_s28 }
 0x205   : > { %8675 = vmatpush3.bf16.xpose.msra.mxu1 %v11673_v21 }
 0x206   : > { %10154 = vrot.lane.b32.xlu1 %v10088_v13, %s15644_s26 }
 0x207   : > { %10139 = vrot.lane.b32.xlu0 %v10128_v17, %s11175_s23 }
 0x20a   : > { %10164 = vrot.lane.b32.xlu1 %v10148_v20, %s11175_s23 }
 0x20b   : > { %10144 = vrot.lane.b32.xlu0 %v10128_v17, %s15646_s28 }
 0x20c   : > { %8492 = vmatmul.mubr.f32.vlgmr.msra.gmra.mrb[16].mxu1 %v11554_v41 }
 0x20d   : > { %8502 = vmatprep.mubr.msk.f32.mxu1 %vm1815_vm11, %v11749_v23 }
 0x20e   : > { %10169 = vrot.lane.b32.xlu1 %v11643_v53, %s15644_s26 }
 0x20f   : > { %10159 = vrot.lane.b32.xlu0 %v11646_v59, %s15644_s26 }
 0x212   : > { %10184 = vrot.lane.b32.xlu1 %v10148_v20, %s15646_s28 }
 0x213   : > { %10174 = vrot.lane.b32.xlu0 %v10128_v17, %s15644_s26 }
 0x216   : > { %10189 = vrot.lane.b32.xlu1 %v11646_v59, %s15642_s29 }
 0x217   : > { %10179 = vrot.lane.b32.xlu0 %v11658_v8, %s15644_s26 }
 0x21a   : > { %10199 = vrot.lane.b32.xlu1 %v10148_v20, %s15644_s26 }
 0x21b   : > { %10194 = vrot.lane.b32.xlu0 %v11643_v53, %s15642_s29 }
 0x21e   : > { %10204 = vrot.lane.b32.xlu1 %v10088_v13, %s15642_s29 }
 0x21f   : > { %10214 = vrot.lane.b32.xlu0 %v10128_v17, %s15642_s29 }
 0x222   : > { %10209 = vrot.lane.b32.xlu1 %v11658_v8, %s15642_s29 }
 0x223   : > { %10224 = vrot.lane.b32.xlu0 %v11643_v53, %s15384_s19 }
 0x226   : > { %10219 = vrot.lane.b32.xlu1 %v11646_v59, %s15384_s19 }
 0x227   : > { %10239 = vrot.lane.b32.xlu0 %v10148_v20, %s15642_s29 }
 0x22a   : > { %10229 = vrot.lane.b32.xlu1 %v10088_v13, %s15384_s19 }
 0x22b   : > { %10244 = vrot.lane.b32.xlu0 %v10128_v17, %s15384_s19 }
 0x22e   : > { %10234 = vrot.lane.b32.xlu1 %v11658_v8, %s15384_s19 }
 0x22f   : > { %10254 = vrot.lane.b32.xlu0 %v10148_v20, %s15384_s19 }
 0x232   : > { %10249 = vrot.lane.b32.xlu1 %v11646_v59, %s15722_s16 }
 0x233   : > { %10259 = vrot.lane.b32.xlu0 %v11643_v53, %s15722_s16 }
 0x236   : > { %10264 = vrot.lane.b32.xlu1 %v10088_v13, %s15722_s16 }
 0x237   : > { %10274 = vrot.lane.b32.xlu0 %v10148_v20, %s15722_s16 }
 0x23a   : > { %10269 = vrot.lane.b32.xlu1 %v11658_v8, %s15722_s16 }
 0x23b   : > { %10279 = vrot.lane.b32.xlu0 %v10128_v17, %s15722_s16 }
 0x23e   : > { %10284 = vrot.lane.b32.xlu1 %v11646_v59, %s15640_s17 }
 0x23f   : > { %10289 = vrot.lane.b32.xlu0 %v11643_v53, %s15640_s17 }
 0x242   : > { %10294 = vrot.lane.b32.xlu1 %v10088_v13, %s15640_s17 }
 0x243   : > { %10304 = vrot.lane.b32.xlu0 %v10148_v20, %s15640_s17 }
 0x246   : > { %10299 = vrot.lane.b32.xlu1 %v11658_v8, %s15640_s17 }
 0x247   : > { %10309 = vrot.lane.b32.xlu0 %v10128_v17, %s15640_s17 }
 0x24a   : > { %2195 = vperm.xlu1 %10072, %v7902_v24  }
 0x24b   : > { %2200 = vperm.xlu0 %10071, %v7903_v25  }
 0x24e   : > { %2205 = vperm.xlu1 %10072, %v7904_v26  }
 0x24f   : > { %2210 = vperm.xlu0 %10071, %v7905_v27  }
 0x25c   : > { %v10075_v28 = vpop.permute.xlu1 %10074 }
 0x25d   : > { %v10105_v29 = vpop.permute.xlu0 %10104  ;;  %v10077_v30 = vunpack.i.h.bf16 %v10075_v28  ;;  %v10076_v31 = vunpack.i.l.bf16 %v10075_v28 }
 0x25e   : > { %v10107_v32 = vunpack.i.h.bf16 %v10105_v29  ;;  %v10106_v33 = vunpack.i.l.bf16 %v10105_v29 }
 0x260   : > { %v1312_v34 = vsel %vm454_vm3, %v10107_v32, %v10077_v30  ;;  %v1311_v35 = vsel %vm454_vm3, %v10106_v33, %v10076_v31  ;;  %v10080_v36 = vpop.permute.xlu1 %10079 }
 0x261   : > { %v10110_v37 = vpop.permute.xlu0 %10109  ;;  %v11772_v38 = vpack.c.bf16 %v1312_v34, %v1311_v35  ;;  %v10082_v40 = vunpack.i.h.bf16 %v10080_v36  ;;  %v10081_v42 = vunpack.i.l.bf16 %v10080_v36 }
 0x262   : > { %v10112_v27 = vunpack.i.h.bf16 %v10110_v37  ;;  %v10111_v28 = vunpack.i.l.bf16 %v10110_v37 }
 0x263   : > { %15723 = vst [vmem:[#allocation32_spill] sm:$0xff] %v11772_v38 }
 0x264   : > { %v11774_v3 = vpop.permute.xlu1 %10084 }
 0x265   : > { %v10115_v39 = vpop.permute.xlu0 %10114  ;;  %v10087_v61 = vunpack.i.h.bf16 %v11774_v3  ;;  %v10086_v5 = vunpack.i.l.bf16 %v11774_v3 }
 0x266   : > { %v10117_v43 = vunpack.i.h.bf16 %v10115_v39  ;;  %v10116_v10 = vunpack.i.l.bf16 %v10115_v39 }
 0x268   : > { %v1360_v44 = vsel %vm467_vm2, %v10117_v43, %v10082_v40  ;;  %v1359_v45 = vsel %vm467_vm2, %v10116_v10, %v10081_v42  ;;  %v10090_v46 = vpop.permute.xlu1 %10089 }
 0x269   : > { %v10092_v47 = vunpack.i.h.bf16 %v10090_v46  ;;  %v10091_v48 = vunpack.i.l.bf16 %v10090_v46  ;;  %v11780_v49 = vpop.permute.xlu0 %10119  ;;  %v11782_v50 = vpack.c.bf16 %v1360_v44, %v1359_v45 }
 0x26b   : > { %15724 = vst [vmem:[#allocation33_spill] sm:$0xff] %v11782_v50  ;;  %v1316_v51 = vsel %vm454_vm3, %v10092_v47, %v10107_v32  ;;  %v1320_v52 = vsel %vm454_vm3, %v10077_v30, %v10092_v47  ;;  %v1315_v53 = vsel %vm454_vm3, %v10091_v48, %v10106_v33  ;;  %v1319_v55 = vsel %vm454_vm3, %v10076_v31, %v10091_v48 }
 0x26c   : > { %v10095_v57 = vpop.permute.xlu1 %10094  ;;  %v11792_v58 = vpack.c.bf16 %v1316_v51, %v1315_v53  ;;  %v11794_v59 = vpack.c.bf16 %v1320_v52, %v1319_v55 }
 0x26d   : > { %v10125_v60 = vpop.permute.xlu0 %10124  ;;  %v10097_v20 = vunpack.i.h.bf16 %v10095_v57  ;;  %v10096_v24 = vunpack.i.l.bf16 %v10095_v57 }
 0x26e   : > { %15725 = vst [vmem:[#allocation34_spill] sm:$0xff] %v11792_v58  ;;  %15726 = vst [vmem:[#allocation35_spill] sm:$0xff] %v11794_v59  ;;  %8677 = vmatprep.subr.bf16.mxu0 %v11792_v58  ;;  %v10127_v7 = vunpack.i.h.bf16 %v10125_v60  ;;  %v10126_v8 = vunpack.i.l.bf16 %v10125_v60 }
 0x26f   : > { %8679 = vmatpush1.bf16.msra.mxu0 %v11794_v59  ;;  %v1364_v33 = vsel %vm467_vm2, %v10097_v20, %v10117_v43  ;;  %v1363_v34 = vsel %vm467_vm2, %v10096_v24, %v10116_v10  ;;  %v1368_v46 = vsel %vm467_vm2, %v10082_v40, %v10097_v20  ;;  %v1367_v47 = vsel %vm467_vm2, %v10081_v42, %v10096_v24 }
 0x270   : > { %v1408_v9 = vsel %vm489_vm4, %v10127_v7, %v10087_v61  ;;  %v1407_v12 = vsel %vm489_vm4, %v10126_v8, %v10086_v5  ;;  %v10100_v13 = vpop.permute.xlu1 %10099  ;;  %v11836_v52 = vpack.c.bf16 %v1364_v33, %v1363_v34  ;;  %v10121_v40 = vunpack.i.l.bf16 %v11780_v49 }
 0x271   : > { %v10130_v14 = vpop.permute.xlu0 %10129  ;;  %v11804_v17 = vpack.c.bf16 %v1408_v9, %v1407_v12  ;;  %v10102_v53 = vunpack.i.h.bf16 %v10100_v13  ;;  %v10101_v55 = vunpack.i.l.bf16 %v10100_v13  ;;  %v10122_v9 = vunpack.i.h.bf16 %v11780_v49 }
 0x272   : > { %v10132_v25 = vunpack.i.h.bf16 %v10130_v14  ;;  %v10131_v26 = vunpack.i.l.bf16 %v10130_v14  ;;  %15731 = vst [vmem:[#allocation40_spill] sm:$0xff] %v11836_v52  ;;  %v11843_v24 = vpack.c.bf16 %v1368_v46, %v1367_v47 }
 0x273   : > { %15727 = vst [vmem:[#allocation36_spill] sm:$0xff] %v11804_v17  ;;  %v1412_v13 = vsel %vm489_vm4, %v10102_v53, %v10127_v7 }
 0x274   : > { %v10150_v29 = vpop.permute.xlu1 %10149  ;;  %v1322_v35 = vsel %vm454_vm3, %v10112_v27, %v10132_v25  ;;  %v1321_v36 = vsel %vm454_vm3, %v10111_v28, %v10131_v26  ;;  %15732 = vst [vmem:[#allocation41_spill] sm:$0xff] %v11843_v24 }
 0x275   : > { %v10152_v30 = vunpack.i.h.bf16 %v10150_v29  ;;  %v10151_v31 = vunpack.i.l.bf16 %v10150_v29  ;;  %v11806_v32 = vpop.permute.xlu0 %10134  ;;  %v11834_v51 = vpack.c.bf16 %v1322_v35, %v1321_v36 }
 0x277   : > { %v1314_v37 = vsel %vm454_vm3, %v10152_v30, %v10112_v27  ;;  %v1318_v3 = vsel %vm454_vm3, %v10132_v25, %v10152_v30  ;;  %v1313_v39 = vsel %vm454_vm3, %v10151_v31, %v10111_v28  ;;  %v1317_v43 = vsel %vm454_vm3, %v10131_v26, %v10151_v31  ;;  %15730 = vst [vmem:[#allocation39_spill] sm:$0xff] %v11834_v51 }
 0x278   : > { %v11824_v44 = vpop.permute.xlu1 %10154  ;;  %v11826_v10 = vpack.c.bf16 %v1318_v3, %v1317_v43  ;;  %v11828_v45 = vpack.c.bf16 %v1314_v37, %v1313_v39  ;;  %v1411_v25 = vsel %vm489_vm4, %v10101_v55, %v10126_v8  ;;  %v1416_v8 = vsel %vm489_vm4, %v10087_v61, %v10102_v53 }
 0x279   : > { %v10140_v48 = vpop.permute.xlu0 %10139  ;;  %v1415_v30 = vsel %vm489_vm4, %v10086_v5, %v10101_v55  ;;  %v11872_v39 = vpack.c.bf16 %v1412_v13, %v1411_v25  ;;  %v10137_v5 = vunpack.i.h.bf16 %v11806_v32  ;;  %v10157_v53 = vunpack.i.h.bf16 %v11824_v44 }
 0x27a   : > { %15728 = vst [vmem:[#allocation37_spill] sm:$0xff] %v11826_v10  ;;  %15729 = vst [vmem:[#allocation38_spill] sm:$0xff] %v11828_v45  ;;  %8681 = vmatprep.subr.bf16.mxu0 %v11826_v10  ;;  %v10142_v57 = vunpack.i.h.bf16 %v10140_v48  ;;  %v10141_v60 = vunpack.i.l.bf16 %v10140_v48  ;;  %v10136_v48 = vunpack.i.l.bf16 %v11806_v32  ;;  %v10156_v55 = vunpack.i.l.bf16 %v11824_v44 }
 0x27b   : > { %8683 = vmatpush1.bf16.msra.mxu0 %v11834_v51  ;;  %15736 = vst [vmem:[#allocation45_spill] sm:$0xff] %v11872_v39 }
 0x27c   : > { %v10165_v12 = vpop.permute.xlu1 %10164  ;;  %8685 = vmatprep.subr.bf16.mxu0 %v11836_v52  ;;  %v1370_v26 = vsel %vm467_vm2, %v10122_v9, %v10142_v57  ;;  %v1369_v49 = vsel %vm467_vm2, %v10121_v40, %v10141_v60 }
 0x27d   : > { %v10167_v42 = vunpack.i.h.bf16 %v10165_v12  ;;  %v10166_v14 = vunpack.i.l.bf16 %v10165_v12  ;;  %v10145_v20 = vpop.permute.xlu0 %10144  ;;  %v11870_v3 = vpack.c.bf16 %v1370_v26, %v1369_v49 }
 0x27e   : > { %v10147_v35 = vunpack.i.h.bf16 %v10145_v20  ;;  %v10146_v36 = vunpack.i.l.bf16 %v10145_v20 }
 0x27f   : > { %v1362_v27 = vsel %vm467_vm2, %v10167_v42, %v10122_v9  ;;  %v1366_v28 = vsel %vm467_vm2, %v10142_v57, %v10167_v42  ;;  %v1361_v29 = vsel %vm467_vm2, %v10166_v14, %v10121_v40  ;;  %v1365_v7 = vsel %vm467_vm2, %v10141_v60, %v10166_v14  ;;  %8687 = vmatpush1.bf16.msra.mxu0 %v11843_v24 }
 0x280   : > { %v10170_v31 = vpop.permute.xlu1 %10169  ;;  %v11866_v33 = vpack.c.bf16 %v1366_v28, %v1365_v7  ;;  %v11868_v34 = vpack.c.bf16 %v1362_v27, %v1361_v29  ;;  %15735 = vst [vmem:[#allocation44_spill] sm:$0xff] %v11870_v3  ;;  %v1417_v40 = vsel %vm489_vm4, %v10136_v48, %v10146_v36  ;;  %v11887_v14 = vpack.c.bf16 %v1416_v8, %v1415_v30 }
 0x281   : > { %v10160_v37 = vpop.permute.xlu0 %10159  ;;  %v10172_v43 = vunpack.i.h.bf16 %v10170_v31  ;;  %v10171_v46 = vunpack.i.l.bf16 %v10170_v31  ;;  %v1418_v44 = vsel %vm489_vm4, %v10137_v5, %v10147_v35 }
 0x282   : > { %15733 = vst [vmem:[#allocation42_spill] sm:$0xff] %v11866_v33  ;;  %15734 = vst [vmem:[#allocation43_spill] sm:$0xff] %v11868_v34  ;;  %8689 = vmatprep.subr.bf16.mxu0 %v11866_v33  ;;  %v10162_v61 = vunpack.i.h.bf16 %v10160_v37  ;;  %v10161_v47 = vunpack.i.l.bf16 %v10160_v37  ;;  %v11912_v37 = vpack.c.bf16 %v1418_v44, %v1417_v40 }
 0x283   : > { %8691 = vmatpush1.bf16.msra.mxu0 %v11870_v3  ;;  %15737 = vst [vmem:[#allocation46_spill] sm:$0xff] %v11887_v14  ;;  %v1463_v30 = vsel %vm502_vm1, %v10171_v46, %v10156_v55 }
 0x284   : > { %v1455_v57 = vsel %vm502_vm1, %v10161_v47, %v10171_v46  ;;  %v1456_v60 = vsel %vm502_vm1, %v10162_v61, %v10172_v43  ;;  %v10185_v9 = vpop.permute.xlu1 %10184  ;;  %8693 = vmatprep.subr.bf16.mxu0 %v11872_v39  ;;  %v1459_v20 = vsel %vm502_vm1, %v10156_v55, %v10161_v47  ;;  %v1460_v13 = vsel %vm502_vm1, %v10157_v53, %v10162_v61 }
 0x285   : > { %v10187_v12 = vunpack.i.h.bf16 %v10185_v9  ;;  %v10186_v32 = vunpack.i.l.bf16 %v10185_v9  ;;  %v10175_v42 = vpop.permute.xlu0 %10174  ;;  %v11895_v25 = vpack.c.bf16 %v1456_v60, %v1455_v57  ;;  %15741 = vst [vmem:[#allocation50_spill] sm:$0xff] %v11912_v37  ;;  %v11917_v47 = vpack.c.bf16 %v1460_v13, %v1459_v20 }
 0x287   : > { %15738 = vst [vmem:[#allocation47_spill] sm:$0xff] %v11895_v25  ;;  %v1410_v26 = vsel %vm489_vm4, %v10187_v12, %v10137_v5  ;;  %v1414_v49 = vsel %vm489_vm4, %v10147_v35, %v10187_v12  ;;  %v1409_v27 = vsel %vm489_vm4, %v10186_v32, %v10136_v48  ;;  %v1413_v28 = vsel %vm489_vm4, %v10146_v36, %v10186_v32 }
 0x288   : > { %8695 = vmatpush1.bf16.msra.mxu0 %v11887_v14  ;;  %v10190_v29 = vpop.permute.xlu1 %10189  ;;  %v11906_v7 = vpack.c.bf16 %v1414_v49, %v1413_v28  ;;  %v11908_v8 = vpack.c.bf16 %v1410_v26, %v1409_v27  ;;  %v1464_v35 = vsel %vm502_vm1, %v10172_v43, %v10157_v53  ;;  %15742 = vst [vmem:[#allocation51_spill] sm:$0xff] %v11917_v47  ;;  %v10177_v5 = vunpack.i.h.bf16 %v10175_v42 }
 0x289   : > { %v10180_v31 = vpop.permute.xlu0 %10179  ;;  %v10176_v48 = vunpack.i.l.bf16 %v10175_v42  ;;  %v11923_v9 = vpack.c.bf16 %v1464_v35, %v1463_v30  ;;  %v10192_v30 = vunpack.i.h.bf16 %v10190_v29 }
 0x28a   : > { %15739 = vst [vmem:[#allocation48_spill] sm:$0xff] %v11906_v7  ;;  %15740 = vst [vmem:[#allocation49_spill] sm:$0xff] %v11908_v8  ;;  %8697 = vmatprep.subr.bf16.mxu0 %v11906_v7  ;;  %v10182_v61 = vunpack.i.h.bf16 %v10180_v31  ;;  %v10181_v36 = vunpack.i.l.bf16 %v10180_v31  ;;  %v10191_v31 = vunpack.i.l.bf16 %v10190_v29 }
 0x28b   : > { %15743 = vst [vmem:[#allocation52_spill] sm:$0xff] %v11923_v9 }
 0x28c   : > { %8699 = vmatpush1.bf16.msra.mxu0 %v11912_v37  ;;  %v10200_v57 = vpop.permute.xlu1 %10199  ;;  %v1465_v43 = vsel %vm502_vm1, %v10181_v36, %v10176_v48  ;;  %v1466_v53 = vsel %vm502_vm1, %v10182_v61, %v10177_v5 }
 0x28d   : > { %8701 = vmatprep.subr.bf16.mxu0 %v11917_v47  ;;  %v10202_v46 = vunpack.i.h.bf16 %v10200_v57  ;;  %v10201_v55 = vunpack.i.l.bf16 %v10200_v57  ;;  %v11921_v60 = vpop.permute.xlu0 %10194  ;;  %v11948_v28 = vpack.c.bf16 %v1466_v53, %v1465_v43 }
 0x28e   : > { %v15390_v26 = vunpack.i.h.bf16 %v11921_v60  ;;  %v15388_v49 = vunpack.i.l.bf16 %v11921_v60 }
 0x28f   : > { %v1458_v40 = vsel %vm502_vm1, %v10202_v46, %v10182_v61  ;;  %v1462_v12 = vsel %vm502_vm1, %v10177_v5, %v10202_v46  ;;  %v1457_v32 = vsel %vm502_vm1, %v10201_v55, %v10181_v36  ;;  %v1461_v42 = vsel %vm502_vm1, %v10176_v48, %v10201_v55  ;;  %15746 = vst [vmem:[#allocation55_spill] sm:$0xff] %v11948_v28 }
 0x290   : > { %8703 = vmatpush1.bf16.msra.mxu0 %v11923_v9  ;;  %v11938_v44 = vpop.permute.xlu1 %10204  ;;  %v11940_v20 = vpack.c.bf16 %v1462_v12, %v1461_v42  ;;  %v11942_v13 = vpack.c.bf16 %v1458_v40, %v1457_v32  ;;  %v1515_v5 = vsel %vm527_vm5, %v10191_v31, %v15388_v49  ;;  %v1516_v29 = vsel %vm527_vm5, %v10192_v30, %v15390_v26 }
 0x291   : > { %v11946_v27 = vpop.permute.xlu0 %10214  ;;  %v15391_v35 = vunpack.i.h.bf16 %v11938_v44  ;;  %v15389_v61 = vunpack.i.l.bf16 %v11938_v44  ;;  %v11977_v43 = vpack.c.bf16 %v1516_v29, %v1515_v5 }
 0x292   : > { %15744 = vst [vmem:[#allocation53_spill] sm:$0xff] %v11940_v20  ;;  %15745 = vst [vmem:[#allocation54_spill] sm:$0xff] %v11942_v13  ;;  %8705 = vmatprep.subr.bf16.mxu0 %v11940_v20 }
 0x293   : > { %v1519_v57 = vsel %vm527_vm5, %v15389_v61, %v10191_v31  ;;  %v1520_v46 = vsel %vm527_vm5, %v15391_v35, %v10192_v30  ;;  %15747 = vst [vmem:[#allocation56_spill] sm:$0xff] %v11977_v43 }
 0x294   : > { %8707 = vmatpush1.bf16.msra.mxu0 %v11948_v28  ;;  %v11954_v36 = vpop.permute.xlu1 %10209  ;;  %v12001_v30 = vpack.c.bf16 %v1520_v46, %v1519_v57  ;;  %v15751_v57 = vunpack.i.h.bf16 %v11946_v27 }
 0x295   : > { %8709 = vmatprep.subr.bf16.mxu0 %v11651_v63  ;;  %v11965_v48 = vpop.permute.xlu0 %10224  ;;  %v15395_v53 = vunpack.i.h.bf16 %v11954_v36  ;;  %v15394_v40 = vunpack.i.l.bf16 %v11954_v36 }
 0x296   : > { %v15397_v12 = vunpack.i.h.bf16 %v11965_v48  ;;  %v15396_v32 = vunpack.i.l.bf16 %v11965_v48  ;;  %15748 = vst [vmem:[#allocation57_spill] sm:$0xff] %v12001_v30 }
 0x298   : > { %8711 = vmatpush1.bf16.msra.mxu0 %v11655_v6  ;;  %v10220_v55 = vpop.permute.xlu1 %10219 }
 0x299   : > { %8713 = vmatprep.subr.bf16.mxu0 %v11671_v19  ;;  %v10240_v42 = vpop.permute.xlu0 %10239  ;;  %v10222_v31 = vunpack.i.h.bf16 %v10220_v55  ;;  %v10221_v18 = vunpack.i.l.bf16 %v10220_v55  ;;  %v15750_v55 = vunpack.i.l.bf16 %v11946_v27 }
 0x29a   : > { %v10242_v49 = vunpack.i.h.bf16 %v10240_v42  ;;  %v10241_v61 = vunpack.i.l.bf16 %v10240_v42 }
 0x29c   : > { %8715 = vmatpush1.bf16.msra.mxu0 %v11667_v15  ;;  %v1517_v29 = vsel %vm527_vm5, %v10241_v61, %v15394_v40  ;;  %v1518_v26 = vsel %vm527_vm5, %v10242_v49, %v15395_v53  ;;  %v11994_v35 = vpop.permute.xlu1 %10229  ;;  %v1564_v40 = vsel %vm549_vm7, %v10222_v31, %v15397_v12  ;;  %v1563_v53 = vsel %vm549_vm7, %v10221_v18, %v15396_v32 }
 0x29d   : > { %8717 = vmatprep.subr.bf16.mxu0 %v11977_v43  ;;  %v11999_v4 = vpop.permute.xlu0 %10244  ;;  %v12003_v5 = vpack.c.bf16 %v1518_v26, %v1517_v29  ;;  %v1521_v42 = vsel %vm527_vm5, %v15750_v55, %v10241_v61  ;;  %v1522_v26 = vsel %vm527_vm5, %v15751_v57, %v10242_v49  ;;  %v15752_v29 = vunpack.i.l.bf16 %v11994_v35 }
 0x29e   : > { %v15753_v12 = vunpack.i.h.bf16 %v11994_v35  ;;  %v12033_v56 = vpack.c.bf16 %v1522_v26, %v1521_v42  ;;  %v12035_v49 = vpack.c.bf16 %v1564_v40, %v1563_v53 }
 0x29f   : > { %15749 = vst [vmem:[#allocation58_spill] sm:$0xff] %v12003_v5  ;;  %v1567_v32 = vsel %vm549_vm7, %v15752_v29, %v10221_v18  ;;  %v15411_v18 = vunpack.i.l.bf16 %v11999_v4 }
 0x2a0   : > { %8719 = vmatpush1.bf16.msra.mxu0 %v12001_v30  ;;  %v12022_v46 = vpop.permute.xlu1 %10234  ;;  %v1568_v61 = vsel %vm549_vm7, %v15753_v12, %v10222_v31  ;;  %15754 = vst [vmem:[#allocation59_spill] sm:$0xff] %v12033_v56  ;;  %15755 = vst [vmem:[#allocation60_spill] sm:$0xff] %v12035_v49 }
 0x2a1   : > { %8721 = vmatprep.subr.bf16.mxu0 %v12003_v5  ;;  %v10255_v55 = vpop.permute.xlu0 %10254  ;;  %v15406_v57 = vunpack.i.h.bf16 %v12022_v46  ;;  %v15405_v1 = vunpack.i.l.bf16 %v12022_v46  ;;  %v15414_v5 = vunpack.i.h.bf16 %v11999_v4  ;;  %v12061_v29 = vpack.c.bf16 %v1568_v61, %v1567_v32 }
 0x2a2   : > { %v10257_v0 = vunpack.i.h.bf16 %v10255_v55  ;;  %v10256_v2 = vunpack.i.l.bf16 %v10255_v55 }
 0x2a3   : > { %15756 = vst [vmem:[#allocation61_spill] sm:$0xff] %v12061_v29 }
 0x2a4   : > { %8723 = vmatpush1.bf16.msra.mxu0 %v12033_v56  ;;  %v1565_v12 = vsel %vm549_vm7, %v10256_v2, %v15405_v1  ;;  %v1566_v53 = vsel %vm549_vm7, %v10257_v0, %v15406_v57  ;;  %v10250_v40 = vpop.permute.xlu1 %10249  ;;  %v1569_v31 = vsel %vm549_vm7, %v15411_v18, %v10256_v2  ;;  %v1570_v42 = vsel %vm549_vm7, %v15414_v5, %v10257_v0 }
 0x2a5   : > { %8725 = vmatprep.subr.bf16.mxu0 %v12035_v49  ;;  %v12059_v26 = vpop.permute.xlu0 %10259  ;;  %v12063_v55 = vpack.c.bf16 %v1566_v53, %v1565_v12  ;;  %v10252_v1 = vunpack.i.h.bf16 %v10250_v40  ;;  %v10251_v57 = vunpack.i.l.bf16 %v10250_v40  ;;  %v12081_v40 = vpack.c.bf16 %v1570_v42, %v1569_v31 }
 0x2a6   : > { %v15413_v49 = vunpack.i.h.bf16 %v12059_v26  ;;  %v15412_v56 = vunpack.i.l.bf16 %v12059_v26 }
 0x2a7   : > { %15757 = vst [vmem:[#allocation62_spill] sm:$0xff] %v12063_v55  ;;  %15758 = vst [vmem:[#allocation63_spill] sm:$0xff] %v12081_v40 }
 0x2a8   : > { %8727 = vmatpush1.bf16.msra.mxu0 %v12061_v29  ;;  %v1611_v2 = vsel %vm562_vm6, %v10251_v57, %v15412_v56  ;;  %v1612_v0 = vsel %vm562_vm6, %v10252_v1, %v15413_v49  ;;  %v12076_v32 = vpop.permute.xlu1 %10264 }
 0x2a9   : > { %8729 = vmatprep.subr.bf16.mxu0 %v12063_v55  ;;  %v15420_v61 = vunpack.i.h.bf16 %v12076_v32  ;;  %v15419_v12 = vunpack.i.l.bf16 %v12076_v32  ;;  %v10275_v53 = vpop.permute.xlu0 %10274  ;;  %v12083_v18 = vpack.c.bf16 %v1612_v0, %v1611_v2 }
 0x2aa   : > { %v10277_v5 = vunpack.i.h.bf16 %v10275_v53  ;;  %v10276_v55 = vunpack.i.l.bf16 %v10275_v53 }
 0x2ab   : > { %15759 = vst [vmem:[#allocation64_spill] sm:$0xff] %v12083_v18  ;;  %v1615_v56 = vsel %vm562_vm6, %v15419_v12, %v10251_v57  ;;  %v1616_v49 = vsel %vm562_vm6, %v15420_v61, %v10252_v1 }
 0x2ac   : > { %8731 = vmatpush1.bf16.msra.mxu0 %v12081_v40  ;;  %v12094_v29 = vpop.permute.xlu1 %10269  ;;  %v12097_v31 = vpack.c.bf16 %v1616_v49, %v1615_v56 }
 0x2ad   : > { %8733 = vmatprep.subr.bf16.mxu0 %v12083_v18  ;;  %v15423_v42 = vunpack.i.h.bf16 %v12094_v29  ;;  %v15428_v2 = vunpack.i.l.bf16 %v12094_v29  ;;  %v12101_v57 = vpop.permute.xlu0 %10279 }
 0x2ae   : > { %15760 = vst [vmem:[#allocation65_spill] sm:$0xff] %v12097_v31  ;;  %v15436_v0 = vunpack.i.h.bf16 %v12101_v57  ;;  %v15433_v1 = vunpack.i.l.bf16 %v12101_v57 }
 0x2af   : > { %v1614_v53 = vsel %vm562_vm6, %v10277_v5, %v15423_v42  ;;  %v1613_v56 = vsel %vm562_vm6, %v10276_v55, %v15428_v2 }
 0x2b0   : > { %8735 = vmatpush1.bf16.msra.mxu0 %v12097_v31  ;;  %v1617_v49 = vsel %vm562_vm6, %v15433_v1, %v10276_v55  ;;  %v1618_v12 = vsel %vm562_vm6, %v15436_v0, %v10277_v5  ;;  %v10285_v61 = vpop.permute.xlu1 %10284  ;;  %v12122_v18 = vpack.c.bf16 %v1614_v53, %v1613_v56  ;;  %v12132_v5 = vld [vmem:[#allocation5] sm:$0xff] }
 0x2b1   : > { %v10290_v42 = vpop.permute.xlu0 %10289  ;;  %v12124_v40 = vpack.c.bf16 %v1618_v12, %v1617_v49  ;;  %v10287_v30 = vunpack.i.h.bf16 %v10285_v61  ;;  %v10286_v2 = vunpack.i.l.bf16 %v10285_v61  ;;  %v12136_v61 = vld [vmem:[#allocation5 + $0x20] sm:$0xff] }
 0x2b2   : > { %15761 = vst [vmem:[#allocation66_spill] sm:$0xff] %v12122_v18  ;;  %v10292_v43 = vunpack.i.h.bf16 %v10290_v42  ;;  %v10291_v31 = vunpack.i.l.bf16 %v10290_v42  ;;  %8737 = vmatprep.subr.bf16.mxu0 %v12122_v18 }
 0x2b3   : > { %15762 = vst [vmem:[#allocation67_spill] sm:$0xff] %v12124_v40 }
 0x2b4   : > { %v1659_v55 = vsel %vm15639_vm8, %v10286_v2, %v10291_v31  ;;  %v1660_v1 = vsel %vm15639_vm8, %v10287_v30, %v10292_v43  ;;  %v10295_v15 = vpop.permute.xlu1 %10294  ;;  %8739 = vmatpush1.bf16.msra.mxu0 %v12124_v40 }
 0x2b5   : > { %v10297_v53 = vunpack.i.h.bf16 %v10295_v15  ;;  %v10296_v12 = vunpack.i.l.bf16 %v10295_v15  ;;  %v10305_v56 = vpop.permute.xlu0 %10304  ;;  %v12134_v49 = vpack.c.bf16 %v1660_v1, %v1659_v55 }
 0x2b6   : > { %v10307_v42 = vunpack.i.h.bf16 %v10305_v56  ;;  %v10306_v0 = vunpack.i.l.bf16 %v10305_v56 }
 0x2b7   : > { %15763 = vst [vmem:[#allocation68_spill] sm:$0xff] %v12134_v49  ;;  %v1668_v18 = vsel %vm15639_vm8, %v10292_v43, %v10297_v53  ;;  %v1663_v19 = vsel %vm15639_vm8, %v10296_v12, %v10286_v2  ;;  %v1664_v40 = vsel %vm15639_vm8, %v10297_v53, %v10287_v30  ;;  %v1667_v6 = vsel %vm15639_vm8, %v10291_v31, %v10296_v12  ;;  %v12153_v43 = vld [vmem:[#allocation5 + $0x18] sm:$0xff] }
 0x2b8   : > { %1893 = vmatmul.mubr.f32.vlgmr.msra.gmra.mrb[8].mxu0 %v12132_v5  ;;  %v12147_v15 = vpack.c.bf16 %v1668_v18, %v1667_v6  ;;  %v10300_v1 = vpop.permute.xlu1 %10299  ;;  %8741 = vmatprep.subr.bf16.mxu0 %v12134_v49  ;;  %v12150_v55 = vpack.c.bf16 %v1664_v40, %v1663_v19  ;;  %v12155_v30 = vld [vmem:[#allocation5 + $0x38] sm:$0xff] }
 0x2b9   : > { %1898 = vmatprep.mubr.f32.mxu0 %v12136_v61  ;;  %v10302_v2 = vunpack.i.h.bf16 %v10300_v1  ;;  %v10301_v56 = vunpack.i.l.bf16 %v10300_v1  ;;  %v10310_v63 = vpop.permute.xlu0 %10309  ;;  %v12174_v1 = vld [vmem:[#allocation5 + $0x30] sm:$0xff] }
 0x2ba   : > { %15764 = vst [vmem:[#allocation69_spill] sm:$0xff] %v12147_v15  ;;  %15765 = vst [vmem:[#allocation70_spill] sm:$0xff] %v12150_v55  ;;  %8743 = vmatpush1.bf16.msra.mxu0 %v12150_v55  ;;  %8781 = vmatprep.subr.bf16.mxu1 %v12147_v15  ;;  %v10312_v6 = vunpack.i.h.bf16 %v10310_v63  ;;  %v10311_v18 = vunpack.i.l.bf16 %v10310_v63 }
 0x2bb   : > { %v1662_v31 = vsel %vm15639_vm8, %v10307_v42, %v10302_v2  ;;  %v1661_v19 = vsel %vm15639_vm8, %v10306_v0, %v10301_v56  ;;  %8783 = vmatpush3.bf16.msra.mxu1 %v12147_v15 }
 0x2bc   : > { %1899 = vmatmul.mubr.f32.gmra.mrb[10].mxu0 %v12153_v43  ;;  %v1665_v40 = vsel %vm15639_vm8, %v10311_v18, %v10306_v0  ;;  %v1666_v53 = vsel %vm15639_vm8, %v10312_v6, %v10307_v42  ;;  %v1669_v12 = vsel %vm15639_vm8, %v10301_v56, %v10311_v18  ;;  %v1670_v63 = vsel %vm15639_vm8, %v10302_v2, %v10312_v6  ;;  %v12184_v0 = vld [vmem:[#allocation5 + $0x50] sm:$0xff]  ;;  %v12188_v42 = vld [vmem:[#allocation5 + $0x48] sm:$0xff]  ;;  %v1703_v56 = vld [vmem:[#allocation5 + $0x40] sm:$0xff] }
 0x2bd   : > { %1904 = vmatprep.mubr.f32.mxu0 %v12155_v30  ;;  %v12176_v55 = vpack.c.bf16 %v1670_v63, %v1669_v12  ;;  %v12178_v15 = vpack.c.bf16 %v1662_v31, %v1661_v19  ;;  %v12180_v49 = vpack.c.bf16 %v1666_v53, %v1665_v40  ;;  %v1700_v2 = vld [vmem:[#allocation5 + $0x28] sm:$0xff]  ;;  %v15769_v6 = vmov 0.0   ;;  %v1706_v63 = vld [vmem:[#allocation5 + $0x58] sm:$0xff] }
 0x2be   : > { %v15770_v18 = vunpack.i.h.bf16 %v11938_v44  ;;  %v15771_v31 = vunpack.i.h.bf16 %v11921_v60  ;;  %v15772_v40 = vunpack.i.l.bf16 %v11938_v44  ;;  %v15773_v53 = vunpack.i.l.bf16 %v11921_v60 }
 0x2bf   : > { %15766 = vst [vmem:[#allocation71_spill] sm:$0xff] %v12176_v55  ;;  %15767 = vst [vmem:[#allocation72_spill] sm:$0xff] %v12178_v15  ;;  %8745 = vmatprep.subr.bf16.mxu0 %v12178_v15  ;;  %8785 = vmatprep.subr.bf16.mxu1 %v12176_v55  ;;  %v15775_v60 = vunpack.i.h.bf16 %v11946_v27 }
 0x2c0   : > { %15768 = vst [vmem:[#allocation73_spill] sm:$0xff] %v12180_v49  ;;  %1905 = vmatmul.mubr.f32.gmra.mrb[12].mxu0 %v12174_v1  ;;  %8787 = vmatpush3.bf16.msra.mxu1 %v12176_v55  ;;  %v1524_v19 = vsel %vm527_vm5, %v15771_v31, %v15770_v18  ;;  %v1523_v12 = vsel %vm527_vm5, %v15773_v53, %v15772_v40  ;;  %v15776_v18 = vunpack.i.h.bf16 %v11954_v36  ;;  %v15777_v40 = vunpack.i.l.bf16 %v11946_v27 }
 0x2c1   : > { %8747 = vmatpush1.bf16.msra.mxu0 %v12180_v49  ;;  %1910 = vmatprep.mubr.f32.mxu0 %v12184_v0  ;;  %v12216_v44 = vpack.c.bf16 %v1524_v19, %v1523_v12  ;;  %v15778_v53 = vunpack.i.l.bf16 %v11954_v36  ;;  %v15780_v36 = vunpack.i.h.bf16 %v11994_v35  ;;  %v15781_v19 = vunpack.i.h.bf16 %v11965_v48 }
 0x2c2   : > { %8749 = vmatprep.subr.bf16.mxu0 %v11669_v16  ;;  %8947 = vmatprep.subr.bf16.mxu1 %v11669_v16  ;;  %v1526_v31 = vsel %vm527_vm5, %v15776_v18, %v15775_v60  ;;  %v15782_v60 = vunpack.i.l.bf16 %v11994_v35  ;;  %v15783_v18 = vunpack.i.l.bf16 %v11965_v48  ;;  %v15785_v35 = vunpack.i.h.bf16 %v11999_v4 }
 0x2c3   : > { %8503 = vmatmul.mubr.msk.f32.vlgmr.msra.gmra.mrb[4].mxu1 %vm1815_vm11, %v1700_v2  ;;  %15774 = vst [vmem:[#allocation74_spill] sm:$0xff] %v12216_v44  ;;  %v1572_v12 = vsel %vm549_vm7, %v15781_v19, %v15780_v36  ;;  %v15786_v48 = vunpack.i.h.bf16 %v12022_v46 }
 0x2c4   : > { %1911 = vmatmul.mubr.f32.gmra.mrb[14].mxu0 %v12188_v42  ;;  %8949 = vmatpush3.bf16.msra.mxu1 %v11772_v38 }
 0x2c5   : > { %1981 = vmatprep.mubr.f32.mxu0 %v15769_v6  ;;  %8505 = vmatprep.mubr.msk.f32.mxu1 %vm1815_vm11, %v1703_v56 }
 0x2c6   : > { %8951 = vmatprep.subr.bf16.mxu1 %v11673_v21 }
 0x2c7   : > { %8506 = vmatmul.mubr.msk.f32.gmra.mrb[6].mxu1 %vm1815_vm11, %v1706_v63 }
 0x2c8   : > { %7894 = vmatmul.mubr.msk.f32.vlgmr.msra.gmra.mrb[8].mxu0 %vm1815_vm11, %v11749_v23  ;;  %v1525_v23 = vsel %vm527_vm5, %v15778_v53, %v15777_v40  ;;  %8953 = vmatpush3.bf16.msra.mxu1 %v11828_v45  ;;  %v1574_v40 = vsel %vm549_vm7, %v15786_v48, %v15785_v35  ;;  %v15787_v53 = vunpack.i.l.bf16 %v11999_v4  ;;  %v15790_v4 = vunpack.i.h.bf16 %v12076_v32 }
 0x2c9   : > { %8751 = vmatpush3.bf16.msra.mxu0 %v11772_v38  ;;  %1987 = vmatprep.mubr.f32.mxu0 %v15769_v6  ;;  %v12237_v27 = vpack.c.bf16 %v1526_v31, %v1525_v23  ;;  %v15788_v23 = vunpack.i.l.bf16 %v12022_v46  ;;  %v15791_v46 = vunpack.i.h.bf16 %v12059_v26  ;;  %v15798_v35 = vunpack.i.h.bf16 %v12094_v29  ;;  %v15825_v38 = vld [vmem:[#allocation68_spill] sm:$0xff] }
 0x2ca   : > { %8753 = vmatprep.subr.bf16.mxu0 %v11673_v21  ;;  %8955 = vmatprep.subr.bf16.mxu1 %v12216_v44 }
 0x2cb   : > { %15779 = vst [vmem:[#allocation75_spill] sm:$0xff] %v12237_v27  ;;  %v1620_v19 = vsel %vm562_vm6, %v15791_v46, %v15790_v4  ;;  %v12352_v46 = vld [vmem:[%s15364_s4] sm:$0xff] }
 0x2cc   : > { %7895 = vmatmul.mubr.msk.f32.gmra.mrb[10].mxu0 %vm1815_vm11, %v1700_v2  ;;  %v1571_v2 = vsel %vm549_vm7, %v15783_v18, %v15782_v60  ;;  %8957 = vmatpush3.bf16.msra.mxu1 %v11782_v50  ;;  %v15793_v60 = vunpack.i.l.bf16 %v12059_v26  ;;  %v15795_v18 = vunpack.i.l.bf16 %v12101_v57 }
 0x2cd   : > { %8755 = vmatpush3.bf16.msra.mxu0 %v11828_v45  ;;  %1993 = vmatprep.mubr.f32.mxu0 %v15769_v6  ;;  %v12257_v31 = vpack.c.bf16 %v1572_v12, %v1571_v2  ;;  %v15792_v12 = vunpack.i.l.bf16 %v12076_v32  ;;  %v15796_v2 = vunpack.i.l.bf16 %v12094_v29  ;;  %v15797_v32 = vunpack.i.h.bf16 %v12101_v57 }
 0x2ce   : > { %8757 = vmatprep.subr.bf16.mxu0 %v12216_v44  ;;  %8959 = vmatprep.subr.bf16.mxu1 %v12237_v27 }
 0x2cf   : > { %15784 = vst [vmem:[#allocation76_spill] sm:$0xff] %v12257_v31  ;;  %v1621_v26 = vsel %vm562_vm6, %v15796_v2, %v15795_v18  ;;  %v1622_v48 = vsel %vm562_vm6, %v15798_v35, %v15797_v32 }
 0x2d0   : > { %7896 = vmatmul.mubr.msk.f32.gmra.mrb[12].mxu0 %vm1815_vm11, %v1703_v56  ;;  %v1573_v56 = vsel %vm549_vm7, %v15788_v23, %v15787_v53  ;;  %8961 = vmatpush3.bf16.msra.mxu1 %v11868_v34 }
 0x2d1   : > { %8759 = vmatpush3.bf16.msra.mxu0 %v11782_v50  ;;  %1999 = vmatprep.mubr.f32.mxu0 %v15769_v6  ;;  %v12276_v36 = vpack.c.bf16 %v1574_v40, %v1573_v56  ;;  %v12313_v40 = vpack.c.bf16 %v1622_v48, %v1621_v26  ;;  %v12347_v56 = vld [vmem:[%s15364_s4 + $0x8] sm:$0xff] }
 0x2d2   : > { %8761 = vmatprep.subr.bf16.mxu0 %v12237_v27  ;;  %8963 = vmatprep.subr.bf16.mxu1 %v12257_v31 }
 0x2d3   : > { %15789 = vst [vmem:[#allocation77_spill] sm:$0xff] %v12276_v36  ;;  %15799 = vst [vmem:[#allocation79_spill] sm:$0xff] %v12313_v40  ;;  %3401 = vmatprep.mubr.f32.mxu1 %v12347_v56 }
 0x2d4   : > { %7897 = vmatmul.mubr.msk.f32.gmra.mrb[14].mxu0 %vm1815_vm11, %v1706_v63  ;;  %v1619_v63 = vsel %vm562_vm6, %v15793_v60, %v15792_v12  ;;  %8965 = vmatpush3.bf16.msra.mxu1 %v11804_v17 }
 0x2d5   : > { %8763 = vmatpush3.bf16.msra.mxu0 %v11868_v34  ;;  %2070 = vmatprep.mubr.f32.mxu0 %v11734_v22  ;;  %v12295_v22 = vpack.c.bf16 %v1620_v19, %v1619_v63  ;;  %v12355_v19 = vpop.permute.xlu0 %2200 }
 0x2d6   : > { %8765 = vmatprep.subr.bf16.mxu0 %v12257_v31  ;;  %8967 = vmatprep.subr.bf16.mxu1 %v12276_v36 }
 0x2d7   : > { %15794 = vst [vmem:[#allocation78_spill] sm:$0xff] %v12295_v22 }
 0x2d8   : > { %8969 = vmatpush3.bf16.msra.mxu1 %v11908_v8 }
 0x2d9   : > { %8767 = vmatpush3.bf16.msra.mxu0 %v11804_v17  ;;  %8971 = vmatprep.subr.bf16.mxu1 %v12295_v22 }
 0x2da   : > { %8769 = vmatprep.subr.bf16.mxu0 %v12276_v36 }
 0x2dc   : > { %8973 = vmatpush3.bf16.msra.mxu1 %v11895_v25 }
 0x2dd   : > { %8771 = vmatpush3.bf16.msra.mxu0 %v11908_v8  ;;  %8975 = vmatprep.subr.bf16.mxu1 %v12313_v40 }
 0x2de   : > { %8773 = vmatprep.subr.bf16.mxu0 %v12295_v22 }
 0x2df   : > { %v12330_v29 = vpop.f32.mrb[16].mxu1 }
 0x2e0   : > { %8977 = vmatpush3.bf16.msra.mxu1 %v11942_v13  ;;  %15800 = vst [vmem:[#allocation80_spill] sm:$0xff] %v12330_v29  ;;  %v8493_v57 = vpop.f32.mrb[17].mxu1 }
 0x2e1   : > { %8775 = vmatpush3.bf16.msra.mxu0 %v11895_v25 }
 0x2e2   : > { %8777 = vmatprep.subr.bf16.mxu0 %v12313_v40 }
 0x2e3   : > { %3402 = vmatmul.mubr.f32.vlgmr.msra.gmra.mrb[18].mxu1 %v12352_v46 }
 0x2e5   : > { %8779 = vmatpush3.bf16.msra.mxu0 %v11942_v13 }
 0x2e8   : > { %2071 = vmatmul.mubr.f32.vlgmr.msra.gmra.mrb[32].mxu0 %v12132_v5 }
 0x2e9   : > { %2075 = vmatprep.mubr.f32.mxu0 %v12136_v61  ;;  %v12336_v61 = vpop.permute.xlu1 %2195 }
 0x2ec   : > { %2076 = vmatmul.mubr.f32.gmra.mrb[34].mxu0 %v12153_v43 }
 0x2ed   : > { %2080 = vmatprep.mubr.f32.mxu0 %v12155_v30  ;;  %v12360_v35 = vpop.permute.xlu1 %2205 }
 0x2f0   : > { %2081 = vmatmul.mubr.f32.gmra.mrb[36].mxu0 %v12174_v1 }
 0x2f1   : > { %2085 = vmatprep.mubr.f32.mxu0 %v12184_v0 }
 0x2f4   : > { %2086 = vmatmul.mubr.f32.gmra.mrb[38].mxu0 %v12188_v42 }
 0x2f5   : > { %2337 = vmatprep.mubr.f32.mxu0 %v11615_v54 }
 0x396   : > { %v12332_v53 = vpop.f32.mrb[4].mxu1 }
 0x397   : > { %v12334_v5 = vpop.f32.mrb[5].mxu1 }
 0x39a   : > { %v12339_v1 = vpop.f32.mrb[6].mxu1 }
 0x39b   : > { %v1983_v43 = vpop.f32.mrb[8].mxu0  ;;  %v12342_v42 = vpop.f32.mrb[7].mxu1 }
 0x39c   : > { %v2213_v30 = vadd.f32 %v12336_v61, %v1983_v43  ;;  %v1985_v23 = vpop.f32.mrb[9].mxu0 }
 0x39d   : > { %v2214_v0 = vadd.f32 %v12336_v61, %v1985_v23 }
 0x39e   : > { %v2237_v4 = vmul.f32 0.01, %v2213_v30  ;;  %vm2225_vm12 = vcmp.ge.f32.partialorder %v2213_v30, 0.0 }
 0x39f   : > { %v2238_v12 = vmul.f32 0.01, %v2214_v0  ;;  %v1989_v60 = vpop.f32.mrb[10].mxu0  ;;  %vm2226_vm13 = vcmp.ge.f32.partialorder %v2214_v0, 0.0 }
 0x3a0   : > { %v2216_v63 = vadd.f32 %v12355_v19, %v1989_v60  ;;  %v1991_v18 = vpop.f32.mrb[11].mxu0  ;;  %v2249_v26 = vsel %vm2225_vm12, %v2213_v30, %v2237_v4 }
 0x3a1   : > { %v2217_v2 = vadd.f32 %v12355_v19, %v1991_v18  ;;  %v2250_v48 = vsel %vm2226_vm13, %v2214_v0, %v2238_v12  ;;  %v2261_v40 = vmul.f32 %v2249_v26, %v11633_v62  ;;  %v12368_v12 = vpop.permute.xlu0 %2210 }
 0x3a2   : > { %vm2228_vm14 = vcmp.ge.f32.partialorder %v2216_v63, 0.0  ;;  %v2240_v32 = vmul.f32 0.01, %v2216_v63  ;;  %v2262_v30 = vmul.f32 %v2250_v48, %v11615_v54 }
 0x3a3   : > { %vm2229_vm15 = vcmp.ge.f32.partialorder %v2217_v2, 0.0  ;;  %v2241_v57 = vmul.f32 0.01, %v2217_v2  ;;  %v1995_v43 = vpop.f32.mrb[12].mxu0 }
 0x3a4   : > { %v2252_v23 = vsel %vm2228_vm14, %v2216_v63, %v2240_v32  ;;  %v2219_v29 = vadd.f32 %v12360_v35, %v1995_v43  ;;  %v1997_v13 = vpop.f32.mrb[13].mxu0 }
 0x3a5   : > { %v2264_v60 = vmul.f32 %v2252_v23, %v11633_v62  ;;  %v2253_v25 = vsel %vm2229_vm15, %v2217_v2, %v2241_v57  ;;  %v2220_v18 = vadd.f32 %v12360_v35, %v1997_v13 }
 0x3a6   : > { %v2265_v4 = vmul.f32 %v2253_v25, %v11615_v54  ;;  %vm2231_vm12 = vcmp.ge.f32.partialorder %v2219_v29, 0.0  ;;  %v2243_v0 = vmul.f32 0.01, %v2219_v29 }
 0x3a7   : > { %vm2232_vm13 = vcmp.ge.f32.partialorder %v2220_v18, 0.0  ;;  %v2244_v63 = vmul.f32 0.01, %v2220_v18  ;;  %v2001_v32 = vpop.f32.mrb[14].mxu0  ;;  %v12370_v43 = vpack.i.bf16 %v2264_v60, %v2261_v40  ;;  %v12372_v22 = vpack.c.bf16 %v2264_v60, %v2261_v40 }
 0x3a8   : > { %v2255_v26 = vsel %vm2231_vm12, %v2219_v29, %v2243_v0  ;;  %v2222_v2 = vadd.f32 %v12368_v12, %v2001_v32  ;;  %v2003_v57 = vpop.f32.mrb[15].mxu0  ;;  %v12375_v13 = vpack.i.bf16 %v2265_v4, %v2262_v30  ;;  %v12377_v48 = vpack.c.bf16 %v2265_v4, %v2262_v30 }
 0x3a9   : > { %15801 = vst [vmem:[#allocation81_spill] sm:$0xff] %v12372_v22  ;;  %v2267_v25 = vmul.f32 %v2255_v26, %v11633_v62  ;;  %v2256_v23 = vsel %vm2232_vm13, %v2220_v18, %v2244_v63  ;;  %v2223_v8 = vadd.f32 %v12368_v12, %v2003_v57  ;;  %10314 = vrot.lane.b32.xlu1 %v12370_v43, %s11176_s27 }
 0x3aa   : > { %15802 = vst [vmem:[#allocation82_spill] sm:$0xff] %v12377_v48  ;;  %v2268_v36 = vmul.f32 %v2256_v23, %v11615_v54  ;;  %vm2234_vm14 = vcmp.ge.f32.partialorder %v2222_v2, 0.0  ;;  %v2246_v40 = vmul.f32 0.01, %v2222_v2  ;;  %10329 = vrot.lane.b32.xlu0 %v12375_v13, %s11176_s27  ;;  %8789 = vmatprep.subr.bf16.mxu0 %v12377_v48 }
 0x3ab   : > { %vm2235_vm15 = vcmp.ge.f32.partialorder %v2223_v8, 0.0  ;;  %v2247_v29 = vmul.f32 0.01, %v2223_v8  ;;  %8791 = vmatpush1.bf16.xpose.msra.mxu0 %v12372_v22 }
 0x3ac   : > { %v2258_v60 = vsel %vm2234_vm14, %v2222_v2, %v2246_v40 }
 0x3ad   : > { %v2270_v18 = vmul.f32 %v2258_v60, %v11633_v62  ;;  %v2259_v30 = vsel %vm2235_vm15, %v2223_v8, %v2247_v29  ;;  %10319 = vrot.lane.b32.xlu1 %v12370_v43, %s11175_s23  ;;  %v15805_v8 = vmov 0.0|0.0  }
 0x3ae   : > { %v2271_v4 = vmul.f32 %v2259_v30, %v11615_v54  ;;  %10334 = vrot.lane.b32.xlu0 %v12375_v13, %s11175_s23 }
 0x3af   : > { %v12394_v0 = vpack.c.bf16 %v2270_v18, %v2267_v25  ;;  %v12396_v63 = vpack.i.bf16 %v2270_v18, %v2267_v25 }
 0x3b0   : > { %v12398_v32 = vpack.c.bf16 %v2271_v4, %v2268_v36  ;;  %v12400_v26 = vpack.i.bf16 %v2271_v4, %v2268_v36 }
 0x3b1   : > { %15803 = vst [vmem:[#allocation83_spill] sm:$0xff] %v12394_v0  ;;  %10324 = vrot.lane.b32.xlu1 %v12370_v43, %s15646_s28 }
 0x3b2   : > { %15804 = vst [vmem:[#allocation84_spill] sm:$0xff] %v12398_v32  ;;  %10339 = vrot.lane.b32.xlu0 %v12375_v13, %s15646_s28  ;;  %8793 = vmatprep.subr.bf16.mxu0 %v12398_v32 }
 0x3b3   : > { %8795 = vmatpush1.bf16.xpose.msra.mxu0 %v12394_v0 }
 0x3b4   : > { %8796 = vmatprep.subr.bf16.mxu0 %v15805_v8 }
 0x3b5   : > { %10359 = vrot.lane.b32.xlu1 %v12400_v26, %s11176_s27 }
 0x3b6   : > { %10344 = vrot.lane.b32.xlu0 %v12396_v63, %s11176_s27 }
 0x3b9   : > { %10364 = vrot.lane.b32.xlu1 %v12400_v26, %s11175_s23 }
 0x3ba   : > { %10349 = vrot.lane.b32.xlu0 %v12396_v63, %s11175_s23  ;;  %2338 = vmatmul.mubr.f32.vlgmr.msra.gmra.mrb[40].mxu0 %v11633_v62 }
 0x3bb   : > { %v8001_v36 = vpop.f32.mrb[32].mxu0  ;;  %8516 = vmatprep.mubr.msk.f32.mxu0 %vm11185_vm10, %v15769_v6 }
 0x3bc   : > { %v8002_v2 = vpop.f32.mrb[33].mxu0 }
 0x3bd   : > { %v8003_v57 = vadd.f32 %v8002_v2, %v8001_v36  ;;  %10369 = vrot.lane.b32.xlu1 %v12400_v26, %s15646_s28 }
 0x3be   : > { %10354 = vrot.lane.b32.xlu0 %v12396_v63, %s15646_s28 }
 0x3bf   : > { %v2158_v25 = vadd.f32 %v8003_v57, %v12334_v5  ;;  %v8004_v23 = vpop.f32.mrb[34].mxu0 }
 0x3c0   : > { %v8005_v40 = vpop.f32.mrb[35].mxu0 }
 0x3c1   : > { %v2215_v29 = vadd.f32 %v12336_v61, %v2158_v25  ;;  %v8006_v60 = vadd.f32 %v8005_v40, %v8004_v23 }
 0x3c2   : > { %10384 = vrot.lane.b32.xlu0 %v12375_v13, %s15644_s26 }
 0x3c3   : > { %v2239_v18 = vmul.f32 0.01, %v2215_v29  ;;  %v2163_v30 = vadd.f32 %v12332_v53, %v8006_v60  ;;  %v8007_v4 = vpop.f32.mrb[36].mxu0  ;;  %vm2227_vm12 = vcmp.ge.f32.partialorder %v2215_v29, 0.0 }
 0x3c4   : > { %v8008_v36 = vpop.f32.mrb[37].mxu0 }
 0x3c5   : > { %v2218_v2 = vadd.f32 %v12355_v19, %v2163_v30  ;;  %v8009_v17 = vadd.f32 %v8008_v36, %v8007_v4  ;;  %v2251_v31 = vsel %vm2227_vm12, %v2215_v29, %v2239_v18  ;;  %v12512_v18 = vld [vmem:[%s15364_s4 + $0x28] sm:$0xff]  ;;  %v12521_v4 = vld [vmem:[%s15364_s4 + $0x58] sm:$0xff]  ;;  %v12530_v36 = vld [vmem:[%s15364_s4 + $0x50] sm:$0xff]  ;;  %vm15582_vm12 = vcmask 523264  }
 0x3c6   : > { %v2263_v27 = vmul.f32 %v2251_v31, %v11554_v41 }
 0x3c7   : > { %vm2230_vm13 = vcmp.ge.f32.partialorder %v2218_v2, 0.0  ;;  %v2242_v5 = vmul.f32 0.01, %v2218_v2  ;;  %v2168_v57 = vadd.f32 %v8009_v17, %v12342_v42  ;;  %v8010_v34 = vpop.f32.mrb[38].mxu0 }
 0x3c8   : > { %v8011_v61 = vpop.f32.mrb[39].mxu0 }
 0x3c9   : > { %v2254_v25 = vsel %vm2230_vm13, %v2218_v2, %v2242_v5  ;;  %v2221_v23 = vadd.f32 %v12360_v35, %v2168_v57  ;;  %v8012_v40 = vadd.f32 %v8011_v61, %v8010_v34  ;;  %v15809_v2 = vld [vmem:[#allocation26_spill] sm:$0xff]  ;;  %v2836_v57 = vld [vmem:[%s15364_s4 + $0x78] sm:$0xff]  ;;  %v15810_v61 = vld [vmem:[#allocation27_spill] sm:$0xff] }
 0x3ca   : > { %v2266_v53 = vmul.f32 %v2254_v25, %v11554_v41  ;;  %v2837_v5 = vld [vmem:[%s15364_s4 + $0x80] sm:$0xff] }
 0x3cb   : > { %vm2233_vm14 = vcmp.ge.f32.partialorder %v2221_v23, 0.0  ;;  %v2245_v60 = vmul.f32 0.01, %v2221_v23  ;;  %v2173_v19 = vadd.f32 %v12339_v1, %v8012_v40  ;;  %v15811_v25 = vld [vmem:[#allocation30_spill] sm:$0xff]  ;;  %v15812_v40 = vld [vmem:[#allocation28_spill] sm:$0xff] }
 0x3cc   : > { %v12435_v30 = vpack.i.bf16 %v2266_v53, %v2263_v27  ;;  %v12437_v29 = vpack.c.bf16 %v2266_v53, %v2263_v27  ;;  %v15813_v53 = vld [vmem:[#allocation56_spill] sm:$0xff] }
 0x3cd   : > { %v2224_v17 = vadd.f32 %v12368_v12, %v2173_v19  ;;  %v2257_v34 = vsel %vm2233_vm14, %v2221_v23, %v2245_v60  ;;  %v2824_v23 = vld [vmem:[%s15364_s4 + $0x18] sm:$0xff]  ;;  %v15815_v19 = vld [vmem:[#allocation58_spill] sm:$0xff] }
 0x3ce   : > { %15806 = vst [vmem:[#allocation85_spill] sm:$0xff] %v12437_v29  ;;  %10374 = vrot.lane.b32.xlu1 %v12435_v30, %s11176_s27  ;;  %8798 = vmatpush3.bf16.xpose.msra.mxu0 %v12437_v29  ;;  %v2269_v35 = vmul.f32 %v2257_v34, %v11554_v41  ;;  %v15814_v60 = vld [vmem:[#allocation57_spill] sm:$0xff]  ;;  %v15817_v34 = vld [vmem:[#allocation60_spill] sm:$0xff] }
 0x3cf   : > { %vm2236_vm15 = vcmp.ge.f32.partialorder %v2224_v17, 0.0  ;;  %v2248_v31 = vmul.f32 0.01, %v2224_v17  ;;  %8799 = vmatprep.subr.bf16.mxu0 %v15805_v8 }
 0x3d1   : > { %v2260_v42 = vsel %vm2236_vm15, %v2224_v17, %v2248_v31  ;;  %v15816_v17 = vld [vmem:[#allocation59_spill] sm:$0xff]  ;;  %v15819_v31 = vld [vmem:[#allocation62_spill] sm:$0xff] }
 0x3d2   : > { %v2272_v1 = vmul.f32 %v2260_v42, %v11554_v41  ;;  %10379 = vrot.lane.b32.xlu1 %v12370_v43, %s15644_s26  ;;  %v7914_v42 = vld [vmem:[%s15368_s8 + $0x40] sm:$0xff] }
 0x3d4   : > { %v12448_v27 = vpack.i.bf16 %v2272_v1, %v2269_v35  ;;  %v12450_v12 = vpack.c.bf16 %v2272_v1, %v2269_v35  ;;  %v15820_v35 = vld [vmem:[#allocation63_spill] sm:$0xff]  ;;  %v15822_v1 = vld [vmem:[#allocation65_spill] sm:$0xff] }
 0x3d6   : > { %15807 = vst [vmem:[#allocation86_spill] sm:$0xff] %v12450_v12  ;;  %10404 = vrot.lane.b32.xlu0 %v12448_v27, %s11176_s27  ;;  %10389 = vrot.lane.b32.xlu1 %v12435_v30, %s11175_s23 }
 0x3d7   : > { %8801 = vmatpush3.bf16.xpose.msra.mxu0 %v12450_v12 }
 0x3d8   : > { %8803 = vmatprep.subr.bf16.mxu0 %v11792_v58 }
 0x3da   : > { %10409 = vrot.lane.b32.xlu0 %v12396_v63, %s15644_s26  ;;  %10394 = vrot.lane.b32.xlu1 %v12435_v30, %s15646_s28 }
 0x3de   : > { %10424 = vrot.lane.b32.xlu0 %v12448_v27, %s11175_s23  ;;  %10399 = vrot.lane.b32.xlu1 %v12435_v30, %s15644_s26 }
 0x3df   : > { %8517 = vmatmul.mubr.f32.vlgmr.msra.gmra.mrb[40].mxu0 %v11554_v41  ;;  %v15826_v41 = vld [vmem:[#allocation70_spill] sm:$0xff] }
 0x3e0   : > { %8805 = vmatpush1.bf16.msra.mxu0 %v11794_v59  ;;  %3134 = vmatprep.mubr.f32.mxu0 %v12347_v56  ;;  %v12507_v56 = vld [vmem:[%s15364_s4 + $0x30] sm:$0xff] }
 0x3e1   : > { %8807 = vmatprep.subr.bf16.mxu0 %v11826_v10  ;;  %3406 = vmatprep.mubr.f32.mxu1 %v12507_v56 }
 0x3e2   : > { %10429 = vrot.lane.b32.xlu0 %v12435_v30, %s15642_s29  ;;  %10414 = vrot.lane.b32.xlu1 %v12400_v26, %s15644_s26 }
 0x3e3   : > { %3407 = vmatmul.mubr.f32.gmra.mrb[20].mxu1 %v12512_v18 }
 0x3e4   : > { %8809 = vmatpush1.bf16.msra.mxu0 %v11834_v51  ;;  %3411 = vmatprep.mubr.f32.mxu1 %v12521_v4 }
 0x3e5   : > { %8811 = vmatprep.subr.bf16.mxu0 %v11836_v52 }
 0x3e6   : > { %10439 = vrot.lane.b32.xlu0 %v12448_v27, %s15646_s28  ;;  %10419 = vrot.lane.b32.xlu1 %v12375_v13, %s15642_s29 }
 0x3e7   : > { %3412 = vmatmul.mubr.f32.gmra.mrb[22].mxu1 %v12530_v36 }
 0x3e8   : > { %8813 = vmatpush1.bf16.msra.mxu0 %v11843_v24  ;;  %3416 = vmatprep.mubr.f32.mxu1 %v2837_v5 }
 0x3e9   : > { %8815 = vmatprep.subr.bf16.mxu0 %v11866_v33 }
 0x3ea   : > { %10444 = vrot.lane.b32.xlu0 %v12400_v26, %s15642_s29  ;;  %10434 = vrot.lane.b32.xlu1 %v12370_v43, %s15642_s29 }
 0x3eb   : > { %3417 = vmatmul.mubr.f32.gmra.mrb[24].mxu1 %v2836_v57 }
 0x3ec   : > { %8817 = vmatpush1.bf16.msra.mxu0 %v11870_v3  ;;  %3486 = vmatprep.mubr.f32.mxu1 %v2824_v23 }
 0x3ed   : > { %8819 = vmatprep.subr.bf16.mxu0 %v11872_v39 }
 0x3ee   : > { %10449 = vrot.lane.b32.xlu0 %v12448_v27, %s15644_s26  ;;  %10459 = vrot.lane.b32.xlu1 %v12375_v13, %s15808_s15 }
 0x3f0   : > { %8821 = vmatpush1.bf16.msra.mxu0 %v11887_v14 }
 0x3f1   : > { %8823 = vmatprep.subr.bf16.mxu0 %v11906_v7 }
 0x3f2   : > { %10454 = vrot.lane.b32.xlu0 %v12396_v63, %s15642_s29  ;;  %10469 = vrot.lane.b32.xlu1 %v12370_v43, %s15808_s15 }
 0x3f4   : > { %8825 = vmatpush1.bf16.msra.mxu0 %v11912_v37 }
 0x3f5   : > { %8827 = vmatprep.subr.bf16.mxu0 %v11917_v47 }
 0x3f6   : > { %10464 = vrot.lane.b32.xlu0 %v12435_v30, %s15808_s15  ;;  %10484 = vrot.lane.b32.xlu1 %v12375_v13, %s15722_s16 }
 0x3f8   : > { %8829 = vmatpush1.bf16.msra.mxu0 %v11923_v9 }
 0x3f9   : > { %8831 = vmatprep.subr.bf16.mxu0 %v11940_v20 }
 0x3fa   : > { %10474 = vrot.lane.b32.xlu0 %v12400_v26, %s15808_s15  ;;  %10494 = vrot.lane.b32.xlu1 %v12448_v27, %s15642_s29 }
 0x3fc   : > { %8833 = vmatpush1.bf16.msra.mxu0 %v11948_v28 }
 0x3fd   : > { %8835 = vmatprep.subr.bf16.mxu0 %v15809_v2 }
 0x3fe   : > { %10479 = vrot.lane.b32.xlu0 %v12396_v63, %s15808_s15  ;;  %10499 = vrot.lane.b32.xlu1 %v12370_v43, %s15722_s16 }
 0x400   : > { %8837 = vmatpush1.bf16.msra.mxu0 %v15810_v61 }
 0x401   : > { %8839 = vmatprep.subr.bf16.mxu0 %v15811_v25 }
 0x402   : > { %10489 = vrot.lane.b32.xlu0 %v12435_v30, %s15722_s16  ;;  %10514 = vrot.lane.b32.xlu1 %v12448_v27, %s15808_s15 }
 0x404   : > { %8841 = vmatpush1.bf16.msra.mxu0 %v15812_v40 }
 0x405   : > { %8843 = vmatprep.subr.bf16.mxu0 %v15813_v53 }
 0x406   : > { %10504 = vrot.lane.b32.xlu0 %v12400_v26, %s15722_s16  ;;  %10519 = vrot.lane.b32.xlu1 %v12375_v13, %s15640_s17  ;;  %v15818_v13 = vld [vmem:[#allocation61_spill] sm:$0xff] }
 0x408   : > { %8845 = vmatpush1.bf16.msra.mxu0 %v15814_v60 }
 0x409   : > { %8847 = vmatprep.subr.bf16.mxu0 %v15815_v19 }
 0x40a   : > { %10509 = vrot.lane.b32.xlu0 %v12396_v63, %s15722_s16  ;;  %10529 = vrot.lane.b32.xlu1 %v12448_v27, %s15722_s16 }
 0x40c   : > { %8849 = vmatpush1.bf16.msra.mxu0 %v15816_v17 }
 0x40d   : > { %8851 = vmatprep.subr.bf16.mxu0 %v15817_v34 }
 0x40e   : > { %10524 = vrot.lane.b32.xlu0 %v12435_v30, %s15640_s17  ;;  %10534 = vrot.lane.b32.xlu1 %v12370_v43, %s15640_s17  ;;  %v15821_v30 = vld [vmem:[#allocation64_spill] sm:$0xff]  ;;  %v7915_v43 = vld [vmem:[%s15368_s8 + $0x48] sm:$0xff] }
 0x410   : > { %8853 = vmatpush1.bf16.msra.mxu0 %v15818_v13 }
 0x411   : > { %8855 = vmatprep.subr.bf16.mxu0 %v15819_v31 }
 0x412   : > { %10539 = vrot.lane.b32.xlu0 %v12400_v26, %s15640_s17  ;;  %10544 = vrot.lane.b32.xlu1 %v12448_v27, %s15640_s17  ;;  %v7916_v26 = vld [vmem:[%s15368_s8 + $0x50] sm:$0xff]  ;;  %v15823_v27 = vld [vmem:[#allocation66_spill] sm:$0xff] }
 0x414   : > { %8857 = vmatpush1.bf16.msra.mxu0 %v15820_v35 }
 0x415   : > { %8859 = vmatprep.subr.bf16.mxu0 %v15821_v30 }
 0x416   : > { %10549 = vrot.lane.b32.xlu0 %v12396_v63, %s15640_s17  ;;  %3611 = vperm.xlu1 %10072, %v7914_v42   ;;  %v7917_v63 = vld [vmem:[%s15368_s8 + $0x58] sm:$0xff]  ;;  %v15824_v42 = vld [vmem:[#allocation67_spill] sm:$0xff] }
 0x418   : > { %8861 = vmatpush1.bf16.msra.mxu0 %v15822_v1 }
 0x419   : > { %8863 = vmatprep.subr.bf16.mxu0 %v15823_v27 }
 0x41a   : > { %3616 = vperm.xlu0 %10071, %v7915_v43   ;;  %3621 = vperm.xlu1 %10072, %v7916_v26  }
 0x41b   : > { %v10315_v50 = vpop.permute.xlu1 %10314 }
 0x41c   : > { %8865 = vmatpush1.bf16.msra.mxu0 %v15824_v42  ;;  %v10317_v44 = vunpack.i.h.bf16 %v10315_v50  ;;  %v10316_v45 = vunpack.i.l.bf16 %v10315_v50  ;;  %v10330_v21 = vpop.permute.xlu0 %10329 }
 0x41d   : > { %8867 = vmatprep.subr.bf16.mxu0 %v15825_v38  ;;  %v10332_v16 = vunpack.i.h.bf16 %v10330_v21  ;;  %v10331_v8 = vunpack.i.l.bf16 %v10330_v21 }
 0x41e   : > { %3626 = vperm.xlu0 %10071, %v7917_v63  }
 0x41f   : > { %3135 = vmatmul.mubr.f32.vlgmr.msra.gmra.mrb[16].mxu0 %v12352_v46  ;;  %v2441_v43 = vsel %vm454_vm3, %v10316_v45, %v10331_v8  ;;  %v2442_v26 = vsel %vm454_vm3, %v10317_v44, %v10332_v16  ;;  %v12610_v21 = vpop.permute.xlu1 %10319 }
 0x420   : > { %8869 = vmatpush1.bf16.msra.mxu0 %v15826_v41  ;;  %3140 = vmatprep.mubr.f32.mxu0 %v12507_v56  ;;  %v12607_v50 = vpack.c.bf16 %v2442_v26, %v2441_v43  ;;  %v12615_v46 = vpop.permute.xlu0 %10334 }
 0x421   : > { %8871 = vmatprep.subr.bf16.mxu0 %v12178_v15  ;;  %v15831_v34 = vunpack.i.l.bf16 %v12615_v46 }
 0x422   : > { %15827 = vst [vmem:[#allocation87_spill] sm:$0xff] %v12607_v50 }
 0x423   : > { %3141 = vmatmul.mubr.f32.gmra.mrb[18].mxu0 %v12512_v18  ;;  %v12618_v56 = vpop.permute.xlu1 %10324 }
 0x424   : > { %8873 = vmatpush1.bf16.msra.mxu0 %v12180_v49  ;;  %3146 = vmatprep.mubr.f32.mxu0 %v12521_v4  ;;  %v12620_v63 = vpop.permute.xlu0 %10339 }
 0x425   : > { %8875 = vmatprep.subr.bf16.mxu0 %v12607_v50 }
 0x427   : > { %3147 = vmatmul.mubr.f32.gmra.mrb[20].mxu0 %v12530_v36  ;;  %v12622_v18 = vpop.permute.xlu1 %10359 }
 0x428   : > { %3152 = vmatprep.mubr.f32.mxu0 %v2837_v5  ;;  %v10345_v43 = vpop.permute.xlu0 %10344  ;;  %v15497_v50 = vunpack.i.h.bf16 %v12622_v18  ;;  %v15496_v36 = vunpack.i.l.bf16 %v12622_v18 }
 0x429   : > { %v10347_v5 = vunpack.i.h.bf16 %v10345_v43  ;;  %v10346_v49 = vunpack.i.l.bf16 %v10345_v43 }
 0x42b   : > { %3153 = vmatmul.mubr.f32.gmra.mrb[22].mxu0 %v2836_v57  ;;  %v12624_v26 = vpop.permute.xlu1 %10364  ;;  %v2443_v38 = vsel %vm454_vm3, %v10346_v49, %v15496_v36  ;;  %v2444_v42 = vsel %vm454_vm3, %v10347_v5, %v15497_v50 }
 0x42c   : > { %3223 = vmatprep.mubr.f32.mxu0 %v2824_v23  ;;  %v12626_v62 = vpop.permute.xlu0 %10349  ;;  %v12658_v50 = vpack.c.bf16 %v2444_v42, %v2443_v38 }
 0x42d   : > { %v10351_v42 = vunpack.i.l.bf16 %v12626_v62 }
 0x42e   : > { %15830 = vst [vmem:[#allocation90_spill] sm:$0xff] %v12658_v50 }
 0x42f   : > { %v12628_v4 = vpop.permute.xlu1 %10369 }
 0x430   : > { %v12632_v15 = vpop.permute.xlu0 %10354 }
 0x434   : > { %v12650_v30 = vpop.permute.xlu0 %10384 }
 0x440   : > { %v10375_v57 = vpop.permute.xlu1 %10374 }
 0x441   : > { %v10377_v41 = vunpack.i.h.bf16 %v10375_v57  ;;  %v10376_v23 = vunpack.i.l.bf16 %v10375_v57 }
 0x443   : > { %v2438_v27 = vsel %vm454_vm3, %v10332_v16, %v10377_v41  ;;  %v2446_v43 = vsel %vm454_vm3, %v10377_v41, %v10317_v44  ;;  %v2437_v1 = vsel %vm454_vm3, %v10331_v8, %v10376_v23  ;;  %v2445_v57 = vsel %vm454_vm3, %v10376_v23, %v10316_v45 }
 0x444   : > { %v12652_v36 = vpop.permute.xlu1 %10379  ;;  %v12654_v35 = vpack.c.bf16 %v2446_v43, %v2445_v57  ;;  %v12656_v31 = vpack.c.bf16 %v2438_v27, %v2437_v1  ;;  %v10322_v41 = vunpack.i.h.bf16 %v12610_v21  ;;  %v10321_v16 = vunpack.i.l.bf16 %v12610_v21 }
 0x445   : > { %v10352_v27 = vunpack.i.h.bf16 %v12626_v62  ;;  %v10326_v57 = vunpack.i.l.bf16 %v12618_v56 }
 0x446   : > { %15828 = vst [vmem:[#allocation88_spill] sm:$0xff] %v12654_v35  ;;  %15829 = vst [vmem:[#allocation89_spill] sm:$0xff] %v12656_v31  ;;  %8877 = vmatpush1.bf16.msra.mxu0 %v12654_v35  ;;  %v15834_v35 = vunpack.i.h.bf16 %v12624_v26 }
 0x447   : > { %8879 = vmatprep.subr.bf16.mxu0 %v12658_v50  ;;  %v10327_v50 = vunpack.i.h.bf16 %v12618_v56 }
 0x448   : > { %v12668_v1 = vpop.permute.xlu0 %10404  ;;  %v12670_v38 = vpop.permute.xlu1 %10389  ;;  %v2492_v44 = vsel %vm467_vm2, %v10352_v27, %v15834_v35 }
 0x449   : > { %v15502_v21 = vunpack.i.h.bf16 %v12668_v1  ;;  %v15503_v43 = vunpack.i.l.bf16 %v12668_v1  ;;  %v15836_v17 = vunpack.i.h.bf16 %v12670_v38  ;;  %v15837_v19 = vunpack.i.l.bf16 %v12670_v38 }
 0x44b   : > { %v2448_v8 = vsel %vm454_vm3, %v15502_v21, %v10347_v5  ;;  %v2447_v23 = vsel %vm454_vm3, %v15503_v43, %v10346_v49  ;;  %v2489_v5 = vsel %vm467_vm2, %v10321_v16, %v15831_v34  ;;  %v15832_v21 = vunpack.i.h.bf16 %v12615_v46 }
 0x44c   : > { %v12690_v13 = vpop.permute.xlu0 %10409  ;;  %v12692_v45 = vpop.permute.xlu1 %10394  ;;  %v15833_v43 = vunpack.i.l.bf16 %v12624_v26  ;;  %v12710_v62 = vpack.c.bf16 %v2448_v8, %v2447_v23  ;;  %v2494_v34 = vsel %vm467_vm2, %v15836_v17, %v10322_v41  ;;  %v10356_v8 = vunpack.i.l.bf16 %v12632_v15 }
 0x44d   : > { %v2490_v49 = vsel %vm467_vm2, %v10322_v41, %v15832_v21  ;;  %v2493_v21 = vsel %vm467_vm2, %v15837_v19, %v10321_v16  ;;  %v15841_v19 = vunpack.i.h.bf16 %v12620_v63  ;;  %v15514_v40 = vunpack.i.h.bf16 %v12692_v45 }
 0x44e   : > { %v2491_v56 = vsel %vm467_vm2, %v10351_v42, %v15833_v43  ;;  %15835 = vst [vmem:[#allocation91_spill] sm:$0xff] %v12710_v62  ;;  %v12720_v60 = vpack.c.bf16 %v2490_v49, %v2489_v5  ;;  %v15839_v43 = vunpack.i.l.bf16 %v12620_v63  ;;  %8881 = vmatpush1.bf16.msra.mxu0 %v12710_v62  ;;  %v10357_v5 = vunpack.i.h.bf16 %v12632_v15 }
 0x44f   : > { %v12731_v41 = vpack.c.bf16 %v2492_v44, %v2491_v56  ;;  %v2538_v16 = vsel %vm489_vm4, %v10327_v50, %v15841_v19  ;;  %v10386_v62 = vunpack.i.l.bf16 %v12650_v30  ;;  %v12743_v56 = vpack.c.bf16 %v2494_v34, %v2493_v21 }
 0x450   : > { %15838 = vst [vmem:[#allocation92_spill] sm:$0xff] %v12720_v60  ;;  %v2537_v53 = vsel %vm489_vm4, %v10326_v57, %v15839_v43  ;;  %v12729_v23 = vpop.permute.xlu0 %10424  ;;  %v10400_v17 = vpop.permute.xlu1 %10399  ;;  %8883 = vmatprep.subr.bf16.mxu0 %v12720_v60  ;;  %v10387_v15 = vunpack.i.h.bf16 %v12650_v30 }
 0x451   : > { %15840 = vst [vmem:[#allocation93_spill] sm:$0xff] %v12731_v41  ;;  %v15508_v49 = vunpack.i.h.bf16 %v12729_v23  ;;  %v15509_v43 = vunpack.i.l.bf16 %v12729_v23  ;;  %v10401_v35 = vunpack.i.l.bf16 %v10400_v17  ;;  %v10402_v44 = vunpack.i.h.bf16 %v10400_v17  ;;  %15842 = vst [vmem:[#allocation94_spill] sm:$0xff] %v12743_v56 }
 0x452   : > { %8885 = vmatpush1.bf16.msra.mxu0 %v12743_v56 }
 0x453   : > { %v2496_v60 = vsel %vm467_vm2, %v15508_v49, %v10352_v27  ;;  %v2495_v25 = vsel %vm467_vm2, %v15509_v43, %v10351_v42  ;;  %v2581_v19 = vsel %vm502_vm1, %v10386_v62, %v10401_v35  ;;  %8887 = vmatprep.subr.bf16.mxu0 %v12731_v41  ;;  %v12764_v27 = vpack.c.bf16 %v2538_v16, %v2537_v53 }
 0x454   : > { %v12757_v34 = vpop.permute.xlu0 %10429  ;;  %v10415_v21 = vpop.permute.xlu1 %10414  ;;  %v12759_v17 = vpack.c.bf16 %v2496_v60, %v2495_v25  ;;  %v10382_v49 = vunpack.i.h.bf16 %v12652_v36  ;;  %v10381_v42 = vunpack.i.l.bf16 %v12652_v36  ;;  %v2582_v30 = vsel %vm502_vm1, %v10387_v15, %v10402_v44 }
 0x455   : > { %15844 = vst [vmem:[#allocation96_spill] sm:$0xff] %v12764_v27  ;;  %v15845_v43 = vunpack.i.l.bf16 %v12628_v4  ;;  %v2542_v60 = vsel %vm489_vm4, %v15514_v40, %v10327_v50  ;;  %v15846_v53 = vunpack.i.l.bf16 %v12692_v45  ;;  %v12782_v41 = vpack.c.bf16 %v2582_v30, %v2581_v19  ;;  %v15849_v19 = vld [vmem:[#allocation69_spill] sm:$0xff] }
 0x456   : > { %15843 = vst [vmem:[#allocation95_spill] sm:$0xff] %v12759_v17  ;;  %v15848_v36 = vunpack.i.h.bf16 %v12628_v4  ;;  %8889 = vmatpush1.bf16.msra.mxu0 %v12759_v17  ;;  %v2586_v40 = vsel %vm502_vm1, %v10382_v49, %v10387_v15  ;;  %v10417_v17 = vunpack.i.h.bf16 %v10415_v21  ;;  %v10412_v15 = vunpack.i.h.bf16 %v12690_v13 }
 0x457   : > { %v2539_v25 = vsel %vm489_vm4, %v10356_v8, %v15845_v43  ;;  %v2541_v16 = vsel %vm489_vm4, %v15846_v53, %v10326_v57  ;;  %15847 = vst [vmem:[#allocation97_spill] sm:$0xff] %v12782_v41  ;;  %8979 = vmatprep.subr.bf16.mxu1 %v12782_v41  ;;  %8891 = vmatprep.subr.bf16.mxu0 %v12764_v27  ;;  %v10416_v41 = vunpack.i.l.bf16 %v10415_v21  ;;  %v10411_v21 = vunpack.i.l.bf16 %v12690_v13 }
 0x458   : > { %v2540_v56 = vsel %vm489_vm4, %v10357_v5, %v15848_v36  ;;  %v12789_v43 = vpop.permute.xlu0 %10439  ;;  %v12791_v61 = vpop.permute.xlu1 %10419  ;;  %8981 = vmatpush3.bf16.msra.mxu1 %v15849_v19  ;;  %v12798_v30 = vpack.c.bf16 %v2542_v60, %v2541_v16  ;;  %v2585_v36 = vsel %vm502_vm1, %v10381_v42, %v10386_v62  ;;  %v2589_v16 = vsel %vm502_vm1, %v10401_v35, %v10381_v42 }
 0x459   : > { %v15522_v50 = vunpack.i.h.bf16 %v12789_v43  ;;  %v15521_v57 = vunpack.i.l.bf16 %v12789_v43  ;;  %v12800_v53 = vpack.c.bf16 %v2540_v56, %v2539_v25 }
 0x45a   : > { %15850 = vst [vmem:[#allocation98_spill] sm:$0xff] %v12798_v30  ;;  %8893 = vmatpush1.bf16.msra.mxu0 %v12798_v30 }
 0x45b   : > { %15851 = vst [vmem:[#allocation99_spill] sm:$0xff] %v12800_v53  ;;  %v2544_v27 = vsel %vm489_vm4, %v15522_v50, %v10357_v5  ;;  %v2543_v60 = vsel %vm489_vm4, %v15521_v57, %v10356_v8  ;;  %8895 = vmatprep.subr.bf16.mxu0 %v12800_v53  ;;  %v12824_v5 = vpack.c.bf16 %v2586_v40, %v2585_v36 }
 0x45c   : > { %v12815_v56 = vpop.permute.xlu0 %10444  ;;  %v12817_v62 = vpop.permute.xlu1 %10434  ;;  %v12819_v25 = vpack.c.bf16 %v2544_v27, %v2543_v60  ;;  %v2590_v8 = vsel %vm502_vm1, %v10402_v44, %v10382_v49  ;;  %v2587_v57 = vsel %vm502_vm1, %v10411_v21, %v10416_v41  ;;  %v2588_v27 = vsel %vm502_vm1, %v10412_v15, %v10417_v17 }
 0x45d   : > { %15853 = vst [vmem:[#allocation101_spill] sm:$0xff] %v12824_v5  ;;  %v12838_v50 = vpack.c.bf16 %v2590_v8, %v2589_v16  ;;  %v12840_v35 = vpack.c.bf16 %v2588_v27, %v2587_v57 }
 0x45e   : > { %15852 = vst [vmem:[#allocation100_spill] sm:$0xff] %v12819_v25  ;;  %8897 = vmatpush1.bf16.msra.mxu0 %v12819_v25 }
 0x45f   : > { %8899 = vmatprep.subr.bf16.mxu0 %v12824_v5  ;;  %15854 = vst [vmem:[#allocation102_spill] sm:$0xff] %v12838_v50  ;;  %15855 = vst [vmem:[#allocation103_spill] sm:$0xff] %v12840_v35 }
 0x460   : > { %v10450_v60 = vpop.permute.xlu0 %10449  ;;  %v12835_v13 = vpop.permute.xlu1 %10459 }
 0x461   : > { %v10452_v40 = vunpack.i.h.bf16 %v10450_v60  ;;  %v10451_v36 = vunpack.i.l.bf16 %v10450_v60  ;;  %v15860_v60 = vunpack.i.l.bf16 %v12668_v1 }
 0x462   : > { %8901 = vmatpush1.bf16.msra.mxu0 %v12838_v50 }
 0x463   : > { %v2592_v49 = vsel %vm502_vm1, %v10452_v40, %v10412_v15  ;;  %v2591_v44 = vsel %vm502_vm1, %v10451_v36, %v10411_v21  ;;  %v2583_v42 = vsel %vm502_vm1, %v10416_v41, %v10451_v36  ;;  %v2584_v19 = vsel %vm502_vm1, %v10417_v17, %v10452_v40  ;;  %8903 = vmatprep.subr.bf16.mxu0 %v12840_v35 }
 0x464   : > { %v12851_v5 = vpop.permute.xlu0 %10454  ;;  %v12853_v16 = vpop.permute.xlu1 %10469  ;;  %v12855_v57 = vpack.c.bf16 %v2592_v49, %v2591_v44  ;;  %v12857_v8 = vpack.c.bf16 %v2584_v19, %v2583_v42  ;;  %v10422_v15 = vunpack.i.h.bf16 %v12791_v61  ;;  %v10421_v21 = vunpack.i.l.bf16 %v12791_v61 }
 0x465   : > { %v15858_v41 = vunpack.i.h.bf16 %v12668_v1  ;;  %v15859_v17 = vunpack.i.h.bf16 %v12622_v18  ;;  %v15861_v40 = vunpack.i.l.bf16 %v12622_v18  ;;  %v10432_v61 = vunpack.i.h.bf16 %v12757_v34 }
 0x466   : > { %15856 = vst [vmem:[#allocation104_spill] sm:$0xff] %v12855_v57  ;;  %15857 = vst [vmem:[#allocation105_spill] sm:$0xff] %v12857_v8  ;;  %8983 = vmatprep.subr.bf16.mxu1 %v12857_v8  ;;  %v10431_v36 = vunpack.i.l.bf16 %v12757_v34  ;;  %v10437_v49 = vunpack.i.h.bf16 %v12817_v62  ;;  %v10436_v44 = vunpack.i.l.bf16 %v12817_v62  ;;  %8905 = vmatpush1.bf16.msra.mxu0 %v12855_v57  ;;  %v15862_v18 = vunpack.i.h.bf16 %v12670_v38 }
 0x467   : > { %v2440_v27 = vsel %vm454_vm3, %v15859_v17, %v15858_v41  ;;  %v2439_v19 = vsel %vm454_vm3, %v15861_v40, %v15860_v60  ;;  %8985 = vmatpush3.bf16.msra.mxu1 %v12176_v55  ;;  %v15863_v41 = vunpack.i.h.bf16 %v12615_v46  ;;  %8907 = vmatprep.subr.bf16.mxu0 %v12377_v48  ;;  %v2642_v17 = vsel %vm527_vm5, %v10422_v15, %v10432_v61 }
 0x468   : > { %v10465_v1 = vpop.permute.xlu0 %10464  ;;  %v12881_v42 = vpop.permute.xlu1 %10484  ;;  %8987 = vmatprep.subr.bf16.mxu1 %v12437_v29  ;;  %v2641_v62 = vsel %vm527_vm5, %v10421_v21, %v10431_v36  ;;  %v15864_v60 = vunpack.i.l.bf16 %v12670_v38  ;;  %v15865_v40 = vunpack.i.l.bf16 %v12615_v46  ;;  %v15866_v55 = vunpack.i.h.bf16 %v12692_v45 }
 0x469   : > { %v2486_v34 = vsel %vm467_vm2, %v15863_v41, %v15862_v18  ;;  %v15867_v8 = vunpack.i.h.bf16 %v12620_v63  ;;  %v15868_v41 = vunpack.i.l.bf16 %v12692_v45  ;;  %v15869_v48 = vunpack.i.l.bf16 %v12620_v63 }
 0x46a   : > { %v2485_v29 = vsel %vm467_vm2, %v15865_v40, %v15864_v60  ;;  %v12913_v38 = vpack.c.bf16 %v2440_v27, %v2439_v19  ;;  %v15871_v46 = vunpack.i.h.bf16 %v12729_v23  ;;  %v15872_v60 = vunpack.i.h.bf16 %v12624_v26  ;;  %8909 = vmatpush1.bf16.msra.mxu0 %v12372_v22 }
 0x46b   : > { %v2534_v18 = vsel %vm489_vm4, %v15867_v8, %v15866_v55  ;;  %v2533_v57 = vsel %vm489_vm4, %v15869_v48, %v15868_v41  ;;  %v15873_v35 = vunpack.i.l.bf16 %v12729_v23  ;;  %v15874_v55 = vunpack.i.l.bf16 %v12624_v26  ;;  %8989 = vmatpush3.bf16.msra.mxu1 %v12656_v31  ;;  %8911 = vmatprep.subr.bf16.mxu0 %v12398_v32 }
 0x46c   : > { %15870 = vst [vmem:[#allocation106_spill] sm:$0xff] %v12913_v38  ;;  %v2488_v40 = vsel %vm467_vm2, %v15872_v60, %v15871_v46  ;;  %v2649_v48 = vsel %vm527_vm5, %v10431_v36, %v10436_v44  ;;  %v2650_v63 = vsel %vm527_vm5, %v10432_v61, %v10437_v49  ;;  %v10447_v8 = vunpack.i.h.bf16 %v12815_v56  ;;  %v12937_v26 = vpop.permute.xlu0 %10474  ;;  %8991 = vmatprep.subr.bf16.mxu1 %v12450_v12 }
 0x46d   : > { %v2487_v45 = vsel %vm467_vm2, %v15874_v55, %v15873_v35  ;;  %v10446_v27 = vunpack.i.l.bf16 %v12815_v56  ;;  %v2645_v23 = vsel %vm527_vm5, %v10436_v44, %v10421_v21  ;;  %v10495_v35 = vpop.permute.xlu1 %10494  ;;  %v12940_v19 = vpack.c.bf16 %v2642_v17, %v2641_v62 }
 0x46e   : > { %v10457_v36 = vunpack.i.h.bf16 %v12851_v5  ;;  %v10456_v61 = vunpack.i.l.bf16 %v12851_v5  ;;  %v10497_v41 = vunpack.i.h.bf16 %v10495_v35  ;;  %v10496_v56 = vunpack.i.l.bf16 %v10495_v35  ;;  %8913 = vmatpush1.bf16.msra.mxu0 %v12394_v0 }
 0x46f   : > { %15875 = vst [vmem:[#allocation107_spill] sm:$0xff] %v12940_v19  ;;  %v2646_v21 = vsel %vm527_vm5, %v10437_v49, %v10422_v15  ;;  %v10467_v44 = vunpack.i.h.bf16 %v10465_v1  ;;  %v10466_v46 = vunpack.i.l.bf16 %v10465_v1  ;;  %v12947_v60 = vpack.c.bf16 %v2650_v63, %v2649_v48  ;;  %8993 = vmatpush3.bf16.msra.mxu1 %v12913_v38  ;;  %8915 = vmatprep.subr.bf16.mxu0 %v12940_v19 }
 0x470   : > { %v2643_v62 = vsel %vm527_vm5, %v10446_v27, %v10496_v56  ;;  %v2644_v17 = vsel %vm527_vm5, %v10447_v8, %v10497_v41  ;;  %v2651_v5 = vsel %vm527_vm5, %v10496_v56, %v10456_v61  ;;  %v2652_v55 = vsel %vm527_vm5, %v10497_v41, %v10457_v36  ;;  %v10480_v48 = vpop.permute.xlu0 %10479 }
 0x471   : > { %15876 = vst [vmem:[#allocation108_spill] sm:$0xff] %v12947_v60  ;;  %v10462_v15 = vunpack.i.h.bf16 %v12835_v13  ;;  %v10472_v49 = vunpack.i.h.bf16 %v12853_v16  ;;  %v10471_v1 = vunpack.i.l.bf16 %v12853_v16  ;;  %v12962_v63 = vpop.permute.xlu1 %10499  ;;  %8995 = vmatprep.subr.bf16.mxu1 %v12947_v60  ;;  %v12965_v35 = vpack.c.bf16 %v2486_v34, %v2485_v29 }
 0x472   : > { %v10461_v56 = vunpack.i.l.bf16 %v12835_v13  ;;  %v2647_v41 = vsel %vm527_vm5, %v10456_v61, %v10446_v27  ;;  %v2648_v38 = vsel %vm527_vm5, %v10457_v36, %v10447_v8  ;;  %v12973_v16 = vpack.c.bf16 %v2644_v17, %v2643_v62 }
 0x473   : > { %15877 = vst [vmem:[#allocation109_spill] sm:$0xff] %v12965_v35  ;;  %v12975_v12 = vpack.c.bf16 %v2646_v21, %v2645_v23  ;;  %v12977_v31 = vpack.c.bf16 %v2652_v55, %v2651_v5  ;;  %v12979_v0 = vpack.c.bf16 %v2488_v40, %v2487_v45  ;;  %v12981_v29 = vpack.c.bf16 %v2534_v18, %v2533_v57 }
 0x474   : > { %15878 = vst [vmem:[#allocation110_spill] sm:$0xff] %v12973_v16  ;;  %8997 = vmatpush3.bf16.msra.mxu1 %v12965_v35  ;;  %v2689_v13 = vsel %vm549_vm7, %v10461_v56, %v10466_v46  ;;  %v2690_v34 = vsel %vm549_vm7, %v10462_v15, %v10467_v44  ;;  %v2697_v8 = vsel %vm549_vm7, %v10466_v46, %v10471_v1  ;;  %v10490_v18 = vpop.permute.xlu0 %10489  ;;  %v10477_v36 = vunpack.i.h.bf16 %v12937_v26 }
 0x475   : > { %15879 = vst [vmem:[#allocation111_spill] sm:$0xff] %v12975_v12  ;;  %15880 = vst [vmem:[#allocation112_spill] sm:$0xff] %v12977_v31  ;;  %v2698_v27 = vsel %vm549_vm7, %v10467_v44, %v10472_v49  ;;  %v2693_v40 = vsel %vm549_vm7, %v10471_v1, %v10461_v56  ;;  %v2694_v57 = vsel %vm549_vm7, %v10472_v49, %v10462_v15  ;;  %8917 = vmatpush1.bf16.msra.mxu0 %v12975_v12  ;;  %v10515_v45 = vpop.permute.xlu1 %10514 }
 0x476   : > { %15881 = vst [vmem:[#allocation113_spill] sm:$0xff] %v12979_v0  ;;  %15882 = vst [vmem:[#allocation114_spill] sm:$0xff] %v12981_v29  ;;  %8999 = vmatprep.subr.bf16.mxu1 %v12977_v31  ;;  %v12998_v23 = vpack.c.bf16 %v2648_v38, %v2647_v41  ;;  %v10476_v61 = vunpack.i.l.bf16 %v12937_v26  ;;  %8919 = vmatprep.subr.bf16.mxu0 %v12973_v16  ;;  %v10517_v21 = vunpack.i.h.bf16 %v10515_v45  ;;  %v10516_v44 = vunpack.i.l.bf16 %v10515_v45 }
 0x477   : > { %v10482_v46 = vunpack.i.h.bf16 %v10480_v48  ;;  %v10481_v62 = vunpack.i.l.bf16 %v10480_v48  ;;  %v13003_v17 = vpack.c.bf16 %v2690_v34, %v2689_v13  ;;  %v13005_v5 = vpack.c.bf16 %v2698_v27, %v2697_v8 }
 0x478   : > { %15883 = vst [vmem:[#allocation115_spill] sm:$0xff] %v12998_v23  ;;  %v10492_v55 = vunpack.i.h.bf16 %v10490_v18  ;;  %v10491_v15 = vunpack.i.l.bf16 %v10490_v18  ;;  %9001 = vmatpush3.bf16.msra.mxu1 %v12979_v0  ;;  %v2691_v38 = vsel %vm549_vm7, %v10476_v61, %v10516_v44  ;;  %v2692_v26 = vsel %vm549_vm7, %v10477_v36, %v10517_v21  ;;  %v10505_v56 = vpop.permute.xlu0 %10504 }
 0x479   : > { %15884 = vst [vmem:[#allocation116_spill] sm:$0xff] %v13003_v17  ;;  %15885 = vst [vmem:[#allocation117_spill] sm:$0xff] %v13005_v5  ;;  %v15886_v49 = vunpack.i.h.bf16 %v12789_v43  ;;  %v15887_v1 = vunpack.i.h.bf16 %v12628_v4  ;;  %8921 = vmatpush1.bf16.msra.mxu0 %v12998_v23  ;;  %v13019_v41 = vpop.permute.xlu1 %10519  ;;  %9003 = vmatprep.subr.bf16.mxu1 %v13005_v5  ;;  %v2699_v13 = vsel %vm549_vm7, %v10516_v44, %v10481_v62  ;;  %v15888_v8 = vunpack.i.l.bf16 %v12789_v43 }
 0x47a   : > { %v2700_v34 = vsel %vm549_vm7, %v10517_v21, %v10482_v46  ;;  %v15889_v27 = vunpack.i.l.bf16 %v12628_v4  ;;  %v10502_v45 = vunpack.i.h.bf16 %v12962_v63  ;;  %8923 = vmatprep.subr.bf16.mxu0 %v13003_v17  ;;  %v10487_v44 = vunpack.i.h.bf16 %v12881_v42 }
 0x47b   : > { %v2536_v48 = vsel %vm489_vm4, %v15887_v1, %v15886_v49  ;;  %v10501_v49 = vunpack.i.l.bf16 %v12962_v63  ;;  %v13035_v1 = vpack.c.bf16 %v2692_v26, %v2691_v38  ;;  %v10486_v5 = vunpack.i.l.bf16 %v12881_v42 }
 0x47c   : > { %v2535_v18 = vsel %vm489_vm4, %v15889_v27, %v15888_v8  ;;  %v13039_v21 = vpack.c.bf16 %v2694_v57, %v2693_v40  ;;  %v13041_v43 = vpack.c.bf16 %v2700_v34, %v2699_v13  ;;  %v2695_v4 = vsel %vm549_vm7, %v10481_v62, %v10476_v61  ;;  %9005 = vmatpush3.bf16.msra.mxu1 %v12981_v29  ;;  %v10510_v42 = vpop.permute.xlu0 %10509 }
 0x47d   : > { %15890 = vst [vmem:[#allocation118_spill] sm:$0xff] %v13035_v1  ;;  %v2696_v8 = vsel %vm549_vm7, %v10482_v46, %v10477_v36  ;;  %v2745_v63 = vsel %vm562_vm6, %v10491_v15, %v10501_v49  ;;  %v2746_v38 = vsel %vm562_vm6, %v10492_v55, %v10502_v45  ;;  %v10530_v40 = vpop.permute.xlu1 %10529  ;;  %v2737_v57 = vsel %vm562_vm6, %v10486_v5, %v10491_v15 }
 0x47e   : > { %15891 = vst [vmem:[#allocation119_spill] sm:$0xff] %v13039_v21  ;;  %15892 = vst [vmem:[#allocation120_spill] sm:$0xff] %v13041_v43  ;;  %8925 = vmatpush1.bf16.msra.mxu0 %v13039_v21  ;;  %9007 = vmatprep.subr.bf16.mxu1 %v13041_v43  ;;  %v2738_v36 = vsel %vm562_vm6, %v10487_v44, %v10492_v55  ;;  %v13058_v61 = vpack.c.bf16 %v2536_v48, %v2535_v18  ;;  %v10512_v46 = vunpack.i.h.bf16 %v10510_v42 }
 0x47f   : > { %8927 = vmatprep.subr.bf16.mxu0 %v13035_v1  ;;  %v10511_v62 = vunpack.i.l.bf16 %v10510_v42  ;;  %v10532_v26 = vunpack.i.h.bf16 %v10530_v40  ;;  %v10531_v13 = vunpack.i.l.bf16 %v10530_v40  ;;  %v10507_v34 = vunpack.i.h.bf16 %v10505_v56 }
 0x480   : > { %15893 = vst [vmem:[#allocation121_spill] sm:$0xff] %v13058_v61  ;;  %v10506_v27 = vunpack.i.l.bf16 %v10505_v56  ;;  %v13061_v29 = vpack.c.bf16 %v2696_v8, %v2695_v4  ;;  %v13063_v0 = vpack.c.bf16 %v2746_v38, %v2745_v63  ;;  %v2741_v15 = vsel %vm562_vm6, %v10501_v49, %v10486_v5  ;;  %9009 = vmatpush3.bf16.msra.mxu1 %v13058_v61  ;;  %v2823_v56 = vld [vmem:[%s15364_s4 + $0x10] sm:$0xff]  ;;  %v10525_v5 = vpop.permute.xlu0 %10524 }
 0x481   : > { %v2742_v55 = vsel %vm562_vm6, %v10502_v45, %v10487_v44  ;;  %v2748_v48 = vsel %vm562_vm6, %v10532_v26, %v10512_v46  ;;  %v13071_v18 = vpack.c.bf16 %v2738_v36, %v2737_v57  ;;  %v2747_v4 = vsel %vm562_vm6, %v10531_v13, %v10511_v62  ;;  %v10535_v49 = vpop.permute.xlu1 %10534 }
 0x482   : > { %15894 = vst [vmem:[#allocation122_spill] sm:$0xff] %v13061_v29  ;;  %15895 = vst [vmem:[#allocation123_spill] sm:$0xff] %v13063_v0  ;;  %8929 = vmatpush1.bf16.msra.mxu0 %v13061_v29  ;;  %9011 = vmatprep.subr.bf16.mxu1 %v13063_v0  ;;  %v2739_v45 = vsel %vm562_vm6, %v10506_v27, %v10531_v13  ;;  %v2740_v44 = vsel %vm562_vm6, %v10507_v34, %v10532_v26  ;;  %v10527_v8 = vunpack.i.h.bf16 %v10525_v5  ;;  %v2829_v13 = vld [vmem:[%s15364_s4 + $0x40] sm:$0xff] }
 0x483   : > { %15896 = vst [vmem:[#allocation124_spill] sm:$0xff] %v13071_v18  ;;  %8931 = vmatprep.subr.bf16.mxu0 %v13071_v18  ;;  %v10526_v63 = vunpack.i.l.bf16 %v10525_v5  ;;  %v10537_v38 = vunpack.i.h.bf16 %v10535_v49  ;;  %v10536_v42 = vunpack.i.l.bf16 %v10535_v49  ;;  %v10522_v40 = vunpack.i.h.bf16 %v13019_v41  ;;  %3487 = vmatmul.mubr.f32.vlgmr.msra.gmra.mrb[26].mxu1 %v2823_v56 }
 0x484   : > { %v10521_v57 = vunpack.i.l.bf16 %v13019_v41  ;;  %v13088_v36 = vpack.c.bf16 %v2742_v55, %v2741_v15  ;;  %v13090_v61 = vpack.c.bf16 %v2740_v44, %v2739_v45  ;;  %v2743_v26 = vsel %vm562_vm6, %v10511_v62, %v10506_v27  ;;  %9013 = vmatpush3.bf16.msra.mxu1 %v13063_v0  ;;  %v10540_v55 = vpop.permute.xlu0 %10539  ;;  %v2828_v62 = vld [vmem:[%s15364_s4 + $0x38] sm:$0xff]  ;;  %3491 = vmatprep.mubr.f32.mxu1 %v2829_v13 }
 0x485   : > { %v2744_v5 = vsel %vm562_vm6, %v10512_v46, %v10507_v34  ;;  %v2794_v49 = vsel %vm15639_vm8, %v10527_v8, %v10537_v38  ;;  %3224 = vmatmul.mubr.f32.vlgmr.msra.gmra.mrb[16].mxu0 %v2823_v56  ;;  %v13101_v41 = vpack.c.bf16 %v2748_v48, %v2747_v4  ;;  %v2793_v15 = vsel %vm15639_vm8, %v10526_v63, %v10536_v42  ;;  %v10545_v45 = vpop.permute.xlu1 %10544 }
 0x486   : > { %15897 = vst [vmem:[#allocation125_spill] sm:$0xff] %v13088_v36  ;;  %15898 = vst [vmem:[#allocation126_spill] sm:$0xff] %v13090_v61  ;;  %8933 = vmatpush1.bf16.msra.mxu0 %v13088_v36  ;;  %v2785_v46 = vsel %vm15639_vm8, %v10521_v57, %v10526_v63  ;;  %v2786_v34 = vsel %vm15639_vm8, %v10522_v40, %v10527_v8  ;;  %v10542_v27 = vunpack.i.h.bf16 %v10540_v55  ;;  %v10541_v48 = vunpack.i.l.bf16 %v10540_v55  ;;  %v2834_v8 = vld [vmem:[%s15364_s4 + $0x68] sm:$0xff] }
 0x487   : > { %8935 = vmatprep.subr.bf16.mxu0 %v13090_v61  ;;  %v10547_v56 = vunpack.i.h.bf16 %v10545_v45  ;;  %v10546_v4 = vunpack.i.l.bf16 %v10545_v45  ;;  %3229 = vmatprep.mubr.f32.mxu0 %v2829_v13  ;;  %v2789_v44 = vsel %vm15639_vm8, %v10536_v42, %v10521_v57  ;;  %v13118_v0 = vpack.c.bf16 %v2744_v5, %v2743_v26  ;;  %v2833_v26 = vld [vmem:[%s15364_s4 + $0x60] sm:$0xff] }
 0x488   : > { %9015 = vmatprep.subr.bf16.mxu1 %v13101_v41  ;;  %v13120_v43 = vpack.c.bf16 %v2786_v34, %v2785_v46  ;;  %v2790_v63 = vsel %vm15639_vm8, %v10537_v38, %v10522_v40  ;;  %3492 = vmatmul.mubr.f32.gmra.mrb[28].mxu1 %v2828_v62  ;;  %v10550_v57 = vpop.permute.xlu0 %10549  ;;  %v13133_v13 = vpack.c.bf16 %v2794_v49, %v2793_v15  ;;  %v2839_v34 = vld [vmem:[%s15364_s4 + $0x90] sm:$0xff] }
 0x489   : > { %15899 = vst [vmem:[#allocation127_spill] sm:$0xff] %v13118_v0  ;;  %3230 = vmatmul.mubr.f32.gmra.mrb[18].mxu0 %v2828_v62  ;;  %v2787_v55 = vsel %vm15639_vm8, %v10541_v48, %v10546_v4  ;;  %v2788_v42 = vsel %vm15639_vm8, %v10542_v27, %v10547_v56  ;;  %9017 = vmatpush3.bf16.msra.mxu1 %v13101_v41  ;;  %v10552_v38 = vunpack.i.h.bf16 %v10550_v57  ;;  %v10551_v40 = vunpack.i.l.bf16 %v10550_v57 }
 0x48a   : > { %15900 = vst [vmem:[#allocation128_spill] sm:$0xff] %v13120_v43  ;;  %8937 = vmatpush1.bf16.msra.mxu0 %v13118_v0  ;;  %3235 = vmatprep.mubr.f32.mxu0 %v2834_v8  ;;  %v13139_v5 = vpack.c.bf16 %v2788_v42, %v2787_v55  ;;  %v13142_v45 = vpack.c.bf16 %v2790_v63, %v2789_v44  ;;  %v2840_v63 = vld [vmem:[%s15364_s4 + $0x98] sm:$0xff]  ;;  %v13202_v55 = vld [vmem:[%s15365_s5 + $0x8] sm:$0xff]  ;;  %v8058_v42 = vpop.f32.mrb[18].mxu1 }
 0x48b   : > { %8939 = vmatprep.subr.bf16.mxu0 %v13120_v43  ;;  %9019 = vmatprep.subr.bf16.mxu1 %v13133_v13  ;;  %v2791_v49 = vsel %vm15639_vm8, %v10551_v40, %v10541_v48  ;;  %v2792_v15 = vsel %vm15639_vm8, %v10552_v38, %v10542_v27  ;;  %v2795_v62 = vsel %vm15639_vm8, %v10546_v4, %v10551_v40  ;;  %v2838_v48 = vld [vmem:[%s15364_s4 + $0x88] sm:$0xff]  ;;  %v8059_v57 = vpop.f32.mrb[19].mxu1 }
 0x48c   : > { %15901 = vst [vmem:[#allocation129_spill] sm:$0xff] %v13139_v5  ;;  %3496 = vmatprep.mubr.f32.mxu1 %v2834_v8  ;;  %15902 = vst [vmem:[#allocation130_spill] sm:$0xff] %v13142_v45  ;;  %v2796_v46 = vsel %vm15639_vm8, %v10547_v56, %v10552_v38  ;;  %v13159_v44 = vpack.c.bf16 %v2792_v15, %v2791_v49  ;;  %v2825_v56 = vld [vmem:[%s15364_s4 + $0x20] sm:$0xff]  ;;  %v2830_v4 = vld [vmem:[%s15364_s4 + $0x48] sm:$0xff] }
 0x48d   : > { %3236 = vmatmul.mubr.f32.gmra.mrb[20].mxu0 %v2833_v26  ;;  %3497 = vmatmul.mubr.f32.gmra.mrb[30].mxu1 %v2833_v26  ;;  %v13161_v27 = vpack.c.bf16 %v2796_v46, %v2795_v62  ;;  %v2835_v8 = vld [vmem:[%s15364_s4 + $0x70] sm:$0xff]  ;;  %v13208_v26 = vadd.f32 %v8059_v57, %v8058_v42  ;;  %v15905_v15 = vld [vmem:[#allocation30_spill] sm:$0xff] }
 0x48e   : > { %8941 = vmatpush1.bf16.msra.mxu0 %v13142_v45  ;;  %15903 = vst [vmem:[#allocation131_spill] sm:$0xff] %v13159_v44  ;;  %9021 = vmatpush3.bf16.msra.mxu1 %v13133_v13  ;;  %v15904_v49 = vld [vmem:[#allocation27_spill] sm:$0xff]  ;;  %v15906_v62 = vld [vmem:[#allocation28_spill] sm:$0xff] }
 0x48f   : > { %8943 = vmatprep.subr.bf16.mxu0 %v13139_v5  ;;  %3241 = vmatprep.mubr.f32.mxu0 %v2839_v34  ;;  %v15907_v46 = vld [vmem:[#allocation56_spill] sm:$0xff]  ;;  %v15914_v42 = vld [vmem:[#allocation63_spill] sm:$0xff] }
 0x490   : > { %3501 = vmatprep.mubr.f32.mxu1 %v2839_v34  ;;  %9023 = vmatprep.subr.bf16.mxu1 %v13161_v27  ;;  %v15908_v34 = vld [vmem:[#allocation57_spill] sm:$0xff]  ;;  %v15915_v57 = vld [vmem:[#allocation64_spill] sm:$0xff] }
 0x491   : > { %3242 = vmatmul.mubr.f32.gmra.mrb[22].mxu0 %v2838_v48  ;;  %3502 = vmatmul.mubr.f32.gmra.mrb[32].mxu1 %v2838_v48  ;;  %v15909_v48 = vld [vmem:[#allocation58_spill] sm:$0xff] }
 0x492   : > { %8945 = vmatpush1.bf16.msra.mxu0 %v13159_v44  ;;  %9025 = vmatpush3.bf16.msra.mxu1 %v13161_v27 }
 0x493   : > { %9041 = vmatprep.subr.bf16.mxu0 %v11792_v58  ;;  %3312 = vmatprep.mubr.f32.mxu0 %v15769_v6 }
 0x494   : > { %8535 = vmatprep.mubr.msk.f32.mxu1 %vm15582_vm12, %v2825_v56 }
 0x495   : > { %7906 = vmatmul.mubr.msk.f32.vlgmr.msra.gmra.mrb[16].mxu0 %vm15582_vm12, %v2825_v56  ;;  %8536 = vmatmul.mubr.msk.f32.vlgmr.msra.gmra.mrb[8].mxu1 %vm15582_vm12, %v2830_v4  ;;  %v15910_v56 = vld [vmem:[#allocation59_spill] sm:$0xff] }
 0x496   : > { %9043 = vmatpush1.bf16.msra.mxu0 %v11794_v59  ;;  %3318 = vmatprep.mubr.f32.mxu0 %v15769_v6 }
 0x497   : > { %9045 = vmatprep.subr.bf16.mxu0 %v11826_v10  ;;  %8538 = vmatprep.mubr.msk.f32.mxu1 %vm15582_vm12, %v2835_v8 }
 0x499   : > { %7907 = vmatmul.mubr.msk.f32.gmra.mrb[18].mxu0 %vm15582_vm12, %v2830_v4  ;;  %8539 = vmatmul.mubr.msk.f32.gmra.mrb[10].mxu1 %vm15582_vm12, %v2840_v63  ;;  %v15911_v4 = vld [vmem:[#allocation60_spill] sm:$0xff] }
 0x49a   : > { %9047 = vmatpush1.bf16.msra.mxu0 %v11834_v51  ;;  %3324 = vmatprep.mubr.f32.mxu0 %v15769_v6  ;;  %v15964_v51 = vld [vmem:[#allocation85_spill] sm:$0xff] }
 0x49b   : > { %9049 = vmatprep.subr.bf16.mxu0 %v11836_v52  ;;  %3753 = vmatprep.mubr.f32.mxu1 %v11615_v54  ;;  %v15962_v52 = vld [vmem:[#allocation105_spill] sm:$0xff] }
 0x49d   : > { %7908 = vmatmul.mubr.msk.f32.gmra.mrb[20].mxu0 %vm15582_vm12, %v2835_v8  ;;  %v15912_v8 = vld [vmem:[#allocation61_spill] sm:$0xff] }
 0x49e   : > { %9051 = vmatpush1.bf16.msra.mxu0 %v11843_v24  ;;  %3330 = vmatprep.mubr.f32.mxu0 %v15769_v6  ;;  %v15961_v24 = vld [vmem:[#allocation69_spill] sm:$0xff] }
 0x49f   : > { %9053 = vmatprep.subr.bf16.mxu0 %v11866_v33  ;;  %v4242_v33 = vld [vmem:[%s15365_s5 + $0x28] sm:$0xff] }
 0x4a1   : > { %7909 = vmatmul.mubr.msk.f32.gmra.mrb[22].mxu0 %vm15582_vm12, %v2840_v63  ;;  %v15913_v63 = vld [vmem:[#allocation62_spill] sm:$0xff] }
 0x4a2   : > { %9055 = vmatpush1.bf16.msra.mxu0 %v11870_v3  ;;  %4666 = vmatprep.mubr.f32.mxu0 %v13202_v55  ;;  %v15960_v3 = vld [vmem:[#allocation97_spill] sm:$0xff] }
 0x4a3   : > { %9057 = vmatprep.subr.bf16.mxu0 %v11872_v39  ;;  %v15959_v39 = vld [vmem:[#allocation54_spill] sm:$0xff] }
 0x4a6   : > { %9059 = vmatpush1.bf16.msra.mxu0 %v11887_v14  ;;  %v15958_v14 = vld [vmem:[#allocation79_spill] sm:$0xff] }
 0x4a7   : > { %9061 = vmatprep.subr.bf16.mxu0 %v11906_v7  ;;  %v15957_v7 = vld [vmem:[#allocation47_spill] sm:$0xff] }
 0x4aa   : > { %9063 = vmatpush1.bf16.msra.mxu0 %v11912_v37  ;;  %v13500_v37 = vld [vmem:[%s15365_s5 + $0xb8] sm:$0xff] }
 0x4ab   : > { %9065 = vmatprep.subr.bf16.mxu0 %v11917_v47  ;;  %v15932_v47 = vld [vmem:[#allocation101_spill] sm:$0xff] }
 0x4ae   : > { %9067 = vmatpush1.bf16.msra.mxu0 %v11923_v9  ;;  %v15930_v9 = vld [vmem:[#allocation95_spill] sm:$0xff] }
 0x4af   : > { %9069 = vmatprep.subr.bf16.mxu0 %v11940_v20  ;;  %v15929_v20 = vld [vmem:[#allocation93_spill] sm:$0xff] }
 0x4b2   : > { %9071 = vmatpush1.bf16.msra.mxu0 %v11948_v28  ;;  %v13218_v38 = vpop.f32.mrb[40].mxu0  ;;  %v15928_v28 = vld [vmem:[#allocation94_spill] sm:$0xff] }
 0x4b3   : > { %9073 = vmatprep.subr.bf16.mxu0 %v15809_v2  ;;  %v8518_v40 = vpop.f32.mrb[41].mxu0  ;;  %v15926_v2 = vld [vmem:[#allocation91_spill] sm:$0xff] }
 0x4b4   : > { %v15916_v40 = vld [vmem:[#allocation65_spill] sm:$0xff] }
 0x4b6   : > { %9075 = vmatpush1.bf16.msra.mxu0 %v15904_v49  ;;  %v13278_v49 = vld [vmem:[%s15365_s5 + $0xb0] sm:$0xff] }
 0x4b7   : > { %9077 = vmatprep.subr.bf16.mxu0 %v15905_v15 }
 0x4ba   : > { %9079 = vmatpush1.bf16.msra.mxu0 %v15906_v62  ;;  %v8061_v62 = vpop.f32.mrb[20].mxu1 }
 0x4bb   : > { %9081 = vmatprep.subr.bf16.mxu0 %v15907_v46  ;;  %v15917_v46 = vld [vmem:[#allocation66_spill] sm:$0xff] }
 0x4be   : > { %9083 = vmatpush1.bf16.msra.mxu0 %v15908_v34  ;;  %v8062_v34 = vpop.f32.mrb[21].mxu1 }
 0x4bf   : > { %9085 = vmatprep.subr.bf16.mxu0 %v15909_v48  ;;  %v13234_v15 = vadd.f32 %v8062_v34, %v8061_v62  ;;  %v15918_v48 = vld [vmem:[#allocation67_spill] sm:$0xff]  ;;  %v15920_v62 = vld [vmem:[#allocation70_spill] sm:$0xff]  ;;  %v13256_v34 = vld [vmem:[%s15365_s5 + $0x38] sm:$0xff] }
 0x4c2   : > { %9087 = vmatpush1.bf16.msra.mxu0 %v15910_v56  ;;  %v13272_v56 = vld [vmem:[%s15365_s5 + $0x70] sm:$0xff] }
 0x4c3   : > { %9089 = vmatprep.subr.bf16.mxu0 %v15911_v4  ;;  %v15919_v4 = vld [vmem:[#allocation68_spill] sm:$0xff] }
 0x4c6   : > { %9091 = vmatpush1.bf16.msra.mxu0 %v15912_v8  ;;  %v13240_v8 = vld [vmem:[%s15365_s5] sm:$0xff] }
 0x4c7   : > { %9093 = vmatprep.subr.bf16.mxu0 %v15913_v63  ;;  %v8064_v63 = vpop.f32.mrb[22].mxu1 }
 0x4ca   : > { %9095 = vmatpush1.bf16.msra.mxu0 %v15914_v42  ;;  %v13262_v42 = vld [vmem:[%s15365_s5 + $0x78] sm:$0xff] }
 0x4cb   : > { %9097 = vmatprep.subr.bf16.mxu0 %v15915_v57  ;;  %v8065_v57 = vpop.f32.mrb[23].mxu1 }
 0x4ce   : > { %9099 = vmatpush1.bf16.msra.mxu0 %v15916_v40  ;;  %v13246_v40 = vld [vmem:[%s15365_s5 + $0x40] sm:$0xff] }
 0x4cf   : > { %9101 = vmatprep.subr.bf16.mxu0 %v15917_v46  ;;  %v13248_v46 = vadd.f32 %v8065_v57, %v8064_v63 }
 0x4d2   : > { %9103 = vmatpush1.bf16.msra.mxu0 %v15918_v48  ;;  %v15921_v48 = vld [vmem:[#allocation72_spill] sm:$0xff] }
 0x4d3   : > { %9105 = vmatprep.subr.bf16.mxu0 %v15919_v4  ;;  %v8067_v4 = vpop.f32.mrb[24].mxu1 }
 0x4d4   : > { %v8068_v63 = vpop.f32.mrb[25].mxu1 }
 0x4d5   : > { %4667 = vmatmul.mubr.f32.vlgmr.msra.gmra.mrb[24].mxu0 %v13240_v8  ;;  %v13264_v57 = vadd.f32 %v8068_v63, %v8067_v4  ;;  %v15924_v4 = vld [vmem:[#allocation88_spill] sm:$0xff]  ;;  %v13286_v63 = vld [vmem:[%s15365_s5 + $0xa8] sm:$0xff] }
 0x4d6   : > { %9107 = vmatpush1.bf16.msra.mxu0 %v15920_v62  ;;  %4672 = vmatprep.mubr.f32.mxu0 %v13246_v40  ;;  %v15922_v62 = vld [vmem:[#allocation73_spill] sm:$0xff] }
 0x4d7   : > { %9109 = vmatprep.subr.bf16.mxu0 %v15921_v48  ;;  %v15923_v48 = vld [vmem:[#allocation87_spill] sm:$0xff] }
 0x4d9   : > { %4673 = vmatmul.mubr.f32.gmra.mrb[26].mxu0 %v13256_v34 }
 0x4da   : > { %9111 = vmatpush1.bf16.msra.mxu0 %v15922_v62  ;;  %4678 = vmatprep.mubr.f32.mxu0 %v13262_v42  ;;  %v15925_v62 = vld [vmem:[#allocation90_spill] sm:$0xff] }
 0x4db   : > { %9113 = vmatprep.subr.bf16.mxu0 %v15923_v48  ;;  %v13292_v48 = vld [vmem:[%s15365_s5 + $0x18] sm:$0xff] }
 0x4dd   : > { %4679 = vmatmul.mubr.f32.gmra.mrb[28].mxu0 %v13272_v56 }
 0x4de   : > { %9115 = vmatpush1.bf16.msra.mxu0 %v15924_v4  ;;  %4684 = vmatprep.mubr.f32.mxu0 %v13278_v49  ;;  %v15927_v4 = vld [vmem:[#allocation92_spill] sm:$0xff] }
 0x4df   : > { %9117 = vmatprep.subr.bf16.mxu0 %v15925_v62  ;;  %v15931_v62 = vld [vmem:[#allocation96_spill] sm:$0xff] }
 0x4e1   : > { %4685 = vmatmul.mubr.f32.gmra.mrb[30].mxu0 %v13286_v63 }
 0x4e2   : > { %9119 = vmatpush1.bf16.msra.mxu0 %v15926_v2  ;;  %4755 = vmatprep.mubr.f32.mxu0 %v13292_v48  ;;  %v15933_v2 = vld [vmem:[#allocation103_spill] sm:$0xff] }
 0x4e3   : > { %9121 = vmatprep.subr.bf16.mxu0 %v15927_v4  ;;  %v15934_v4 = vld [vmem:[#allocation104_spill] sm:$0xff] }
 0x4e6   : > { %9123 = vmatpush1.bf16.msra.mxu0 %v15928_v28  ;;  %v15935_v28 = vld [vmem:[#allocation82_spill] sm:$0xff] }
 0x4e7   : > { %9125 = vmatprep.subr.bf16.mxu0 %v15929_v20 }
 0x4ea   : > { %9127 = vmatpush1.bf16.msra.mxu0 %v15930_v9 }
 0x4eb   : > { %9129 = vmatprep.subr.bf16.mxu0 %v15931_v62  ;;  %v15936_v62 = vld [vmem:[#allocation83_spill] sm:$0xff] }
 0x4ee   : > { %9131 = vmatpush1.bf16.msra.mxu0 %v12798_v30 }
 0x4ef   : > { %9133 = vmatprep.subr.bf16.mxu0 %v12800_v53 }
 0x4f2   : > { %9135 = vmatpush1.bf16.msra.mxu0 %v12819_v25 }
 0x4f3   : > { %9137 = vmatprep.subr.bf16.mxu0 %v15932_v47 }
 0x4f6   : > { %9139 = vmatpush1.bf16.msra.mxu0 %v12838_v50 }
 0x4f7   : > { %9141 = vmatprep.subr.bf16.mxu0 %v15933_v2  ;;  %v15937_v2 = vld [vmem:[#allocation25_spill] sm:$0xff] }
 0x4fa   : > { %9143 = vmatpush1.bf16.msra.mxu0 %v15934_v4 }
 0x4fb   : > { %9145 = vmatprep.subr.bf16.mxu0 %v15935_v28 }
 0x4fe   : > { %9147 = vmatpush1.bf16.msra.mxu0 %v12372_v22 }
 0x4ff   : > { %9149 = vmatprep.subr.bf16.mxu0 %v12398_v32  ;;  %v3612_v32 = vpop.permute.xlu1 %3611 }
 0x502   : > { %9151 = vmatpush1.bf16.msra.mxu0 %v15936_v62  ;;  %v13324_v62 = vld [vmem:[%s15365_s5 + $0x10] sm:$0xff] }
 0x503   : > { %9153 = vmatprep.subr.bf16.mxu0 %v12940_v19 }
 0x506   : > { %9155 = vmatpush1.bf16.msra.mxu0 %v12975_v12 }
 0x507   : > { %9157 = vmatprep.subr.bf16.mxu0 %v12973_v16 }
 0x50a   : > { %9159 = vmatpush1.bf16.msra.mxu0 %v12998_v23 }
 0x50b   : > { %9161 = vmatprep.subr.bf16.mxu0 %v13003_v17 }
 0x50e   : > { %9163 = vmatpush1.bf16.msra.mxu0 %v13039_v21 }
 0x50f   : > { %9165 = vmatprep.subr.bf16.mxu0 %v13035_v1 }
 0x512   : > { %9167 = vmatpush1.bf16.msra.mxu0 %v13061_v29 }
 0x513   : > { %9169 = vmatprep.subr.bf16.mxu0 %v13071_v18 }
 0x515   : > { %4756 = vmatmul.mubr.f32.vlgmr.msra.gmra.mrb[24].mxu0 %v13324_v62 }
 0x516   : > { %9171 = vmatpush1.bf16.msra.mxu0 %v13088_v36 }
 0x517   : > { %9173 = vmatprep.subr.bf16.mxu0 %v13090_v61 }
 0x51a   : > { %9175 = vmatpush1.bf16.msra.mxu0 %v13118_v0 }
 0x51b   : > { %9177 = vmatprep.subr.bf16.mxu0 %v13120_v43 }
 0x51e   : > { %9179 = vmatpush1.bf16.msra.mxu0 %v13142_v45 }
 0x51f   : > { %9181 = vmatprep.subr.bf16.mxu0 %v13139_v5 }
 0x522   : > { %9183 = vmatpush1.bf16.msra.mxu0 %v13159_v44 }
 0x556   : > { %v8102_v29 = vpop.f32.mrb[26].mxu1 }
 0x557   : > { %v8103_v1 = vpop.f32.mrb[27].mxu1 }
 0x558   : > { %v8104_v21 = vadd.f32 %v8103_v1, %v8102_v29 }
 0x55a   : > { %v3489_v18 = vadd.f32 %v8104_v21, %v13208_v26 }
 0x55b   : > { %v8105_v17 = vpop.f32.mrb[28].mxu1 }
 0x55c   : > { %v8106_v23 = vpop.f32.mrb[29].mxu1 }
 0x55d   : > { %v8107_v36 = vadd.f32 %v8106_v23, %v8105_v17  ;;  %v3617_v17 = vpop.permute.xlu0 %3616 }
 0x55f   : > { %v3494_v61 = vadd.f32 %v8107_v36, %v13234_v15 }
 0x560   : > { %v8108_v16 = vpop.f32.mrb[30].mxu1 }
 0x561   : > { %v8109_v0 = vpop.f32.mrb[31].mxu1  ;;  %v3627_v25 = vpop.permute.xlu0 %3626 }
 0x562   : > { %v8110_v12 = vadd.f32 %v8109_v0, %v8108_v16 }
 0x564   : > { %v8111_v43 = vpop.f32.mrb[32].mxu1  ;;  %v3499_v45 = vadd.f32 %v8110_v12, %v13248_v46 }
 0x565   : > { %v8112_v19 = vpop.f32.mrb[33].mxu1 }
 0x566   : > { %v8113_v5 = vadd.f32 %v8112_v19, %v8111_v43 }
 0x568   : > { %v3314_v44 = vpop.f32.mrb[16].mxu0  ;;  %v8537_v29 = vpop.f32.mrb[8].mxu1  ;;  %v3504_v1 = vadd.f32 %v8113_v5, %v13264_v57 }
 0x569   : > { %v3629_v22 = vadd.f32 %v3612_v32, %v3314_v44  ;;  %v3316_v28 = vpop.f32.mrb[17].mxu0  ;;  %v3579_v26 = vadd.f32 %v8537_v29, %v3494_v61  ;;  %v3573_v23 = vpop.f32.mrb[9].mxu1 }
 0x56a   : > { %v3630_v21 = vadd.f32 %v3612_v32, %v3316_v28  ;;  %v3574_v15 = vadd.f32 %v3573_v23, %v3489_v18  ;;  %v3622_v29 = vpop.permute.xlu1 %3621 }
 0x56b   : > { %vm3641_vm13 = vcmp.ge.f32.partialorder %v3629_v22, 0.0  ;;  %v3653_v36 = vmul.f32 0.01, %v3629_v22  ;;  %v3634_v16 = vadd.f32 %v3617_v17, %v3579_v26 }
 0x56c   : > { %vm3642_vm14 = vcmp.ge.f32.partialorder %v3630_v21, 0.0  ;;  %v3654_v0 = vmul.f32 0.01, %v3630_v21  ;;  %v3320_v12 = vpop.f32.mrb[18].mxu0  ;;  %v3631_v19 = vadd.f32 %v3612_v32, %v3574_v15  ;;  %v8540_v44 = vpop.f32.mrb[10].mxu1  ;;  %v15938_v15 = vld [vmem:[#allocation23_spill] sm:$0xff] }
 0x56d   : > { %v3665_v46 = vsel %vm3641_vm13, %v3629_v22, %v3653_v36  ;;  %v3632_v43 = vadd.f32 %v3617_v17, %v3320_v12  ;;  %v3322_v4 = vpop.f32.mrb[19].mxu0  ;;  %vm3646_vm15 = vcmp.ge.f32.partialorder %v3634_v16, 0.0  ;;  %v3658_v28 = vmul.f32 0.01, %v3634_v16  ;;  %v3583_v61 = vpop.f32.mrb[11].mxu1 }
 0x56e   : > { %v13340_v50 = vmul.f32 %v3665_v46, %v15937_v2  ;;  %v3666_v5 = vsel %vm3642_vm14, %v3630_v21, %v3654_v0  ;;  %vm3643_vm0 = vcmp.ge.f32.partialorder %v3631_v19, 0.0  ;;  %v3655_v18 = vmul.f32 0.01, %v3631_v19 }
 0x56f   : > { %v13343_v57 = vmul.f32 %v3666_v5, %v11615_v54  ;;  %vm3644_vm12 = vcmp.ge.f32.partialorder %v3632_v43, 0.0  ;;  %v3670_v26 = vsel %vm3646_vm15, %v3634_v16, %v3658_v28  ;;  %v3656_v22 = vmul.f32 0.01, %v3632_v43 }
 0x570   : > { %v3633_v32 = vadd.f32 %v3617_v17, %v3322_v4  ;;  %v3589_v23 = vadd.f32 %v8540_v44, %v3504_v1  ;;  %v3326_v36 = vpop.f32.mrb[20].mxu0  ;;  %v3682_v12 = vmul.f32 %v3670_v26, %v15938_v15  ;;  %v3667_v46 = vsel %vm3643_vm0, %v3631_v19, %v3655_v18 }
 0x571   : > { %v3584_v47 = vadd.f32 %v3583_v61, %v3499_v45  ;;  %v3635_v21 = vadd.f32 %v3622_v29, %v3326_v36  ;;  %v3328_v0 = vpop.f32.mrb[21].mxu0  ;;  %v3679_v53 = vmul.f32 %v3667_v46, %v15938_v15  ;;  %v3668_v5 = vsel %vm3644_vm12, %v3632_v43, %v3656_v22 }
 0x572   : > { %vm3645_vm13 = vcmp.ge.f32.partialorder %v3633_v32, 0.0  ;;  %v3657_v30 = vmul.f32 0.01, %v3633_v32  ;;  %v3680_v9 = vmul.f32 %v3668_v5, %v15937_v2  ;;  %v3640_v20 = vadd.f32 %v3627_v25, %v3589_v23 }
 0x573   : > { %v3637_v16 = vadd.f32 %v3622_v29, %v3584_v47  ;;  %vm3647_vm14 = vcmp.ge.f32.partialorder %v3635_v21, 0.0  ;;  %v3659_v1 = vmul.f32 0.01, %v3635_v21  ;;  %v3636_v17 = vadd.f32 %v3622_v29, %v3328_v0 }
 0x574   : > { %v3669_v4 = vsel %vm3645_vm13, %v3633_v32, %v3657_v30  ;;  %v3332_v44 = vpop.f32.mrb[22].mxu0  ;;  %v13348_v28 = vpack.i.bf16 %v3682_v12, %v3679_v53  ;;  %vm3652_vm0 = vcmp.ge.f32.partialorder %v3640_v20, 0.0  ;;  %v3664_v19 = vmul.f32 0.01, %v3640_v20 }
 0x575   : > { %v3681_v45 = vmul.f32 %v3669_v4, %v11615_v54  ;;  %vm3649_vm15 = vcmp.ge.f32.partialorder %v3637_v16, 0.0  ;;  %v3334_v61 = vpop.f32.mrb[23].mxu0  ;;  %v3661_v43 = vmul.f32 0.01, %v3637_v16  ;;  %v3671_v18 = vsel %vm3647_vm14, %v3635_v21, %v3659_v1 }
 0x576   : > { %vm3648_vm12 = vcmp.ge.f32.partialorder %v3636_v17, 0.0  ;;  %v3660_v26 = vmul.f32 0.01, %v3636_v17  ;;  %10554 = vrot.lane.b32.xlu1 %v13348_v28, %s11176_s27  ;;  %v3676_v47 = vsel %vm3652_vm0, %v3640_v20, %v3664_v19  ;;  %v3683_v30 = vmul.f32 %v3671_v18, %v15937_v2 }
 0x577   : > { %v3638_v29 = vadd.f32 %v3627_v25, %v3332_v44  ;;  %v3639_v22 = vadd.f32 %v3627_v25, %v3334_v61  ;;  %v3688_v32 = vmul.f32 %v3676_v47, %v15938_v15  ;;  %v3673_v23 = vsel %vm3649_vm15, %v3637_v16, %v3661_v43 }
 0x578   : > { %v3672_v36 = vsel %vm3648_vm12, %v3636_v17, %v3660_v26  ;;  %v13356_v46 = vpack.c.bf16 %v3681_v45, %v13343_v57  ;;  %v3685_v0 = vmul.f32 %v3673_v23, %v15938_v15  ;;  %v13362_v20 = vpack.c.bf16 %v3680_v9, %v13340_v50  ;;  %v13457_v23 = vld [vmem:[%s15365_s5 + $0x48] sm:$0xff] }
 0x579   : > { %v3684_v21 = vmul.f32 %v3672_v36, %v11615_v54  ;;  %vm3650_vm13 = vcmp.ge.f32.partialorder %v3638_v29, 0.0  ;;  %v3662_v5 = vmul.f32 0.01, %v3638_v29  ;;  %vm3651_vm14 = vcmp.ge.f32.partialorder %v3639_v22, 0.0  ;;  %v15951_v36 = vld [vmem:[#allocation43_spill] sm:$0xff] }
 0x57a   : > { %15939 = vst [vmem:[#allocation132_spill] sm:$0xff] %v13356_v46  ;;  %v3663_v4 = vmul.f32 0.01, %v3639_v22  ;;  %9027 = vmatprep.subr.bf16.mxu1 %v13356_v46  ;;  %15940 = vst [vmem:[#allocation133_spill] sm:$0xff] %v13362_v20  ;;  %v13364_v1 = vpack.i.bf16 %v3688_v32, %v3685_v0  ;;  %10559 = vrot.lane.b32.xlu1 %v13348_v28, %s11175_s23  ;;  %v13374_v19 = vpack.i.bf16 %v3680_v9, %v13340_v50  ;;  %v15943_v9 = vmov 0.0|0.0   ;;  %v15944_v50 = vld [vmem:[#allocation29_spill] sm:$0xff] }
 0x57b   : > { %v3674_v25 = vsel %vm3650_vm13, %v3638_v29, %v3662_v5  ;;  %9029 = vmatpush1.bf16.xpose.msra.mxu1 %v13362_v20  ;;  %v13377_v61 = vpack.i.bf16 %v3681_v45, %v13343_v57  ;;  %v13381_v18 = vpack.c.bf16 %v3682_v12, %v3679_v53  ;;  %v13385_v47 = vpack.c.bf16 %v3688_v32, %v3685_v0  ;;  %v15945_v53 = vld [vmem:[#allocation32_spill] sm:$0xff]  ;;  %v15946_v57 = vld [vmem:[#allocation31_spill] sm:$0xff]  ;;  %v15947_v12 = vld [vmem:[#allocation38_spill] sm:$0xff] }
 0x57c   : > { %v3686_v16 = vmul.f32 %v3674_v25, %v15937_v2  ;;  %v3675_v17 = vsel %vm3651_vm14, %v3639_v22, %v3663_v4  ;;  %10569 = vrot.lane.b32.xlu0 %v13364_v1, %s11176_s27  ;;  %v15948_v45 = vld [vmem:[#allocation74_spill] sm:$0xff]  ;;  %v15950_v32 = vld [vmem:[#allocation75_spill] sm:$0xff]  ;;  %v15952_v0 = vld [vmem:[#allocation76_spill] sm:$0xff]  ;;  %vm4589_vm0 = vcmask 785408  }
 0x57d   : > { %v3687_v44 = vmul.f32 %v3675_v17, %v11615_v54  ;;  %v13475_v5 = vld [vmem:[%s15365_s5 + $0x80] sm:$0xff]  ;;  %v15953_v4 = vld [vmem:[#allocation36_spill] sm:$0xff] }
 0x57e   : > { %v13379_v43 = vpack.c.bf16 %v3686_v16, %v3683_v30  ;;  %10564 = vrot.lane.b32.xlu1 %v13348_v28, %s15646_s28  ;;  %v13389_v29 = vpack.i.bf16 %v3686_v16, %v3683_v30  ;;  %v15949_v30 = vld [vmem:[#allocation33_spill] sm:$0xff] }
 0x57f   : > { %v13383_v26 = vpack.c.bf16 %v3687_v44, %v3684_v21  ;;  %v13391_v22 = vpack.i.bf16 %v3687_v44, %v3684_v21  ;;  %v13470_v21 = vld [vmem:[%s15365_s5 + $0x88] sm:$0xff]  ;;  %v15954_v25 = vld [vmem:[#allocation77_spill] sm:$0xff] }
 0x580   : > { %15941 = vst [vmem:[#allocation134_spill] sm:$0xff] %v13379_v43  ;;  %10574 = vrot.lane.b32.xlu0 %v13364_v1, %s11175_s23  ;;  %v13488_v16 = vld [vmem:[%s15365_s5 + $0xc0] sm:$0xff] }
 0x581   : > { %15942 = vst [vmem:[#allocation135_spill] sm:$0xff] %v13383_v26  ;;  %9031 = vmatprep.subr.bf16.mxu1 %v13383_v26  ;;  %v15955_v17 = vld [vmem:[#allocation49_spill] sm:$0xff]  ;;  %v15956_v44 = vld [vmem:[#allocation78_spill] sm:$0xff] }
 0x582   : > { %10584 = vrot.lane.b32.xlu1 %v13374_v19, %s11176_s27 }
 0x583   : > { %9033 = vmatpush1.bf16.xpose.msra.mxu1 %v13379_v43 }
 0x584   : > { %10579 = vrot.lane.b32.xlu0 %v13364_v1, %s15646_s28  ;;  %9034 = vmatprep.subr.bf16.mxu1 %v15943_v9 }
 0x586   : > { %10589 = vrot.lane.b32.xlu1 %v13374_v19, %s11175_s23 }
 0x588   : > { %10604 = vrot.lane.b32.xlu0 %v13377_v61, %s11176_s27 }
 0x58a   : > { %3754 = vmatmul.mubr.f32.vlgmr.msra.gmra.mrb[34].mxu1 %v15937_v2  ;;  %10594 = vrot.lane.b32.xlu1 %v13374_v19, %s15646_s28 }
 0x58b   : > { %9036 = vmatpush3.bf16.xpose.msra.mxu1 %v13381_v18  ;;  %8549 = vmatprep.mubr.msk.f32.mxu1 %vm11185_vm10, %v15769_v6 }
 0x58c   : > { %10609 = vrot.lane.b32.xlu0 %v13377_v61, %s11175_s23  ;;  %9037 = vmatprep.subr.bf16.mxu1 %v15943_v9 }
 0x58e   : > { %10599 = vrot.lane.b32.xlu1 %v13374_v19, %s15644_s26 }
 0x590   : > { %10614 = vrot.lane.b32.xlu0 %v13377_v61, %s15646_s28 }
 0x592   : > { %10639 = vrot.lane.b32.xlu1 %v13391_v22, %s11176_s27 }
 0x593   : > { %9039 = vmatpush3.bf16.xpose.msra.mxu1 %v13385_v47 }
 0x594   : > { %9257 = vmatprep.subr.bf16.mxu1 %v15944_v50  ;;  %10619 = vrot.lane.b32.xlu0 %v13389_v29, %s11176_s27 }
 0x596   : > { %10644 = vrot.lane.b32.xlu1 %v13348_v28, %s15644_s26 }
 0x598   : > { %10624 = vrot.lane.b32.xlu0 %v13377_v61, %s15644_s26 }
 0x59a   : > { %8550 = vmatmul.mubr.f32.vlgmr.msra.gmra.mrb[34].mxu1 %v15938_v15  ;;  %10659 = vrot.lane.b32.xlu1 %v13391_v22, %s11175_s23 }
 0x59b   : > { %9259 = vmatpush3.bf16.msra.mxu1 %v15945_v53  ;;  %5022 = vmatprep.mubr.f32.mxu1 %v13202_v55  ;;  %v13452_v55 = vld [vmem:[%s15365_s5 + $0x50] sm:$0xff] }
 0x59c   : > { %9261 = vmatprep.subr.bf16.mxu1 %v15946_v57  ;;  %10629 = vrot.lane.b32.xlu0 %v13389_v29, %s11175_s23 }
 0x59d   : > { %4761 = vmatprep.mubr.f32.mxu0 %v13452_v55 }
 0x59e   : > { %10664 = vrot.lane.b32.xlu1 %v13377_v61, %s15642_s29  ;;  %4762 = vmatmul.mubr.f32.gmra.mrb[26].mxu0 %v13457_v23 }
 0x59f   : > { %9263 = vmatpush3.bf16.msra.mxu1 %v15947_v12  ;;  %4767 = vmatprep.mubr.f32.mxu0 %v13470_v21 }
 0x5a0   : > { %9265 = vmatprep.subr.bf16.mxu1 %v15948_v45  ;;  %10634 = vrot.lane.b32.xlu0 %v13389_v29, %s15646_s28 }
 0x5a2   : > { %10674 = vrot.lane.b32.xlu1 %v13391_v22, %s15646_s28  ;;  %4768 = vmatmul.mubr.f32.gmra.mrb[28].mxu0 %v13475_v5  ;;  %s11192_s28 = smov 12  }
 0x5a3   : > { %9267 = vmatpush3.bf16.msra.mxu1 %v15949_v30  ;;  %4773 = vmatprep.mubr.f32.mxu0 %v13488_v16 }
 0x5a4   : > { %9269 = vmatprep.subr.bf16.mxu1 %v15950_v32  ;;  %10649 = vrot.lane.b32.xlu0 %v13389_v29, %s15644_s26 }
 0x5a6   : > { %10679 = vrot.lane.b32.xlu1 %v13374_v19, %s15642_s29  ;;  %4774 = vmatmul.mubr.f32.gmra.mrb[30].mxu0 %v13500_v37 }
 0x5a7   : > { %9271 = vmatpush3.bf16.msra.mxu1 %v15951_v36  ;;  %4844 = vmatprep.mubr.f32.mxu0 %v4242_v33 }
 0x5a8   : > { %9273 = vmatprep.subr.bf16.mxu1 %v15952_v0  ;;  %10654 = vrot.lane.b32.xlu0 %v13364_v1, %s15644_s26 }
 0x5aa   : > { %10684 = vrot.lane.b32.xlu1 %v13391_v22, %s15644_s26  ;;  %s16119_s26 = smov 127  }
 0x5ab   : > { %9275 = vmatpush3.bf16.msra.mxu1 %v15953_v4 }
 0x5ac   : > { %9277 = vmatprep.subr.bf16.mxu1 %v15954_v25  ;;  %10669 = vrot.lane.b32.xlu0 %v13348_v28, %s15642_s29 }
 0x5ae   : > { %10689 = vrot.lane.b32.xlu1 %v13364_v1, %s15642_s29 }
 0x5af   : > { %9279 = vmatpush3.bf16.msra.mxu1 %v15955_v17 }
 0x5b0   : > { %9281 = vmatprep.subr.bf16.mxu1 %v15956_v44  ;;  %10694 = vrot.lane.b32.xlu0 %v13389_v29, %s15642_s29 }
 0x5b2   : > { %10699 = vrot.lane.b32.xlu1 %v13377_v61, %s15808_s15 }
 0x5b3   : > { %9283 = vmatpush3.bf16.msra.mxu1 %v15957_v7 }
 0x5b4   : > { %9285 = vmatprep.subr.bf16.mxu1 %v15958_v14  ;;  %10704 = vrot.lane.b32.xlu0 %v13348_v28, %s15808_s15 }
 0x5b6   : > { %10709 = vrot.lane.b32.xlu1 %v13374_v19, %s15808_s15 }
 0x5b7   : > { %9287 = vmatpush3.bf16.msra.mxu1 %v15959_v39 }
 0x5b8   : > { %9289 = vmatprep.subr.bf16.mxu1 %v15960_v3  ;;  %10719 = vrot.lane.b32.xlu0 %v13389_v29, %s15808_s15 }
 0x5ba   : > { %5023 = vmatmul.mubr.f32.vlgmr.msra.gmra.mrb[36].mxu1 %v13240_v8  ;;  %10714 = vrot.lane.b32.xlu1 %v13364_v1, %s15808_s15  ;;  %v15963_v8 = vld [vmem:[#allocation71_spill] sm:$0xff] }
 0x5bb   : > { %9291 = vmatpush3.bf16.msra.mxu1 %v15961_v24  ;;  %5027 = vmatprep.mubr.f32.mxu1 %v13246_v40  ;;  %v15966_v40 = vld [vmem:[#allocation86_spill] sm:$0xff] }
 0x5bc   : > { %9293 = vmatprep.subr.bf16.mxu1 %v15962_v52  ;;  %10729 = vrot.lane.b32.xlu0 %v13391_v22, %s15642_s29  ;;  %v15965_v52 = vld [vmem:[#allocation89_spill] sm:$0xff]  ;;  %s11191_s29 = smov 16  }
 0x5be   : > { %5028 = vmatmul.mubr.f32.gmra.mrb[38].mxu1 %v13256_v34  ;;  %10724 = vrot.lane.b32.xlu1 %v13377_v61, %s15722_s16  ;;  %v15967_v34 = vld [vmem:[#allocation106_spill] sm:$0xff] }
 0x5bf   : > { %9295 = vmatpush3.bf16.msra.mxu1 %v15963_v8  ;;  %5032 = vmatprep.mubr.f32.mxu1 %v13262_v42  ;;  %v15971_v42 = vld [vmem:[#allocation120_spill] sm:$0xff]  ;;  %v15978_v8 = vld [vmem:[#allocation123_spill] sm:$0xff] }
 0x5c0   : > { %9297 = vmatprep.subr.bf16.mxu1 %v15964_v51  ;;  %10734 = vrot.lane.b32.xlu0 %v13348_v28, %s15722_s16 }
 0x5c2   : > { %5033 = vmatmul.mubr.f32.gmra.mrb[40].mxu1 %v13272_v56  ;;  %10739 = vrot.lane.b32.xlu1 %v13374_v19, %s15722_s16  ;;  %v15969_v56 = vld [vmem:[#allocation117_spill] sm:$0xff] }
 0x5c3   : > { %9299 = vmatpush3.bf16.msra.mxu1 %v15965_v52  ;;  %5037 = vmatprep.mubr.f32.mxu1 %v13278_v49  ;;  %v15968_v49 = vld [vmem:[#allocation113_spill] sm:$0xff] }
 0x5c4   : > { %9301 = vmatprep.subr.bf16.mxu1 %v15966_v40  ;;  %10749 = vrot.lane.b32.xlu0 %v13391_v22, %s15808_s15 }
 0x5c6   : > { %5038 = vmatmul.mubr.f32.gmra.mrb[42].mxu1 %v13286_v63  ;;  %10744 = vrot.lane.b32.xlu1 %v13364_v1, %s15722_s16  ;;  %v7926_v63 = vld [vmem:[%s15368_s8 + $0x60] sm:$0xff] }
 0x5c7   : > { %9303 = vmatpush3.bf16.msra.mxu1 %v15967_v34  ;;  %5107 = vmatprep.mubr.f32.mxu1 %v13292_v48  ;;  %v15970_v48 = vld [vmem:[#allocation114_spill] sm:$0xff] }
 0x5c8   : > { %9305 = vmatprep.subr.bf16.mxu1 %v12947_v60  ;;  %10754 = vrot.lane.b32.xlu0 %v13389_v29, %s15722_s16 }
 0x5ca   : > { %10759 = vrot.lane.b32.xlu1 %v13377_v61, %s15640_s17  ;;  %v7929_v61 = vld [vmem:[%s15368_s8 + $0x78] sm:$0xff] }
 0x5cb   : > { %9307 = vmatpush3.bf16.msra.mxu1 %v12965_v35 }
 0x5cc   : > { %9309 = vmatprep.subr.bf16.mxu1 %v12977_v31  ;;  %10764 = vrot.lane.b32.xlu0 %v13391_v22, %s15722_s16 }
 0x5ce   : > { %10774 = vrot.lane.b32.xlu1 %v13374_v19, %s15640_s17  ;;  %v15972_v19 = vld [vmem:[#allocation121_spill] sm:$0xff] }
 0x5cf   : > { %9311 = vmatpush3.bf16.msra.mxu1 %v15968_v49 }
 0x5d0   : > { %9313 = vmatprep.subr.bf16.mxu1 %v15969_v56  ;;  %10769 = vrot.lane.b32.xlu0 %v13348_v28, %s15640_s17  ;;  %v7928_v28 = vld [vmem:[%s15368_s8 + $0x70] sm:$0xff] }
 0x5d2   : > { %10779 = vrot.lane.b32.xlu1 %v13364_v1, %s15640_s17  ;;  %v7927_v1 = vld [vmem:[%s15368_s8 + $0x68] sm:$0xff] }
 0x5d3   : > { %9315 = vmatpush3.bf16.msra.mxu1 %v15970_v48 }
 0x5d4   : > { %9317 = vmatprep.subr.bf16.mxu1 %v15971_v42  ;;  %10784 = vrot.lane.b32.xlu0 %v13391_v22, %s15640_s17 }
 0x5d6   : > { %5317 = vperm.xlu1 %10072, %v7926_v63  }
 0x5d7   : > { %9319 = vmatpush3.bf16.msra.mxu1 %v15972_v19 }
 0x5d8   : > { %10789 = vrot.lane.b32.xlu0 %v13389_v29, %s15640_s17  ;;  %s11195_s17 = smov 28  }
 0x5da   : > { %5108 = vmatmul.mubr.f32.vlgmr.msra.gmra.mrb[44].mxu1 %v13324_v62  ;;  %5327 = vperm.xlu1 %10072, %v7928_v28  }
 0x5db   : > { %5112 = vmatprep.mubr.f32.mxu1 %v13452_v55 }
 0x5dc   : > { %5322 = vperm.xlu0 %10071, %v7927_v1  }
 0x5de   : > { %5113 = vmatmul.mubr.f32.gmra.mrb[46].mxu1 %v13457_v23  ;;  %6072 = vrot.lane.b32.xlu1 %v13218_v38, %s11186_s24 }
 0x5df   : > { %5117 = vmatprep.mubr.f32.mxu1 %v13470_v21 }
 0x5e0   : > { %5332 = vperm.xlu0 %10071, %v7929_v61  }
 0x5e2   : > { %5118 = vmatmul.mubr.f32.gmra.mrb[48].mxu1 %v13475_v5 }
 0x5e3   : > { %5122 = vmatprep.mubr.f32.mxu1 %v13488_v16 }
 0x5e6   : > { %5123 = vmatmul.mubr.f32.gmra.mrb[50].mxu1 %v13500_v37 }
 0x5e7   : > { %5192 = vmatprep.mubr.f32.mxu1 %v4242_v33 }
 0x5e8   : > { %v13592_v62 = vpop.permute.xlu1 %10554 }
 0x5e9   : > { %v15595_v16 = vunpack.i.h.bf16 %v13592_v62  ;;  %v15597_v37 = vunpack.i.l.bf16 %v13592_v62 }
 0x5ec   : > { %v13594_v29 = vpop.permute.xlu1 %10559 }
 0x5ee   : > { %v13596_v22 = vpop.permute.xlu0 %10569 }
 0x5f0   : > { %v13598_v55 = vpop.permute.xlu1 %10564 }
 0x5f2   : > { %v13600_v23 = vpop.permute.xlu0 %10574 }
 0x5f4   : > { %v10585_v38 = vpop.permute.xlu1 %10584 }
 0x5f5   : > { %v10587_v63 = vunpack.i.h.bf16 %v10585_v38  ;;  %v10586_v5 = vunpack.i.l.bf16 %v10585_v38 }
 0x5f6   : > { %v13602_v21 = vpop.permute.xlu0 %10579 }
 0x5f7   : > { %v3862_v19 = vsel %vm454_vm3, %v15595_v16, %v10587_v63  ;;  %v3861_v38 = vsel %vm454_vm3, %v15597_v37, %v10586_v5 }
 0x5f8   : > { %v10590_v28 = vpop.permute.xlu1 %10589  ;;  %v13632_v31 = vpack.c.bf16 %v3862_v19, %v3861_v38 }
 0x5fa   : > { %v13606_v1 = vpop.permute.xlu0 %10604  ;;  %15974 = vst [vmem:[#allocation32_spill] sm:$0xff] %v13632_v31 }
 0x5fb   : > { %v15601_v33 = vunpack.i.h.bf16 %v13606_v1  ;;  %v15599_v61 = vunpack.i.l.bf16 %v13606_v1 }
 0x5fc   : > { %v13618_v42 = vpop.permute.xlu1 %10594 }
 0x5fd   : > { %v3857_v48 = vsel %vm454_vm3, %v10586_v5, %v15599_v61  ;;  %v3858_v56 = vsel %vm454_vm3, %v10587_v63, %v15601_v33  ;;  %v10567_v5 = vunpack.i.h.bf16 %v13598_v55  ;;  %v10566_v61 = vunpack.i.l.bf16 %v13598_v55 }
 0x5fe   : > { %v13628_v49 = vpop.permute.xlu0 %10609  ;;  %v13630_v16 = vpack.c.bf16 %v3858_v56, %v3857_v48  ;;  %v10592_v48 = vunpack.i.h.bf16 %v10590_v28  ;;  %v15606_v63 = vunpack.i.h.bf16 %v13596_v22  ;;  %v15609_v56 = vunpack.i.l.bf16 %v13596_v22 }
 0x5ff   : > { %v15976_v24 = vunpack.i.l.bf16 %v13628_v49  ;;  %v15977_v40 = vunpack.i.h.bf16 %v13628_v49 }
 0x600   : > { %15973 = vst [vmem:[#allocation29_spill] sm:$0xff] %v13630_v16  ;;  %9185 = vmatprep.subr.bf16.mxu0 %v13630_v16  ;;  %v13636_v37 = vpop.permute.xlu1 %10599 }
 0x601   : > { %9187 = vmatpush1.bf16.msra.mxu0 %v13632_v31  ;;  %v10591_v31 = vunpack.i.l.bf16 %v10590_v28 }
 0x602   : > { %v10615_v35 = vpop.permute.xlu0 %10614 }
 0x603   : > { %v10617_v60 = vunpack.i.h.bf16 %v10615_v35  ;;  %v10616_v34 = vunpack.i.l.bf16 %v10615_v35  ;;  %v3905_v28 = vsel %vm467_vm2, %v10591_v31, %v15976_v24 }
 0x604   : > { %v13642_v19 = vpop.permute.xlu1 %10639 }
 0x605   : > { %v3949_v38 = vsel %vm489_vm4, %v10616_v34, %v10566_v61  ;;  %v3950_v33 = vsel %vm489_vm4, %v10617_v60, %v10567_v5  ;;  %v15979_v24 = vunpack.i.l.bf16 %v13642_v19 }
 0x606   : > { %v10620_v16 = vpop.permute.xlu0 %10619  ;;  %v13650_v35 = vpack.c.bf16 %v3950_v33, %v3949_v38  ;;  %v3906_v33 = vsel %vm467_vm2, %v10592_v48, %v15977_v40  ;;  %v15980_v40 = vunpack.i.h.bf16 %v13642_v19 }
 0x607   : > { %v10622_v52 = vunpack.i.h.bf16 %v10620_v16  ;;  %v10621_v51 = vunpack.i.l.bf16 %v10620_v16 }
 0x608   : > { %15975 = vst [vmem:[#allocation31_spill] sm:$0xff] %v13650_v35  ;;  %9321 = vmatprep.subr.bf16.mxu1 %v13650_v35  ;;  %v13673_v55 = vpop.permute.xlu1 %10644 }
 0x609   : > { %v3864_v38 = vsel %vm454_vm3, %v15606_v63, %v10622_v52  ;;  %v3863_v16 = vsel %vm454_vm3, %v15609_v56, %v10621_v51  ;;  %9323 = vmatpush3.bf16.msra.mxu1 %v15978_v8  ;;  %v3859_v35 = vsel %vm454_vm3, %v10621_v51, %v15979_v24  ;;  %v3860_v10 = vsel %vm454_vm3, %v10622_v52, %v15980_v40 }
 0x60a   : > { %v15611_v63 = vunpack.i.l.bf16 %v13594_v29  ;;  %v13684_v59 = vpop.permute.xlu0 %10624  ;;  %v13686_v58 = vpack.c.bf16 %v3860_v10, %v3859_v35  ;;  %v13688_v56 = vpack.c.bf16 %v3864_v38, %v3863_v16  ;;  %v15983_v8 = vunpack.i.h.bf16 %v13594_v29 }
 0x60b   : > { %v10597_v52 = vunpack.i.h.bf16 %v13618_v42  ;;  %v10596_v24 = vunpack.i.l.bf16 %v13618_v42  ;;  %v13701_v10 = vpack.c.bf16 %v3906_v33, %v3905_v28  ;;  %v15986_v16 = vunpack.i.h.bf16 %v13600_v23 }
 0x60c   : > { %15981 = vst [vmem:[#allocation38_spill] sm:$0xff] %v13686_v58  ;;  %15982 = vst [vmem:[#allocation74_spill] sm:$0xff] %v13688_v56  ;;  %v3910_v9 = vsel %vm467_vm2, %v15983_v8, %v10592_v48  ;;  %v3909_v51 = vsel %vm467_vm2, %v15611_v63, %v10591_v31  ;;  %9189 = vmatprep.subr.bf16.mxu0 %v13686_v58  ;;  %v13704_v35 = vpop.permute.xlu1 %10659 }
 0x60d   : > { %15984 = vst [vmem:[#allocation33_spill] sm:$0xff] %v13701_v10  ;;  %9191 = vmatpush1.bf16.msra.mxu0 %v13688_v56  ;;  %v13711_v63 = vpack.c.bf16 %v3910_v9, %v3909_v51  ;;  %v3958_v28 = vsel %vm489_vm4, %v10567_v5, %v10597_v52  ;;  %v3957_v33 = vsel %vm489_vm4, %v10566_v61, %v10596_v24  ;;  %v15987_v9 = vunpack.i.l.bf16 %v13600_v23 }
 0x60e   : > { %v10630_v8 = vpop.permute.xlu0 %10629  ;;  %9193 = vmatprep.subr.bf16.mxu0 %v13701_v10  ;;  %v3953_v38 = vsel %vm489_vm4, %v10596_v24, %v10616_v34  ;;  %v3954_v48 = vsel %vm489_vm4, %v10597_v52, %v10617_v60  ;;  %v15988_v61 = vunpack.i.l.bf16 %v13704_v35  ;;  %v15989_v60 = vunpack.i.h.bf16 %v13704_v35 }
 0x60f   : > { %v10632_v42 = vunpack.i.h.bf16 %v10630_v8  ;;  %v10631_v40 = vunpack.i.l.bf16 %v10630_v8  ;;  %15985 = vst [vmem:[#allocation75_spill] sm:$0xff] %v13711_v63  ;;  %v10647_v24 = vunpack.i.h.bf16 %v13673_v55  ;;  %v10646_v8 = vunpack.i.l.bf16 %v13673_v55 }
 0x610   : > { %v13730_v5 = vpop.permute.xlu1 %10664  ;;  %v10627_v10 = vunpack.i.h.bf16 %v13684_v59  ;;  %v10626_v56 = vunpack.i.l.bf16 %v13684_v59  ;;  %v10602_v55 = vunpack.i.h.bf16 %v13636_v37 }
 0x611   : > { %v3912_v31 = vsel %vm467_vm2, %v15986_v16, %v10632_v42  ;;  %v3911_v51 = vsel %vm467_vm2, %v15987_v9, %v10631_v40  ;;  %9195 = vmatpush1.bf16.msra.mxu0 %v13711_v63  ;;  %v3907_v34 = vsel %vm467_vm2, %v10631_v40, %v15988_v61  ;;  %v3908_v52 = vsel %vm467_vm2, %v10632_v42, %v15989_v60 }
 0x612   : > { %v10635_v16 = vpop.permute.xlu0 %10634  ;;  %v13742_v9 = vpack.c.bf16 %v3908_v52, %v3907_v34  ;;  %v13744_v63 = vpack.c.bf16 %v3912_v31, %v3911_v51  ;;  %v13749_v61 = vpack.c.bf16 %v3954_v48, %v3953_v38  ;;  %v10582_v42 = vunpack.i.h.bf16 %v13602_v21 }
 0x613   : > { %v10637_v58 = vunpack.i.h.bf16 %v10635_v16  ;;  %v10636_v40 = vunpack.i.l.bf16 %v10635_v16  ;;  %v10581_v60 = vunpack.i.l.bf16 %v13602_v21  ;;  %v10601_v51 = vunpack.i.l.bf16 %v13636_v37 }
 0x614   : > { %15990 = vst [vmem:[#allocation43_spill] sm:$0xff] %v13742_v9  ;;  %15991 = vst [vmem:[#allocation76_spill] sm:$0xff] %v13744_v63  ;;  %9197 = vmatprep.subr.bf16.mxu0 %v13742_v9  ;;  %v10675_v31 = vpop.permute.xlu1 %10674  ;;  %v13757_v16 = vpack.c.bf16 %v3958_v28, %v3957_v33  ;;  %v3997_v48 = vsel %vm502_vm1, %v10626_v56, %v10646_v8 }
 0x615   : > { %15992 = vst [vmem:[#allocation36_spill] sm:$0xff] %v13749_v61  ;;  %9199 = vmatpush1.bf16.msra.mxu0 %v13744_v63  ;;  %v10677_v52 = vunpack.i.h.bf16 %v10675_v31  ;;  %v10676_v59 = vunpack.i.l.bf16 %v10675_v31  ;;  %v3960_v38 = vsel %vm489_vm4, %v10582_v42, %v10637_v58  ;;  %v3959_v21 = vsel %vm489_vm4, %v10581_v60, %v10636_v40 }
 0x616   : > { %v10650_v34 = vpop.permute.xlu0 %10649  ;;  %9201 = vmatprep.subr.bf16.mxu0 %v13749_v61  ;;  %v3998_v63 = vsel %vm502_vm1, %v10627_v10, %v10647_v24 }
 0x617   : > { %v3955_v37 = vsel %vm489_vm4, %v10636_v40, %v10676_v59  ;;  %v3956_v31 = vsel %vm489_vm4, %v10637_v58, %v10677_v52  ;;  %v3951_v28 = vsel %vm489_vm4, %v10676_v59, %v10581_v60  ;;  %v3952_v33 = vsel %vm489_vm4, %v10677_v52, %v10582_v42 }
 0x618   : > { %v13776_v61 = vpop.permute.xlu1 %10679  ;;  %v13778_v9 = vpack.c.bf16 %v3956_v31, %v3955_v37  ;;  %v13780_v15 = vpack.c.bf16 %v3952_v33, %v3951_v28  ;;  %v4001_v40 = vsel %vm502_vm1, %v10601_v51, %v10626_v56  ;;  %v4002_v58 = vsel %vm502_vm1, %v10602_v55, %v10627_v10 }
 0x619   : > { %9203 = vmatpush1.bf16.msra.mxu0 %v13757_v16  ;;  %v13788_v42 = vpack.c.bf16 %v3960_v38, %v3959_v21  ;;  %v13790_v52 = vpack.c.bf16 %v3998_v63, %v3997_v48  ;;  %v4006_v59 = vsel %vm502_vm1, %v10647_v24, %v10602_v55  ;;  %v4005_v56 = vsel %vm502_vm1, %v10646_v8, %v10601_v51 }
 0x61a   : > { %15993 = vst [vmem:[#allocation77_spill] sm:$0xff] %v13778_v9  ;;  %v10655_v2 = vpop.permute.xlu0 %10654  ;;  %9205 = vmatprep.subr.bf16.mxu0 %v13778_v9  ;;  %9325 = vmatprep.subr.bf16.mxu1 %v13780_v15  ;;  %v13797_v10 = vpack.c.bf16 %v4002_v58, %v4001_v40  ;;  %v10652_v37 = vunpack.i.h.bf16 %v10650_v34  ;;  %v13806_v55 = vpack.c.bf16 %v4006_v59, %v4005_v56  ;;  %v15998_v59 = vunpack.i.h.bf16 %v13592_v62 }
 0x61b   : > { %v10657_v3 = vunpack.i.h.bf16 %v10655_v2  ;;  %v10656_v60 = vunpack.i.l.bf16 %v10655_v2  ;;  %15994 = vst [vmem:[#allocation49_spill] sm:$0xff] %v13788_v42  ;;  %9327 = vmatpush3.bf16.msra.mxu1 %v13101_v41  ;;  %v10651_v2 = vunpack.i.l.bf16 %v10650_v34  ;;  %v15999_v56 = vunpack.i.h.bf16 %v13606_v1 }
 0x61c   : > { %15995 = vst [vmem:[#allocation78_spill] sm:$0xff] %v13797_v10  ;;  %v10685_v31 = vpop.permute.xlu1 %10684  ;;  %9329 = vmatprep.subr.bf16.mxu1 %v13790_v52  ;;  %15996 = vst [vmem:[#allocation47_spill] sm:$0xff] %v13806_v55 }
 0x61d   : > { %9207 = vmatpush1.bf16.msra.mxu0 %v13788_v42  ;;  %v10687_v63 = vunpack.i.h.bf16 %v10685_v31  ;;  %v10686_v21 = vunpack.i.l.bf16 %v10685_v31  ;;  %v4007_v24 = vsel %vm502_vm1, %v10656_v60, %v10651_v2  ;;  %v4008_v8 = vsel %vm502_vm1, %v10657_v3, %v10652_v37 }
 0x61e   : > { %v10670_v38 = vpop.permute.xlu0 %10669  ;;  %9209 = vmatprep.subr.bf16.mxu0 %v13797_v10 }
 0x61f   : > { %9331 = vmatpush3.bf16.msra.mxu1 %v13133_v13  ;;  %v4003_v51 = vsel %vm502_vm1, %v10651_v2, %v10686_v21  ;;  %v4004_v34 = vsel %vm502_vm1, %v10652_v37, %v10687_v63  ;;  %v3999_v48 = vsel %vm502_vm1, %v10686_v21, %v10656_v60  ;;  %v4000_v28 = vsel %vm502_vm1, %v10687_v63, %v10657_v3 }
 0x620   : > { %v13818_v33 = vpop.permute.xlu1 %10689  ;;  %v13820_v40 = vpack.c.bf16 %v4004_v34, %v4003_v51  ;;  %v13822_v58 = vpack.c.bf16 %v4000_v28, %v3999_v48  ;;  %v3854_v37 = vsel %vm454_vm3, %v15999_v56, %v15998_v59  ;;  %v16000_v60 = vunpack.i.l.bf16 %v13592_v62 }
 0x621   : > { %9211 = vmatpush1.bf16.msra.mxu0 %v13806_v55  ;;  %v16001_v2 = vunpack.i.l.bf16 %v13606_v1  ;;  %v13838_v63 = vpack.c.bf16 %v4008_v8, %v4007_v24  ;;  %v10672_v21 = vunpack.i.h.bf16 %v10670_v38  ;;  %v10671_v51 = vunpack.i.l.bf16 %v10670_v38 }
 0x622   : > { %15997 = vst [vmem:[#allocation79_spill] sm:$0xff] %v13820_v40  ;;  %v13836_v31 = vpop.permute.xlu0 %10694  ;;  %9213 = vmatprep.subr.bf16.mxu0 %v13820_v40  ;;  %9333 = vmatprep.subr.bf16.mxu1 %v13822_v58  ;;  %v16003_v34 = vunpack.i.h.bf16 %v13596_v22  ;;  %v16004_v62 = vunpack.i.h.bf16 %v13642_v19  ;;  %v16005_v48 = vunpack.i.l.bf16 %v13596_v22  ;;  %v16006_v24 = vunpack.i.l.bf16 %v13642_v19 }
 0x623   : > { %v3853_v3 = vsel %vm454_vm3, %v16001_v2, %v16000_v60  ;;  %16002 = vst [vmem:[#allocation54_spill] sm:$0xff] %v13838_v63  ;;  %9335 = vmatpush3.bf16.msra.mxu1 %v13161_v27  ;;  %v10667_v59 = vunpack.i.h.bf16 %v13730_v5  ;;  %v10666_v56 = vunpack.i.l.bf16 %v13730_v5  ;;  %v10682_v60 = vunpack.i.h.bf16 %v13776_v61 }
 0x624   : > { %v3856_v1 = vsel %vm454_vm3, %v16004_v62, %v16003_v34  ;;  %v3855_v8 = vsel %vm454_vm3, %v16006_v24, %v16005_v48  ;;  %v13856_v28 = vpop.permute.xlu1 %10699  ;;  %9337 = vmatprep.subr.bf16.mxu1 %v13381_v18  ;;  %v13859_v38 = vpack.c.bf16 %v3854_v37, %v3853_v3  ;;  %v10681_v22 = vunpack.i.l.bf16 %v13776_v61 }
 0x625   : > { %9215 = vmatpush1.bf16.msra.mxu0 %v13838_v63  ;;  %v10697_v2 = vunpack.i.h.bf16 %v13836_v31  ;;  %v10696_v34 = vunpack.i.l.bf16 %v13836_v31  ;;  %v10692_v62 = vunpack.i.h.bf16 %v13818_v33  ;;  %v10691_v37 = vunpack.i.l.bf16 %v13818_v33 }
 0x626   : > { %v13865_v19 = vpop.permute.xlu0 %10704  ;;  %9217 = vmatprep.subr.bf16.mxu0 %v13356_v46  ;;  %v16007_v3 = vunpack.i.h.bf16 %v13594_v29  ;;  %v16008_v5 = vunpack.i.h.bf16 %v13628_v49  ;;  %v4065_v61 = vsel %vm527_vm5, %v10671_v51, %v10681_v22  ;;  %v4066_v24 = vsel %vm527_vm5, %v10672_v21, %v10682_v60 }
 0x627   : > { %9339 = vmatpush3.bf16.msra.mxu1 %v13859_v38  ;;  %v16009_v31 = vunpack.i.l.bf16 %v13594_v29  ;;  %v16010_v46 = vunpack.i.l.bf16 %v13628_v49  ;;  %v4061_v29 = vsel %vm527_vm5, %v10681_v22, %v10666_v56  ;;  %v4062_v49 = vsel %vm527_vm5, %v10682_v60, %v10667_v59 }
 0x628   : > { %v3902_v48 = vsel %vm467_vm2, %v16008_v5, %v16007_v3  ;;  %v13890_v63 = vpop.permute.xlu1 %10709  ;;  %9341 = vmatprep.subr.bf16.mxu1 %v13385_v47  ;;  %v4057_v3 = vsel %vm527_vm5, %v10666_v56, %v10671_v51  ;;  %v4058_v5 = vsel %vm527_vm5, %v10667_v59, %v10672_v21  ;;  %v4067_v51 = vsel %vm527_vm5, %v10691_v37, %v10696_v34 }
 0x629   : > { %v3901_v33 = vsel %vm467_vm2, %v16010_v46, %v16009_v31  ;;  %9219 = vmatpush1.bf16.msra.mxu0 %v13362_v20  ;;  %v13904_v46 = vpack.c.bf16 %v3856_v1, %v3855_v8  ;;  %v13906_v31 = vpack.c.bf16 %v4066_v24, %v4065_v61  ;;  %v4068_v21 = vsel %vm527_vm5, %v10692_v62, %v10697_v2 }
 0x62a   : > { %v13901_v40 = vpop.permute.xlu0 %10719  ;;  %9221 = vmatprep.subr.bf16.mxu0 %v13383_v26  ;;  %v10712_v20 = vunpack.i.h.bf16 %v13890_v63  ;;  %v10711_v56 = vunpack.i.l.bf16 %v13890_v63  ;;  %v13915_v59 = vpack.c.bf16 %v4058_v5, %v4057_v3  ;;  %v13917_v60 = vpack.c.bf16 %v3902_v48, %v3901_v33 }
 0x62b   : > { %9343 = vmatpush3.bf16.msra.mxu1 %v13904_v46  ;;  %v16012_v1 = vunpack.i.h.bf16 %v13600_v23  ;;  %v16013_v8 = vunpack.i.h.bf16 %v13704_v35  ;;  %v16014_v61 = vunpack.i.l.bf16 %v13600_v23  ;;  %v16015_v24 = vunpack.i.l.bf16 %v13704_v35 }
 0x62c   : > { %16011 = vst [vmem:[#allocation136_spill] sm:$0xff] %v13915_v59  ;;  %v13931_v26 = vpack.c.bf16 %v4062_v49, %v4061_v29  ;;  %v10702_v3 = vunpack.i.h.bf16 %v13856_v28  ;;  %v13935_v48 = vpop.permute.xlu1 %10714  ;;  %9345 = vmatprep.subr.bf16.mxu1 %v13906_v31  ;;  %v10707_v33 = vunpack.i.h.bf16 %v13865_v19  ;;  %v10706_v5 = vunpack.i.l.bf16 %v13865_v19 }
 0x62d   : > { %v3904_v22 = vsel %vm467_vm2, %v16013_v8, %v16012_v1  ;;  %v3903_v63 = vsel %vm467_vm2, %v16015_v24, %v16014_v61  ;;  %9223 = vmatpush1.bf16.msra.mxu0 %v13379_v43  ;;  %v10701_v23 = vunpack.i.l.bf16 %v13856_v28  ;;  %v13942_v1 = vpack.c.bf16 %v4068_v21, %v4067_v51 }
 0x62e   : > { %16016 = vst [vmem:[#allocation137_spill] sm:$0xff] %v13931_v26  ;;  %v10730_v35 = vpop.permute.xlu0 %10729  ;;  %9225 = vmatprep.subr.bf16.mxu0 %v13915_v59  ;;  %v10722_v24 = vunpack.i.h.bf16 %v13901_v40  ;;  %v13948_v43 = vpack.c.bf16 %v3904_v22, %v3903_v63  ;;  %v4113_v28 = vsel %vm549_vm7, %v10706_v5, %v10711_v56  ;;  %v4114_v19 = vsel %vm549_vm7, %v10707_v33, %v10712_v20 }
 0x62f   : > { %v10732_v29 = vunpack.i.h.bf16 %v10730_v35  ;;  %v10731_v49 = vunpack.i.l.bf16 %v10730_v35  ;;  %9347 = vmatpush3.bf16.msra.mxu1 %v13917_v60  ;;  %v10721_v51 = vunpack.i.l.bf16 %v13901_v40  ;;  %v13975_v59 = vpack.c.bf16 %v4114_v19, %v4113_v28  ;;  %v4241_v28 = vld [vmem:[%s15365_s5 + $0x20] sm:$0xff] }
 0x630   : > { %v13960_v8 = vpop.permute.xlu1 %10724  ;;  %9349 = vmatprep.subr.bf16.mxu1 %v13942_v1  ;;  %v16019_v55 = vunpack.i.l.bf16 %v13935_v48  ;;  %v4110_v19 = vsel %vm549_vm7, %v10712_v20, %v10702_v3 }
 0x631   : > { %v4064_v21 = vsel %vm527_vm5, %v10697_v2, %v10732_v29  ;;  %v4063_v35 = vsel %vm527_vm5, %v10696_v34, %v10731_v49  ;;  %9227 = vmatpush1.bf16.msra.mxu0 %v13931_v26  ;;  %v4059_v22 = vsel %vm527_vm5, %v10731_v49, %v10691_v37  ;;  %v4060_v40 = vsel %vm527_vm5, %v10732_v29, %v10692_v62 }
 0x632   : > { %v13965_v63 = vpack.c.bf16 %v4064_v21, %v4063_v35  ;;  %v10735_v61 = vpop.permute.xlu0 %10734  ;;  %v4105_v2 = vsel %vm549_vm7, %v10701_v23, %v10706_v5  ;;  %v4106_v34 = vsel %vm549_vm7, %v10702_v3, %v10707_v33  ;;  %v13973_v26 = vpack.c.bf16 %v4060_v40, %v4059_v22 }
 0x633   : > { %v4115_v37 = vsel %vm549_vm7, %v16019_v55, %v10721_v51  ;;  %v16020_v49 = vunpack.i.h.bf16 %v13935_v48  ;;  %v10737_v29 = vunpack.i.h.bf16 %v10735_v61  ;;  %v10736_v21 = vunpack.i.l.bf16 %v10735_v61  ;;  %9351 = vmatpush3.bf16.msra.mxu1 %v13948_v43 }
 0x634   : > { %16017 = vst [vmem:[#allocation138_spill] sm:$0xff] %v13965_v63  ;;  %16018 = vst [vmem:[#allocation139_spill] sm:$0xff] %v13973_v26  ;;  %v10727_v5 = vunpack.i.h.bf16 %v13960_v8  ;;  %v10726_v33 = vunpack.i.l.bf16 %v13960_v8  ;;  %v4109_v55 = vsel %vm549_vm7, %v10711_v56, %v10701_v23  ;;  %9229 = vmatprep.subr.bf16.mxu0 %v13973_v26  ;;  %v10740_v35 = vpop.permute.xlu1 %10739  ;;  %v13996_v61 = vpack.c.bf16 %v4106_v34, %v4105_v2  ;;  %v4249_v8 = vld [vmem:[%s15365_s5 + $0x60] sm:$0xff]  ;;  %v4248_v2 = vld [vmem:[%s15365_s5 + $0x58] sm:$0xff] }
 0x635   : > { %v4116_v62 = vsel %vm549_vm7, %v16020_v49, %v10722_v24  ;;  %9353 = vmatprep.subr.bf16.mxu1 %v13975_v59  ;;  %9231 = vmatpush1.bf16.msra.mxu0 %v13965_v63  ;;  %v10741_v40 = vunpack.i.l.bf16 %v10740_v35  ;;  %v10742_v23 = vunpack.i.h.bf16 %v10740_v35  ;;  %v14006_v3 = vpack.c.bf16 %v4110_v19, %v4109_v55  ;;  %v4256_v19 = vld [vmem:[%s15365_s5 + $0x98] sm:$0xff] }
 0x636   : > { %16021 = vst [vmem:[#allocation140_spill] sm:$0xff] %v13996_v61  ;;  %v10750_v22 = vpop.permute.xlu0 %10749  ;;  %9233 = vmatprep.subr.bf16.mxu0 %v13996_v61  ;;  %5193 = vmatmul.mubr.f32.vlgmr.msra.gmra.mrb[52].mxu1 %v4241_v28  ;;  %v14004_v20 = vpack.c.bf16 %v4116_v62, %v4115_v37  ;;  %v4153_v34 = vsel %vm562_vm6, %v10726_v33, %v10736_v21 }
 0x637   : > { %v10752_v49 = vunpack.i.h.bf16 %v10750_v22  ;;  %v10751_v56 = vunpack.i.l.bf16 %v10750_v22  ;;  %9355 = vmatpush3.bf16.msra.mxu1 %v13975_v59  ;;  %5197 = vmatprep.mubr.f32.mxu1 %v4249_v8  ;;  %v4154_v35 = vsel %vm562_vm6, %v10727_v5, %v10737_v29  ;;  %v4161_v55 = vsel %vm562_vm6, %v10736_v21, %v10741_v40 }
 0x638   : > { %4845 = vmatmul.mubr.f32.vlgmr.msra.gmra.mrb[24].mxu0 %v4241_v28  ;;  %v10745_v62 = vpop.permute.xlu1 %10744  ;;  %9357 = vmatprep.subr.bf16.mxu1 %v14004_v20  ;;  %v16024_v21 = vunpack.i.h.bf16 %v13935_v48 }
 0x639   : > { %v4112_v22 = vsel %vm549_vm7, %v10722_v24, %v10752_v49  ;;  %v4111_v37 = vsel %vm549_vm7, %v10721_v51, %v10751_v56  ;;  %9235 = vmatpush1.bf16.msra.mxu0 %v14006_v3  ;;  %v10747_v24 = vunpack.i.h.bf16 %v10745_v62  ;;  %v10746_v26 = vunpack.i.l.bf16 %v10745_v62  ;;  %4850 = vmatprep.mubr.f32.mxu0 %v4249_v8 }
 0x63a   : > { %v14026_v61 = vpack.c.bf16 %v4112_v22, %v4111_v37  ;;  %v10755_v63 = vpop.permute.xlu0 %10754  ;;  %v16023_v51 = vunpack.i.l.bf16 %v13935_v48  ;;  %v4108_v9 = vsel %vm549_vm7, %v10752_v49, %v16024_v21  ;;  %5198 = vmatmul.mubr.f32.gmra.mrb[54].mxu1 %v4248_v2  ;;  %v4162_v22 = vsel %vm562_vm6, %v10737_v29, %v10742_v23 }
 0x63b   : > { %v10757_v10 = vunpack.i.h.bf16 %v10755_v63  ;;  %v10756_v42 = vunpack.i.l.bf16 %v10755_v63  ;;  %9359 = vmatpush3.bf16.msra.mxu1 %v14004_v20  ;;  %v14042_v62 = vpack.c.bf16 %v4162_v22, %v4161_v55  ;;  %5202 = vmatprep.mubr.f32.mxu1 %v4256_v19  ;;  %v4255_v63 = vld [vmem:[%s15365_s5 + $0x90] sm:$0xff]  ;;  %v4157_v48 = vsel %vm562_vm6, %v10741_v40, %v10726_v33 }
 0x63c   : > { %16022 = vst [vmem:[#allocation141_spill] sm:$0xff] %v14026_v61  ;;  %v4107_v28 = vsel %vm549_vm7, %v10751_v56, %v16023_v51  ;;  %v4158_v8 = vsel %vm562_vm6, %v10742_v23, %v10727_v5  ;;  %v10760_v49 = vpop.permute.xlu1 %10759  ;;  %4851 = vmatmul.mubr.f32.gmra.mrb[26].mxu0 %v4248_v2  ;;  %v14056_v55 = vpack.c.bf16 %v4154_v35, %v4153_v34  ;;  %v4263_v33 = vld [vmem:[%s15365_s5 + $0xd0] sm:$0xff]  ;;  %v4262_v2 = vld [vmem:[%s15365_s5 + $0xc8] sm:$0xff] }
 0x63d   : > { %v14039_v37 = vpack.c.bf16 %v4108_v9, %v4107_v28  ;;  %v4163_v9 = vsel %vm562_vm6, %v10746_v26, %v10756_v42  ;;  %v4164_v29 = vsel %vm562_vm6, %v10747_v24, %v10757_v10  ;;  %9361 = vmatprep.subr.bf16.mxu1 %v14042_v62  ;;  %v14065_v51 = vpack.c.bf16 %v4158_v8, %v4157_v48 }
 0x63e   : > { %v10765_v56 = vpop.permute.xlu0 %10764  ;;  %16025 = vst [vmem:[#allocation142_spill] sm:$0xff] %v14056_v55  ;;  %5203 = vmatmul.mubr.f32.gmra.mrb[56].mxu1 %v4255_v63  ;;  %v14063_v23 = vpack.c.bf16 %v4164_v29, %v4163_v9  ;;  %v10762_v28 = vunpack.i.h.bf16 %v10760_v49  ;;  %v10761_v48 = vunpack.i.l.bf16 %v10760_v49  ;;  %4856 = vmatprep.mubr.f32.mxu0 %v4256_v19 }
 0x63f   : > { %9237 = vmatprep.subr.bf16.mxu0 %v14039_v37  ;;  %v10767_v5 = vunpack.i.h.bf16 %v10765_v56  ;;  %v10766_v40 = vunpack.i.l.bf16 %v10765_v56  ;;  %9363 = vmatpush3.bf16.msra.mxu1 %v14042_v62 }
 0x640   : > { %9239 = vmatpush1.bf16.msra.mxu0 %v14026_v61  ;;  %v10775_v21 = vpop.permute.xlu1 %10774  ;;  %9365 = vmatprep.subr.bf16.mxu1 %v14063_v23 }
 0x641   : > { %9241 = vmatprep.subr.bf16.mxu0 %v14056_v55  ;;  %v4159_v34 = vsel %vm562_vm6, %v10756_v42, %v10766_v40  ;;  %v4160_v35 = vsel %vm562_vm6, %v10757_v10, %v10767_v5  ;;  %5207 = vmatprep.mubr.f32.mxu1 %v4263_v33  ;;  %v4155_v22 = vsel %vm562_vm6, %v10766_v40, %v10746_v26  ;;  %v10777_v9 = vunpack.i.h.bf16 %v10775_v21  ;;  %v4243_v26 = vld [vmem:[%s15365_s5 + $0x30] sm:$0xff] }
 0x642   : > { %v10770_v8 = vpop.permute.xlu0 %10769  ;;  %v10776_v29 = vunpack.i.l.bf16 %v10775_v21  ;;  %v4156_v56 = vsel %vm562_vm6, %v10767_v5, %v10747_v24  ;;  %v14081_v42 = vpack.c.bf16 %v4160_v35, %v4159_v34  ;;  %5208 = vmatmul.mubr.f32.gmra.mrb[58].mxu1 %v4262_v2  ;;  %4857 = vmatmul.mubr.f32.gmra.mrb[28].mxu0 %v4255_v63 }
 0x643   : > { %v10772_v10 = vunpack.i.h.bf16 %v10770_v8  ;;  %v10771_v55 = vunpack.i.l.bf16 %v10770_v8  ;;  %v14084_v61 = vpack.c.bf16 %v4156_v56, %v4155_v22  ;;  %v4206_v24 = vsel %vm15639_vm8, %v10777_v9, %v10762_v28  ;;  %9367 = vmatpush3.bf16.msra.mxu1 %v14063_v23  ;;  %4862 = vmatprep.mubr.f32.mxu0 %v4263_v33 }
 0x644   : > { %9243 = vmatpush1.bf16.msra.mxu0 %v14065_v51  ;;  %v4205_v49 = vsel %vm15639_vm8, %v10776_v29, %v10761_v48  ;;  %v10780_v19 = vpop.permute.xlu1 %10779  ;;  %8576 = vmatprep.mubr.msk.f32.mxu1 %vm4589_vm0, %v4243_v26 }
 0x645   : > { %16026 = vst [vmem:[#allocation143_spill] sm:$0xff] %v14084_v61  ;;  %9245 = vmatprep.subr.bf16.mxu0 %v14084_v61  ;;  %v4201_v5 = vsel %vm15639_vm8, %v10761_v48, %v10771_v55  ;;  %v4202_v40 = vsel %vm15639_vm8, %v10762_v28, %v10772_v10  ;;  %v4209_v34 = vsel %vm15639_vm8, %v10771_v55, %v10776_v29  ;;  %v10782_v21 = vunpack.i.h.bf16 %v10780_v19 }
 0x646   : > { %v10785_v35 = vpop.permute.xlu0 %10784  ;;  %v10781_v22 = vunpack.i.l.bf16 %v10780_v19  ;;  %v14101_v8 = vpack.c.bf16 %v4202_v40, %v4201_v5  ;;  %v4210_v63 = vsel %vm15639_vm8, %v10772_v10, %v10777_v9  ;;  %v14106_v56 = vpack.c.bf16 %v4206_v24, %v4205_v49  ;;  %4863 = vmatmul.mubr.f32.gmra.mrb[30].mxu0 %v4262_v2 }
 0x647   : > { %v10787_v48 = vunpack.i.h.bf16 %v10785_v35  ;;  %v10786_v28 = vunpack.i.l.bf16 %v10785_v35  ;;  %v14109_v61 = vpack.c.bf16 %v4210_v63, %v4209_v34  ;;  %4933 = vmatprep.mubr.f32.mxu0 %v15769_v6  ;;  %v4250_v35 = vld [vmem:[%s15365_s5 + $0x68] sm:$0xff] }
 0x648   : > { %9247 = vmatpush1.bf16.msra.mxu0 %v14081_v42 }
 0x649   : > { %9249 = vmatprep.subr.bf16.mxu0 %v14101_v8  ;;  %9369 = vmatprep.subr.bf16.mxu1 %v14109_v61  ;;  %v4203_v55 = vsel %vm15639_vm8, %v10786_v28, %v10781_v22  ;;  %v4204_v33 = vsel %vm15639_vm8, %v10787_v48, %v10782_v21 }
 0x64a   : > { %9371 = vmatpush3.bf16.msra.mxu1 %v14109_v61  ;;  %v10790_v9 = vpop.permute.xlu0 %10789  ;;  %v14119_v29 = vpack.c.bf16 %v4204_v33, %v4203_v55 }
 0x64b   : > { %v10792_v10 = vunpack.i.h.bf16 %v10790_v9  ;;  %v10791_v49 = vunpack.i.l.bf16 %v10790_v9 }
 0x64c   : > { %9251 = vmatpush1.bf16.msra.mxu0 %v14106_v56 }
 0x64d   : > { %9253 = vmatprep.subr.bf16.mxu0 %v14119_v29  ;;  %v4207_v2 = vsel %vm15639_vm8, %v10791_v49, %v10786_v28  ;;  %v4208_v24 = vsel %vm15639_vm8, %v10792_v10, %v10787_v48  ;;  %v4211_v19 = vsel %vm15639_vm8, %v10781_v22, %v10791_v49  ;;  %v4212_v5 = vsel %vm15639_vm8, %v10782_v21, %v10792_v10  ;;  %v4257_v21 = vld [vmem:[%s15365_s5 + $0xa0] sm:$0xff] }
 0x64e   : > { %v14131_v40 = vpack.c.bf16 %v4208_v24, %v4207_v2  ;;  %v14133_v34 = vpack.c.bf16 %v4212_v5, %v4211_v19 }
 0x650   : > { %9255 = vmatpush1.bf16.msra.mxu0 %v14131_v40  ;;  %9373 = vmatprep.subr.bf16.mxu1 %v14133_v34 }
 0x651   : > { %9375 = vmatpush3.bf16.msra.mxu1 %v14133_v34  ;;  %9703 = vmatprep.subr.bf16.mxu0 %v15944_v50  ;;  %v4264_v50 = vld [vmem:[%s15365_s5 + $0xd8] sm:$0xff] }
 0x653   : > { %7918 = vmatmul.mubr.msk.f32.vlgmr.msra.gmra.mrb[24].mxu0 %vm4589_vm0, %v4243_v26 }
 0x654   : > { %8577 = vmatmul.mubr.msk.f32.vlgmr.msra.gmra.mrb[12].mxu1 %vm4589_vm0, %v4250_v35  ;;  %9705 = vmatpush3.bf16.msra.mxu0 %v15945_v53 }
 0x655   : > { %9707 = vmatprep.subr.bf16.mxu0 %v15946_v57  ;;  %4939 = vmatprep.mubr.f32.mxu0 %v15769_v6 }
 0x656   : > { %8579 = vmatprep.mubr.msk.f32.mxu1 %vm4589_vm0, %v4257_v21 }
 0x657   : > { %7919 = vmatmul.mubr.msk.f32.gmra.mrb[26].mxu0 %vm4589_vm0, %v4250_v35 }
 0x658   : > { %8580 = vmatmul.mubr.msk.f32.gmra.mrb[14].mxu1 %vm4589_vm0, %v4264_v50  ;;  %9709 = vmatpush3.bf16.msra.mxu0 %v15947_v12  ;;  %v16027_v12 = vld [vmem:[#allocation97_spill] sm:$0xff] }
 0x659   : > { %9711 = vmatprep.subr.bf16.mxu0 %v15948_v45  ;;  %4945 = vmatprep.mubr.f32.mxu0 %v15769_v6 }
 0x65a   : > { %5459 = vmatprep.mubr.f32.mxu1 %v11615_v54 }
 0x65b   : > { %7920 = vmatmul.mubr.msk.f32.gmra.mrb[28].mxu0 %vm4589_vm0, %v4257_v21 }
 0x65c   : > { %9713 = vmatpush3.bf16.msra.mxu0 %v15949_v30  ;;  %4951 = vmatprep.mubr.f32.mxu0 %v15769_v6 }
 0x65d   : > { %9715 = vmatprep.subr.bf16.mxu0 %v15950_v32 }
 0x65f   : > { %7921 = vmatmul.mubr.msk.f32.gmra.mrb[30].mxu0 %vm4589_vm0, %v4264_v50 }
 0x660   : > { %9717 = vmatpush3.bf16.msra.mxu0 %v15951_v36 }
 0x661   : > { %9719 = vmatprep.subr.bf16.mxu0 %v15952_v0 }
 0x664   : > { %9721 = vmatpush3.bf16.msra.mxu0 %v15953_v4 }
 0x665   : > { %9723 = vmatprep.subr.bf16.mxu0 %v15954_v25 }
 0x668   : > { %9725 = vmatpush3.bf16.msra.mxu0 %v15955_v17 }
 0x669   : > { %9727 = vmatprep.subr.bf16.mxu0 %v15956_v44 }
 0x66c   : > { %9729 = vmatpush3.bf16.msra.mxu0 %v15957_v7 }
 0x66d   : > { %v3825_v53 = vpop.f32.mrb[34].mxu1  ;;  %9731 = vmatprep.subr.bf16.mxu0 %v15958_v14 }
 0x66e   : > { %6076 = vrot.lane.b32.xlu0 %v3825_v53, %s11187_s30  ;;  %v8551_v57 = vpop.f32.mrb[35].mxu1 }
 0x670   : > { %9733 = vmatpush3.bf16.msra.mxu0 %v15959_v39 }
 0x671   : > { %9735 = vmatprep.subr.bf16.mxu0 %v16027_v12 }
 0x68d   : > { %v8163_v45 = vpop.f32.mrb[36].mxu1 }
 0x68e   : > { %v8164_v30 = vpop.f32.mrb[37].mxu1 }
 0x68f   : > { %v8165_v32 = vadd.f32 %v8164_v30, %v8163_v45 }
 0x691   : > { %v8166_v36 = vpop.f32.mrb[38].mxu1 }
 0x692   : > { %v8167_v0 = vpop.f32.mrb[39].mxu1 }
 0x693   : > { %v8168_v4 = vadd.f32 %v8167_v0, %v8166_v36 }
 0x695   : > { %v8169_v25 = vpop.f32.mrb[40].mxu1 }
 0x696   : > { %v8170_v17 = vpop.f32.mrb[41].mxu1 }
 0x697   : > { %v8171_v7 = vadd.f32 %v8170_v17, %v8169_v25 }
 0x699   : > { %v8172_v44 = vpop.f32.mrb[42].mxu1 }
 0x69a   : > { %v8173_v26 = vpop.f32.mrb[43].mxu1 }
 0x69b   : > { %v8174_v14 = vadd.f32 %v8173_v26, %v8172_v44 }
 0x6ad   : > { %v8207_v22 = vpop.f32.mrb[44].mxu1 }
 0x6ae   : > { %v8208_v63 = vpop.f32.mrb[45].mxu1 }
 0x6af   : > { %v8209_v48 = vadd.f32 %v8208_v63, %v8207_v22  ;;  %v5318_v63 = vpop.permute.xlu1 %5317 }
 0x6b1   : > { %v5110_v28 = vadd.f32 %v8209_v48, %v8165_v32  ;;  %v8210_v55 = vpop.f32.mrb[46].mxu1 }
 0x6b2   : > { %v8211_v39 = vpop.f32.mrb[47].mxu1 }
 0x6b3   : > { %v8212_v33 = vadd.f32 %v8211_v39, %v8210_v55 }
 0x6b5   : > { %v5115_v9 = vadd.f32 %v8212_v33, %v8168_v4  ;;  %v8213_v10 = vpop.f32.mrb[48].mxu1 }
 0x6b6   : > { %v8214_v49 = vpop.f32.mrb[49].mxu1 }
 0x6b7   : > { %v8215_v2 = vadd.f32 %v8214_v49, %v8213_v10 }
 0x6b9   : > { %v5120_v24 = vadd.f32 %v8215_v2, %v8171_v7  ;;  %v8216_v19 = vpop.f32.mrb[50].mxu1 }
 0x6ba   : > { %v8217_v5 = vpop.f32.mrb[51].mxu1 }
 0x6bb   : > { %v8218_v35 = vadd.f32 %v8217_v5, %v8216_v19 }
 0x6bd   : > { %v5125_v21 = vadd.f32 %v8218_v35, %v8174_v14 }
 0x709   : > { %v8251_v50 = vpop.f32.mrb[52].mxu1 }
 0x70a   : > { %v8252_v53 = vpop.f32.mrb[53].mxu1 }
 0x70b   : > { %v8253_v57 = vadd.f32 %v8252_v53, %v8251_v50 }
 0x70d   : > { %v8254_v12 = vpop.f32.mrb[54].mxu1  ;;  %v5195_v45 = vadd.f32 %v8253_v57, %v5110_v28  ;;  %v5323_v28 = vpop.permute.xlu0 %5322 }
 0x70e   : > { %v8255_v30 = vpop.f32.mrb[55].mxu1 }
 0x70f   : > { %v8256_v36 = vadd.f32 %v8255_v30, %v8254_v12  ;;  %v16028_v12 = vld [vmem:[#allocation25_spill] sm:$0xff] }
 0x711   : > { %v8257_v32 = vpop.f32.mrb[56].mxu1  ;;  %v5200_v0 = vadd.f32 %v8256_v36, %v5115_v9 }
 0x712   : > { %v8258_v25 = vpop.f32.mrb[57].mxu1 }
 0x713   : > { %v8259_v17 = vadd.f32 %v8258_v25, %v8257_v32 }
 0x715   : > { %v8260_v4 = vpop.f32.mrb[58].mxu1  ;;  %v5205_v44 = vadd.f32 %v8259_v17, %v5120_v24 }
 0x716   : > { %v8261_v26 = vpop.f32.mrb[59].mxu1 }
 0x717   : > { %v8262_v22 = vadd.f32 %v8261_v26, %v8260_v4 }
 0x719   : > { %v5210_v7 = vadd.f32 %v8262_v22, %v5125_v21 }
 0x726   : > { %v4935_v48 = vpop.f32.mrb[24].mxu0 }
 0x727   : > { %v5335_v55 = vadd.f32 %v5318_v63, %v4935_v48  ;;  %v4937_v14 = vpop.f32.mrb[25].mxu0  ;;  %v8578_v39 = vpop.f32.mrb[12].mxu1 }
 0x728   : > { %v5336_v33 = vadd.f32 %v5318_v63, %v4937_v14  ;;  %v5285_v10 = vadd.f32 %v8578_v39, %v5200_v0  ;;  %v5279_v49 = vpop.f32.mrb[13].mxu1 }
 0x729   : > { %vm5347_vm15 = vcmp.ge.f32.partialorder %v5335_v55, 0.0  ;;  %v5359_v2 = vmul.f32 0.01, %v5335_v55  ;;  %v5280_v19 = vadd.f32 %v5279_v49, %v5195_v45  ;;  %v5328_v45 = vpop.permute.xlu1 %5327 }
 0x72a   : > { %vm5348_vm12 = vcmp.ge.f32.partialorder %v5336_v33, 0.0  ;;  %v5360_v9 = vmul.f32 0.01, %v5336_v33  ;;  %v5340_v5 = vadd.f32 %v5323_v28, %v5285_v10  ;;  %v4941_v35 = vpop.f32.mrb[26].mxu0 }
 0x72b   : > { %v5371_v24 = vsel %vm5347_vm15, %v5335_v55, %v5359_v2  ;;  %v5337_v50 = vadd.f32 %v5318_v63, %v5280_v19  ;;  %v5338_v53 = vadd.f32 %v5323_v28, %v4941_v35  ;;  %v4943_v21 = vpop.f32.mrb[27].mxu0  ;;  %v8581_v57 = vpop.f32.mrb[14].mxu1  ;;  %v16029_v55 = vld [vmem:[#allocation23_spill] sm:$0xff] }
 0x72c   : > { %v5383_v30 = vmul.f32 %v5371_v24, %v16028_v12  ;;  %v5372_v36 = vsel %vm5348_vm12, %v5336_v33, %v5360_v9  ;;  %vm5352_vm13 = vcmp.ge.f32.partialorder %v5340_v5, 0.0  ;;  %v5364_v32 = vmul.f32 0.01, %v5340_v5  ;;  %v5289_v0 = vpop.f32.mrb[15].mxu1  ;;  %v5333_v2 = vpop.permute.xlu0 %5332 }
 0x72d   : > { %v5384_v25 = vmul.f32 %v5372_v36, %v11615_v54  ;;  %vm5349_vm14 = vcmp.ge.f32.partialorder %v5337_v50, 0.0  ;;  %v5361_v17 = vmul.f32 0.01, %v5337_v50  ;;  %vm5350_vm8 = vcmp.ge.f32.partialorder %v5338_v53, 0.0 }
 0x72e   : > { %v5376_v4 = vsel %vm5352_vm13, %v5340_v5, %v5364_v32  ;;  %v5362_v26 = vmul.f32 0.01, %v5338_v53  ;;  %v5339_v22 = vadd.f32 %v5323_v28, %v4943_v21  ;;  %v5295_v48 = vadd.f32 %v8581_v57, %v5210_v7  ;;  %v4947_v63 = vpop.f32.mrb[28].mxu0 }
 0x72f   : > { %v5388_v14 = vmul.f32 %v5376_v4, %v16029_v55  ;;  %v5373_v39 = vsel %vm5349_vm14, %v5337_v50, %v5361_v17  ;;  %v5290_v10 = vadd.f32 %v5289_v0, %v5205_v44  ;;  %v5341_v49 = vadd.f32 %v5328_v45, %v4947_v63  ;;  %v4949_v33 = vpop.f32.mrb[29].mxu0 }
 0x730   : > { %v5385_v19 = vmul.f32 %v5373_v39, %v16029_v55  ;;  %v5374_v9 = vsel %vm5350_vm8, %v5338_v53, %v5362_v26  ;;  %vm5351_vm15 = vcmp.ge.f32.partialorder %v5339_v22, 0.0  ;;  %v5363_v35 = vmul.f32 0.01, %v5339_v22 }
 0x731   : > { %v5386_v24 = vmul.f32 %v5374_v9, %v16028_v12  ;;  %v5346_v36 = vadd.f32 %v5333_v2, %v5295_v48  ;;  %v5343_v5 = vadd.f32 %v5328_v45, %v5290_v10  ;;  %vm5353_vm12 = vcmp.ge.f32.partialorder %v5341_v49, 0.0 }
 0x732   : > { %v5375_v28 = vsel %vm5351_vm15, %v5339_v22, %v5363_v35  ;;  %v5365_v7 = vmul.f32 0.01, %v5341_v49  ;;  %v5342_v21 = vadd.f32 %v5328_v45, %v4949_v33  ;;  %v4953_v57 = vpop.f32.mrb[30].mxu0  ;;  %v14181_v32 = vpack.c.bf16 %v5388_v14, %v5385_v19 }
 0x733   : > { %v5387_v44 = vmul.f32 %v5375_v28, %v11615_v54  ;;  %vm5358_vm13 = vcmp.ge.f32.partialorder %v5346_v36, 0.0  ;;  %v5370_v50 = vmul.f32 0.01, %v5346_v36  ;;  %vm5355_vm14 = vcmp.ge.f32.partialorder %v5343_v5, 0.0  ;;  %v4955_v0 = vpop.f32.mrb[31].mxu0 }
 0x734   : > { %v5367_v53 = vmul.f32 0.01, %v5343_v5  ;;  %v5377_v17 = vsel %vm5353_vm12, %v5341_v49, %v5365_v7  ;;  %vm5354_vm8 = vcmp.ge.f32.partialorder %v5342_v21, 0.0  ;;  %v5366_v4 = vmul.f32 0.01, %v5342_v21 }
 0x735   : > { %v5382_v26 = vsel %vm5358_vm13, %v5346_v36, %v5370_v50  ;;  %v5389_v48 = vmul.f32 %v5377_v17, %v16028_v12  ;;  %v5344_v63 = vadd.f32 %v5333_v2, %v4953_v57  ;;  %v5345_v22 = vadd.f32 %v5333_v2, %v4955_v0 }
 0x736   : > { %v5394_v45 = vmul.f32 %v5382_v26, %v16029_v55  ;;  %v5379_v39 = vsel %vm5355_vm14, %v5343_v5, %v5367_v53  ;;  %v5378_v10 = vsel %vm5354_vm8, %v5342_v21, %v5366_v4  ;;  %v14186_v33 = vpack.c.bf16 %v5387_v44, %v5384_v25 }
 0x737   : > { %v5391_v9 = vmul.f32 %v5379_v39, %v16029_v55  ;;  %v5390_v35 = vmul.f32 %v5378_v10, %v11615_v54  ;;  %vm5356_vm15 = vcmp.ge.f32.partialorder %v5344_v63, 0.0  ;;  %v5368_v28 = vmul.f32 0.01, %v5344_v63  ;;  %v6093_v39 = vld [vmem:[%s15370_s10 + $0x28] sm:$0xff] }
 0x738   : > { %16030 = vst [vmem:[#allocation97_spill] sm:$0xff] %v14186_v33  ;;  %vm5357_vm12 = vcmp.ge.f32.partialorder %v5345_v22, 0.0  ;;  %v5369_v49 = vmul.f32 0.01, %v5345_v22  ;;  %9377 = vmatprep.subr.bf16.mxu1 %v14186_v33  ;;  %v14191_v36 = vpack.c.bf16 %v5386_v24, %v5383_v30  ;;  %v14193_v7 = vpack.i.bf16 %v5386_v24, %v5383_v30  ;;  %v16147_v33 = vld [vmem:[#allocation33_spill] sm:$0xff] }
 0x739   : > { %v5380_v2 = vsel %vm5356_vm15, %v5344_v63, %v5368_v28  ;;  %v14195_v57 = vpack.c.bf16 %v5394_v45, %v5391_v9  ;;  %v14197_v5 = vpack.i.bf16 %v5387_v44, %v5384_v25  ;;  %v14199_v21 = vpack.i.bf16 %v5388_v14, %v5385_v19  ;;  %v16035_v14 = vld [vmem:[#allocation22_spill] sm:$0xff]  ;;  %v16036_v19 = vld [vmem:[#allocation20_spill] sm:$0xff]  ;;  %v16037_v44 = vld [vmem:[#allocation21_spill] sm:$0xff] }
 0x73a   : > { %16031 = vst [vmem:[#allocation25_spill] sm:$0xff] %v14191_v36  ;;  %v5392_v50 = vmul.f32 %v5380_v2, %v16028_v12  ;;  %v5381_v0 = vsel %vm5357_vm12, %v5345_v22, %v5369_v49  ;;  %9379 = vmatpush1.bf16.xpose.msra.mxu1 %v14191_v36  ;;  %v14203_v53 = vpack.i.bf16 %v5394_v45, %v5391_v9  ;;  %v16034_v25 = vmov 0.0|0.0   ;;  %v6091_v22 = vld [vmem:[%s15370_s10 + $0x18] sm:$0xff]  ;;  %v6094_v9 = vld [vmem:[%s15370_s10 + $0x30] sm:$0xff]  ;;  %v6096_v49 = vld [vmem:[%s15370_s10 + $0x40] sm:$0xff] }
 0x73b   : > { %v5393_v17 = vmul.f32 %v5381_v0, %v11615_v54  ;;  %v6097_v2 = vld [vmem:[%s15370_s10 + $0x48] sm:$0xff]  ;;  %v6098_v0 = vld [vmem:[%s15370_s10 + $0x50] sm:$0xff]  ;;  %vm6105_vm13 = vcmask 31744   ;;  %vm16039_vm14 = vcmask 523264   ;;  %vm6185_vm8 = vcmask 64512  }
 0x73c   : > { %v14206_v4 = vpack.c.bf16 %v5392_v50, %v5389_v48  ;;  %v14208_v30 = vpack.i.bf16 %v5392_v50, %v5389_v48  ;;  %v6088_v48 = vld [vmem:[%s15370_s10] sm:$0xff]  ;;  %v9403_v50 = vpack.c.bf16 %v6097_v2, %v6096_v49  ;;  %v6077_v49 = vpop.permute.xlu0 %6076  ;;  %v16038_v2 = vld [vmem:[#allocation80_spill] sm:$0xff]  ;;  %vm16073_vm15 = vmmov %vm16039_vm14 }
 0x73d   : > { %v14210_v24 = vpack.c.bf16 %v5393_v17, %v5390_v35  ;;  %v14212_v26 = vpack.i.bf16 %v5393_v17, %v5390_v35  ;;  %v6095_v35 = vld [vmem:[%s15370_s10 + $0x38] sm:$0xff]  ;;  %vm16075_vm12 = vmmov %vm16039_vm14 }
 0x73e   : > { %16032 = vst [vmem:[#allocation23_spill] sm:$0xff] %v14206_v4  ;;  %v9400_v28 = vpack.c.bf16 %v6095_v35, %v6094_v9  ;;  %v6099_v17 = vld [vmem:[%s15370_s10 + $0x58] sm:$0xff] }
 0x73f   : > { %16033 = vst [vmem:[#allocation144_spill] sm:$0xff] %v14210_v24  ;;  %9381 = vmatprep.subr.bf16.mxu1 %v14210_v24 }
 0x742   : > { %9383 = vmatpush1.bf16.xpose.msra.mxu1 %v14206_v4 }
 0x743   : > { %9384 = vmatprep.subr.bf16.mxu1 %v16034_v25 }
 0x749   : > { %5460 = vmatmul.mubr.f32.vlgmr.msra.gmra.mrb[60].mxu1 %v16028_v12 }
 0x74a   : > { %9386 = vmatpush3.bf16.xpose.msra.mxu1 %v14181_v32  ;;  %8590 = vmatprep.mubr.msk.f32.mxu1 %vm11185_vm10, %v15769_v6 }
 0x74b   : > { %9387 = vmatprep.subr.bf16.mxu1 %v16034_v25 }
 0x752   : > { %9389 = vmatpush3.bf16.xpose.msra.mxu1 %v14195_v57 }
 0x753   : > { %5931 = vmatprep.subr.mxu1 %v16035_v14  ;;  %v9406_v14 = vpack.c.bf16 %v6099_v17, %v6098_v0 }
 0x759   : > { %8591 = vmatmul.mubr.f32.vlgmr.msra.gmra.mrb[60].mxu1 %v16029_v55 }
 0x75a   : > { %5932 = vmatpush1.xpose.msra.mxu1 %v16036_v19  ;;  %5995 = vmatprep.mubr.f32.mxu1 %v11615_v54  ;;  %v6089_v54 = vld [vmem:[%s15370_s10 + $0x8] sm:$0xff]  ;;  %v6100_v19 = vld [vmem:[%s15370_s10 + $0x60] sm:$0xff] }
 0x75b   : > { %8593 = vmatprep.subr.mxu1 %v15769_v6  ;;  %v9391_v63 = vpack.c.bf16 %v6089_v54, %v6088_v48  ;;  %v6102_v54 = vld [vmem:[%s15370_s10 + $0x70] sm:$0xff] }
 0x75d   : > { %5996 = vmatmul.mubr.f32.vlgmr.msra.gmra.mrb[62].mxu1 %v16028_v12  ;;  %v6090_v12 = vld [vmem:[%s15370_s10 + $0x10] sm:$0xff] }
 0x75e   : > { %8594 = vmatpush3.xpose.msra.mxu1 %v16037_v44  ;;  %8595 = vmatprep.mubr.msk.f32.mxu1 %vm11185_vm10, %v15769_v6  ;;  %v9394_v45 = vpack.c.bf16 %v6091_v22, %v6090_v12  ;;  %v6101_v44 = vld [vmem:[%s15370_s10 + $0x68] sm:$0xff]  ;;  %v6103_v12 = vld [vmem:[%s15370_s10 + $0x78] sm:$0xff]  ;;  %v6104_v22 = vld [vmem:[%s15370_s10 + $0x80] sm:$0xf] }
 0x75f   : > { %9390 = vmatprep.subr.bf16.mxu1 %v16034_v25  ;;  %v9409_v48 = vpack.c.bf16 %v6101_v44, %v6100_v19  ;;  %v6183_v44 = vld [vmem:[%s15371_s11] sm:$0xff] }
 0x765   : > { %8596 = vmatmul.mubr.f32.vlgmr.msra.gmra.mrb[62].mxu1 %v16029_v55  ;;  %v6092_v55 = vld [vmem:[%s15370_s10 + $0x20] sm:$0xff] }
 0x766   : > { %9392 = vmatpush1.bf16.msra.mxu1 %v9391_v63  ;;  %v9397_v10 = vpack.c.bf16 %v6093_v39, %v6092_v55  ;;  %v9412_v63 = vpack.c.bf16 %v6103_v12, %v6102_v54 }
 0x767   : > { %9393 = vmatprep.subr.bf16.mxu1 %v16034_v25 }
 0x76a   : > { %9395 = vmatpush1.bf16.msra.mxu1 %v9394_v45  ;;  %v6184_v45 = vld [vmem:[%s15371_s11 + $0x8] sm:$0xff] }
 0x76b   : > { %9396 = vmatprep.subr.bf16.mxu1 %v16034_v25 }
 0x76e   : > { %9398 = vmatpush1.bf16.msra.mxu1 %v9397_v10 }
 0x76f   : > { %9399 = vmatprep.subr.bf16.mxu1 %v16034_v25 }
 0x772   : > { %9401 = vmatpush1.bf16.msra.mxu1 %v9400_v28  ;;  %v6073_v28 = vpop.permute.xlu1 %6072 }
 0x773   : > { %9402 = vmatprep.subr.bf16.mxu1 %v16034_v25 }
 0x776   : > { %9404 = vmatpush1.bf16.msra.mxu1 %v9403_v50  ;;  %v6083_v50 = vsel %vm1815_vm11, %v16038_v2, %v6073_v28  ;;  %v16048_v28 = vld [vmem:[#allocation45_spill] sm:$0xff]  ;;  %v16050_v2 = vld [vmem:[#allocation48_spill] sm:$0xff] }
 0x777   : > { %9405 = vmatprep.subr.bf16.mxu1 %v16034_v25  ;;  %v6084_v0 = vsel %vm16039_vm14, %v6083_v50, %v6077_v49  ;;  %v16049_v49 = vld [vmem:[#allocation46_spill] sm:$0xff]  ;;  %vm16076_vm14 = vmmov %vm16075_vm12 }
 0x778   : > { %v16051_v50 = vld [vmem:[#allocation50_spill] sm:$0xff] }
 0x77a   : > { %9407 = vmatpush1.bf16.msra.mxu1 %v9406_v14 }
 0x77b   : > { %9408 = vmatprep.subr.bf16.mxu1 %v16034_v25 }
 0x77e   : > { %9410 = vmatpush1.bf16.msra.mxu1 %v9409_v48  ;;  %v16040_v48 = vld [vmem:[#allocation34_spill] sm:$0xff] }
 0x77f   : > { %9411 = vmatprep.subr.bf16.mxu1 %v16034_v25 }
 0x782   : > { %9413 = vmatpush1.bf16.msra.mxu1 %v9412_v63 }
 0x783   : > { %6144 = vmatprep.subr.mxu1 %v15769_v6 }
 0x786   : > { %7930 = vmatpush1.msk.msra.mxu1 %vm671_vm9, %v6104_v22  ;;  %v16041_v22 = vld [vmem:[#allocation35_spill] sm:$0xff] }
 0x787   : > { %6189 = vmatprep.subr.mxu1 %v6184_v45  ;;  %v16042_v45 = vld [vmem:[#allocation37_spill] sm:$0xff] }
 0x82c   : > { %v5531_v55 = vpop.f32.mrb[60].mxu1 }
 0x82d   : > { %6080 = vrot.lane.b32.xlu1 %v5531_v55, %s11188_s21  ;;  %v8592_v39 = vpop.f32.mrb[61].mxu1  ;;  %v16043_v55 = vld [vmem:[#allocation39_spill] sm:$0xff] }
 0x82e   : > { %v16044_v39 = vld [vmem:[#allocation40_spill] sm:$0xff] }
 0x838   : > { %v6067_v10 = vpop.f32.mrb[62].mxu1 }
 0x839   : > { %v6087_v9 = vmul.f32 0.00390625, %v6067_v10  ;;  %v8597_v35 = vpop.f32.mrb[63].mxu1  ;;  %v16045_v10 = vld [vmem:[#allocation41_spill] sm:$0xff] }
 0x83a   : > { %v16047_v35 = vld [vmem:[#allocation44_spill] sm:$0xff] }
 0x83b   : > { %7931 = vmatprep.mubr.msk.f32.mxu1 %vm6105_vm13, %v6087_v9  ;;  %v16046_v9 = vld [vmem:[#allocation42_spill] sm:$0xff] }
 0x89f   : > { %v6081_v17 = vpop.permute.xlu1 %6080 }
 0x8a0   : > { %v6085_v14 = vsel %vm4589_vm0, %v6084_v0, %v6081_v17  ;;  %v16052_v0 = vld [vmem:[#allocation51_spill] sm:$0xff]  ;;  %v16053_v17 = vld [vmem:[#allocation52_spill] sm:$0xff] }
 0x8a1   : > { %v6086_v19 = vmul.f32 0.00390625, %v6085_v14  ;;  %v16054_v14 = vld [vmem:[#allocation53_spill] sm:$0xff] }
 0x8a3   : > { %6177 = vmatmul.mubr.f32.vlgmr.msra.gmra.mrb[64].mxu1 %v6086_v19  ;;  %v16055_v19 = vld [vmem:[#allocation55_spill] sm:$0xff] }
 0x8a4   : > { %6190 = vmatpush1.msra.mxu1 %v6183_v44  ;;  %6253 = vmatprep.mubr.f32.mxu1 %v15769_v6  ;;  %v16056_v44 = vld [vmem:[#allocation26_spill] sm:$0xff] }
 0x8a5   : > { %9415 = vmatprep.subr.bf16.mxu1 %v16040_v48  ;;  %v16057_v48 = vld [vmem:[#allocation27_spill] sm:$0xff] }
 0x976   : > { %v6178_v54 = vpop.f32.mrb[64].mxu1 }
 0x977   : > { %v6182_v12 = vmax.f32 %v6178_v54, 0.0  ;;  %v6180_v63 = vpop.f32.mrb[65].mxu1  ;;  %v16058_v54 = vld [vmem:[#allocation30_spill] sm:$0xff] }
 0x978   : > { %v16060_v63 = vld [vmem:[#allocation56_spill] sm:$0xff] }
 0x979   : > { %7932 = vmatmul.mubr.msk.f32.vlgmr.msra.gmra.mrb[66].mxu1 %vm6185_vm8, %v6182_v12  ;;  %v16059_v12 = vld [vmem:[#allocation28_spill] sm:$0xff] }
 0x97a   : > { %9417 = vmatpush1.bf16.msra.mxu1 %v16041_v22  ;;  %v16061_v22 = vld [vmem:[#allocation57_spill] sm:$0xff] }
 0x97b   : > { %9419 = vmatprep.subr.bf16.mxu1 %v16042_v45  ;;  %v16062_v45 = vld [vmem:[#allocation58_spill] sm:$0xff] }
 0x97e   : > { %9421 = vmatpush1.bf16.msra.mxu1 %v16043_v55  ;;  %v16063_v55 = vld [vmem:[#allocation59_spill] sm:$0xff] }
 0x97f   : > { %9423 = vmatprep.subr.bf16.mxu1 %v16044_v39  ;;  %v16064_v39 = vld [vmem:[#allocation60_spill] sm:$0xff] }
 0x982   : > { %9425 = vmatpush1.bf16.msra.mxu1 %v16045_v10  ;;  %v16065_v10 = vld [vmem:[#allocation61_spill] sm:$0xff] }
 0x983   : > { %9427 = vmatprep.subr.bf16.mxu1 %v16046_v9  ;;  %v16066_v9 = vld [vmem:[#allocation62_spill] sm:$0xff] }
 0x986   : > { %9429 = vmatpush1.bf16.msra.mxu1 %v16047_v35  ;;  %v16067_v35 = vld [vmem:[#allocation63_spill] sm:$0xff] }
 0x987   : > { %9431 = vmatprep.subr.bf16.mxu1 %v16048_v28  ;;  %v16068_v28 = vld [vmem:[#allocation64_spill] sm:$0xff] }
 0x98a   : > { %9433 = vmatpush1.bf16.msra.mxu1 %v16049_v49  ;;  %v16069_v49 = vld [vmem:[#allocation65_spill] sm:$0xff] }
 0x98b   : > { %9435 = vmatprep.subr.bf16.mxu1 %v16050_v2  ;;  %v16070_v2 = vld [vmem:[#allocation66_spill] sm:$0xff] }
 0x98e   : > { %9437 = vmatpush1.bf16.msra.mxu1 %v16051_v50  ;;  %v16071_v50 = vld [vmem:[#allocation67_spill] sm:$0xff] }
 0x98f   : > { %9439 = vmatprep.subr.bf16.mxu1 %v16052_v0  ;;  %v16072_v0 = vld [vmem:[#allocation68_spill] sm:$0xff] }
 0x992   : > { %9441 = vmatpush1.bf16.msra.mxu1 %v16053_v17 }
 0x993   : > { %9443 = vmatprep.subr.bf16.mxu1 %v16054_v14 }
 0x996   : > { %9445 = vmatpush1.bf16.msra.mxu1 %v16055_v19 }
 0x997   : > { %9447 = vmatprep.subr.bf16.mxu1 %v16056_v44 }
 0x99a   : > { %9449 = vmatpush1.bf16.msra.mxu1 %v16057_v48 }
 0x99b   : > { %9451 = vmatprep.subr.bf16.mxu1 %v16058_v54 }
 0x99e   : > { %9453 = vmatpush1.bf16.msra.mxu1 %v16059_v12 }
 0x99f   : > { %9455 = vmatprep.subr.bf16.mxu1 %v16060_v63 }
 0x9a2   : > { %9457 = vmatpush1.bf16.msra.mxu1 %v16061_v22 }
 0x9a3   : > { %9459 = vmatprep.subr.bf16.mxu1 %v16062_v45 }
 0x9a6   : > { %9461 = vmatpush1.bf16.msra.mxu1 %v16063_v55 }
 0x9a7   : > { %9463 = vmatprep.subr.bf16.mxu1 %v16064_v39 }
 0x9aa   : > { %9465 = vmatpush1.bf16.msra.mxu1 %v16065_v10 }
 0x9ab   : > { %9467 = vmatprep.subr.bf16.mxu1 %v16066_v9  ;;  %v16074_v9 = vld [vmem:[#allocation24_spill] sm:$0xff] }
 0x9ae   : > { %9469 = vmatpush1.bf16.msra.mxu1 %v16067_v35 }
 0x9af   : > { %9471 = vmatprep.subr.bf16.mxu1 %v16068_v28 }
 0x9b2   : > { %9473 = vmatpush1.bf16.msra.mxu1 %v16069_v49 }
 0x9b3   : > { %9475 = vmatprep.subr.bf16.mxu1 %v16070_v2  ;;  %v6380_v2 = vld [vmem:[%s15367_s7] sm:$0xff] }
 0x9b6   : > { %9477 = vmatpush1.bf16.msra.mxu1 %v16071_v50 }
 0x9b7   : > { %9479 = vmatprep.subr.bf16.mxu1 %v16072_v0 }
 0xa4c   : > { %v6255_v17 = vpop.f32.mrb[66].mxu1 }
 0xa4d   : > { %v7933_v14 = vmul.f32 -1.442695, %v6255_v17  ;;  %v14341_v19 = vpop.f32.mrb[67].mxu1 }
 0xa4f   : > { %11034 = vpow2.f32 %v7933_v14 }
 0xa59   : > { %v11035_v44 = vpop.eup %11034 }
 0xa5a   : > { %v6266_v48 = vadd.f32 1.0, %v11035_v44 }
 0xa5c   : > { %11036 = vrcp.f32 %v6266_v48  ;;  %v16077_v48 = vld [vmem:[#allocation70_spill] sm:$0xff] }
 0xa66   : > { %v14343_v54 = vpop.eup %11036 }
 0xa67   : > { %6314 = vrot.lane.b32.xlu1 %v14343_v54, %s11187_s30  ;;  %6311 = vrot.lane.b32.xlu0 %v14343_v54, %s11186_s24 }
 0xa6b   : > { %6317 = vrot.lane.b32.xlu0 %v14343_v54, %s11188_s21 }
 0xad9   : > { %v14351_v12 = vpop.permute.xlu0 %6311  ;;  %v14353_v63 = vpop.permute.xlu1 %6314 }
 0xada   : > { %v6320_v22 = vsel %vm1815_vm11, %v14343_v54, %v14351_v12 }
 0xadb   : > { %v6321_v45 = vsel %vm16073_vm15, %v6320_v22, %v14353_v63  ;;  %v16078_v22 = vld [vmem:[#allocation69_spill] sm:$0xff]  ;;  %vm16128_vm15 = vmmov %vm16075_vm12 }
 0xadd   : > { %v14360_v55 = vpop.permute.xlu0 %6317 }
 0xade   : > { %v6322_v39 = vsel %vm4589_vm0, %v6321_v45, %v14360_v55  ;;  %6335 = vrot.lane.b32.xlu0 %v14360_v55, %s11186_s24  ;;  %v6323_v10 = vsel %vm1815_vm11, %v14360_v55, %v14343_v54  ;;  %v6326_v17 = vsel %vm1815_vm11, %v14353_v63, %v14360_v55 }
 0xadf   : > { %v6388_v35 = vrot.slane %v6322_v39, %v16074_v9  ;;  %v6324_v28 = vsel %vm16075_vm12, %v6323_v10, %v14351_v12  ;;  %v6327_v44 = vsel %vm16076_vm14, %v6326_v17, %v14343_v54  ;;  %v16079_v39 = vld [vmem:[#allocation72_spill] sm:$0xff]  ;;  %v16080_v10 = vld [vmem:[#allocation105_spill] sm:$0xff]  ;;  %v16087_v17 = vld [vmem:[#allocation90_spill] sm:$0xff] }
 0xae0   : > { %v6325_v49 = vsel %vm4589_vm0, %v6324_v28, %v14353_v63  ;;  %v6328_v45 = vsel %vm4589_vm0, %v6327_v44, %v14351_v12  ;;  %v16082_v28 = vld [vmem:[#allocation71_spill] sm:$0xff] }
 0xae1   : > { %v6424_v50 = vcombine.low %v6388_v35, %v6388_v35  ;;  %6333 = vrot.lane.b32.xlu1 %v6325_v49, %s11186_s24  ;;  %v16081_v35 = vld [vmem:[#allocation73_spill] sm:$0xff]  ;;  %v16083_v49 = vld [vmem:[#allocation87_spill] sm:$0xff] }
 0xae2   : > { %10794 = vrot.lane.b32.xlu0 %v14193_v7, %s11176_s27  ;;  %v16089_v44 = vld [vmem:[#allocation91_spill] sm:$0xff] }
 0xae3   : > { %v6432_v0 = vmul.f32 %v6424_v50, %v6380_v2  ;;  %v16084_v2 = vld [vmem:[#allocation85_spill] sm:$0xff]  ;;  %v16085_v50 = vld [vmem:[#allocation88_spill] sm:$0xff] }
 0xae5   : > { %10799 = vrot.lane.b32.xlu1 %v14197_v5, %s11176_s27  ;;  %v6873_v14 = vcombine.high %v6432_v0, %v6432_v0 }
 0xae6   : > { %10804 = vrot.lane.b32.xlu0 %v14199_v21, %s11176_s27 }
 0xae7   : > { %6945 = vmatprep.mubr.f32.mxu1 %v6873_v14  ;;  %7300 = vmatprep.mubr.f32.mxu0 %v6873_v14  ;;  %v16088_v14 = vld [vmem:[#allocation86_spill] sm:$0xff] }
 0xae8   : > { %6946 = vmatmul.mubr.f32.vlgmr.msra.gmra.mrb[68].mxu1 %v6432_v0  ;;  %7301 = vmatmul.mubr.f32.vlgmr.msra.gmra.mrb[42].mxu0 %v6432_v0  ;;  %v16086_v0 = vld [vmem:[#allocation89_spill] sm:$0xff] }
 0xae9   : > { %9481 = vmatpush1.bf16.msra.mxu1 %v16077_v48  ;;  %9737 = vmatpush3.bf16.msra.mxu0 %v16078_v22  ;;  %v16090_v48 = vld [vmem:[#allocation106_spill] sm:$0xff]  ;;  %v16091_v22 = vld [vmem:[#allocation92_spill] sm:$0xff] }
 0xaea   : > { %6341 = vrot.lane.b32.xlu1 %v6328_v45, %s11187_s30  ;;  %9483 = vmatprep.subr.bf16.mxu1 %v16079_v39  ;;  %v16092_v45 = vld [vmem:[#allocation108_spill] sm:$0xff]  ;;  %v16093_v39 = vld [vmem:[#allocation94_spill] sm:$0xff] }
 0xaeb   : > { %9739 = vmatprep.subr.bf16.mxu0 %v16080_v10  ;;  %10814 = vrot.lane.b32.xlu0 %v14212_v26, %s11176_s27  ;;  %v16094_v10 = vld [vmem:[#allocation109_spill] sm:$0xff] }
 0xaed   : > { %9485 = vmatpush1.bf16.msra.mxu1 %v16081_v35  ;;  %9741 = vmatpush3.bf16.msra.mxu0 %v16082_v28  ;;  %v16095_v35 = vld [vmem:[#allocation93_spill] sm:$0xff]  ;;  %v16096_v28 = vld [vmem:[#allocation112_spill] sm:$0xff] }
 0xaee   : > { %10809 = vrot.lane.b32.xlu1 %v14208_v30, %s11176_s27  ;;  %9487 = vmatprep.subr.bf16.mxu1 %v16083_v49  ;;  %v16098_v49 = vld [vmem:[#allocation95_spill] sm:$0xff] }
 0xaef   : > { %9743 = vmatprep.subr.bf16.mxu0 %v16084_v2  ;;  %10824 = vrot.lane.b32.xlu0 %v14193_v7, %s11175_s23  ;;  %v16099_v2 = vld [vmem:[#allocation113_spill] sm:$0xff] }
 0xaf1   : > { %9489 = vmatpush1.bf16.msra.mxu1 %v16085_v50  ;;  %9745 = vmatpush3.bf16.msra.mxu0 %v16086_v0  ;;  %v16100_v50 = vld [vmem:[#allocation96_spill] sm:$0xff]  ;;  %v16101_v0 = vld [vmem:[#allocation117_spill] sm:$0xff] }
 0xaf2   : > { %10819 = vrot.lane.b32.xlu1 %v14203_v53, %s11176_s27  ;;  %9491 = vmatprep.subr.bf16.mxu1 %v16087_v17  ;;  %s16097_s27 = smov 17   ;;  %v16102_v17 = vld [vmem:[#allocation98_spill] sm:$0xff] }
 0xaf3   : > { %9747 = vmatprep.subr.bf16.mxu0 %v16088_v14  ;;  %10834 = vrot.lane.b32.xlu0 %v14199_v21, %s11175_s23  ;;  %v16103_v14 = vld [vmem:[#allocation114_spill] sm:$0xff] }
 0xaf5   : > { %9493 = vmatpush1.bf16.msra.mxu1 %v16089_v44  ;;  %9749 = vmatpush3.bf16.msra.mxu0 %v16090_v48  ;;  %v16104_v44 = vld [vmem:[#allocation99_spill] sm:$0xff]  ;;  %v16105_v48 = vld [vmem:[#allocation120_spill] sm:$0xff] }
 0xaf6   : > { %10829 = vrot.lane.b32.xlu1 %v14197_v5, %s11175_s23  ;;  %9495 = vmatprep.subr.bf16.mxu1 %v16091_v22  ;;  %v16106_v22 = vld [vmem:[#allocation100_spill] sm:$0xff] }
 0xaf7   : > { %9751 = vmatprep.subr.bf16.mxu0 %v16092_v45  ;;  %10844 = vrot.lane.b32.xlu0 %v14212_v26, %s11175_s23  ;;  %v16107_v45 = vld [vmem:[#allocation121_spill] sm:$0xff] }
 0xaf9   : > { %9497 = vmatpush1.bf16.msra.mxu1 %v16093_v39  ;;  %9753 = vmatpush3.bf16.msra.mxu0 %v16094_v10  ;;  %v16108_v39 = vld [vmem:[#allocation101_spill] sm:$0xff]  ;;  %v16109_v10 = vld [vmem:[#allocation31_spill] sm:$0xff] }
 0xafa   : > { %10839 = vrot.lane.b32.xlu1 %v14208_v30, %s11175_s23  ;;  %9499 = vmatprep.subr.bf16.mxu1 %v16095_v35  ;;  %v16111_v35 = vld [vmem:[#allocation102_spill] sm:$0xff] }
 0xafb   : > { %9755 = vmatprep.subr.bf16.mxu0 %v16096_v28  ;;  %10854 = vrot.lane.b32.xlu0 %v14193_v7, %s16097_s27  ;;  %v16112_v28 = vld [vmem:[#allocation103_spill] sm:$0xff] }
 0xafd   : > { %9501 = vmatpush1.bf16.msra.mxu1 %v16098_v49  ;;  %9757 = vmatpush3.bf16.msra.mxu0 %v16099_v2  ;;  %v16113_v49 = vld [vmem:[#allocation104_spill] sm:$0xff]  ;;  %v16114_v2 = vld [vmem:[#allocation82_spill] sm:$0xff] }
 0xafe   : > { %10849 = vrot.lane.b32.xlu1 %v14203_v53, %s11175_s23  ;;  %9503 = vmatprep.subr.bf16.mxu1 %v16100_v50  ;;  %s16110_s23 = smov 1   ;;  %v16115_v50 = vld [vmem:[#allocation81_spill] sm:$0xff] }
 0xaff   : > { %9759 = vmatprep.subr.bf16.mxu0 %v16101_v0  ;;  %10864 = vrot.lane.b32.xlu0 %v14199_v21, %s16097_s27  ;;  %v16116_v0 = vld [vmem:[#allocation84_spill] sm:$0xff] }
 0xb01   : > { %9505 = vmatpush1.bf16.msra.mxu1 %v16102_v17  ;;  %9761 = vmatpush3.bf16.msra.mxu0 %v16103_v14  ;;  %v16117_v17 = vld [vmem:[#allocation83_spill] sm:$0xff] }
 0xb02   : > { %10859 = vrot.lane.b32.xlu1 %v14197_v5, %s16097_s27  ;;  %9507 = vmatprep.subr.bf16.mxu1 %v16104_v44  ;;  %v16118_v14 = vld [vmem:[#allocation107_spill] sm:$0xff] }
 0xb03   : > { %9763 = vmatprep.subr.bf16.mxu0 %v16105_v48  ;;  %10874 = vrot.lane.b32.xlu0 %v14212_v26, %s16097_s27  ;;  %v16120_v44 = vld [vmem:[#allocation111_spill] sm:$0xff]  ;;  %v16121_v48 = vld [vmem:[#allocation110_spill] sm:$0xff] }
 0xb05   : > { %9509 = vmatpush1.bf16.msra.mxu1 %v16106_v22  ;;  %9765 = vmatpush3.bf16.msra.mxu0 %v16107_v45  ;;  %v16122_v22 = vld [vmem:[#allocation115_spill] sm:$0xff]  ;;  %v16123_v45 = vld [vmem:[#allocation116_spill] sm:$0xff] }
 0xb06   : > { %10869 = vrot.lane.b32.xlu1 %v14208_v30, %s16097_s27  ;;  %9511 = vmatprep.subr.bf16.mxu1 %v16108_v39  ;;  %v16124_v39 = vld [vmem:[#allocation119_spill] sm:$0xff] }
 0xb07   : > { %9767 = vmatprep.subr.bf16.mxu0 %v16109_v10  ;;  %10884 = vrot.lane.b32.xlu0 %v14193_v7, %s16110_s23  ;;  %v16125_v10 = vld [vmem:[#allocation118_spill] sm:$0xff] }
 0xb09   : > { %9513 = vmatpush1.bf16.msra.mxu1 %v16111_v35  ;;  %v16126_v35 = vld [vmem:[#allocation122_spill] sm:$0xff] }
 0xb0a   : > { %10879 = vrot.lane.b32.xlu1 %v14203_v53, %s16097_s27  ;;  %9515 = vmatprep.subr.bf16.mxu1 %v16112_v28  ;;  %v6329_v28 = vsel %vm1815_vm11, %v14351_v12, %v14353_v63 }
 0xb0b   : > { %10894 = vrot.lane.b32.xlu0 %v14199_v21, %s16110_s23 }
 0xb0d   : > { %9517 = vmatpush1.bf16.msra.mxu1 %v16113_v49  ;;  %v16127_v49 = vld [vmem:[#allocation124_spill] sm:$0xff] }
 0xb0e   : > { %10889 = vrot.lane.b32.xlu1 %v14197_v5, %s16110_s23  ;;  %9519 = vmatprep.subr.bf16.mxu1 %v16114_v2  ;;  %v6330_v2 = vsel %vm16128_vm15, %v6329_v28, %v14360_v55  ;;  %v6381_v55 = vld [vmem:[%s15367_s7 + $0x8] sm:$0xff]  ;;  %vm6303_vm15 = vcmask 162816  }
 0xb0f   : > { %10904 = vrot.lane.b32.xlu0 %v14212_v26, %s16110_s23 }
 0xb11   : > { %9521 = vmatpush1.bf16.msra.mxu1 %v16115_v50  ;;  %v6331_v50 = vsel %vm4589_vm0, %v6330_v2, %v14343_v54  ;;  %v6382_v2 = vld [vmem:[%s15367_s7 + $0x10] sm:$0xff] }
 0xb12   : > { %10899 = vrot.lane.b32.xlu1 %v14208_v30, %s16110_s23  ;;  %9523 = vmatprep.subr.bf16.mxu1 %v16116_v0  ;;  %v7934_v0 = vmul.f32 -1.442695, %v14341_v19 }
 0xb13   : > { %6343 = vrot.lane.b32.xlu0 %v14353_v63, %s11187_s30  ;;  %s16129_s30 = smov 109  }
 0xb14   : > { %11038 = vpow2.f32 %v7934_v0  ;;  %v16131_v0 = vld [vmem:[#allocation125_spill] sm:$0xff] }
 0xb15   : > { %9525 = vmatpush1.bf16.msra.mxu1 %v16117_v17 }
 0xb16   : > { %10909 = vrot.lane.b32.xlu1 %v14203_v53, %s16110_s23  ;;  %9527 = vmatprep.subr.bf16.mxu1 %v16118_v14 }
 0xb17   : > { %10914 = vrot.lane.b32.xlu0 %v14197_v5, %s16119_s26 }
 0xb19   : > { %9529 = vmatpush1.bf16.msra.mxu1 %v16120_v44 }
 0xb1a   : > { %10919 = vrot.lane.b32.xlu1 %v14199_v21, %s16119_s26  ;;  %9531 = vmatprep.subr.bf16.mxu1 %v16121_v48 }
 0xb1b   : > { %10924 = vrot.lane.b32.xlu0 %v14193_v7, %s16119_s26 }
 0xb1d   : > { %9533 = vmatpush1.bf16.msra.mxu1 %v16122_v22 }
 0xb1e   : > { %10929 = vrot.lane.b32.xlu1 %v14212_v26, %s16119_s26  ;;  %9535 = vmatprep.subr.bf16.mxu1 %v16123_v45  ;;  %v11039_v19 = vpop.eup %11038 }
 0xb1f   : > { %10934 = vrot.lane.b32.xlu0 %v14203_v53, %s16119_s26  ;;  %v6267_v63 = vadd.f32 1.0, %v11039_v19 }
 0xb21   : > { %9537 = vmatpush1.bf16.msra.mxu1 %v16124_v39  ;;  %11040 = vrcp.f32 %v6267_v63  ;;  %v7739_v39 = vld [vmem:[%s15369_s9] sm:$0xf]  ;;  %v16132_v63 = vld [vmem:[#allocation123_spill] sm:$0xff] }
 0xb22   : > { %10939 = vrot.lane.b32.xlu1 %v14208_v30, %s16119_s26  ;;  %9539 = vmatprep.subr.bf16.mxu1 %v16125_v10 }
 0xb23   : > { %10944 = vrot.lane.b32.xlu0 %v14197_v5, %s15808_s15 }
 0xb25   : > { %9541 = vmatpush1.bf16.msra.mxu1 %v16126_v35 }
 0xb26   : > { %10949 = vrot.lane.b32.xlu1 %v14199_v21, %s15808_s15  ;;  %9543 = vmatprep.subr.bf16.mxu1 %v16127_v49 }
 0xb27   : > { %10954 = vrot.lane.b32.xlu0 %v14193_v7, %s15808_s15 }
 0xb2a   : > { %6349 = vrot.lane.b32.xlu1 %v6331_v50, %s11188_s21 }
 0xb2b   : > { %10964 = vrot.lane.b32.xlu0 %v14203_v53, %s15808_s15 }
 0xb2e   : > { %10959 = vrot.lane.b32.xlu1 %v14212_v26, %s15808_s15 }
 0xb2f   : > { %10974 = vrot.lane.b32.xlu0 %v14197_v5, %s15722_s16 }
 0xb32   : > { %10969 = vrot.lane.b32.xlu1 %v14208_v30, %s15808_s15  ;;  %s11190_s15 = smov 4  }
 0xb33   : > { %10984 = vrot.lane.b32.xlu0 %v14193_v7, %s15722_s16 }
 0xb36   : > { %10979 = vrot.lane.b32.xlu1 %v14199_v21, %s15722_s16 }
 0xb37   : > { %10994 = vrot.lane.b32.xlu0 %v14203_v53, %s15722_s16 }
 0xb3a   : > { %10989 = vrot.lane.b32.xlu1 %v14212_v26, %s15722_s16 }
 0xb3b   : > { %11004 = vrot.lane.b32.xlu0 %v14197_v5, %s16129_s30  ;;  %v14541_v5 = vpop.eup %11040 }
 0xb3c   : > { %16130 = vst [vmem:[#allocation22_spill] sm:$0xff] %v14541_v5 }
 0xb3e   : > { %10999 = vrot.lane.b32.xlu1 %v14208_v30, %s15722_s16  ;;  %s11189_s16 = smov 8  }
 0xb3f   : > { %11014 = vrot.lane.b32.xlu0 %v14193_v7, %s16129_s30 }
 0xb42   : > { %11009 = vrot.lane.b32.xlu1 %v14199_v21, %s16129_s30 }
 0xb43   : > { %11024 = vrot.lane.b32.xlu0 %v14203_v53, %s16129_s30 }
 0xb46   : > { %11019 = vrot.lane.b32.xlu1 %v14212_v26, %s16129_s30 }
 0xb47   : > { %6351 = vrot.lane.b32.xlu0 %v14351_v12, %s11188_s21  ;;  %s9986_s21 = smul.u32 192, %s11283_s25  ;;  %s11196_s25 = smov [#allocation10]  }
 0xb48   : > { %s11102_s23 = sshll.u32 %s11196_s25, 4  ;;  %s11103_s23 = int_to_ptr.vmem [resolvable:$false] %s11102_s23 }
 0xb49   : > { %s15318_s18 = scalar_lea.hbm %s15372_s12, %s9986_s21  ;;  %s11104_s26 = scalar_lea.vmem %s11103_s23, 384 }
 0xb4a   : > { %11029 = vrot.lane.b32.xlu1 %v14208_v30, %s16129_s30 }
 0xb4b   : > { %6276 = vrot.lane.b32.xlu0 %v14541_v5, %s11189_s16 }
 0xb4e   : > { %6273 = vrot.lane.b32.xlu1 %v14541_v5, %s11190_s15 }
 0xb4f   : > { %6282 = vrot.lane.b32.xlu0 %v14541_v5, %s11191_s29  ;;  %s432_s29 = sand.u32 1, %s11160_s22  }
 0xb50   : > { %v6336_v7 = vpop.permute.xlu0 %6335  ;;  %s7755_s27 = scalar_lea.sflag [#allocation7], %s432_s29 }
 0xb52   : > { %6279 = vrot.lane.b32.xlu1 %v14541_v5, %s11192_s28  ;;  %s9984_s28 = smul.u32 12, %s432_s29 }
 0xb53   : > { %6288 = vrot.lane.b32.xlu0 %v14541_v5, %s11193_s20  ;;  %v6334_v21 = vpop.permute.xlu1 %6333 }
 0xb54   : > { %v6356_v53 = vsel %vm1815_vm11, %v14343_v54, %v6334_v21  ;;  %v6396_v30 = vrot.slane %v6334_v21, %v16074_v9  ;;  %v14553_v26 = vpop.permute.xlu0 %10794  ;;  %v6337_v48 = vsel %vm1815_vm11, %v6334_v21, %v6336_v7  ;;  %v16133_v7 = vld [vmem:[#allocation126_spill] sm:$0xff]  ;;  %s434_s20 = scalar_lea.vmem [#allocation10], %s9984_s28 }
 0xb55   : > { %v6392_v12 = vrot.slane %v6356_v53, %v16074_v9  ;;  %s7769_s19 = sshll.u32 %s434_s20, 4  ;;  %s15320_s19 = int_to_ptr.vmem [resolvable:$true] %s7769_s19 }
 0xb56   : > { %6285 = vrot.lane.b32.xlu1 %v14541_v5, %s11194_s14  ;;  %p11105_p4 = scmp.lt.s32.totalorder %s15320_s19, %s11103_s23 }
 0xb57   : > { %v6425_v17 = vcombine.low %v6392_v12, %v6396_v30  ;;  %6294 = vrot.lane.b32.xlu0 %v14541_v5, %s11186_s24  ;;  %v14562_v14 = vpop.permute.xlu1 %10799  ;;  %v16134_v30 = vld [vmem:[#allocation127_spill] sm:$0xff]  ;;  %s11098_s24 = scalar_lea.vmem %s15320_s19, 192 }
 0xb58   : > { %v14564_v54 = vpop.permute.xlu0 %10804  ;;  %p11099_p12 = scmp.ne.s32.totalorder %s15320_s19, %s11098_s24  ;;  %p11106_p7 = scmp.lt.s32.totalorder %s11104_s26, %s11098_s24 }
 0xb59   : > { %v6433_v44 = vmul.f32 %v6425_v17, %v6381_v55  ;;  %v16135_v17 = vld [vmem:[#allocation128_spill] sm:$0xff] }
 0xb5a   : > { %6291 = vrot.lane.b32.xlu1 %v14541_v5, %s11195_s17  ;;  %v16152_v5 = vld [vmem:[#allocation43_spill] sm:$0xff]  ;;  %p11100_p2 = pnand %p11099_p12, %p16256_p1  ;;  %p11107_p8 = por %p11106_p7, %p11105_p4 }
 0xb5b   : > { %v6874_v45 = vcombine.high %v6433_v44, %v6433_v44 }
 0xb5c   : > { %v14568_v22 = vpop.permute.xlu1 %6341  ;;  %p11101_p3 = pneg %p11100_p2 }
 0xb5d   : > { %v6357_v10 = vsel %vm16075_vm12, %v6337_v48, %v14568_v22  ;;  %v6404_v35 = vrot.slane %v14568_v22, %v16074_v9  ;;  %v14577_v28 = vpop.permute.xlu0 %10814  ;;  %7016 = vmatprep.mubr.f32.mxu1 %v6874_v45  ;;  %7370 = vmatprep.mubr.f32.mxu0 %v6874_v45 }
 0xb5e   : > { %v6400_v49 = vrot.slane %v6357_v10, %v16074_v9  ;;  %7742 = vperm.xlu1 %10072, %v7739_v39   ;;  %7017 = vmatmul.mubr.f32.vlgmr.msra.gmra.mrb[68].mxu1 %v6433_v44  ;;  %p11108_p11 = pnand %p11107_p8, %p11101_p3 }
 0xb5f   : > { %9545 = vmatpush1.bf16.msra.mxu1 %v16131_v0  ;;  %7371 = vmatmul.mubr.f32.vlgmr.msra.gmra.mrb[44].mxu0 %v6433_v44  ;;  %v16137_v0 = vld [vmem:[#allocation129_spill] sm:$0xff] }
 0xb60   : > { %v6426_v50 = vcombine.low %v6400_v49, %v6404_v35  ;;  %v14584_v19 = vpop.permute.xlu1 %10809  ;;  %9769 = vmatpush3.bf16.msra.mxu0 %v16132_v63  ;;  %9547 = vmatprep.subr.bf16.mxu1 %v16133_v7  ;;  %v16136_v35 = vld [vmem:[#allocation130_spill] sm:$0xff] }
 0xb61   : > { %v10825_v21 = vpop.permute.xlu0 %10824  ;;  %9771 = vmatprep.subr.bf16.mxu0 %v13780_v15 }
 0xb62   : > { %v14588_v53 = vmul.f32 %v6426_v50, %v6382_v2  ;;  %v10827_v48 = vunpack.i.h.bf16 %v10825_v21  ;;  %v10826_v45 = vunpack.i.l.bf16 %v10825_v21 }
 0xb63   : > { %9549 = vmatpush1.bf16.msra.mxu1 %v16134_v30  ;;  %v16138_v30 = vld [vmem:[#allocation131_spill] sm:$0xff] }
 0xb64   : > { %v14592_v12 = vpop.permute.xlu1 %10819  ;;  %v6875_v55 = vcombine.high %v14588_v53, %v14588_v53  ;;  %9773 = vmatpush3.bf16.msra.mxu0 %v13101_v41  ;;  %9551 = vmatprep.subr.bf16.mxu1 %v16135_v17 }
 0xb65   : > { %v14598_v44 = vpop.permute.xlu0 %10834  ;;  %9775 = vmatprep.subr.bf16.mxu0 %v13790_v52  ;;  %v16140_v52 = vld [vmem:[#allocation32_spill] sm:$0xff] }
 0xb66   : > { %v15648_v39 = vunpack.i.h.bf16 %v14598_v44  ;;  %v10836_v15 = vunpack.i.l.bf16 %v14598_v44  ;;  %7087 = vmatprep.mubr.f32.mxu1 %v6875_v55  ;;  %7440 = vmatprep.mubr.f32.mxu0 %v6875_v55 }
 0xb67   : > { %9553 = vmatpush1.bf16.msra.mxu1 %v16136_v35 }
 0xb68   : > { %v14605_v10 = vsel %vm467_vm2, %v10836_v15, %v10826_v45  ;;  %v14611_v41 = vsel %vm467_vm2, %v15648_v39, %v10827_v48  ;;  %v10830_v49 = vpop.permute.xlu1 %10829  ;;  %9777 = vmatpush3.bf16.msra.mxu0 %v13133_v13  ;;  %9555 = vmatprep.subr.bf16.mxu1 %v16137_v0  ;;  %v16141_v13 = vld [vmem:[#allocation38_spill] sm:$0xff] }
 0xb69   : > { %v10832_v2 = vunpack.i.h.bf16 %v10830_v49  ;;  %v10831_v50 = vunpack.i.l.bf16 %v10830_v49  ;;  %v14618_v63 = vpop.permute.xlu0 %10844  ;;  %9779 = vmatprep.subr.bf16.mxu0 %v13822_v58 }
 0xb6a   : > { %v10847_v17 = vunpack.i.h.bf16 %v14618_v63  ;;  %v10846_v35 = vunpack.i.l.bf16 %v14618_v63 }
 0xb6b   : > { %v14623_v7 = vsel %vm467_vm2, %v10826_v45, %v10831_v50  ;;  %v14627_v21 = vsel %vm467_vm2, %v10827_v48, %v10832_v2  ;;  %9557 = vmatpush1.bf16.msra.mxu1 %v16138_v30  ;;  %v16139_v45 = vld [vmem:[#allocation29_spill] sm:$0xff] }
 0xb6c   : > { %v10840_v55 = vpop.permute.xlu1 %10839  ;;  %9781 = vmatpush3.bf16.msra.mxu0 %v13161_v27  ;;  %9559 = vmatprep.subr.bf16.mxu1 %v16139_v45 }
 0xb6d   : > { %v10842_v58 = vunpack.i.h.bf16 %v10840_v55  ;;  %v10841_v49 = vunpack.i.l.bf16 %v10840_v55  ;;  %v10855_v0 = vpop.permute.xlu0 %10854  ;;  %9783 = vmatprep.subr.bf16.mxu0 %v13381_v18 }
 0xb6e   : > { %v10857_v39 = vunpack.i.h.bf16 %v10855_v0  ;;  %v10856_v4 = vunpack.i.l.bf16 %v10855_v0 }
 0xb6f   : > { %v14639_v48 = vsel %vm467_vm2, %v10841_v49, %v10846_v35  ;;  %v14643_v30 = vsel %vm467_vm2, %v10842_v58, %v10847_v17  ;;  %9561 = vmatpush1.bf16.msra.mxu1 %v16140_v52 }
 0xb70   : > { %v10850_v63 = vpop.permute.xlu1 %10849  ;;  %9785 = vmatpush3.bf16.msra.mxu0 %v13859_v38  ;;  %9563 = vmatprep.subr.bf16.mxu1 %v16141_v13 }
 0xb71   : > { %v10852_v55 = vunpack.i.h.bf16 %v10850_v63  ;;  %v10851_v45 = vunpack.i.l.bf16 %v10850_v63  ;;  %v14650_v18 = vpop.permute.xlu0 %10864  ;;  %9787 = vmatprep.subr.bf16.mxu0 %v13385_v47  ;;  %v16146_v63 = vld [vmem:[#allocation74_spill] sm:$0xff] }
 0xb72   : > { %v15655_v24 = vunpack.i.h.bf16 %v14650_v18  ;;  %v10866_v52 = vunpack.i.l.bf16 %v14650_v18 }
 0xb73   : > { %v14657_v36 = vsel %vm467_vm2, %v10851_v45, %v10841_v49  ;;  %v14661_v38 = vsel %vm467_vm2, %v10852_v55, %v10842_v58  ;;  %9565 = vmatpush1.bf16.msra.mxu1 %v16146_v63 }
 0xb74   : > { %16142 = vst [vmem:[#allocation20_spill] sm:$0xff] %v14657_v36  ;;  %16143 = vst [vmem:[#allocation21_spill] sm:$0xff] %v14661_v38  ;;  %v14667_v0 = vsel %vm489_vm4, %v10866_v52, %v10856_v4  ;;  %v14673_v47 = vsel %vm489_vm4, %v15655_v24, %v10857_v39  ;;  %v10860_v49 = vpop.permute.xlu1 %10859  ;;  %9789 = vmatpush3.bf16.msra.mxu0 %v13904_v46  ;;  %9567 = vmatprep.subr.bf16.mxu1 %v16147_v33  ;;  %v16150_v24 = vld [vmem:[#allocation75_spill] sm:$0xff] }
 0xb75   : > { %16144 = vst [vmem:[#allocation80_spill] sm:$0xff] %v14667_v0  ;;  %16145 = vst [vmem:[#allocation34_spill] sm:$0xff] %v14673_v47  ;;  %v10862_v27 = vunpack.i.h.bf16 %v10860_v49  ;;  %v10861_v13 = vunpack.i.l.bf16 %v10860_v49  ;;  %v10875_v36 = vpop.permute.xlu0 %10874  ;;  %9791 = vmatprep.subr.bf16.mxu0 %v13906_v31  ;;  %v5607_v46 = vsel %vm467_vm2, %v10831_v50, %v10836_v15  ;;  %v16151_v49 = vunpack.i.h.bf16 %v14598_v44  ;;  %v16154_v31 = vld [vmem:[#allocation36_spill] sm:$0xff] }
 0xb76   : > { %v10876_v0 = vunpack.i.l.bf16 %v10875_v36 }
 0xb77   : > { %v14683_v38 = vsel %vm489_vm4, %v10856_v4, %v10861_v13  ;;  %v14687_v63 = vsel %vm489_vm4, %v10857_v39, %v10862_v27  ;;  %9569 = vmatpush1.bf16.msra.mxu1 %v16150_v24  ;;  %v5608_v33 = vsel %vm467_vm2, %v10832_v2, %v16151_v49  ;;  %v10877_v4 = vunpack.i.h.bf16 %v10875_v36  ;;  %v16153_v2 = vld [vmem:[#allocation76_spill] sm:$0xff] }
 0xb78   : > { %16148 = vst [vmem:[#allocation35_spill] sm:$0xff] %v14683_v38  ;;  %16149 = vst [vmem:[#allocation37_spill] sm:$0xff] %v14687_v63  ;;  %v10870_v58 = vpop.permute.xlu1 %10869  ;;  %9793 = vmatpush3.bf16.msra.mxu0 %v13917_v60  ;;  %9571 = vmatprep.subr.bf16.mxu1 %v16152_v5  ;;  %v9798_v50 = vpack.c.bf16 %v5608_v33, %v5607_v46  ;;  %v5609_v60 = vsel %vm467_vm2, %v10846_v35, %v10851_v45  ;;  %v16158_v45 = vld [vmem:[#allocation78_spill] sm:$0xff] }
 0xb79   : > { %v10872_v39 = vunpack.i.h.bf16 %v10870_v58  ;;  %v10871_v47 = vunpack.i.l.bf16 %v10870_v58  ;;  %v10885_v24 = vpop.permute.xlu0 %10884  ;;  %9795 = vmatprep.subr.bf16.mxu0 %v13942_v1  ;;  %v5610_v5 = vsel %vm467_vm2, %v10847_v17, %v10852_v55  ;;  %vm16189_vm2 = vcmp.lt.s32.totalorder %v11467_v11, 109  ;;  %v6371_v11 = vld [vmem:[#allocation2 + $0x30] sm:$0xff] }
 0xb7a   : > { %v10887_v63 = vunpack.i.h.bf16 %v10885_v24  ;;  %v9802_v55 = vpack.c.bf16 %v5610_v5, %v5609_v60  ;;  %vm16193_vm14 = vmmov %vm16189_vm2 }
 0xb7b   : > { %v14703_v44 = vsel %vm489_vm4, %v10871_v47, %v10876_v0  ;;  %v14707_v15 = vsel %vm489_vm4, %v10872_v39, %v10877_v4  ;;  %9573 = vmatpush1.bf16.msra.mxu1 %v16153_v2  ;;  %v10886_v2 = vunpack.i.l.bf16 %v10885_v24  ;;  %v16155_v24 = vld [vmem:[#allocation77_spill] sm:$0xff] }
 0xb7c   : > { %v10880_v36 = vpop.permute.xlu1 %10879  ;;  %9797 = vmatpush3.bf16.msra.mxu0 %v13948_v43  ;;  %9575 = vmatprep.subr.bf16.mxu1 %v16154_v31  ;;  %v5655_v43 = vsel %vm489_vm4, %v10861_v13, %v10866_v52 }
 0xb7d   : > { %v10882_v58 = vunpack.i.h.bf16 %v10880_v36  ;;  %v10881_v49 = vunpack.i.l.bf16 %v10880_v36  ;;  %v10895_v38 = vpop.permute.xlu0 %10894  ;;  %9799 = vmatprep.subr.bf16.mxu0 %v9798_v50  ;;  %v16156_v50 = vunpack.i.h.bf16 %v14650_v18 }
 0xb7e   : > { %v10897_v46 = vunpack.i.h.bf16 %v10895_v38  ;;  %v10896_v33 = vunpack.i.l.bf16 %v10895_v38 }
 0xb7f   : > { %v14720_v35 = vsel %vm489_vm4, %v10881_v49, %v10871_v47  ;;  %v14724_v17 = vsel %vm489_vm4, %v10882_v58, %v10872_v39  ;;  %7441 = vmatmul.mubr.f32.vlgmr.msra.gmra.mrb[46].mxu0 %v14588_v53  ;;  %9577 = vmatpush1.bf16.msra.mxu1 %v13757_v16  ;;  %v5656_v60 = vsel %vm489_vm4, %v10862_v27, %v16156_v50 }
 0xb80   : > { %v14732_v31 = vsel %vm502_vm1, %v10896_v33, %v10886_v2  ;;  %v14736_v38 = vsel %vm502_vm1, %v10897_v46, %v10887_v63  ;;  %v10890_v47 = vpop.permute.xlu1 %10889  ;;  %9801 = vmatpush3.bf16.msra.mxu0 %v13975_v59  ;;  %9579 = vmatprep.subr.bf16.mxu1 %v16155_v24  ;;  %v16157_v59 = vld [vmem:[#allocation49_spill] sm:$0xff]  ;;  %v9806_v39 = vpack.c.bf16 %v5656_v60, %v5655_v43 }
 0xb81   : > { %v10892_v52 = vunpack.i.h.bf16 %v10890_v47  ;;  %v10891_v13 = vunpack.i.l.bf16 %v10890_v47  ;;  %v10905_v36 = vpop.permute.xlu0 %10904  ;;  %9803 = vmatprep.subr.bf16.mxu0 %v9802_v55  ;;  %v5657_v24 = vsel %vm489_vm4, %v10876_v0, %v10881_v49  ;;  %v5658_v18 = vsel %vm489_vm4, %v10877_v4, %v10882_v58  ;;  %v16159_v4 = vld [vmem:[#allocation47_spill] sm:$0xff]  ;;  %vm16192_vm4 = vmmov %vm16189_vm2 }
 0xb82   : > { %v10907_v55 = vunpack.i.h.bf16 %v10905_v36  ;;  %v9810_v49 = vpack.c.bf16 %v5658_v18, %v5657_v24 }
 0xb83   : > { %v14750_v16 = vsel %vm502_vm1, %v10886_v2, %v10891_v13  ;;  %v14754_v5 = vsel %vm502_vm1, %v10887_v63, %v10892_v52  ;;  %9581 = vmatpush1.bf16.msra.mxu1 %v16157_v59  ;;  %v10906_v2 = vunpack.i.l.bf16 %v10905_v36  ;;  %v5704_v27 = vsel %vm502_vm1, %v10892_v52, %v10897_v46  ;;  %v16162_v46 = vld [vmem:[#allocation132_spill] sm:$0xff] }
 0xb84   : > { %v10900_v47 = vpop.permute.xlu1 %10899  ;;  %9805 = vmatpush3.bf16.msra.mxu0 %v14004_v20  ;;  %9583 = vmatprep.subr.bf16.mxu1 %v16158_v45 }
 0xb85   : > { %v10902_v50 = vunpack.i.h.bf16 %v10900_v47  ;;  %v10901_v63 = vunpack.i.l.bf16 %v10900_v47  ;;  %v6344_v59 = vpop.permute.xlu0 %6343  ;;  %9807 = vmatprep.subr.bf16.mxu0 %v9806_v39  ;;  %v16160_v39 = vld [vmem:[#allocation79_spill] sm:$0xff]  ;;  %v5703_v47 = vsel %vm502_vm1, %v10891_v13, %v10896_v33 }
 0xb86   : > { %v9814_v33 = vpack.c.bf16 %v5704_v27, %v5703_v47  ;;  %v15666_v27 = vunpack.i.l.bf16 %v14564_v54 }
 0xb87   : > { %v14767_v43 = vsel %vm502_vm1, %v10901_v63, %v10906_v2  ;;  %v14771_v0 = vsel %vm502_vm1, %v10902_v50, %v10907_v55  ;;  %9585 = vmatpush1.bf16.msra.mxu1 %v16159_v4  ;;  %v16161_v4 = vld [vmem:[#allocation54_spill] sm:$0xff] }
 0xb88   : > { %v10910_v58 = vpop.permute.xlu1 %10909  ;;  %9809 = vmatpush3.bf16.msra.mxu0 %v14042_v62  ;;  %9587 = vmatprep.subr.bf16.mxu1 %v16160_v39  ;;  %v15665_v39 = vunpack.i.h.bf16 %v14564_v54 }
 0xb89   : > { %v10912_v45 = vunpack.i.h.bf16 %v10910_v58  ;;  %v10911_v36 = vunpack.i.l.bf16 %v10910_v58  ;;  %v14778_v60 = vpop.permute.xlu0 %10914  ;;  %9811 = vmatprep.subr.bf16.mxu0 %v9810_v49  ;;  %v15678_v49 = vunpack.i.l.bf16 %v14562_v14 }
 0xb8b   : > { %v14786_v24 = vsel %vm502_vm1, %v10911_v36, %v10901_v63  ;;  %v14790_v62 = vsel %vm502_vm1, %v10912_v45, %v10902_v50  ;;  %9589 = vmatpush1.bf16.msra.mxu1 %v16161_v4  ;;  %v5705_v13 = vsel %vm502_vm1, %v10906_v2, %v10911_v36  ;;  %v5706_v50 = vsel %vm502_vm1, %v10907_v55, %v10912_v45  ;;  %v16164_v2 = vld [vmem:[#allocation135_spill] sm:$0xff]  ;;  %vm16169_vm1 = vmmov %vm16075_vm12 }
 0xb8c   : > { %v14795_v58 = vpop.permute.xlu1 %10919  ;;  %9813 = vmatpush3.bf16.msra.mxu0 %v14063_v23  ;;  %9591 = vmatprep.subr.bf16.mxu1 %v16162_v46  ;;  %v15675_v63 = vunpack.i.h.bf16 %v14562_v14  ;;  %v16163_v23 = vld [vmem:[#allocation133_spill] sm:$0xff]  ;;  %v9818_v4 = vpack.c.bf16 %v5706_v50, %v5705_v13  ;;  %v5559_v45 = vsel %vm454_vm3, %v15678_v49, %v15666_v27  ;;  %v16165_v46 = vld [vmem:[#allocation134_spill] sm:$0xff]  ;;  %v16166_v50 = vld [vmem:[#allocation136_spill] sm:$0xff]  ;;  %v6345_v1 = vsel %vm16169_vm1, %v14568_v22, %v6344_v59 }
 0xb8d   : > { %v14799_v52 = vpop.permute.xlu0 %10924  ;;  %9815 = vmatprep.subr.bf16.mxu0 %v9814_v33  ;;  %v15661_v33 = vunpack.i.l.bf16 %v14592_v12  ;;  %v15668_v22 = vunpack.i.h.bf16 %v14795_v58  ;;  %v6383_v59 = vld [vmem:[%s15367_s7 + $0x18] sm:$0xff]  ;;  %v16173_v27 = vld [vmem:[#allocation142_spill] sm:$0xff]  ;;  %vm6307_vm12 = vcmask 228352   ;;  %vm16248_vm1 = vmmov %vm16189_vm2 }
 0xb8e   : > { %v5560_v55 = vsel %vm454_vm3, %v15675_v63, %v15665_v39 }
 0xb8f   : > { %9593 = vmatpush1.bf16.msra.mxu1 %v16163_v23  ;;  %v9824_v18 = vpack.c.bf16 %v5560_v55, %v5559_v45 }
 0xb90   : > { %v14810_v47 = vpop.permute.xlu1 %10929  ;;  %9817 = vmatpush3.bf16.msra.mxu0 %v14109_v61  ;;  %9595 = vmatprep.subr.bf16.mxu1 %v16164_v2  ;;  %v15663_v61 = vunpack.i.h.bf16 %v14592_v12  ;;  %v15662_v2 = vunpack.i.l.bf16 %v14577_v28 }
 0xb91   : > { %v14814_v36 = vpop.permute.xlu0 %10934  ;;  %9819 = vmatprep.subr.bf16.mxu0 %v9818_v4  ;;  %v15664_v4 = vunpack.i.h.bf16 %v14577_v28 }
 0xb92   : > { %v15671_v39 = vunpack.i.l.bf16 %v14814_v36 }
 0xb93   : > { %9597 = vmatpush1.bf16.msra.mxu1 %v16165_v46  ;;  %v5561_v46 = vsel %vm454_vm3, %v15662_v2, %v15661_v33  ;;  %v16170_v33 = vld [vmem:[#allocation138_spill] sm:$0xff] }
 0xb94   : > { %v14831_v13 = vpop.permute.xlu1 %10939  ;;  %9821 = vmatpush3.bf16.msra.mxu0 %v14133_v34  ;;  %9599 = vmatprep.subr.bf16.mxu1 %v16166_v50  ;;  %v5562_v34 = vsel %vm454_vm3, %v15664_v4, %v15663_v61  ;;  %v16167_v50 = vld [vmem:[#allocation137_spill] sm:$0xff] }
 0xb95   : > { %v14835_v23 = vpop.permute.xlu0 %10944  ;;  %9823 = vmatprep.subr.bf16.mxu0 %v14181_v32  ;;  %v16168_v32 = vld [vmem:[#allocation139_spill] sm:$0xff]  ;;  %v9828_v45 = vpack.c.bf16 %v5562_v34, %v5561_v46  ;;  %v15669_v46 = vunpack.i.l.bf16 %v14799_v52  ;;  %v15673_v4 = vunpack.i.h.bf16 %v14831_v13 }
 0xb97   : > { %9601 = vmatpush1.bf16.msra.mxu1 %v16167_v50 }
 0xb98   : > { %v14853_v20 = vpop.permute.xlu1 %10949  ;;  %9825 = vmatpush3.bf16.msra.mxu0 %v9824_v18  ;;  %9603 = vmatprep.subr.bf16.mxu1 %v16168_v32 }
 0xb99   : > { %v14856_v55 = vpop.permute.xlu0 %10954  ;;  %9827 = vmatprep.subr.bf16.mxu0 %v14195_v57  ;;  %v16171_v57 = vld [vmem:[#allocation140_spill] sm:$0xff] }
 0xb9b   : > { %9605 = vmatpush1.bf16.msra.mxu1 %v16170_v33  ;;  %v15667_v33 = vunpack.i.h.bf16 %v14799_v52 }
 0xb9c   : > { %v14862_v2 = vpop.permute.xlu1 %6349  ;;  %9829 = vmatpush3.bf16.msra.mxu0 %v9828_v45  ;;  %9607 = vmatprep.subr.bf16.mxu1 %v16171_v57 }
 0xb9d   : > { %v6358_v50 = vsel %vm4589_vm0, %v6345_v1, %v14862_v2  ;;  %v6412_v18 = vrot.slane %v14862_v2, %v16074_v9  ;;  %v14868_v32 = vpop.permute.xlu0 %10964  ;;  %9830 = vmatprep.subr.bf16.mxu0 %v16034_v25  ;;  %v15672_v1 = vunpack.i.l.bf16 %v14795_v58 }
 0xb9e   : > { %v6408_v61 = vrot.slane %v6358_v50, %v16074_v9  ;;  %7088 = vmatmul.mubr.f32.vlgmr.msra.gmra.mrb[68].mxu1 %v14588_v53  ;;  %v15670_v53 = vunpack.i.l.bf16 %v14831_v13  ;;  %v15683_v49 = vunpack.i.l.bf16 %v14868_v32 }
 0xb9f   : > { %9609 = vmatpush1.bf16.msra.mxu1 %v14006_v3  ;;  %v5771_v3 = vsel %vm527_vm5, %v15672_v1, %v15669_v46 }
 0xba0   : > { %v6427_v34 = vcombine.low %v6408_v61, %v6412_v18  ;;  %v14882_v45 = vpop.permute.xlu1 %10959  ;;  %9611 = vmatprep.subr.bf16.mxu1 %v14039_v37  ;;  %v5772_v61 = vsel %vm527_vm5, %v15668_v22, %v15667_v33  ;;  %v16172_v37 = vld [vmem:[#allocation141_spill] sm:$0xff] }
 0xba1   : > { %v14885_v50 = vpop.permute.xlu0 %10974  ;;  %v9831_v22 = vpack.c.bf16 %v5772_v61, %v5771_v3  ;;  %v15680_v61 = vunpack.i.l.bf16 %v14853_v20  ;;  %v15676_v3 = vunpack.i.h.bf16 %v14856_v55 }
 0xba2   : > { %v14887_v57 = vmul.f32 %v6427_v34, %v6383_v59  ;;  %v15674_v34 = vunpack.i.h.bf16 %v14814_v36 }
 0xba3   : > { %9613 = vmatpush1.bf16.msra.mxu1 %v16172_v37  ;;  %v5773_v37 = vsel %vm527_vm5, %v15671_v39, %v15670_v53  ;;  %v16174_v39 = vld [vmem:[#allocation143_spill] sm:$0xff] }
 0xba4   : > { %v14904_v18 = vpop.permute.xlu1 %10969  ;;  %v6876_v59 = vcombine.high %v14887_v57, %v14887_v57  ;;  %9615 = vmatprep.subr.bf16.mxu1 %v16173_v27  ;;  %v5774_v46 = vsel %vm527_vm5, %v15674_v34, %v15673_v4  ;;  %v15677_v27 = vunpack.i.h.bf16 %v14853_v20  ;;  %v10796_v4 = vunpack.i.l.bf16 %v14553_v26 }
 0xba5   : > { %v14911_v33 = vpop.permute.xlu0 %10984  ;;  %v9834_v34 = vpack.c.bf16 %v5774_v46, %v5773_v37  ;;  %v15682_v63 = vunpack.i.l.bf16 %v14904_v18  ;;  %v10797_v37 = vunpack.i.h.bf16 %v14553_v26  ;;  %v10811_v26 = vunpack.i.l.bf16 %v14584_v19 }
 0xba6   : > { %7158 = vmatprep.mubr.f32.mxu1 %v6876_v59  ;;  %7510 = vmatprep.mubr.f32.mxu0 %v6876_v59  ;;  %v15679_v59 = vunpack.i.l.bf16 %v14856_v55 }
 0xba7   : > { %7511 = vmatmul.mubr.f32.vlgmr.msra.gmra.mrb[48].mxu0 %v14887_v57  ;;  %9617 = vmatpush1.bf16.msra.mxu1 %v14065_v51  ;;  %v5820_v51 = vsel %vm549_vm7, %v15677_v27, %v15676_v3  ;;  %v5821_v27 = vsel %vm549_vm7, %v15683_v49, %v15682_v63  ;;  %v16181_v63 = vunpack.i.l.bf16 %v14564_v54 }
 0xba8   : > { %v14931_v53 = vpop.permute.xlu1 %10979  ;;  %9832 = vmatpush3.bf16.msra.mxu0 %v9831_v22  ;;  %9619 = vmatprep.subr.bf16.mxu1 %v16174_v39  ;;  %v5819_v39 = vsel %vm549_vm7, %v15680_v61, %v15679_v59  ;;  %v16177_v59 = vunpack.i.l.bf16 %v14562_v14  ;;  %v10812_v61 = vunpack.i.h.bf16 %v14584_v19 }
 0xba9   : > { %v14934_v1 = vpop.permute.xlu0 %10994  ;;  %9833 = vmatprep.subr.bf16.mxu0 %v16034_v25  ;;  %8630 = vmatprep.mubr.msk.f32.mxu0 %vm11185_vm10, %v15769_v6  ;;  %v5567_v49 = vsel %vm454_vm3, %v16181_v63, %v10796_v4  ;;  %v16184_v63 = vunpack.i.h.bf16 %v14577_v28 }
 0xbab   : > { %9621 = vmatpush1.bf16.msra.mxu1 %v14081_v42  ;;  %v5563_v42 = vsel %vm454_vm3, %v10796_v4, %v16177_v59  ;;  %v16180_v59 = vunpack.i.h.bf16 %v14868_v32  ;;  %v16185_v4 = vunpack.i.l.bf16 %v14931_v53 }
 0xbac   : > { %v14955_v46 = vpop.permute.xlu1 %10989  ;;  %9835 = vmatpush3.bf16.msra.mxu0 %v9834_v34  ;;  %9623 = vmatprep.subr.bf16.mxu1 %v14101_v8  ;;  %v9837_v34 = vpack.c.bf16 %v5820_v51, %v5819_v39  ;;  %v16178_v8 = vunpack.i.h.bf16 %v14562_v14  ;;  %v15685_v51 = vunpack.i.h.bf16 %v14911_v33  ;;  %v16183_v14 = vunpack.i.l.bf16 %v14577_v28 }
 0xbad   : > { %16175 = vst [vmem:[#allocation39_spill] sm:$0xff] %v14955_v46  ;;  %v14959_v3 = vpop.permute.xlu0 %11004  ;;  %9836 = vmatprep.subr.bf16.mxu0 %v16034_v25 }
 0xbae   : > { %16176 = vst [vmem:[#allocation40_spill] sm:$0xff] %v14959_v3  ;;  %v5564_v22 = vsel %vm454_vm3, %v10797_v37, %v16178_v8  ;;  %v16179_v3 = vunpack.i.h.bf16 %v14904_v18  ;;  %v5565_v46 = vsel %vm454_vm3, %v10811_v26, %v16183_v14 }
 0xbaf   : > { %9625 = vmatpush1.bf16.msra.mxu1 %v14106_v56  ;;  %v15686_v56 = vunpack.i.l.bf16 %v14911_v33 }
 0xbb0   : > { %v5822_v19 = vsel %vm549_vm7, %v16180_v59, %v16179_v3  ;;  %v14989_v39 = vpop.permute.xlu1 %10999  ;;  %9838 = vmatpush3.bf16.msra.mxu0 %v9837_v34  ;;  %9627 = vmatprep.subr.bf16.mxu1 %v14119_v29  ;;  %v16182_v3 = vunpack.i.h.bf16 %v14564_v54  ;;  %v9630_v29 = vpack.c.bf16 %v5564_v22, %v5563_v42  ;;  %v5566_v54 = vsel %vm454_vm3, %v10812_v61, %v16184_v63 }
 0xbb1   : > { %v14992_v8 = vpop.permute.xlu0 %11014  ;;  %9839 = vmatprep.subr.bf16.mxu0 %v16034_v25  ;;  %v9840_v34 = vpack.c.bf16 %v5822_v19, %v5821_v27  ;;  %v16186_v27 = vunpack.i.h.bf16 %v14931_v53  ;;  %v15689_v42 = vunpack.i.h.bf16 %v14989_v39  ;;  %v11001_v28 = vunpack.i.l.bf16 %v14989_v39 }
 0xbb2   : > { %v5568_v59 = vsel %vm454_vm3, %v16182_v3, %v10797_v37  ;;  %v5867_v37 = vsel %vm562_vm6, %v16185_v4, %v15686_v56  ;;  %v10997_v63 = vunpack.i.h.bf16 %v14934_v1  ;;  %v10996_v4 = vunpack.i.l.bf16 %v14934_v1 }
 0xbb3   : > { %v5868_v22 = vsel %vm562_vm6, %v16186_v27, %v15685_v51  ;;  %9629 = vmatpush1.bf16.msra.mxu1 %v14131_v40  ;;  %v9632_v3 = vpack.c.bf16 %v5568_v59, %v5567_v49  ;;  %v16187_v27 = vunpack.i.l.bf16 %v14592_v12  ;;  %v16188_v40 = vunpack.i.h.bf16 %v14592_v12 }
 0xbb4   : > { %v15028_v19 = vpop.permute.xlu1 %11009  ;;  %9841 = vmatpush3.bf16.msra.mxu0 %v9840_v34  ;;  %9631 = vmatprep.subr.bf16.mxu1 %v9630_v29  ;;  %v9843_v29 = vpack.c.bf16 %v5868_v22, %v5867_v37  ;;  %v9634_v56 = vpack.c.bf16 %v5566_v54, %v5565_v46  ;;  %v5869_v49 = vsel %vm562_vm6, %v10996_v4, %v11001_v28  ;;  %v15690_v37 = vunpack.i.h.bf16 %v14992_v8 }
 0xbb5   : > { %v15030_v14 = vpop.permute.xlu0 %11024  ;;  %9842 = vmatprep.subr.bf16.mxu0 %v16034_v25  ;;  %v5569_v51 = vsel %vm454_vm3, %v16187_v27, %v10811_v26  ;;  %v5570_v34 = vsel %vm454_vm3, %v16188_v40, %v10812_v61  ;;  %v5870_v26 = vsel %vm562_vm6, %v10997_v63, %v15689_v42  ;;  %v15691_v12 = vunpack.i.h.bf16 %v15028_v19  ;;  %vm16190_vm3 = vmmov %vm16189_vm2 }
 0xbb6   : > { %v15688_v61 = vunpack.i.l.bf16 %v15028_v19  ;;  %v9636_v54 = vpack.c.bf16 %v5570_v34, %v5569_v51  ;;  %v15687_v22 = vunpack.i.l.bf16 %v14992_v8  ;;  %v9846_v27 = vpack.c.bf16 %v5870_v26, %v5869_v49 }
 0xbb7   : > { %9633 = vmatpush1.bf16.msra.mxu1 %v9632_v3  ;;  %v5916_v51 = vsel %vm16190_vm3, %v15691_v12, %v15690_v37  ;;  %v11026_v49 = vunpack.i.l.bf16 %v15030_v14  ;;  %vm16252_vm3 = vmmov %vm16248_vm1 }
 0xbb8   : > { %v15057_v46 = vpop.permute.xlu1 %11019  ;;  %9844 = vmatpush3.bf16.msra.mxu0 %v9843_v29  ;;  %9635 = vmatprep.subr.bf16.mxu1 %v9634_v56  ;;  %v5915_v3 = vsel %vm16189_vm2, %v15688_v61, %v15687_v22  ;;  %v15694_v56 = vunpack.i.h.bf16 %v15030_v14  ;;  %v16191_v61 = vpack.c.bf16 %v14627_v21, %v14623_v7  ;;  %v16194_v21 = vpack.c.bf16 %v14611_v41, %v14605_v10  ;;  %v6384_v10 = vld [vmem:[%s15367_s7 + $0x20] sm:$0xf] }
 0xbb9   : > { %v6352_v59 = vpop.permute.xlu0 %6351  ;;  %9845 = vmatprep.subr.bf16.mxu0 %v16034_v25  ;;  %v16197_v41 = vld [vmem:[#allocation21_spill] sm:$0xff] }
 0xbba   : > { %v6353_v12 = vsel %vm4589_vm0, %v14862_v2, %v6352_v59  ;;  %v16195_v59 = vpack.c.bf16 %v14643_v30, %v14639_v48  ;;  %vm6299_vm0 = vcmask 97280  }
 0xbbb   : > { %v8318_v40 = vpop.f32.mrb[42].mxu0  ;;  %9637 = vmatpush1.bf16.msra.mxu1 %v9636_v54  ;;  %v9849_v54 = vpack.c.bf16 %v5916_v51, %v5915_v3 }
 0xbbc   : > { %v15075_v34 = vpop.permute.xlu1 %11029  ;;  %v8319_v29 = vpop.f32.mrb[43].mxu0  ;;  %9847 = vmatpush3.bf16.msra.mxu0 %v9846_v27  ;;  %9639 = vmatprep.subr.bf16.mxu1 %v16191_v61 }
 0xbbd   : > { %v15692_v26 = vunpack.i.h.bf16 %v15075_v34  ;;  %v15693_v22 = vunpack.i.l.bf16 %v15075_v34  ;;  %v15083_v42 = vadd.f32 %v8319_v29, %v8318_v40  ;;  %v6277_v37 = vpop.permute.xlu0 %6276  ;;  %9848 = vmatprep.subr.bf16.mxu0 %v16034_v25  ;;  %v16196_v40 = vld [vmem:[#allocation22_spill] sm:$0xff]  ;;  %v6416_v29 = vrot.slane %v6353_v12, %v16074_v9 }
 0xbbf   : > { %v5917_v27 = vsel %vm16192_vm4, %v11026_v49, %v15693_v22  ;;  %v5918_v7 = vsel %vm16193_vm14, %v15694_v56, %v15692_v26  ;;  %9641 = vmatpush1.bf16.msra.mxu1 %v16194_v21  ;;  %v6370_v21 = vld [vmem:[#allocation2 + $0x28] sm:$0xff]  ;;  %v15120_v26 = vmul.f32 %v6416_v29, %v6384_v10  ;;  %v6376_v56 = vld [vmem:[#allocation2 + $0x58] sm:$0xff]  ;;  %v6373_v10 = vld [vmem:[#allocation2 + $0x40] sm:$0xff] }
 0xbc0   : > { %v6274_v61 = vpop.permute.xlu1 %6273  ;;  %v9852_v2 = vpack.c.bf16 %v5918_v7, %v5917_v27  ;;  %9850 = vmatpush3.bf16.msra.mxu0 %v9849_v54  ;;  %9643 = vmatprep.subr.bf16.mxu1 %v16195_v59  ;;  %v16198_v27 = vld [vmem:[#allocation20_spill] sm:$0xff]  ;;  %v16201_v59 = vld [vmem:[#allocation35_spill] sm:$0xff]  ;;  %vm16254_vm4 = vmmov %vm16248_vm1 }
 0xbc1   : > { %v6297_v3 = vsel %vm6105_vm13, %v16196_v40, %v6274_v61  ;;  %v6283_v51 = vpop.permute.xlu0 %6282  ;;  %9851 = vmatprep.subr.bf16.mxu0 %v16034_v25  ;;  %v16199_v54 = vpack.c.bf16 %v16197_v41, %v16198_v27  ;;  %v6367_v7 = vld [vmem:[#allocation2 + $0x10] sm:$0xff]  ;;  %v16200_v61 = vld [vmem:[#allocation37_spill] sm:$0xff]  ;;  %vm6301_vm13 = vcmask 130048  }
 0xbc2   : > { %v6298_v48 = vsel %vm6185_vm8, %v6297_v3, %v6277_v37  ;;  %v16202_v12 = vpack.c.bf16 %v16200_v61, %v16201_v59  ;;  %v9863_v41 = vpack.c.bf16 %v6370_v21, %v6367_v7  ;;  %v16203_v37 = vld [vmem:[#allocation34_spill] sm:$0xff]  ;;  %v16204_v3 = vld [vmem:[#allocation80_spill] sm:$0xff]  ;;  %vm6305_vm8 = vcmask 195584  }
 0xbc3   : > { %9645 = vmatpush1.bf16.msra.mxu1 %v16199_v54  ;;  %v16205_v27 = vpack.c.bf16 %v16203_v37, %v16204_v3  ;;  %v16217_v37 = vld [vmem:[#allocation144_spill] sm:$0xff] }
 0xbc4   : > { %v6280_v30 = vpop.permute.xlu1 %6279  ;;  %9853 = vmatpush3.bf16.msra.mxu0 %v9852_v2  ;;  %9647 = vmatprep.subr.bf16.mxu1 %v16202_v12  ;;  %v10932_v12 = vunpack.i.h.bf16 %v14810_v47 }
 0xbc5   : > { %v6300_v40 = vsel %vm6299_vm0, %v6298_v48, %v6280_v30  ;;  %9862 = vmatprep.subr.bf16.mxu0 %v16034_v25  ;;  %v6289_v22 = vpop.permute.xlu0 %6288  ;;  %v16206_v48 = vpack.c.bf16 %v14707_v15, %v14703_v44  ;;  %v9866_v30 = vpack.c.bf16 %v6376_v56, %v6373_v10  ;;  %v16208_v44 = vpack.c.bf16 %v14754_v5, %v14750_v16 }
 0xbc6   : > { %v6302_v2 = vsel %vm6301_vm13, %v6300_v40, %v6283_v51  ;;  %v16207_v51 = vpack.c.bf16 %v14724_v17, %v14720_v35  ;;  %v16209_v35 = vpack.c.bf16 %v14736_v38, %v14732_v31  ;;  %v6379_v17 = vld [vmem:[#allocation2 + $0x70] sm:$0xf]  ;;  %v16210_v16 = vpack.c.bf16 %v14771_v0, %v14767_v43 }
 0xbc7   : > { %8631 = vmatmul.mubr.f32.vlgmr.msra.gmra.mrb[50].mxu0 %v15120_v26  ;;  %9649 = vmatpush1.bf16.msra.mxu1 %v16205_v27  ;;  %v16212_v5 = vpack.c.bf16 %v14790_v62, %v14786_v24  ;;  %v10917_v31 = vunpack.i.h.bf16 %v14778_v60  ;;  %v10916_v38 = vunpack.i.l.bf16 %v14778_v60  ;;  %v10931_v40 = vunpack.i.l.bf16 %v14810_v47 }
 0xbc8   : > { %v6286_v54 = vpop.permute.xlu1 %6285  ;;  %9864 = vmatpush3.bf16.msra.mxu0 %v9863_v41  ;;  %9651 = vmatprep.subr.bf16.mxu1 %v16206_v48  ;;  %v16214_v41 = vld [vmem:[#allocation25_spill] sm:$0xff]  ;;  %v16215_v43 = vunpack.i.l.bf16 %v14795_v58  ;;  %v16216_v24 = vunpack.i.h.bf16 %v14795_v58  ;;  %v16218_v60 = vunpack.i.l.bf16 %v14799_v52  ;;  %v16219_v47 = vunpack.i.h.bf16 %v14799_v52 }
 0xbc9   : > { %v6304_v29 = vsel %vm6303_vm15, %v6302_v2, %v6286_v54  ;;  %9865 = vmatprep.subr.bf16.mxu0 %v16034_v25  ;;  %8643 = vmatprep.mubr.msk.f32.mxu0 %vm11185_vm10, %v15769_v6  ;;  %v6295_v61 = vpop.permute.xlu0 %6294  ;;  %v6359_v25 = vld [vmem:[#allocation8] sm:$0xf]  ;;  %vm16211_vm10 = vcmask 293888   ;;  %v16220_v54 = vld [vmem:[#allocation23_spill] sm:$0xff]  ;;  %v16221_v58 = vunpack.i.l.bf16 %v14814_v36  ;;  %v10947_v52 = vunpack.i.h.bf16 %v14835_v23 }
 0xbca   : > { %v6306_v7 = vsel %vm6305_vm8, %v6304_v29, %v6289_v22  ;;  %v5763_v0 = vsel %vm527_vm5, %v10916_v38, %v16215_v43  ;;  %v5764_v62 = vsel %vm527_vm5, %v10917_v31, %v16216_v24  ;;  %v5767_v3 = vsel %vm527_vm5, %v16218_v60, %v10916_v38  ;;  %vm16255_vm14 = vmmov %vm16211_vm10 }
 0xbcb   : > { %9653 = vmatpush1.bf16.msra.mxu1 %v16207_v51  ;;  %v5768_v27 = vsel %vm527_vm5, %v16219_v47, %v10917_v31  ;;  %v9670_v2 = vpack.c.bf16 %v5764_v62, %v5763_v0  ;;  %v5765_v48 = vsel %vm527_vm5, %v10931_v40, %v16221_v58  ;;  %v16222_v29 = vunpack.i.h.bf16 %v14814_v36  ;;  %v16233_v62 = vld [vmem:[#allocation39_spill] sm:$0xff] }
 0xbcc   : > { %v6292_v21 = vpop.permute.xlu1 %6291  ;;  %9867 = vmatpush3.bf16.msra.mxu0 %v9866_v30  ;;  %9655 = vmatprep.subr.bf16.mxu1 %v16208_v44  ;;  %v9672_v30 = vpack.c.bf16 %v5768_v27, %v5767_v3  ;;  %v10946_v51 = vunpack.i.l.bf16 %v14835_v23  ;;  %v16225_v23 = vunpack.i.l.bf16 %v14853_v20  ;;  %v16230_v31 = vunpack.i.h.bf16 %v14868_v32 }
 0xbcd   : > { %v6308_v15 = vsel %vm6307_vm12, %v6306_v7, %v6292_v21  ;;  %8641 = vmatprep.subr.mxu0 %v15769_v6  ;;  %v5766_v10 = vsel %vm527_vm5, %v10932_v12, %v16222_v29  ;;  %v16223_v7 = vunpack.i.l.bf16 %v14831_v13  ;;  %v16232_v0 = vunpack.i.h.bf16 %v14904_v18 }
 0xbce   : > { %v6309_v59 = vsel %vm1815_vm11, %v6308_v15, %v6295_v61  ;;  %v16224_v61 = vunpack.i.h.bf16 %v14831_v13  ;;  %v9674_v36 = vpack.c.bf16 %v5766_v10, %v5765_v48  ;;  %v10962_v15 = vunpack.i.h.bf16 %v14882_v45  ;;  %vm16247_vm11 = vmmov %vm16189_vm2 }
 0xbcf   : > { %v6363_v56 = vrot.slane %v6309_v59, %v16074_v9  ;;  %9657 = vmatpush1.bf16.msra.mxu1 %v16209_v35  ;;  %v16213_v9 = vld [vmem:[#allocation97_spill] sm:$0xff]  ;;  %v5769_v21 = vsel %vm527_vm5, %v16223_v7, %v10931_v40  ;;  %v5811_v59 = vsel %vm549_vm7, %v10946_v51, %v16225_v23  ;;  %v16227_v35 = vunpack.i.l.bf16 %v14856_v55 }
 0xbd0   : > { %8642 = vmatpush3.msk.msra.mxu0 %vm671_vm9, %v6379_v17  ;;  %9659 = vmatprep.subr.bf16.mxu1 %v16210_v16  ;;  %v5770_v44 = vsel %vm527_vm5, %v16224_v61, %v10932_v12  ;;  %v16228_v17 = vunpack.i.h.bf16 %v14856_v55  ;;  %v5814_v38 = vsel %vm549_vm7, %v10962_v15, %v16230_v31  ;;  %v10977_v40 = vunpack.i.h.bf16 %v14885_v50  ;;  %vm16241_vm5 = vmmov %vm16189_vm2  ;;  %v6365_v31 = vld [vmem:[#allocation2] sm:$0xff] }
 0xbd1   : > { %v15145_v22 = vmul.f32 %v6363_v56, %v6359_v25  ;;  %v10961_v25 = vunpack.i.l.bf16 %v14882_v45  ;;  %v16226_v56 = vunpack.i.h.bf16 %v14853_v20  ;;  %v5815_v45 = vsel %vm549_vm7, %v16227_v35, %v10946_v51 }
 0xbd2   : > { %v5816_v16 = vsel %vm549_vm7, %v16228_v17, %v10947_v52  ;;  %v16229_v20 = vunpack.i.l.bf16 %v14868_v32  ;;  %v10976_v55 = vunpack.i.l.bf16 %v14885_v50  ;;  %v5818_v24 = vsel %vm549_vm7, %v16232_v0, %v10962_v15  ;;  %v6378_v0 = vld [vmem:[#allocation2 + $0x68] sm:$0xf] }
 0xbd3   : > { %8644 = vmatmul.mubr.msk.f32.vlgmr.msra.gmra.mrb[52].mxu0 %vm16211_vm10, %v15145_v22  ;;  %9661 = vmatpush1.bf16.msra.mxu1 %v16212_v5  ;;  %v5812_v13 = vsel %vm549_vm7, %v10947_v52, %v16226_v56  ;;  %v9680_v12 = vpack.c.bf16 %v5816_v16, %v5815_v45  ;;  %v10991_v60 = vunpack.i.l.bf16 %v16233_v62  ;;  %v16234_v3 = vunpack.i.l.bf16 %v14931_v53  ;;  %v16238_v52 = vld [vmem:[#allocation40_spill] sm:$0xff] }
 0xbd4   : > { %9663 = vmatprep.subr.bf16.mxu1 %v16213_v9  ;;  %v9678_v5 = vpack.c.bf16 %v5812_v13, %v5811_v59  ;;  %v5813_v9 = vsel %vm549_vm7, %v10961_v25, %v16229_v20  ;;  %v16235_v47 = vunpack.i.h.bf16 %v14931_v53  ;;  %v16237_v58 = vunpack.i.h.bf16 %v14911_v33  ;;  %v6366_v20 = vld [vmem:[#allocation2 + $0x8] sm:$0xff] }
 0xbd5   : > { %v9682_v32 = vpack.c.bf16 %v5814_v38, %v5813_v9  ;;  %v5859_v50 = vsel %vm562_vm6, %v10976_v55, %v16234_v3  ;;  %v5861_v53 = vsel %vm562_vm6, %v10991_v60, %v10996_v4  ;;  %v11007_v51 = vunpack.i.h.bf16 %v16238_v52  ;;  %v6368_v38 = vld [vmem:[#allocation2 + $0x18] sm:$0xff] }
 0xbd6   : > { %v5860_v27 = vsel %vm562_vm6, %v10977_v40, %v16235_v47  ;;  %v5864_v48 = vsel %vm562_vm6, %v16237_v58, %v10977_v40  ;;  %v5865_v7 = vsel %vm562_vm6, %v11001_v28, %v10991_v60  ;;  %v11022_v61 = vunpack.i.h.bf16 %v15057_v46 }
 0xbd7   : > { %9665 = vmatpush1.bf16.msra.mxu1 %v16214_v41  ;;  %v16231_v41 = vunpack.i.l.bf16 %v14904_v18  ;;  %v9686_v29 = vpack.c.bf16 %v5860_v27, %v5859_v50  ;;  %v16242_v15 = vunpack.i.h.bf16 %v15028_v19  ;;  %v16249_v13 = vunpack.i.h.bf16 %v15030_v14 }
 0xbd8   : > { %9667 = vmatprep.subr.bf16.mxu1 %v16217_v37  ;;  %v10992_v37 = vunpack.i.h.bf16 %v16233_v62  ;;  %v16251_v45 = vunpack.i.l.bf16 %v15075_v34  ;;  %v16253_v17 = vunpack.i.h.bf16 %v15075_v34  ;;  %v9856_v40 = vpack.c.bf16 %v6368_v38, %v6365_v31 }
 0xbd9   : > { %v5817_v43 = vsel %vm549_vm7, %v16231_v41, %v10961_v25  ;;  %vm16243_vm7 = vmmov %vm16189_vm2  ;;  %v16244_v25 = vunpack.i.l.bf16 %v14992_v8  ;;  %v6374_v41 = vld [vmem:[#allocation2 + $0x48] sm:$0xff] }
 0xbda   : > { %v9684_v18 = vpack.c.bf16 %v5818_v24, %v5817_v43  ;;  %v5862_v10 = vsel %vm562_vm6, %v10992_v37, %v10997_v63  ;;  %v11021_v63 = vunpack.i.l.bf16 %v15057_v46  ;;  %v5908_v28 = vsel %vm16243_vm7, %v11007_v51, %v16242_v15  ;;  %v6377_v24 = vld [vmem:[#allocation2 + $0x60] sm:$0xf] }
 0xbdb   : > { %9669 = vmatpush1.bf16.msra.mxu1 %v16220_v54  ;;  %v9690_v1 = vpack.c.bf16 %v5862_v10, %v5861_v53  ;;  %v16246_v46 = vunpack.i.h.bf16 %v14992_v8  ;;  %v5914_v16 = vsel %vm16254_vm4, %v16253_v17, %v11022_v61  ;;  %v9860_v43 = vpack.c.bf16 %v6374_v41, %v6371_v11 }
 0xbdc   : > { %9671 = vmatprep.subr.bf16.mxu1 %v9670_v2  ;;  %v16236_v2 = vunpack.i.l.bf16 %v14911_v33  ;;  %v11006_v33 = vunpack.i.l.bf16 %v16238_v52  ;;  %v5913_v8 = vsel %vm16252_vm3, %v16251_v45, %v11021_v63 }
 0xbdd   : > { %v5912_v59 = vsel %vm16247_vm11, %v16246_v46, %v11007_v51  ;;  %v9700_v14 = vpack.c.bf16 %v5914_v16, %v5913_v8  ;;  %v7743_v10 = vpop.permute.xlu1 %7742 }
 0xbde   : > { %7159 = vmatmul.mubr.f32.vlgmr.msra.gmra.mrb[68].mxu1 %v14887_v57  ;;  %v9676_v57 = vpack.c.bf16 %v5770_v44, %v5769_v21  ;;  %v5863_v54 = vsel %vm562_vm6, %v16236_v2, %v10976_v55  ;;  %v16239_v21 = vunpack.i.h.bf16 %v14989_v39  ;;  %v16240_v44 = vunpack.i.l.bf16 %v15028_v19  ;;  %v6372_v55 = vld [vmem:[#allocation2 + $0x38] sm:$0xff] }
 0xbdf   : > { %9673 = vmatpush1.bf16.msra.mxu1 %v9672_v30  ;;  %7229 = vmatprep.mubr.f32.mxu1 %v15769_v6  ;;  %v9688_v30 = vpack.c.bf16 %v5864_v48, %v5863_v54  ;;  %v5909_v19 = vsel %vm16248_vm1, %v11021_v63, %v11026_v49  ;;  %v6369_v49 = vld [vmem:[#allocation2 + $0x20] sm:$0xff] }
 0xbe0   : > { %9675 = vmatprep.subr.bf16.mxu1 %v9674_v36  ;;  %v5866_v4 = vsel %vm562_vm6, %v16239_v21, %v10992_v37  ;;  %v5907_v36 = vsel %vm16241_vm5, %v11006_v33, %v16240_v44  ;;  %vm16245_vm6 = vmmov %vm16189_vm2  ;;  %v9854_v9 = vpack.c.bf16 %v6369_v49, %v6366_v20 }
 0xbe1   : > { %v9692_v39 = vpack.c.bf16 %v5866_v4, %v5865_v7  ;;  %v5911_v23 = vsel %vm16245_vm6, %v16244_v25, %v11006_v33  ;;  %v9694_v56 = vpack.c.bf16 %v5908_v28, %v5907_v36  ;;  %vm16250_vm2 = vmmov %vm16248_vm1 }
 0xbe2   : > { %v9696_v35 = vpack.c.bf16 %v5912_v59, %v5911_v23 }
 0xbe3   : > { %9677 = vmatpush1.bf16.msra.mxu1 %v9676_v57  ;;  %v5910_v57 = vsel %vm16250_vm2, %v11022_v61, %v16249_v13 }
 0xbe4   : > { %9679 = vmatprep.subr.bf16.mxu1 %v9678_v5  ;;  %v9698_v5 = vpack.c.bf16 %v5910_v57, %v5909_v19 }
 0xbe7   : > { %9681 = vmatpush1.bf16.msra.mxu1 %v9680_v12  ;;  %v6375_v12 = vld [vmem:[#allocation2 + $0x50] sm:$0xff] }
 0xbe8   : > { %9683 = vmatprep.subr.bf16.mxu1 %v9682_v32  ;;  %v9858_v34 = vpack.c.bf16 %v6375_v12, %v6372_v55 }
 0xbeb   : > { %9685 = vmatpush1.bf16.msra.mxu1 %v9684_v18 }
 0xbec   : > { %9687 = vmatprep.subr.bf16.mxu1 %v9686_v29 }
 0xbef   : > { %9689 = vmatpush1.bf16.msra.mxu1 %v9688_v30 }
 0xbf0   : > { %9691 = vmatprep.subr.bf16.mxu1 %v9690_v1 }
 0xbf3   : > { %9693 = vmatpush1.bf16.msra.mxu1 %v9692_v39 }
 0xbf4   : > { %9695 = vmatprep.subr.bf16.mxu1 %v9694_v56 }
 0xbf7   : > { %9697 = vmatpush1.bf16.msra.mxu1 %v9696_v35 }
 0xbf8   : > { %9699 = vmatprep.subr.bf16.mxu1 %v9698_v5 }
 0xbfb   : > { %9701 = vmatpush1.bf16.msra.mxu1 %v9700_v14 }
 0xbfc   : > { %9855 = vmatprep.subr.bf16.mxu1 %v9854_v9 }
 0xbfe   : > { %7230 = vmatmul.mubr.f32.vlgmr.msra.gmra.mrb[68].mxu1 %v15120_v26 }
 0xbff   : > { %9857 = vmatpush1.bf16.msra.mxu1 %v9856_v40  ;;  %7662 = vmatprep.mubr.f32.mxu1 %v15769_v6 }
 0xc00   : > { %9859 = vmatprep.subr.bf16.mxu1 %v9858_v34 }
 0xc03   : > { %9861 = vmatpush1.bf16.msra.mxu1 %v9860_v43 }
 0xc04   : > { %7935 = vmatprep.subr.msk.mxu1 %vm671_vm9, %v6378_v0 }
 0xc07   : > { %7936 = vmatpush1.msk.msra.mxu1 %vm671_vm9, %v6377_v24 }
 0xc08   : > { %7937 = vmatmul.mubr.msk.f32.vlgmr.msra.gmra.mrb[68].mxu1 %vm16255_vm14, %v15145_v22 }
 0xc32   : > { %v8353_v26 = vpop.f32.mrb[44].mxu0 }
 0xc33   : > { %v8354_v32 = vpop.f32.mrb[45].mxu0 }
 0xc34   : > { %v8355_v62 = vadd.f32 %v8354_v32, %v8353_v26 }
 0xc36   : > { %v7373_v37 = vadd.f32 %v8355_v62, %v15083_v42 }
 0xc52   : > { %v8388_v6 = vpop.f32.mrb[46].mxu0 }
 0xc53   : > { %v8389_v60 = vpop.f32.mrb[47].mxu0 }
 0xc54   : > { %v8390_v3 = vadd.f32 %v8389_v60, %v8388_v6 }
 0xc56   : > { %v7443_v50 = vadd.f32 %v8390_v3, %v7373_v37 }
 0xc7a   : > { %v8423_v47 = vpop.f32.mrb[48].mxu0 }
 0xc7b   : > { %v8424_v27 = vpop.f32.mrb[49].mxu0 }
 0xc7c   : > { %v8425_v18 = vadd.f32 %v8424_v27, %v8423_v47 }
 0xc7e   : > { %v7513_v2 = vadd.f32 %v8425_v18, %v7443_v50 }
 0xc9a   : > { %v7582_v54 = vpop.f32.mrb[50].mxu0 }
 0xc9b   : > { %v7583_v58 = vadd.f32 %v7582_v54, %v7513_v2  ;;  %v8632_v48 = vpop.f32.mrb[51].mxu0 }
 0xca6   : > { %v7735_v22 = vpop.f32.mrb[52].mxu0 }
 0xca7   : > { %v7736_v29 = vadd.f32 %v7735_v22, %v7583_v58  ;;  %v8645_v53 = vpop.f32.mrb[53].mxu0 }
 0xca9   : > { %v7747_v30 = vadd.f32 %v7743_v10, %v7736_v29 }
 0xcab   : > { %7753 = vst [vmem:[%s434_s20 + $0x8] sm:$0xf] %v7747_v30 }
 0xcdb   : > { %v7664_v42 = vpop.f32.mrb[68].mxu1 }
 0xcdc   : > { %v7745_v52 = vadd.f32 %v7743_v10, %v7664_v42  ;;  %v7666_v51 = vpop.f32.mrb[69].mxu1 }
 0xcdd   : > { %v7746_v33 = vadd.f32 %v7743_v10, %v7666_v51 }
 0xcdf   : > { %v7750_v7 = vcombine.low %v7745_v52, %v7746_v33 }
 0xce1   : > { %7752 = vst [vmem:[%s434_s20] sm:$0xff] %v7750_v7 }
 0xce2   : > { %11111 = shalt.err (!%p11108_p11)
}
 0xce3   : > { %s11112_s30 = scalar_lea.hbm %s15318_s18, 192  ;;  %s11116_s29 = scalar_lea.hbm %s15372_s12, 384 }
 0xce4   : > { %p11113_p13 = scmp.ne.s32.totalorder %s15318_s18, %s11112_s30  ;;  %p11117_p6 = scmp.lt.u32.totalorder %s15318_s18, %s15372_s12 }
 0xce5   : > { %p11118_p9 = scmp.lt.u32.totalorder %s11116_s29, %s11112_s30  ;;  %p11120_p12 = scmp.lt.u32.totalorder %s11112_s30, %s15318_s18 }
 0xce6   : > { %p11114_p5 = pnand %p11113_p13, %p16256_p1 }
 0xce7   : > { %p11119_p10 = por %p11118_p9, %p11117_p6 }
 0xce8   : > { %p11115_p0 = pneg %p11114_p5 }
 0xce9   : > { %p11121_p2 = por %p11120_p12, %p11119_p10 }
 0xceb   : > { %p11122_p3 = pnand %p11121_p2, %p11115_p0 }
 0xced   : > { %11125 = shalt.err (!%p11122_p3)
}
 0xcee   : > { %9995 = dma.vmem_to_hbm [thread:$0]  (%p16256_p1), %s15320_s19, 192, %s15318_s18, %s7755_s27  }
 0xcef PF: > { %s16257_s21 = sld [smem:[#allocation16_spill]]  ;;  %s16258_s14 = sld [smem:[#allocation14_spill]] }
 0xcf0   : > { %s16259_s17 = sld [smem:[#allocation19_spill]] }
 0xcf5   : > { %p10012_p4 = scmp.ge.s32.totalorder %s16257_s21, 2  ;;  %s7781_s24 = sand.u32 1, %s16258_s14  }
 0xcf6   : > { %p16260_p7 = scmp.ne.s32.totalorder %s16259_s17, 0  ;;  %s7782_s25 = scalar_lea.sflag [#allocation7], %s7781_s24 }
 0xcf8   : > { %p10005_p8 = pnand %p10012_p4, %p16260_p7 }
 0xcfa   : > { %11151 = dma.done.wait (!%p10005_p8), %s7782_s25, 192  }
 0xcfb   : > { %11153 = vsyncadd (!%p10005_p8), %s7782_s25, 4294967104  ;;  %s16261_s24 = sld [smem:[#allocation17_spill]]  ;;  %s16262_s23 = sld [smem:[#allocation15_spill]] }
 0xcfc   : > { %s16263_s26 = sld [smem:[#allocation18_spill]]  ;;  %s16264_s21 = smov %s11160_s22 }
 0xd01   : > { %p24_p11 = scmp.ge.s32.totalorder %s16261_s24, 4   ;;  %s16265_s22 = smov %s16262_s23 }
 0xd02   : > { %s16266_s23 = smov %s16263_s26 }
 0xd03   :  { %26 = sbr.rel (!%p24_p11) target bundleno = 5 (0x5), region = 115 }
 0xd0a   :  { %7787 = vsyncpa [#allocation6], 1 }
 0xd0b   :  { %7789 = vsyncpa [#allocation6 + $0x1], 1 }
 0xd0c   :  { %7790 = vsyncpa [#allocation9], 1 }
 0xd0d   :  { %7791 = vsyncpa [#allocation7], 1 }
 0xd0e   :  { %7793 = vsyncpa [#allocation7 + $0x1], 1 }

</bundles_post_ra>
